<compile_context>
chip_gen: v7x
topology: tpu7x:2x2x1
jax: 0.10.0
libtpu: 0.0.40
codegen_flags: <defaults>
</compile_context>

<pallas_src>
import functools

import numpy as np

import jax
import jax.numpy as jnp
from jax.experimental import pallas as pl
from jax.experimental.pallas import tpu as pltpu


# ----------------------------------------------------------------------------
# Fused whole-network kernel (one batch tile of B images per grid step).
#
# Activation layout everywhere: (rows = spatial h, sublanes = batch, lanes =
# packed (w, channel)).  kh taps are contiguous row slices (free), kw taps are
# baked into the banded weight matrices, pooling is halves-max on lanes +
# outer-dim max on row pairs.
# ----------------------------------------------------------------------------
def _fused_net_kernel(a1_ref, w1_ref, b1_ref, w2_ref, b2_ref, w3_ref, b3_ref,
                      wf1_ref, bf1_ref, wf2_ref, bf2_ref, o_ref,
                      pad1_ref, pad2_ref):
    B = a1_ref.shape[1]

    # ---- conv1: ONE dot (kh folded into K in glue, kw folded into banded W1)
    a1 = a1_ref[...].reshape(32 * B, 512)                       # rows = (h, b)
    c1 = jnp.dot(a1, w1_ref[...], preferred_element_type=jnp.float32)
    c1 = c1 + b1_ref[...]                                       # (32B, 1024) f32

    # ---- pool1: w-pool = aligned halves max (even cols in lanes [:512],
    #      odd cols in [512:]); h-pool = outer-dim max over row pairs.
    p1 = jnp.maximum(c1[:, :512], c1[:, 512:])                  # (32B, 512)
    p1 = p1.reshape(16, 2, B, 512)
    p1 = jnp.maximum(p1[:, 0], p1[:, 1]).astype(jnp.bfloat16)   # (16, B, 512)

    # h-padded conv2 input lives in VMEM scratch (rows 0,1,18,19 are zero).
    z2 = jnp.zeros((2, B, 512), jnp.bfloat16)
    pad1_ref[0:2] = z2
    pad1_ref[2:18] = p1
    pad1_ref[18:20] = z2

    # ---- conv2: 5 kh-tap dots, kw folded into banded W2 (K = 512 lane-dense)
    acc = None
    for kh in range(5):
        lhs = pad1_ref[kh:kh + 16].reshape(16 * B, 512)
        d = jnp.dot(lhs, w2_ref[kh], preferred_element_type=jnp.float32)
        acc = d if acc is None else acc + d
    c2 = acc + b2_ref[...]                                      # (16B, 512) f32

    p2 = jnp.maximum(c2[:, :256], c2[:, 256:])                  # (16B, 256)
    p2 = p2.reshape(8, 2, B, 256)
    p2 = jnp.maximum(p2[:, 0], p2[:, 1]).astype(jnp.bfloat16)   # (8, B, 256)

    z3 = jnp.zeros((2, B, 256), jnp.bfloat16)
    pad2_ref[0:2] = z3
    pad2_ref[2:10] = p2
    pad2_ref[10:12] = z3

    # ---- conv3: 5 kh-tap dots (K = 256 lane-dense)
    acc = None
    for kh in range(5):
        lhs = pad2_ref[kh:kh + 8].reshape(8 * B, 256)
        d = jnp.dot(lhs, w3_ref[kh], preferred_element_type=jnp.float32)
        acc = d if acc is None else acc + d
    c3 = acc + b3_ref[...]                                      # (8B, 512) f32

    p3 = jnp.maximum(c3[:, :256], c3[:, 256:])                  # (8B, 256)
    p3 = p3.reshape(4, 2, B, 256)
    p3 = jnp.maximum(p3[:, 0], p3[:, 1]).astype(jnp.bfloat16)   # (4, B, 256)

    # ---- fc1 (flatten permutation folded into per-row weights) + fc2
    acc = None
    for h in range(4):
        d = jnp.dot(p3[h], wf1_ref[h], preferred_element_type=jnp.float32)
        acc = d if acc is None else acc + d
    hid = (acc + bf1_ref[...]).astype(jnp.bfloat16)             # (B, 128)
    out = jnp.dot(hid, wf2_ref[...], preferred_element_type=jnp.float32)
    o_ref[...] = out + bf2_ref[...]                             # lane-dense (B,128)


def _fused_net_call(a1, kp, n_tiles, bt):
    npad = n_tiles * bt
    return pl.pallas_call(
        _fused_net_kernel,
        out_shape=jax.ShapeDtypeStruct((npad, 128), jnp.float32),
        grid=(n_tiles,),
        in_specs=[
            pl.BlockSpec((32, bt, 512), lambda i: (0, i, 0)),    # conv1 input tile
            pl.BlockSpec((512, 1024), lambda i: (0, 0)),         # W1 (banded)
            pl.BlockSpec((1, 1024), lambda i: (0, 0)),           # b1
            pl.BlockSpec((5, 512, 512), lambda i: (0, 0, 0)),    # W2 (banded, per kh)
            pl.BlockSpec((1, 512), lambda i: (0, 0)),            # b2
            pl.BlockSpec((5, 256, 512), lambda i: (0, 0, 0)),    # W3 (banded, per kh)
            pl.BlockSpec((1, 512), lambda i: (0, 0)),            # b3
            pl.BlockSpec((4, 256, 128), lambda i: (0, 0, 0)),    # fc1 (per h row)
            pl.BlockSpec((1, 128), lambda i: (0, 0)),            # fc1 bias
            pl.BlockSpec((128, 128), lambda i: (0, 0)),          # fc2
            pl.BlockSpec((1, 128), lambda i: (0, 0)),            # fc2 bias
        ],
        out_specs=pl.BlockSpec((bt, 128), lambda i: (i, 0)),
        scratch_shapes=[
            pltpu.VMEM((20, bt, 512), jnp.bfloat16),              # h-padded conv2 input
            pltpu.VMEM((12, bt, 256), jnp.bfloat16),              # h-padded conv3 input
        ],
        compiler_params=pltpu.CompilerParams(
            dimension_semantics=("parallel",),
            vmem_limit_bytes=32 * 1024 * 1024,
        ),
    )(a1, kp["w1"], kp["b1"], kp["w2"], kp["b2"], kp["w3"], kp["b3"],
      kp["wf1"], kp["bf1"], kp["wf2"], kp["bf2"])


# ----------------------------------------------------------------------------
# Forward pass (matches NeuralNetwork.forward; NCHW input like PyTorch).
# The only JAX glue is the one-time conv1 input prep (transpose, h-pad, fold
# the 5 kh taps into lanes, cast bf16) and slicing the logits off the padded
# lane-dense output.
# ----------------------------------------------------------------------------
@functools.partial(jax.jit, static_argnames=("block_batch",))
def neural_network_forward(x_nchw, kp, *, block_batch=8):
    n = x_nchw.shape[0]
    assert x_nchw.shape[1:] == (3, 32, 32), x_nchw.shape
    bt = block_batch
    n_tiles = -(-n // bt)
    npad = n_tiles * bt

    xt = jnp.transpose(x_nchw, (2, 0, 3, 1)).reshape(32, n, 96)   # (H, N, W*C)
    xt = jnp.pad(xt, ((2, 2), (0, 0), (0, 0)))                    # h pad by 2
    a1 = jnp.concatenate([xt[kh:kh + 32] for kh in range(5)], axis=-1)  # kh -> lanes
    a1 = jnp.pad(a1, ((0, 0), (0, npad - n), (0, 512 - 480)))      # pad batch & K->512
    a1 = a1.astype(jnp.bfloat16)

    out = _fused_net_call(a1, kp, n_tiles, bt)                     # (npad, 128) f32
    return out[:n, :10]


# ----------------------------------------------------------------------------
# Parameters: generated in PyTorch layouts, then converted to banded matmul
# weights (kw taps + 'same' padding + even/odd pool ordering baked in).
# ----------------------------------------------------------------------------
def init_torch_params(key):
    ks = jax.random.split(key, 10)
    s = 0.05
    return {
        "conv1_w": s * jax.random.normal(ks[0], (32, 3, 5, 5), jnp.float32),
        "conv1_b": s * jax.random.normal(ks[1], (32,), jnp.float32),
        "conv2_w": s * jax.random.normal(ks[2], (32, 32, 5, 5), jnp.float32),
        "conv2_b": s * jax.random.normal(ks[3], (32,), jnp.float32),
        "conv3_w": s * jax.random.normal(ks[4], (64, 32, 5, 5), jnp.float32),
        "conv3_b": s * jax.random.normal(ks[5], (64,), jnp.float32),
        "fc1_w": s * jax.random.normal(ks[6], (64, 1024), jnp.float32),
        "fc1_b": s * jax.random.normal(ks[7], (64,), jnp.float32),
        "fc2_w": s * jax.random.normal(ks[8], (10, 64), jnp.float32),
        "fc2_b": s * jax.random.normal(ks[9], (10,), jnp.float32),
    }


def prepare_params(tp):
    c1 = np.asarray(tp["conv1_w"], np.float32)   # (32, 3, 5, 5)
    c2 = np.asarray(tp["conv2_w"], np.float32)   # (32, 32, 5, 5)
    c3 = np.asarray(tp["conv3_w"], np.float32)   # (64, 32, 5, 5)

    # conv1: rows = (kh, w_in, cin) [480 used of 512]; cols = (phase, w_pair, cout).
    w1 = np.zeros((512, 1024), np.float32)
    for kh in range(5):
        for kw in range(5):
            for p in range(2):
                for wo in range(16):
                    wi = 2 * wo + p + kw - 2
                    if 0 <= wi < 32:
                        w1[kh * 96 + wi * 3: kh * 96 + wi * 3 + 3,
                           p * 512 + wo * 32: p * 512 + wo * 32 + 32] = c1[:, :, kh, kw].T

    # conv2: per-kh banded; rows = pooled (w_in, cin); cols = (phase, w_pair, cout).
    w2 = np.zeros((5, 512, 512), np.float32)
    for kh in range(5):
        for kw in range(5):
            for p in range(2):
                for wo in range(8):
                    wi = 2 * wo + p + kw - 2
                    if 0 <= wi < 16:
                        w2[kh, wi * 32: wi * 32 + 32,
                           p * 256 + wo * 32: p * 256 + wo * 32 + 32] = c2[:, :, kh, kw].T

    # conv3: per-kh banded; rows = pooled (w_in, cin); cols = (phase, w_pair, cout).
    w3 = np.zeros((5, 256, 512), np.float32)
    for kh in range(5):
        for kw in range(5):
            for p in range(2):
                for wo in range(4):
                    wi = 2 * wo + p + kw - 2
                    if 0 <= wi < 8:
                        w3[kh, wi * 32: wi * 32 + 32,
                           p * 256 + wo * 64: p * 256 + wo * 64 + 64] = c3[:, :, kh, kw].T

    # fc1: torch flatten order is (c, h, w); our features per h-row are (w, c) lanes.
    f1 = np.asarray(tp["fc1_w"], np.float32)      # (64, 1024)
    wf1 = np.zeros((4, 256, 128), np.float32)
    for h in range(4):
        for w in range(4):
            for c in range(64):
                wf1[h, w * 64 + c, :64] = f1[:, c * 16 + h * 4 + w]

    wf2 = np.zeros((128, 128), np.float32)
    wf2[:64, :10] = np.asarray(tp["fc2_w"], np.float32).T

    def bias_row(b, reps, width):
        r = np.zeros((1, width), np.float32)
        t = np.tile(np.asarray(b, np.float32), reps)
        r[0, : t.shape[0]] = t
        return r

    return {
        "w1": jnp.asarray(w1, jnp.bfloat16),
        "b1": jnp.asarray(bias_row(tp["conv1_b"], 32, 1024)),
        "w2": jnp.asarray(w2, jnp.bfloat16),
        "b2": jnp.asarray(bias_row(tp["conv2_b"], 16, 512)),
        "w3": jnp.asarray(w3, jnp.bfloat16),
        "b3": jnp.asarray(bias_row(tp["conv3_b"], 8, 512)),
        "wf1": jnp.asarray(wf1, jnp.bfloat16),
        "bf1": jnp.asarray(bias_row(tp["fc1_b"], 1, 128)),
        "wf2": jnp.asarray(wf2, jnp.bfloat16),
        "bf2": jnp.asarray(bias_row(tp["fc2_b"], 1, 128)),
    }


# ----------------------------------------------------------------------------
# Pure-JAX f32 reference of the original PyTorch module (for correctness check)
# ----------------------------------------------------------------------------
def reference_forward(x_nchw, tp):
    dn = ("NCHW", "OIHW", "NCHW")
    prec = jax.lax.Precision.HIGHEST

    def conv(x, w, b):
        y = jax.lax.conv_general_dilated(x, w, (1, 1), ((2, 2), (2, 2)),
                                         dimension_numbers=dn, precision=prec)
        return y + b[None, :, None, None]

    def pool(x):
        return jax.lax.reduce_window(x, -jnp.inf, jax.lax.max,
                                     (1, 1, 2, 2), (1, 1, 2, 2), "VALID")

    x = pool(conv(x_nchw, tp["conv1_w"], tp["conv1_b"]))
    x = pool(conv(x, tp["conv2_w"], tp["conv2_b"]))
    x = pool(conv(x, tp["conv3_w"], tp["conv3_b"]))
    x = x.reshape(x.shape[0], -1)
    x = jnp.dot(x, tp["fc1_w"].T, precision=prec) + tp["fc1_b"]
    x = jnp.dot(x, tp["fc2_w"].T, precision=prec) + tp["fc2_b"]
    return x


# ----------------------------------------------------------------------------
if __name__ == "__main__":
    key = jax.random.PRNGKey(0)
    k_x, k_p = jax.random.split(key)
    # Linear(1024, 64) implies 32x32 spatial input with 3 channels (CIFAR-like).
    x = jax.random.normal(k_x, (2, 3, 32, 32), jnp.float32)
    torch_params = init_torch_params(k_p)
    params = prepare_params(torch_params)

    out = jax.block_until_ready(neural_network_forward(x, params))
    assert out.shape == (2, 10), out.shape
    assert bool(jnp.all(jnp.isfinite(out))), "non-finite output"

    ref = reference_forward(x, torch_params)
    rel = float(jnp.linalg.norm(out - ref) / (jnp.linalg.norm(ref) + 1e-6))
    assert rel < 5e-2, f"mismatch vs f32 reference: rel_l2={rel:.4f}"
    print("KERNEL_OK")
</pallas_src>

<mosaic_0001>
module attributes {stable_mosaic.version = 11 : i64} {
  func.func @_fused_net_kernel(%arg0: i32, %arg1: memref<32x8x512xbf16, #tpu.memory_space<vmem>>, %arg2: memref<512x1024xbf16, #tpu.memory_space<vmem>>, %arg3: memref<1x1024xf32, #tpu.memory_space<vmem>>, %arg4: memref<5x512x512xbf16, #tpu.memory_space<vmem>>, %arg5: memref<1x512xf32, #tpu.memory_space<vmem>>, %arg6: memref<5x256x512xbf16, #tpu.memory_space<vmem>>, %arg7: memref<1x512xf32, #tpu.memory_space<vmem>>, %arg8: memref<4x256x128xbf16, #tpu.memory_space<vmem>>, %arg9: memref<1x128xf32, #tpu.memory_space<vmem>>, %arg10: memref<128x128xbf16, #tpu.memory_space<vmem>>, %arg11: memref<1x128xf32, #tpu.memory_space<vmem>>, %arg12: memref<8x128xf32, #tpu.memory_space<vmem>>, %arg13: memref<20x8x512xbf16, #tpu.memory_space<vmem>>, %arg14: memref<12x8x256xbf16, #tpu.memory_space<vmem>>) attributes {dimension_semantics = [#tpu.dimension_semantics<parallel>], iteration_bounds = array<i64: 1>, scalar_prefetch = 0 : i64, scratch_operands = 2 : i64, tpu.core_type = #tpu.core_type<tc>, window_params = [{transform_indices = @transform_0, window_bounds = array<i64: 32, 8, 512>}, {pipeline_mode = #tpu.pipeline_mode<synchronous>, transform_indices = @transform_1, window_bounds = array<i64: 512, 1024>}, {pipeline_mode = #tpu.pipeline_mode<synchronous>, transform_indices = @transform_2, window_bounds = array<i64: 1, 1024>}, {pipeline_mode = #tpu.pipeline_mode<synchronous>, transform_indices = @transform_3, window_bounds = array<i64: 5, 512, 512>}, {pipeline_mode = #tpu.pipeline_mode<synchronous>, transform_indices = @transform_4, window_bounds = array<i64: 1, 512>}, {pipeline_mode = #tpu.pipeline_mode<synchronous>, transform_indices = @transform_5, window_bounds = array<i64: 5, 256, 512>}, {pipeline_mode = #tpu.pipeline_mode<synchronous>, transform_indices = @transform_6, window_bounds = array<i64: 1, 512>}, {pipeline_mode = #tpu.pipeline_mode<synchronous>, transform_indices = @transform_7, window_bounds = array<i64: 4, 256, 128>}, {pipeline_mode = #tpu.pipeline_mode<synchronous>, transform_indices = @transform_8, window_bounds = array<i64: 1, 128>}, {pipeline_mode = #tpu.pipeline_mode<synchronous>, transform_indices = @transform_9, window_bounds = array<i64: 128, 128>}, {pipeline_mode = #tpu.pipeline_mode<synchronous>, transform_indices = @transform_10, window_bounds = array<i64: 1, 128>}, {transform_indices = @transform_11, window_bounds = array<i64: 8, 128>}]} {
    %c0 = arith.constant 0 : index
    %c0_0 = arith.constant 0 : index
    %c0_1 = arith.constant 0 : index
    %0 = vector.load %arg1[%c0, %c0_0, %c0_1] : memref<32x8x512xbf16, #tpu.memory_space<vmem>>, vector<32x8x512xbf16>
    %1 = vector.shape_cast %0 : vector<32x8x512xbf16> to vector<256x512xbf16>
    %c0_2 = arith.constant 0 : index
    %c0_3 = arith.constant 0 : index
    %2 = vector.load %arg2[%c0_2, %c0_3] : memref<512x1024xbf16, #tpu.memory_space<vmem>>, vector<512x1024xbf16>
    %cst = arith.constant dense<0.000000e+00> : vector<256x1024xf32>
    %3 = tpu.matmul %1, %2, %cst {dimension_numbers = #tpu.dot_dimension_numbers<[1], [0], [0], [1], [0, 0, 1, 1], [], []>} : vector<256x512xbf16>, vector<512x1024xbf16>, vector<256x1024xf32> -> vector<256x1024xf32>
    %c0_4 = arith.constant 0 : index
    %c0_5 = arith.constant 0 : index
    %4 = vector.load %arg3[%c0_4, %c0_5] : memref<1x1024xf32, #tpu.memory_space<vmem>>, vector<1x1024xf32>
    %5 = vector.broadcast %4 : vector<1x1024xf32> to vector<256x1024xf32>
    %6 = arith.addf %3, %5 : vector<256x1024xf32>
    %7 = vector.extract_strided_slice %6 {offsets = [0, 0], sizes = [256, 512], strides = [1, 1]} : vector<256x1024xf32> to vector<256x512xf32>
    %8 = vector.extract_strided_slice %6 {offsets = [0, 512], sizes = [256, 512], strides = [1, 1]} : vector<256x1024xf32> to vector<256x512xf32>
    %9 = arith.maximumf %7, %8 : vector<256x512xf32>
    %10 = vector.shape_cast %9 : vector<256x512xf32> to vector<16x2x8x512xf32>
    %11 = vector.extract_strided_slice %10 {offsets = [0, 0, 0, 0], sizes = [16, 1, 8, 512], strides = [1, 1, 1, 1]} : vector<16x2x8x512xf32> to vector<16x1x8x512xf32>
    %12 = vector.shape_cast %11 : vector<16x1x8x512xf32> to vector<16x8x512xf32>
    %13 = vector.extract_strided_slice %10 {offsets = [0, 1, 0, 0], sizes = [16, 1, 8, 512], strides = [1, 1, 1, 1]} : vector<16x2x8x512xf32> to vector<16x1x8x512xf32>
    %14 = vector.shape_cast %13 : vector<16x1x8x512xf32> to vector<16x8x512xf32>
    %15 = arith.maximumf %12, %14 : vector<16x8x512xf32>
    %16 = arith.truncf %15 : vector<16x8x512xf32> to vector<16x8x512xbf16>
    %cst_6 = arith.constant 0.000000e+00 : bf16
    %17 = vector.broadcast %cst_6 : bf16 to vector<2x8x512xbf16>
    %c0_7 = arith.constant 0 : index
    %c0_8 = arith.constant 0 : index
    %c0_9 = arith.constant 0 : index
    %18 = vector.load %arg13[%c0_7, %c0_8, %c0_9] : memref<20x8x512xbf16, #tpu.memory_space<vmem>>, vector<2x8x512xbf16>
    tpu.vector_store %arg13[%c0_7, %c0_8, %c0_9], %17 {strides = array<i32>} : memref<20x8x512xbf16, #tpu.memory_space<vmem>>, vector<2x8x512xbf16>,
    %c2 = arith.constant 2 : index
    %c0_10 = arith.constant 0 : index
    %c0_11 = arith.constant 0 : index
    %19 = vector.load %arg13[%c2, %c0_10, %c0_11] : memref<20x8x512xbf16, #tpu.memory_space<vmem>>, vector<16x8x512xbf16>
    tpu.vector_store %arg13[%c2, %c0_10, %c0_11], %16 {strides = array<i32>} : memref<20x8x512xbf16, #tpu.memory_space<vmem>>, vector<16x8x512xbf16>,
    %c18 = arith.constant 18 : index
    %c0_12 = arith.constant 0 : index
    %c0_13 = arith.constant 0 : index
    %20 = vector.load %arg13[%c18, %c0_12, %c0_13] : memref<20x8x512xbf16, #tpu.memory_space<vmem>>, vector<2x8x512xbf16>
    tpu.vector_store %arg13[%c18, %c0_12, %c0_13], %17 {strides = array<i32>} : memref<20x8x512xbf16, #tpu.memory_space<vmem>>, vector<2x8x512xbf16>,
    %c0_14 = arith.constant 0 : index
    %c0_15 = arith.constant 0 : index
    %c0_16 = arith.constant 0 : index
    %21 = vector.load %arg13[%c0_14, %c0_15, %c0_16] : memref<20x8x512xbf16, #tpu.memory_space<vmem>>, vector<16x8x512xbf16>
    %22 = vector.shape_cast %21 : vector<16x8x512xbf16> to vector<128x512xbf16>
    %c0_17 = arith.constant 0 : index
    %c0_18 = arith.constant 0 : index
    %c0_19 = arith.constant 0 : index
    %23 = vector.load %arg4[%c0_17, %c0_18, %c0_19] : memref<5x512x512xbf16, #tpu.memory_space<vmem>>, vector<1x512x512xbf16>
    %24 = vector.shape_cast %23 : vector<1x512x512xbf16> to vector<512x512xbf16>
    %cst_20 = arith.constant dense<0.000000e+00> : vector<128x512xf32>
    %25 = tpu.matmul %22, %24, %cst_20 {dimension_numbers = #tpu.dot_dimension_numbers<[1], [0], [0], [1], [0, 0, 1, 1], [], []>} : vector<128x512xbf16>, vector<512x512xbf16>, vector<128x512xf32> -> vector<128x512xf32>
    %c1 = arith.constant 1 : index
    %c0_21 = arith.constant 0 : index
    %c0_22 = arith.constant 0 : index
    %26 = vector.load %arg13[%c1, %c0_21, %c0_22] : memref<20x8x512xbf16, #tpu.memory_space<vmem>>, vector<16x8x512xbf16>
    %27 = vector.shape_cast %26 : vector<16x8x512xbf16> to vector<128x512xbf16>
    %c1_23 = arith.constant 1 : index
    %c0_24 = arith.constant 0 : index
    %c0_25 = arith.constant 0 : index
    %28 = vector.load %arg4[%c1_23, %c0_24, %c0_25] : memref<5x512x512xbf16, #tpu.memory_space<vmem>>, vector<1x512x512xbf16>
    %29 = vector.shape_cast %28 : vector<1x512x512xbf16> to vector<512x512xbf16>
    %cst_26 = arith.constant dense<0.000000e+00> : vector<128x512xf32>
    %30 = tpu.matmul %27, %29, %cst_26 {dimension_numbers = #tpu.dot_dimension_numbers<[1], [0], [0], [1], [0, 0, 1, 1], [], []>} : vector<128x512xbf16>, vector<512x512xbf16>, vector<128x512xf32> -> vector<128x512xf32>
    %31 = arith.addf %25, %30 : vector<128x512xf32>
    %c2_27 = arith.constant 2 : index
    %c0_28 = arith.constant 0 : index
    %c0_29 = arith.constant 0 : index
    %32 = vector.load %arg13[%c2_27, %c0_28, %c0_29] : memref<20x8x512xbf16, #tpu.memory_space<vmem>>, vector<16x8x512xbf16>
    %33 = vector.shape_cast %32 : vector<16x8x512xbf16> to vector<128x512xbf16>
    %c2_30 = arith.constant 2 : index
    %c0_31 = arith.constant 0 : index
    %c0_32 = arith.constant 0 : index
    %34 = vector.load %arg4[%c2_30, %c0_31, %c0_32] : memref<5x512x512xbf16, #tpu.memory_space<vmem>>, vector<1x512x512xbf16>
    %35 = vector.shape_cast %34 : vector<1x512x512xbf16> to vector<512x512xbf16>
    %cst_33 = arith.constant dense<0.000000e+00> : vector<128x512xf32>
    %36 = tpu.matmul %33, %35, %cst_33 {dimension_numbers = #tpu.dot_dimension_numbers<[1], [0], [0], [1], [0, 0, 1, 1], [], []>} : vector<128x512xbf16>, vector<512x512xbf16>, vector<128x512xf32> -> vector<128x512xf32>
    %37 = arith.addf %31, %36 : vector<128x512xf32>
    %c3 = arith.constant 3 : index
    %c0_34 = arith.constant 0 : index
    %c0_35 = arith.constant 0 : index
    %38 = vector.load %arg13[%c3, %c0_34, %c0_35] : memref<20x8x512xbf16, #tpu.memory_space<vmem>>, vector<16x8x512xbf16>
    %39 = vector.shape_cast %38 : vector<16x8x512xbf16> to vector<128x512xbf16>
    %c3_36 = arith.constant 3 : index
    %c0_37 = arith.constant 0 : index
    %c0_38 = arith.constant 0 : index
    %40 = vector.load %arg4[%c3_36, %c0_37, %c0_38] : memref<5x512x512xbf16, #tpu.memory_space<vmem>>, vector<1x512x512xbf16>
    %41 = vector.shape_cast %40 : vector<1x512x512xbf16> to vector<512x512xbf16>
    %cst_39 = arith.constant dense<0.000000e+00> : vector<128x512xf32>
    %42 = tpu.matmul %39, %41, %cst_39 {dimension_numbers = #tpu.dot_dimension_numbers<[1], [0], [0], [1], [0, 0, 1, 1], [], []>} : vector<128x512xbf16>, vector<512x512xbf16>, vector<128x512xf32> -> vector<128x512xf32>
    %43 = arith.addf %37, %42 : vector<128x512xf32>
    %c4 = arith.constant 4 : index
    %c0_40 = arith.constant 0 : index
    %c0_41 = arith.constant 0 : index
    %44 = vector.load %arg13[%c4, %c0_40, %c0_41] : memref<20x8x512xbf16, #tpu.memory_space<vmem>>, vector<16x8x512xbf16>
    %45 = vector.shape_cast %44 : vector<16x8x512xbf16> to vector<128x512xbf16>
    %c4_42 = arith.constant 4 : index
    %c0_43 = arith.constant 0 : index
    %c0_44 = arith.constant 0 : index
    %46 = vector.load %arg4[%c4_42, %c0_43, %c0_44] : memref<5x512x512xbf16, #tpu.memory_space<vmem>>, vector<1x512x512xbf16>
    %47 = vector.shape_cast %46 : vector<1x512x512xbf16> to vector<512x512xbf16>
    %cst_45 = arith.constant dense<0.000000e+00> : vector<128x512xf32>
    %48 = tpu.matmul %45, %47, %cst_45 {dimension_numbers = #tpu.dot_dimension_numbers<[1], [0], [0], [1], [0, 0, 1, 1], [], []>} : vector<128x512xbf16>, vector<512x512xbf16>, vector<128x512xf32> -> vector<128x512xf32>
    %49 = arith.addf %43, %48 : vector<128x512xf32>
    %c0_46 = arith.constant 0 : index
    %c0_47 = arith.constant 0 : index
    %50 = vector.load %arg5[%c0_46, %c0_47] : memref<1x512xf32, #tpu.memory_space<vmem>>, vector<1x512xf32>
    %51 = vector.broadcast %50 : vector<1x512xf32> to vector<128x512xf32>
    %52 = arith.addf %49, %51 : vector<128x512xf32>
    %53 = vector.extract_strided_slice %52 {offsets = [0, 0], sizes = [128, 256], strides = [1, 1]} : vector<128x512xf32> to vector<128x256xf32>
    %54 = vector.extract_strided_slice %52 {offsets = [0, 256], sizes = [128, 256], strides = [1, 1]} : vector<128x512xf32> to vector<128x256xf32>
    %55 = arith.maximumf %53, %54 : vector<128x256xf32>
    %56 = vector.shape_cast %55 : vector<128x256xf32> to vector<8x2x8x256xf32>
    %57 = vector.extract_strided_slice %56 {offsets = [0, 0, 0, 0], sizes = [8, 1, 8, 256], strides = [1, 1, 1, 1]} : vector<8x2x8x256xf32> to vector<8x1x8x256xf32>
    %58 = vector.shape_cast %57 : vector<8x1x8x256xf32> to vector<8x8x256xf32>
    %59 = vector.extract_strided_slice %56 {offsets = [0, 1, 0, 0], sizes = [8, 1, 8, 256], strides = [1, 1, 1, 1]} : vector<8x2x8x256xf32> to vector<8x1x8x256xf32>
    %60 = vector.shape_cast %59 : vector<8x1x8x256xf32> to vector<8x8x256xf32>
    %61 = arith.maximumf %58, %60 : vector<8x8x256xf32>
    %62 = arith.truncf %61 : vector<8x8x256xf32> to vector<8x8x256xbf16>
    %cst_48 = arith.constant 0.000000e+00 : bf16
    %63 = vector.broadcast %cst_48 : bf16 to vector<2x8x256xbf16>
    %c0_49 = arith.constant 0 : index
    %c0_50 = arith.constant 0 : index
    %c0_51 = arith.constant 0 : index
    %64 = vector.load %arg14[%c0_49, %c0_50, %c0_51] : memref<12x8x256xbf16, #tpu.memory_space<vmem>>, vector<2x8x256xbf16>
    tpu.vector_store %arg14[%c0_49, %c0_50, %c0_51], %63 {strides = array<i32>} : memref<12x8x256xbf16, #tpu.memory_space<vmem>>, vector<2x8x256xbf16>,
    %c2_52 = arith.constant 2 : index
    %c0_53 = arith.constant 0 : index
    %c0_54 = arith.constant 0 : index
    %65 = vector.load %arg14[%c2_52, %c0_53, %c0_54] : memref<12x8x256xbf16, #tpu.memory_space<vmem>>, vector<8x8x256xbf16>
    tpu.vector_store %arg14[%c2_52, %c0_53, %c0_54], %62 {strides = array<i32>} : memref<12x8x256xbf16, #tpu.memory_space<vmem>>, vector<8x8x256xbf16>,
    %c10 = arith.constant 10 : index
    %c0_55 = arith.constant 0 : index
    %c0_56 = arith.constant 0 : index
    %66 = vector.load %arg14[%c10, %c0_55, %c0_56] : memref<12x8x256xbf16, #tpu.memory_space<vmem>>, vector<2x8x256xbf16>
    tpu.vector_store %arg14[%c10, %c0_55, %c0_56], %63 {strides = array<i32>} : memref<12x8x256xbf16, #tpu.memory_space<vmem>>, vector<2x8x256xbf16>,
    %c0_57 = arith.constant 0 : index
    %c0_58 = arith.constant 0 : index
    %c0_59 = arith.constant 0 : index
    %67 = vector.load %arg14[%c0_57, %c0_58, %c0_59] : memref<12x8x256xbf16, #tpu.memory_space<vmem>>, vector<8x8x256xbf16>
    %68 = vector.shape_cast %67 : vector<8x8x256xbf16> to vector<64x256xbf16>
    %c0_60 = arith.constant 0 : index
    %c0_61 = arith.constant 0 : index
    %c0_62 = arith.constant 0 : index
    %69 = vector.load %arg6[%c0_60, %c0_61, %c0_62] : memref<5x256x512xbf16, #tpu.memory_space<vmem>>, vector<1x256x512xbf16>
    %70 = vector.shape_cast %69 : vector<1x256x512xbf16> to vector<256x512xbf16>
    %cst_63 = arith.constant dense<0.000000e+00> : vector<64x512xf32>
    %71 = tpu.matmul %68, %70, %cst_63 {dimension_numbers = #tpu.dot_dimension_numbers<[1], [0], [0], [1], [0, 0, 1, 1], [], []>} : vector<64x256xbf16>, vector<256x512xbf16>, vector<64x512xf32> -> vector<64x512xf32>
    %c1_64 = arith.constant 1 : index
    %c0_65 = arith.constant 0 : index
    %c0_66 = arith.constant 0 : index
    %72 = vector.load %arg14[%c1_64, %c0_65, %c0_66] : memref<12x8x256xbf16, #tpu.memory_space<vmem>>, vector<8x8x256xbf16>
    %73 = vector.shape_cast %72 : vector<8x8x256xbf16> to vector<64x256xbf16>
    %c1_67 = arith.constant 1 : index
    %c0_68 = arith.constant 0 : index
    %c0_69 = arith.constant 0 : index
    %74 = vector.load %arg6[%c1_67, %c0_68, %c0_69] : memref<5x256x512xbf16, #tpu.memory_space<vmem>>, vector<1x256x512xbf16>
    %75 = vector.shape_cast %74 : vector<1x256x512xbf16> to vector<256x512xbf16>
    %cst_70 = arith.constant dense<0.000000e+00> : vector<64x512xf32>
    %76 = tpu.matmul %73, %75, %cst_70 {dimension_numbers = #tpu.dot_dimension_numbers<[1], [0], [0], [1], [0, 0, 1, 1], [], []>} : vector<64x256xbf16>, vector<256x512xbf16>, vector<64x512xf32> -> vector<64x512xf32>
    %77 = arith.addf %71, %76 : vector<64x512xf32>
    %c2_71 = arith.constant 2 : index
    %c0_72 = arith.constant 0 : index
    %c0_73 = arith.constant 0 : index
    %78 = vector.load %arg14[%c2_71, %c0_72, %c0_73] : memref<12x8x256xbf16, #tpu.memory_space<vmem>>, vector<8x8x256xbf16>
    %79 = vector.shape_cast %78 : vector<8x8x256xbf16> to vector<64x256xbf16>
    %c2_74 = arith.constant 2 : index
    %c0_75 = arith.constant 0 : index
    %c0_76 = arith.constant 0 : index
    %80 = vector.load %arg6[%c2_74, %c0_75, %c0_76] : memref<5x256x512xbf16, #tpu.memory_space<vmem>>, vector<1x256x512xbf16>
    %81 = vector.shape_cast %80 : vector<1x256x512xbf16> to vector<256x512xbf16>
    %cst_77 = arith.constant dense<0.000000e+00> : vector<64x512xf32>
    %82 = tpu.matmul %79, %81, %cst_77 {dimension_numbers = #tpu.dot_dimension_numbers<[1], [0], [0], [1], [0, 0, 1, 1], [], []>} : vector<64x256xbf16>, vector<256x512xbf16>, vector<64x512xf32> -> vector<64x512xf32>
    %83 = arith.addf %77, %82 : vector<64x512xf32>
    %c3_78 = arith.constant 3 : index
    %c0_79 = arith.constant 0 : index
    %c0_80 = arith.constant 0 : index
    %84 = vector.load %arg14[%c3_78, %c0_79, %c0_80] : memref<12x8x256xbf16, #tpu.memory_space<vmem>>, vector<8x8x256xbf16>
    %85 = vector.shape_cast %84 : vector<8x8x256xbf16> to vector<64x256xbf16>
    %c3_81 = arith.constant 3 : index
    %c0_82 = arith.constant 0 : index
    %c0_83 = arith.constant 0 : index
    %86 = vector.load %arg6[%c3_81, %c0_82, %c0_83] : memref<5x256x512xbf16, #tpu.memory_space<vmem>>, vector<1x256x512xbf16>
    %87 = vector.shape_cast %86 : vector<1x256x512xbf16> to vector<256x512xbf16>
    %cst_84 = arith.constant dense<0.000000e+00> : vector<64x512xf32>
    %88 = tpu.matmul %85, %87, %cst_84 {dimension_numbers = #tpu.dot_dimension_numbers<[1], [0], [0], [1], [0, 0, 1, 1], [], []>} : vector<64x256xbf16>, vector<256x512xbf16>, vector<64x512xf32> -> vector<64x512xf32>
    %89 = arith.addf %83, %88 : vector<64x512xf32>
    %c4_85 = arith.constant 4 : index
    %c0_86 = arith.constant 0 : index
    %c0_87 = arith.constant 0 : index
    %90 = vector.load %arg14[%c4_85, %c0_86, %c0_87] : memref<12x8x256xbf16, #tpu.memory_space<vmem>>, vector<8x8x256xbf16>
    %91 = vector.shape_cast %90 : vector<8x8x256xbf16> to vector<64x256xbf16>
    %c4_88 = arith.constant 4 : index
    %c0_89 = arith.constant 0 : index
    %c0_90 = arith.constant 0 : index
    %92 = vector.load %arg6[%c4_88, %c0_89, %c0_90] : memref<5x256x512xbf16, #tpu.memory_space<vmem>>, vector<1x256x512xbf16>
    %93 = vector.shape_cast %92 : vector<1x256x512xbf16> to vector<256x512xbf16>
    %cst_91 = arith.constant dense<0.000000e+00> : vector<64x512xf32>
    %94 = tpu.matmul %91, %93, %cst_91 {dimension_numbers = #tpu.dot_dimension_numbers<[1], [0], [0], [1], [0, 0, 1, 1], [], []>} : vector<64x256xbf16>, vector<256x512xbf16>, vector<64x512xf32> -> vector<64x512xf32>
    %95 = arith.addf %89, %94 : vector<64x512xf32>
    %c0_92 = arith.constant 0 : index
    %c0_93 = arith.constant 0 : index
    %96 = vector.load %arg7[%c0_92, %c0_93] : memref<1x512xf32, #tpu.memory_space<vmem>>, vector<1x512xf32>
    %97 = vector.broadcast %96 : vector<1x512xf32> to vector<64x512xf32>
    %98 = arith.addf %95, %97 : vector<64x512xf32>
    %99 = vector.extract_strided_slice %98 {offsets = [0, 0], sizes = [64, 256], strides = [1, 1]} : vector<64x512xf32> to vector<64x256xf32>
    %100 = vector.extract_strided_slice %98 {offsets = [0, 256], sizes = [64, 256], strides = [1, 1]} : vector<64x512xf32> to vector<64x256xf32>
    %101 = arith.maximumf %99, %100 : vector<64x256xf32>
    %102 = vector.shape_cast %101 : vector<64x256xf32> to vector<4x2x8x256xf32>
    %103 = vector.extract_strided_slice %102 {offsets = [0, 0, 0, 0], sizes = [4, 1, 8, 256], strides = [1, 1, 1, 1]} : vector<4x2x8x256xf32> to vector<4x1x8x256xf32>
    %104 = vector.shape_cast %103 : vector<4x1x8x256xf32> to vector<4x8x256xf32>
    %105 = vector.extract_strided_slice %102 {offsets = [0, 1, 0, 0], sizes = [4, 1, 8, 256], strides = [1, 1, 1, 1]} : vector<4x2x8x256xf32> to vector<4x1x8x256xf32>
    %106 = vector.shape_cast %105 : vector<4x1x8x256xf32> to vector<4x8x256xf32>
    %107 = arith.maximumf %104, %106 : vector<4x8x256xf32>
    %108 = arith.truncf %107 : vector<4x8x256xf32> to vector<4x8x256xbf16>
    %109 = vector.extract_strided_slice %108 {offsets = [0, 0, 0], sizes = [1, 8, 256], strides = [1, 1, 1]} : vector<4x8x256xbf16> to vector<1x8x256xbf16>
    %110 = vector.shape_cast %109 : vector<1x8x256xbf16> to vector<8x256xbf16>
    %c0_94 = arith.constant 0 : index
    %c0_95 = arith.constant 0 : index
    %c0_96 = arith.constant 0 : index
    %111 = vector.load %arg8[%c0_94, %c0_95, %c0_96] : memref<4x256x128xbf16, #tpu.memory_space<vmem>>, vector<1x256x128xbf16>
    %112 = vector.shape_cast %111 : vector<1x256x128xbf16> to vector<256x128xbf16>
    %cst_97 = arith.constant dense<0.000000e+00> : vector<8x128xf32>
    %113 = tpu.matmul %110, %112, %cst_97 {dimension_numbers = #tpu.dot_dimension_numbers<[1], [0], [0], [1], [0, 0, 1, 1], [], []>} : vector<8x256xbf16>, vector<256x128xbf16>, vector<8x128xf32> -> vector<8x128xf32>
    %114 = vector.extract_strided_slice %108 {offsets = [1, 0, 0], sizes = [1, 8, 256], strides = [1, 1, 1]} : vector<4x8x256xbf16> to vector<1x8x256xbf16>
    %115 = vector.shape_cast %114 : vector<1x8x256xbf16> to vector<8x256xbf16>
    %c1_98 = arith.constant 1 : index
    %c0_99 = arith.constant 0 : index
    %c0_100 = arith.constant 0 : index
    %116 = vector.load %arg8[%c1_98, %c0_99, %c0_100] : memref<4x256x128xbf16, #tpu.memory_space<vmem>>, vector<1x256x128xbf16>
    %117 = vector.shape_cast %116 : vector<1x256x128xbf16> to vector<256x128xbf16>
    %cst_101 = arith.constant dense<0.000000e+00> : vector<8x128xf32>
    %118 = tpu.matmul %115, %117, %cst_101 {dimension_numbers = #tpu.dot_dimension_numbers<[1], [0], [0], [1], [0, 0, 1, 1], [], []>} : vector<8x256xbf16>, vector<256x128xbf16>, vector<8x128xf32> -> vector<8x128xf32>
    %119 = arith.addf %113, %118 : vector<8x128xf32>
    %120 = vector.extract_strided_slice %108 {offsets = [2, 0, 0], sizes = [1, 8, 256], strides = [1, 1, 1]} : vector<4x8x256xbf16> to vector<1x8x256xbf16>
    %121 = vector.shape_cast %120 : vector<1x8x256xbf16> to vector<8x256xbf16>
    %c2_102 = arith.constant 2 : index
    %c0_103 = arith.constant 0 : index
    %c0_104 = arith.constant 0 : index
    %122 = vector.load %arg8[%c2_102, %c0_103, %c0_104] : memref<4x256x128xbf16, #tpu.memory_space<vmem>>, vector<1x256x128xbf16>
    %123 = vector.shape_cast %122 : vector<1x256x128xbf16> to vector<256x128xbf16>
    %cst_105 = arith.constant dense<0.000000e+00> : vector<8x128xf32>
    %124 = tpu.matmul %121, %123, %cst_105 {dimension_numbers = #tpu.dot_dimension_numbers<[1], [0], [0], [1], [0, 0, 1, 1], [], []>} : vector<8x256xbf16>, vector<256x128xbf16>, vector<8x128xf32> -> vector<8x128xf32>
    %125 = arith.addf %119, %124 : vector<8x128xf32>
    %126 = vector.extract_strided_slice %108 {offsets = [3, 0, 0], sizes = [1, 8, 256], strides = [1, 1, 1]} : vector<4x8x256xbf16> to vector<1x8x256xbf16>
    %127 = vector.shape_cast %126 : vector<1x8x256xbf16> to vector<8x256xbf16>
    %c3_106 = arith.constant 3 : index
    %c0_107 = arith.constant 0 : index
    %c0_108 = arith.constant 0 : index
    %128 = vector.load %arg8[%c3_106, %c0_107, %c0_108] : memref<4x256x128xbf16, #tpu.memory_space<vmem>>, vector<1x256x128xbf16>
    %129 = vector.shape_cast %128 : vector<1x256x128xbf16> to vector<256x128xbf16>
    %cst_109 = arith.constant dense<0.000000e+00> : vector<8x128xf32>
    %130 = tpu.matmul %127, %129, %cst_109 {dimension_numbers = #tpu.dot_dimension_numbers<[1], [0], [0], [1], [0, 0, 1, 1], [], []>} : vector<8x256xbf16>, vector<256x128xbf16>, vector<8x128xf32> -> vector<8x128xf32>
    %131 = arith.addf %125, %130 : vector<8x128xf32>
    %c0_110 = arith.constant 0 : index
    %c0_111 = arith.constant 0 : index
    %132 = vector.load %arg9[%c0_110, %c0_111] : memref<1x128xf32, #tpu.memory_space<vmem>>, vector<1x128xf32>
    %133 = vector.broadcast %132 : vector<1x128xf32> to vector<8x128xf32>
    %134 = arith.addf %131, %133 : vector<8x128xf32>
    %135 = arith.truncf %134 : vector<8x128xf32> to vector<8x128xbf16>
    %c0_112 = arith.constant 0 : index
    %c0_113 = arith.constant 0 : index
    %136 = vector.load %arg10[%c0_112, %c0_113] : memref<128x128xbf16, #tpu.memory_space<vmem>>, vector<128x128xbf16>
    %cst_114 = arith.constant dense<0.000000e+00> : vector<8x128xf32>
    %137 = tpu.matmul %135, %136, %cst_114 {dimension_numbers = #tpu.dot_dimension_numbers<[1], [0], [0], [1], [0, 0, 1, 1], [], []>} : vector<8x128xbf16>, vector<128x128xbf16>, vector<8x128xf32> -> vector<8x128xf32>
    %c0_115 = arith.constant 0 : index
    %c0_116 = arith.constant 0 : index
    %138 = vector.load %arg11[%c0_115, %c0_116] : memref<1x128xf32, #tpu.memory_space<vmem>>, vector<1x128xf32>
    %139 = vector.broadcast %138 : vector<1x128xf32> to vector<8x128xf32>
    %140 = arith.addf %137, %139 : vector<8x128xf32>
    %c0_117 = arith.constant 0 : index
    %c0_118 = arith.constant 0 : index
    %141 = vector.load %arg12[%c0_117, %c0_118] : memref<8x128xf32, #tpu.memory_space<vmem>>, vector<8x128xf32>
    tpu.vector_store %arg12[%c0_117, %c0_118], %140 {strides = array<i32>} : memref<8x128xf32, #tpu.memory_space<vmem>>, vector<8x128xf32>,
    return
  }
  func.func @transform_0(%arg0: i32) -> (i32, i32, i32) {
    %c0_i32 = arith.constant 0 : i32
    %c0_i32_0 = arith.constant 0 : i32
    %c0_i32_1 = arith.constant 0 : i32
    return %c0_i32, %arg0, %c0_i32_0 : i32, i32, i32
  }
  func.func @transform_1(%arg0: i32) -> (i32, i32) {
    %c0_i32 = arith.constant 0 : i32
    %c0_i32_0 = arith.constant 0 : i32
    %c0_i32_1 = arith.constant 0 : i32
    return %c0_i32, %c0_i32_0 : i32, i32
  }
  func.func @transform_2(%arg0: i32) -> (i32, i32) {
    %c0_i32 = arith.constant 0 : i32
    %c0_i32_0 = arith.constant 0 : i32
    %c0_i32_1 = arith.constant 0 : i32
    return %c0_i32, %c0_i32_0 : i32, i32
  }
  func.func @transform_3(%arg0: i32) -> (i32, i32, i32) {
    %c0_i32 = arith.constant 0 : i32
    %c0_i32_0 = arith.constant 0 : i32
    %c0_i32_1 = arith.constant 0 : i32
    %c0_i32_2 = arith.constant 0 : i32
    return %c0_i32, %c0_i32_0, %c0_i32_1 : i32, i32, i32
  }
  func.func @transform_4(%arg0: i32) -> (i32, i32) {
    %c0_i32 = arith.constant 0 : i32
    %c0_i32_0 = arith.constant 0 : i32
    %c0_i32_1 = arith.constant 0 : i32
    return %c0_i32, %c0_i32_0 : i32, i32
  }
  func.func @transform_5(%arg0: i32) -> (i32, i32, i32) {
    %c0_i32 = arith.constant 0 : i32
    %c0_i32_0 = arith.constant 0 : i32
    %c0_i32_1 = arith.constant 0 : i32
    %c0_i32_2 = arith.constant 0 : i32
    return %c0_i32, %c0_i32_0, %c0_i32_1 : i32, i32, i32
  }
  func.func @transform_6(%arg0: i32) -> (i32, i32) {
    %c0_i32 = arith.constant 0 : i32
    %c0_i32_0 = arith.constant 0 : i32
    %c0_i32_1 = arith.constant 0 : i32
    return %c0_i32, %c0_i32_0 : i32, i32
  }
  func.func @transform_7(%arg0: i32) -> (i32, i32, i32) {
    %c0_i32 = arith.constant 0 : i32
    %c0_i32_0 = arith.constant 0 : i32
    %c0_i32_1 = arith.constant 0 : i32
    %c0_i32_2 = arith.constant 0 : i32
    return %c0_i32, %c0_i32_0, %c0_i32_1 : i32, i32, i32
  }
  func.func @transform_8(%arg0: i32) -> (i32, i32) {
    %c0_i32 = arith.constant 0 : i32
    %c0_i32_0 = arith.constant 0 : i32
    %c0_i32_1 = arith.constant 0 : i32
    return %c0_i32, %c0_i32_0 : i32, i32
  }
  func.func @transform_9(%arg0: i32) -> (i32, i32) {
    %c0_i32 = arith.constant 0 : i32
    %c0_i32_0 = arith.constant 0 : i32
    %c0_i32_1 = arith.constant 0 : i32
    return %c0_i32, %c0_i32_0 : i32, i32
  }
  func.func @transform_10(%arg0: i32) -> (i32, i32) {
    %c0_i32 = arith.constant 0 : i32
    %c0_i32_0 = arith.constant 0 : i32
    %c0_i32_1 = arith.constant 0 : i32
    return %c0_i32, %c0_i32_0 : i32, i32
  }
  func.func @transform_11(%arg0: i32) -> (i32, i32) {
    %c0_i32 = arith.constant 0 : i32
    %c0_i32_0 = arith.constant 0 : i32
    return %arg0, %c0_i32 : i32, i32
  }
}

</mosaic_0001>

<bundles_post_ra>
// kernel: neural_network_forward.1
= control target key start
LH: loop header
LB: loop body
LE: loop exit
PB: predicated region body
PF: predicated region fallthrough
CT: control target
= control target key end

     0   :  { %16 = vsyncpa [#allocation5], 0  ;;  %s22904_s0 = inlined_call_operand.vmem [shape: bf16[32,8,512], index: 0, kind: input, shape index: {}]   ;;  %s22905_s1 = inlined_call_operand.hbm [shape: bf16[512,1024], index: 1, kind: input, shape index: {}]   ;;  %s22906_s2 = inlined_call_operand.hbm [shape: f32[1,1024], index: 2, kind: input, shape index: {}]   ;;  %s22907_s3 = inlined_call_operand.hbm [shape: bf16[5,512,512], index: 3, kind: input, shape index: {}]   ;;  %s22908_s4 = inlined_call_operand.hbm [shape: f32[1,512], index: 4, kind: input, shape index: {}]   ;;  %s22909_s5 = inlined_call_operand.hbm [shape: bf16[5,256,512], index: 5, kind: input, shape index: {}]   ;;  %s22910_s6 = inlined_call_operand.hbm [shape: f32[1,512], index: 6, kind: input, shape index: {}]   ;;  %s22911_s7 = inlined_call_operand.hbm [shape: bf16[4,256,128], index: 7, kind: input, shape index: {}]   ;;  %s22912_s8 = inlined_call_operand.hbm [shape: f32[1,128], index: 8, kind: input, shape index: {}]   ;;  %s22913_s9 = inlined_call_operand.hbm [shape: bf16[128,128], index: 9, kind: input, shape index: {}]   ;;  %s22914_s10 = inlined_call_operand.hbm [shape: f32[1,128], index: 10, kind: input, shape index: {}]   ;;  %s22915_s11 = inlined_call_operand.vmem [shape: f32[8,128], index: 11, kind: output, shape index: {}]  }
   0x1   :  { %17 = vsyncpa [#allocation7], 0 }
   0x2   :  { %18 = vsyncpa [#allocation10], 0 }
   0x3   :  { %19 = vsyncpa [#allocation13], 0 }
   0x4   :  { %20 = vsyncpa [#allocation16], 0 }
   0x5   :  { %21 = vsyncpa [#allocation19], 0  ;;  %s20483_s17 = smov [#allocation6]   ;;  %s20484_s19 = smov [#allocation9]  }
   0x6   :  { %s42_s18 = sshll.u32 %s20483_s17, 4  ;;  %s64_s20 = sshll.u32 %s20484_s19, 4  ;;  %s43_s18 = int_to_ptr.vmem [resolvable:$true] %s42_s18  ;;  %s65_s20 = int_to_ptr.vmem [resolvable:$true] %s64_s20 }
   0x7   :  { %s20251_s23 = scalar_lea.hbm %s22906_s2, 128 }
   0x8   :  { %p20252_p0 = scmp.ne.s32.totalorder %s22906_s2, %s20251_s23  ;;  %p20255_p1 = scmp.lt.u32.totalorder %s20251_s23, %s22906_s2 }
   0xa   :  { %p20257_p2 = pnand %p20255_p1, %p20252_p0 }
   0xc   :  { %20260 = shalt.err (!%p20257_p2)
}
   0xd   :  { %s20261_s28 = scalar_lea.vmem %s43_s18, 128  ;;  %p20266_p4 = scmp.lt.s32.totalorder %s43_s18, %s43_s18 }
   0xe   :  { %p20262_p3 = scmp.ne.s32.totalorder %s43_s18, %s20261_s28  ;;  %p20267_p5 = scmp.lt.s32.totalorder %s20261_s28, %s20261_s28 }
  0x10   :  { %p20268_p6 = por %p20267_p5, %p20266_p4 }
  0x12   :  { %p20269_p7 = pnand %p20268_p6, %p20262_p3 }
  0x14   :  { %20272 = shalt.err (!%p20269_p7)
}
  0x15   :  { %45 = dma.hbm_to_vmem [thread:$0]  %s22906_s2, 128, %s43_s18, [#allocation7]  }
  0x16   :  { %s20273_s14 = scalar_lea.hbm %s22908_s4, 64 }
  0x17   :  { %p20274_p8 = scmp.ne.s32.totalorder %s22908_s4, %s20273_s14  ;;  %p20277_p9 = scmp.lt.u32.totalorder %s20273_s14, %s22908_s4 }
  0x19   :  { %p20279_p10 = pnand %p20277_p9, %p20274_p8 }
  0x1b   :  { %20282 = shalt.err (!%p20279_p10)
}
  0x1c   :  { %s20283_s21 = scalar_lea.vmem %s65_s20, 64  ;;  %p20288_p12 = scmp.lt.s32.totalorder %s65_s20, %s65_s20 }
  0x1d   :  { %p20284_p11 = scmp.ne.s32.totalorder %s65_s20, %s20283_s21  ;;  %p20289_p13 = scmp.lt.s32.totalorder %s20283_s21, %s20283_s21 }
  0x1f   :  { %p20290_p0 = por %p20289_p13, %p20288_p12 }
  0x21   :  { %p20291_p1 = pnand %p20290_p0, %p20284_p11 }
  0x23   :  { %20294 = shalt.err (!%p20291_p1)
}
  0x24   :  { %67 = dma.hbm_to_vmem [thread:$0]  %s22908_s4, 64, %s65_s20, [#allocation10]  }
  0x25   :  { %s20485_s22 = smov [#allocation12]   ;;  %s20486_s24 = smov [#allocation15]  }
  0x26   :  { %s86_s23 = sshll.u32 %s20485_s22, 4  ;;  %s108_s25 = sshll.u32 %s20486_s24, 4  ;;  %s87_s23 = int_to_ptr.vmem [resolvable:$true] %s86_s23  ;;  %s109_s25 = int_to_ptr.vmem [resolvable:$true] %s108_s25 }
  0x27   :  { %s20295_s28 = scalar_lea.hbm %s22910_s6, 64 }
  0x28   :  { %p20296_p2 = scmp.ne.s32.totalorder %s22910_s6, %s20295_s28  ;;  %p20299_p3 = scmp.lt.u32.totalorder %s20295_s28, %s22910_s6 }
  0x2a   :  { %p20301_p4 = pnand %p20299_p3, %p20296_p2 }
  0x2c   :  { %20304 = shalt.err (!%p20301_p4)
}
  0x2d   :  { %s20305_s4 = scalar_lea.vmem %s87_s23, 64  ;;  %p20310_p6 = scmp.lt.s32.totalorder %s87_s23, %s87_s23 }
  0x2e   :  { %p20306_p5 = scmp.ne.s32.totalorder %s87_s23, %s20305_s4  ;;  %p20311_p7 = scmp.lt.s32.totalorder %s20305_s4, %s20305_s4 }
  0x30   :  { %p20312_p8 = por %p20311_p7, %p20310_p6 }
  0x32   :  { %p20313_p9 = pnand %p20312_p8, %p20306_p5 }
  0x34   :  { %20316 = shalt.err (!%p20313_p9)
}
  0x35   :  { %89 = dma.hbm_to_vmem [thread:$0]  %s22910_s6, 64, %s87_s23, [#allocation13]  }
  0x36   :  { %s20317_s17 = scalar_lea.hbm %s22912_s8, 16 }
  0x37   :  { %p20318_p10 = scmp.ne.s32.totalorder %s22912_s8, %s20317_s17  ;;  %p20321_p11 = scmp.lt.u32.totalorder %s20317_s17, %s22912_s8 }
  0x39   :  { %p20323_p12 = pnand %p20321_p11, %p20318_p10 }
  0x3b   :  { %20326 = shalt.err (!%p20323_p12)
}
  0x3c   :  { %s20327_s22 = scalar_lea.vmem %s109_s25, 16  ;;  %s20331_s24 = scalar_lea.vmem %s109_s25, 32 }
  0x3d   :  { %p20328_p13 = scmp.ne.s32.totalorder %s109_s25, %s20327_s22  ;;  %p20332_p0 = scmp.lt.s32.totalorder %s109_s25, %s109_s25 }
  0x3e   :  { %p20333_p1 = scmp.lt.s32.totalorder %s20331_s24, %s20327_s22 }
  0x40   :  { %p20334_p2 = por %p20333_p1, %p20332_p0 }
  0x42   :  { %p20335_p3 = pnand %p20334_p2, %p20328_p13 }
  0x44   :  { %20338 = shalt.err (!%p20335_p3)
}
  0x45   :  { %111 = dma.hbm_to_vmem [thread:$0]  %s22912_s8, 16, %s109_s25, [#allocation16]  }
  0x46   :  { %s20487_s26 = smov [#allocation4]   ;;  %s20339_s30 = scalar_lea.hbm %s22905_s1, 32768 }
  0x47   :  { %s29_s27 = sshll.u32 %s20487_s26, 4  ;;  %p20340_p4 = scmp.ne.s32.totalorder %s22905_s1, %s20339_s30  ;;  %s30_s27 = int_to_ptr.vmem [resolvable:$true] %s29_s27 }
  0x48   :  { %p20343_p5 = scmp.lt.u32.totalorder %s20339_s30, %s22905_s1 }
  0x4a   :  { %p20345_p6 = pnand %p20343_p5, %p20340_p4 }
  0x4c   :  { %20348 = shalt.err (!%p20345_p6)
}
  0x4d   :  { %s20349_s14 = scalar_lea.vmem %s30_s27, 32768  ;;  %p20354_p8 = scmp.lt.s32.totalorder %s30_s27, %s30_s27 }
  0x4e   :  { %p20350_p7 = scmp.ne.s32.totalorder %s30_s27, %s20349_s14  ;;  %p20355_p9 = scmp.lt.s32.totalorder %s20349_s14, %s20349_s14 }
  0x50   :  { %p20356_p10 = por %p20355_p9, %p20354_p8 }
  0x52   :  { %p20357_p11 = pnand %p20356_p10, %p20350_p7 }
  0x54   :  { %20360 = shalt.err (!%p20357_p11)
}
  0x55   :  { %s20488_s8 = smov 512   ;;  %s20489_s25 = smov 32  }
  0x56   :  { %35 = dma.hbm_to_vmem [thread:$0]  %s22905_s1, 32768, %s30_s27, [#allocation5], %s20488_s8, %s20488_s8, %s20489_s25  }
  0x57   :  { %s20490_s17 = smov [#allocation8]   ;;  %s20361_s18 = scalar_lea.hbm %s22907_s3, 81920 }
  0x58   :  { %s51_s19 = sshll.u32 %s20490_s17, 4  ;;  %p20362_p12 = scmp.ne.s32.totalorder %s22907_s3, %s20361_s18  ;;  %s52_s19 = int_to_ptr.vmem [resolvable:$true] %s51_s19 }
  0x59   :  { %p20365_p13 = scmp.lt.u32.totalorder %s20361_s18, %s22907_s3 }
  0x5b   :  { %p20367_p0 = pnand %p20365_p13, %p20362_p12 }
  0x5d   :  { %20370 = shalt.err (!%p20367_p0)
}
  0x5e   :  { %s20371_s26 = scalar_lea.vmem %s52_s19, 81920  ;;  %p20376_p2 = scmp.lt.s32.totalorder %s52_s19, %s52_s19 }
  0x5f   :  { %p20372_p1 = scmp.ne.s32.totalorder %s52_s19, %s20371_s26  ;;  %p20377_p3 = scmp.lt.s32.totalorder %s20371_s26, %s20371_s26 }
  0x61   :  { %p20378_p4 = por %p20377_p3, %p20376_p2 }
  0x63   :  { %p20379_p5 = pnand %p20378_p4, %p20372_p1 }
  0x65   :  { %20382 = shalt.err (!%p20379_p5)
}
  0x66   :  { %s20491_s1 = smov 256   ;;  %s20492_s27 = smov 16  }
  0x67   :  { %57 = dma.hbm_to_vmem [thread:$0]  %s22907_s3, 81920, %s52_s19, [#allocation7], %s20491_s1, %s20491_s1, %s20492_s27  }
  0x68   :  { %s20493_s30 = smov [#allocation11]   ;;  %s20494_s13 = smov [#allocation14]  }
  0x69   :  { %s73_s12 = sshll.u32 %s20493_s30, 4  ;;  %s95_s4 = sshll.u32 %s20494_s13, 4  ;;  %s74_s12 = int_to_ptr.vmem [resolvable:$true] %s73_s12  ;;  %s20634_s4 = int_to_ptr.vmem [resolvable:$true] %s95_s4 }
  0x6a   :  { %s20383_s8 = scalar_lea.hbm %s22909_s5, 40960 }
  0x6b   :  { %p20384_p6 = scmp.ne.s32.totalorder %s22909_s5, %s20383_s8  ;;  %p20387_p7 = scmp.lt.u32.totalorder %s20383_s8, %s22909_s5 }
  0x6d   :  { %p20389_p8 = pnand %p20387_p7, %p20384_p6 }
  0x6f   :  { %20392 = shalt.err (!%p20389_p8)
}
  0x70   :  { %s20393_s3 = scalar_lea.vmem %s74_s12, 40960  ;;  %p20398_p10 = scmp.lt.s32.totalorder %s74_s12, %s74_s12 }
  0x71   :  { %p20394_p9 = scmp.ne.s32.totalorder %s74_s12, %s20393_s3  ;;  %p20399_p11 = scmp.lt.s32.totalorder %s20393_s3, %s20393_s3 }
  0x73   :  { %p20400_p12 = por %p20399_p11, %p20398_p10 }
  0x75   :  { %p20401_p13 = pnand %p20400_p12, %p20394_p9 }
  0x77   :  { %20404 = shalt.err (!%p20401_p13)
}
  0x78   :  { %79 = dma.hbm_to_vmem [thread:$0]  %s22909_s5, 40960, %s74_s12, [#allocation10], %s20491_s1, %s20491_s1, %s20492_s27  }
  0x79   :  { %s20405_s22 = scalar_lea.hbm %s22911_s7, 8192 }
  0x7a   :  { %p20406_p0 = scmp.ne.s32.totalorder %s22911_s7, %s20405_s22  ;;  %p20409_p1 = scmp.lt.u32.totalorder %s20405_s22, %s22911_s7 }
  0x7c   :  { %p20411_p2 = pnand %p20409_p1, %p20406_p0 }
  0x7e   :  { %20414 = shalt.err (!%p20411_p2)
}
  0x7f   :  { %s20415_s28 = scalar_lea.vmem %s20634_s4, 8192  ;;  %p20420_p4 = scmp.lt.s32.totalorder %s20634_s4, %s20634_s4 }
  0x80   :  { %p20416_p3 = scmp.ne.s32.totalorder %s20634_s4, %s20415_s28  ;;  %p20421_p5 = scmp.lt.s32.totalorder %s20415_s28, %s20415_s28 }
  0x82   :  { %p20422_p6 = por %p20421_p5, %p20420_p4 }
  0x84   :  { %p20423_p7 = pnand %p20422_p6, %p20416_p3 }
  0x86   :  { %20426 = shalt.err (!%p20423_p7)
}
  0x87   :  { %s20495_s5 = smov 64   ;;  %s20496_s1 = smov 4  }
  0x88   :  { %101 = dma.hbm_to_vmem [thread:$0]  %s22911_s7, 8192, %s20634_s4, [#allocation13], %s20495_s5, %s20495_s5, %s20496_s1  }
  0x89   :  { %s20497_s30 = smov [#allocation17]   ;;  %s20498_s13 = smov [#allocation18]  }
  0x8a   :  { %s117_s12 = sshll.u32 %s20497_s30, 4  ;;  %s130_s20 = sshll.u32 %s20498_s13, 4  ;;  %s118_s12 = int_to_ptr.vmem [resolvable:$true] %s117_s12  ;;  %s131_s20 = int_to_ptr.vmem [resolvable:$true] %s130_s20 }
  0x8b   :  { %s20427_s25 = scalar_lea.hbm %s22913_s9, 1024 }
  0x8c   :  { %p20428_p8 = scmp.ne.s32.totalorder %s22913_s9, %s20427_s25  ;;  %p20431_p9 = scmp.lt.u32.totalorder %s20427_s25, %s22913_s9 }
  0x8e   :  { %p20433_p10 = pnand %p20431_p9, %p20428_p8 }
  0x90   :  { %20436 = shalt.err (!%p20433_p10)
}
  0x91   :  { %s20437_s7 = scalar_lea.vmem %s118_s12, 1024  ;;  %p20442_p12 = scmp.lt.s32.totalorder %s118_s12, %s118_s12 }
  0x92   :  { %p20438_p11 = scmp.ne.s32.totalorder %s118_s12, %s20437_s7  ;;  %p20443_p13 = scmp.lt.s32.totalorder %s20437_s7, %s20437_s7 }
  0x94   :  { %p20444_p0 = por %p20443_p13, %p20442_p12 }
  0x96   :  { %p20445_p1 = pnand %p20444_p0, %p20438_p11 }
  0x98   :  { %20448 = shalt.err (!%p20445_p1)
}
  0x99   :  { %123 = dma.hbm_to_vmem [thread:$0]  %s22913_s9, 1024, %s118_s12, [#allocation16], %s20495_s5, %s20495_s5, %s20496_s1  }
  0x9a   :  { %s20449_s18 = scalar_lea.hbm %s22914_s10, 16 }
  0x9b   :  { %p20450_p2 = scmp.ne.s32.totalorder %s22914_s10, %s20449_s18  ;;  %p20453_p3 = scmp.lt.u32.totalorder %s20449_s18, %s22914_s10 }
  0x9d   :  { %p20455_p4 = pnand %p20453_p3, %p20450_p2 }
  0x9f   :  { %20458 = shalt.err (!%p20455_p4)
}
  0xa0   :  { %s20459_s26 = scalar_lea.vmem %s131_s20, 16  ;;  %s20463_s28 = scalar_lea.vmem %s131_s20, 32 }
  0xa1   :  { %p20460_p5 = scmp.ne.s32.totalorder %s131_s20, %s20459_s26  ;;  %p20464_p6 = scmp.lt.s32.totalorder %s131_s20, %s131_s20 }
  0xa2   :  { %p20465_p7 = scmp.lt.s32.totalorder %s20463_s28, %s20459_s26 }
  0xa4   :  { %p20466_p8 = por %p20465_p7, %p20464_p6 }
  0xa6   :  { %p20467_p9 = pnand %p20466_p8, %p20460_p5 }
  0xa8   :  { %20470 = shalt.err (!%p20467_p9)
}
  0xa9   :  { %133 = dma.hbm_to_vmem [thread:$0]  %s22914_s10, 16, %s131_s20, [#allocation19]  }
  0xaa   :  { %20471 = dma.done.wait [#allocation5], 32768  }
  0xab   :  { %20472 = vsyncadd [#allocation5], 4294934528 }
  0xac   :  { %20473 = dma.done.wait [#allocation7], 82048  }
  0xad   :  { %20474 = vsyncadd [#allocation7], 4294885248 }
  0xae   :  { %20475 = dma.done.wait [#allocation10], 41024  }
  0xaf   :  { %20476 = vsyncadd [#allocation10], 4294926272 }
  0xb0   :  { %20477 = dma.done.wait [#allocation13], 8256  }
  0xb1   :  { %20478 = vsyncadd [#allocation13], 4294959040 }
  0xb2   :  { %20479 = dma.done.wait [#allocation16], 1040  }
  0xb3   :  { %20480 = vsyncadd [#allocation16], 4294966256 }
  0xb4   :  { %20481 = dma.done.wait [#allocation19], 16  }
  0xb5   :  { %20482 = vsyncadd [#allocation19], 4294967280  ;;  %v229_v0 = vld [vmem:[#allocation4] sm:$0xff]  ;;  %v230_v2 = vld [vmem:[#allocation4 + $0x8] sm:$0xff]  ;;  %vm20501_vm0 = vmmov 0  }
  0xb6   :  { %v233_v1 = vld [vmem:[#allocation4 + $0x20] sm:$0xff]  ;;  %v234_v4 = vld [vmem:[#allocation4 + $0x28] sm:$0xff] }
  0xb7   :  { %v15584_v3 = vcombine.high %v229_v0, %v233_v1  ;;  %v15583_v5 = vcombine.low %v229_v0, %v233_v1  ;;  %v237_v6 = vld [vmem:[#allocation4 + $0x40] sm:$0xff]  ;;  %v15586_v8 = vcombine.high %v230_v2, %v234_v4  ;;  %v15585_v9 = vcombine.low %v230_v2, %v234_v4  ;;  %v238_v11 = vld [vmem:[#allocation4 + $0x48] sm:$0xff] }
  0xb8   :  { %v241_v7 = vld [vmem:[#allocation4 + $0x60] sm:$0xff]  ;;  %v242_v12 = vld [vmem:[#allocation4 + $0x68] sm:$0xff] }
  0xb9   :  { %v15592_v10 = vcombine.high %v237_v6, %v241_v7  ;;  %v245_v13 = vld [vmem:[#allocation4 + $0x80] sm:$0xff]  ;;  %2127 = vmatprep.subr.bf16.mxu0 %v15584_v3  ;;  %v15594_v14 = vcombine.high %v238_v11, %v242_v12  ;;  %v246_v16 = vld [vmem:[#allocation4 + $0x88] sm:$0xff]  ;;  %2513 = vmatprep.subr.bf16.mxu1 %v15586_v8  ;;  %v15591_v18 = vcombine.low %v237_v6, %v241_v7 }
  0xba   :  { %v249_v15 = vld [vmem:[#allocation4 + $0xa0] sm:$0xff]  ;;  %v250_v17 = vld [vmem:[#allocation4 + $0xa8] sm:$0xff]  ;;  %2128 = vmatpush1.bf16.msra.mxu0 %v15583_v5  ;;  %2514 = vmatpush1.bf16.msra.mxu1 %v15585_v9  ;;  %v15593_v19 = vcombine.low %v238_v11, %v242_v12 }
  0xbb   :  { %2129 = vmatprep.subr.bf16.mxu0 %v15592_v10  ;;  %v15600_v20 = vcombine.high %v245_v13, %v249_v15  ;;  %2515 = vmatprep.subr.bf16.mxu1 %v15594_v14  ;;  %v15602_v21 = vcombine.high %v246_v16, %v250_v17  ;;  %v253_v22 = vld [vmem:[#allocation4 + $0xc0] sm:$0xff]  ;;  %v254_v24 = vld [vmem:[#allocation4 + $0xc8] sm:$0xff]  ;;  %v15599_v26 = vcombine.low %v245_v13, %v249_v15 }
  0xbc   :  { %v257_v23 = vld [vmem:[#allocation4 + $0xe0] sm:$0xff]  ;;  %v258_v25 = vld [vmem:[#allocation4 + $0xe8] sm:$0xff]  ;;  %v15601_v27 = vcombine.low %v246_v16, %v250_v17 }
  0xbd   :  { %v15608_v28 = vcombine.high %v253_v22, %v257_v23  ;;  %v15610_v29 = vcombine.high %v254_v24, %v258_v25  ;;  %v261_v30 = vld [vmem:[#allocation4 + $0x100] sm:$0xff]  ;;  %v262_v32 = vld [vmem:[#allocation4 + $0x108] sm:$0xff]  ;;  %v15607_v34 = vcombine.low %v253_v22, %v257_v23  ;;  %v15609_v35 = vcombine.low %v254_v24, %v258_v25 }
  0xbe   :  { %2130 = vmatpush1.bf16.msra.mxu0 %v15591_v18  ;;  %2516 = vmatpush1.bf16.msra.mxu1 %v15593_v19  ;;  %v265_v31 = vld [vmem:[#allocation4 + $0x120] sm:$0xff]  ;;  %v266_v33 = vld [vmem:[#allocation4 + $0x128] sm:$0xff] }
  0xbf   :  { %2131 = vmatprep.subr.bf16.mxu0 %v15600_v20  ;;  %2517 = vmatprep.subr.bf16.mxu1 %v15602_v21  ;;  %v15616_v36 = vcombine.high %v261_v30, %v265_v31  ;;  %v15618_v37 = vcombine.high %v262_v32, %v266_v33  ;;  %v269_v38 = vld [vmem:[#allocation4 + $0x140] sm:$0xff]  ;;  %v270_v40 = vld [vmem:[#allocation4 + $0x148] sm:$0xff]  ;;  %v15615_v42 = vcombine.low %v261_v30, %v265_v31 }
  0xc0   :  { %v273_v39 = vld [vmem:[#allocation4 + $0x160] sm:$0xff]  ;;  %v274_v41 = vld [vmem:[#allocation4 + $0x168] sm:$0xff]  ;;  %v15617_v43 = vcombine.low %v262_v32, %v266_v33 }
  0xc1   :  { %v15624_v44 = vcombine.high %v269_v38, %v273_v39  ;;  %v15626_v45 = vcombine.high %v270_v40, %v274_v41  ;;  %v277_v46 = vld [vmem:[#allocation4 + $0x180] sm:$0xff]  ;;  %v278_v48 = vld [vmem:[#allocation4 + $0x188] sm:$0xff]  ;;  %v15623_v50 = vcombine.low %v269_v38, %v273_v39  ;;  %v15625_v51 = vcombine.low %v270_v40, %v274_v41 }
  0xc2   :  { %2132 = vmatpush1.bf16.msra.mxu0 %v15599_v26  ;;  %2518 = vmatpush1.bf16.msra.mxu1 %v15601_v27  ;;  %v281_v47 = vld [vmem:[#allocation4 + $0x1a0] sm:$0xff]  ;;  %v282_v49 = vld [vmem:[#allocation4 + $0x1a8] sm:$0xff] }
  0xc3   :  { %2133 = vmatprep.subr.bf16.mxu0 %v15608_v28  ;;  %2519 = vmatprep.subr.bf16.mxu1 %v15610_v29  ;;  %v15632_v52 = vcombine.high %v277_v46, %v281_v47  ;;  %v285_v53 = vld [vmem:[#allocation4 + $0x1c0] sm:$0xff]  ;;  %v15634_v54 = vcombine.high %v278_v48, %v282_v49  ;;  %v286_v56 = vld [vmem:[#allocation4 + $0x1c8] sm:$0xff]  ;;  %v15631_v59 = vcombine.low %v277_v46, %v281_v47 }
  0xc4   :  { %v289_v55 = vld [vmem:[#allocation4 + $0x1e0] sm:$0xff]  ;;  %v290_v58 = vld [vmem:[#allocation4 + $0x1e8] sm:$0xff]  ;;  %v15633_v60 = vcombine.low %v278_v48, %v282_v49 }
  0xc5   :  { %v18579_v57 = vld [vmem:[%s22904_s0 + $0x4] ss:$16 sps:$4 sm:$0xff]   ;;  %v15640_v61 = vcombine.high %v285_v53, %v289_v55  ;;  %v15642_v62 = vcombine.high %v286_v56, %v290_v58  ;;  %v294_v1 = vld [vmem:[#allocation4 + $0x208] sm:$0xff]  ;;  %v15639_v3 = vcombine.low %v285_v53, %v289_v55  ;;  %v15641_v4 = vcombine.low %v286_v56, %v290_v58 }
  0xc6   :  { %2134 = vmatpush1.bf16.msra.mxu0 %v15607_v34  ;;  %2520 = vmatpush1.bf16.msra.mxu1 %v15609_v35  ;;  %v293_v63 = vld [vmem:[#allocation4 + $0x200] sm:$0xff]  ;;  %v298_v2 = vld [vmem:[#allocation4 + $0x228] sm:$0xff] }
  0xc7   :  { %2135 = vmatprep.subr.bf16.mxu0 %v15616_v36  ;;  %2521 = vmatprep.subr.bf16.mxu1 %v15618_v37  ;;  %v297_v0 = vld [vmem:[#allocation4 + $0x220] sm:$0xff]  ;;  %v15650_v6 = vcombine.high %v294_v1, %v298_v2  ;;  %v302_v9 = vld [vmem:[#allocation4 + $0x248] sm:$0xff]  ;;  %v15649_v12 = vcombine.low %v294_v1, %v298_v2 }
  0xc8   :  { %2159 = vmatprep.mubr.bf16.mxu0 %v18579_v57  ;;  %2545 = vmatprep.mubr.bf16.mxu1 %v18579_v57  ;;  %v15648_v5 = vcombine.high %v293_v63, %v297_v0  ;;  %v301_v7 = vld [vmem:[#allocation4 + $0x240] sm:$0xff]  ;;  %v306_v10 = vld [vmem:[#allocation4 + $0x268] sm:$0xff]  ;;  %v15647_v11 = vcombine.low %v293_v63, %v297_v0 }
  0xc9   :  { %v305_v8 = vld [vmem:[#allocation4 + $0x260] sm:$0xff]  ;;  %v15658_v14 = vcombine.high %v302_v9, %v306_v10  ;;  %v310_v17 = vld [vmem:[#allocation4 + $0x288] sm:$0xff]  ;;  %v15657_v20 = vcombine.low %v302_v9, %v306_v10 }
  0xca   :  { %2136 = vmatpush1.bf16.msra.mxu0 %v15615_v42  ;;  %2522 = vmatpush1.bf16.msra.mxu1 %v15617_v43  ;;  %v15656_v13 = vcombine.high %v301_v7, %v305_v8  ;;  %v309_v15 = vld [vmem:[#allocation4 + $0x280] sm:$0xff]  ;;  %v314_v18 = vld [vmem:[#allocation4 + $0x2a8] sm:$0xff]  ;;  %v15655_v19 = vcombine.low %v301_v7, %v305_v8 }
  0xcb   :  { %2137 = vmatprep.subr.bf16.mxu0 %v15624_v44  ;;  %2523 = vmatprep.subr.bf16.mxu1 %v15626_v45  ;;  %v313_v16 = vld [vmem:[#allocation4 + $0x2a0] sm:$0xff]  ;;  %v15666_v22 = vcombine.high %v310_v17, %v314_v18  ;;  %v318_v25 = vld [vmem:[#allocation4 + $0x2c8] sm:$0xff]  ;;  %v15665_v28 = vcombine.low %v310_v17, %v314_v18 }
  0xcc   :  { %v15664_v21 = vcombine.high %v309_v15, %v313_v16  ;;  %v317_v23 = vld [vmem:[#allocation4 + $0x2c0] sm:$0xff]  ;;  %v322_v26 = vld [vmem:[#allocation4 + $0x2e8] sm:$0xff]  ;;  %v15663_v27 = vcombine.low %v309_v15, %v313_v16 }
  0xcd   :  { %v321_v24 = vld [vmem:[#allocation4 + $0x2e0] sm:$0xff]  ;;  %v15674_v30 = vcombine.high %v318_v25, %v322_v26  ;;  %v326_v33 = vld [vmem:[#allocation4 + $0x308] sm:$0xff]  ;;  %v15673_v36 = vcombine.low %v318_v25, %v322_v26 }
  0xce   :  { %2138 = vmatpush1.bf16.msra.mxu0 %v15623_v50  ;;  %2524 = vmatpush1.bf16.msra.mxu1 %v15625_v51  ;;  %v15672_v29 = vcombine.high %v317_v23, %v321_v24  ;;  %v325_v31 = vld [vmem:[#allocation4 + $0x300] sm:$0xff]  ;;  %v330_v34 = vld [vmem:[#allocation4 + $0x328] sm:$0xff]  ;;  %v15671_v35 = vcombine.low %v317_v23, %v321_v24  ;;  %v20700_v23 = vld [vmem:[#allocation4 + $0x30] sm:$0xff] }
  0xcf   :  { %2139 = vmatprep.subr.bf16.mxu0 %v15632_v52  ;;  %2525 = vmatprep.subr.bf16.mxu1 %v15634_v54  ;;  %v329_v32 = vld [vmem:[#allocation4 + $0x320] sm:$0xff]  ;;  %v15682_v38 = vcombine.high %v326_v33, %v330_v34  ;;  %v334_v41 = vld [vmem:[#allocation4 + $0x348] sm:$0xff]  ;;  %v15681_v44 = vcombine.low %v326_v33, %v330_v34 }
  0xd0   :  { %v15680_v37 = vcombine.high %v325_v31, %v329_v32  ;;  %v333_v39 = vld [vmem:[#allocation4 + $0x340] sm:$0xff]  ;;  %v338_v42 = vld [vmem:[#allocation4 + $0x368] sm:$0xff]  ;;  %v15679_v43 = vcombine.low %v325_v31, %v329_v32 }
  0xd1   :  { %v337_v40 = vld [vmem:[#allocation4 + $0x360] sm:$0xff]  ;;  %v15690_v46 = vcombine.high %v334_v41, %v338_v42  ;;  %v342_v49 = vld [vmem:[#allocation4 + $0x388] sm:$0xff]  ;;  %v15689_v52 = vcombine.low %v334_v41, %v338_v42 }
  0xd2   :  { %2140 = vmatpush1.bf16.msra.mxu0 %v15631_v59  ;;  %2526 = vmatpush1.bf16.msra.mxu1 %v15633_v60  ;;  %v15688_v45 = vcombine.high %v333_v39, %v337_v40  ;;  %v341_v47 = vld [vmem:[#allocation4 + $0x380] sm:$0xff]  ;;  %v346_v50 = vld [vmem:[#allocation4 + $0x3a8] sm:$0xff]  ;;  %v15687_v51 = vcombine.low %v333_v39, %v337_v40 }
  0xd3   :  { %2141 = vmatprep.subr.bf16.mxu0 %v15640_v61  ;;  %2527 = vmatprep.subr.bf16.mxu1 %v15642_v62  ;;  %v345_v48 = vld [vmem:[#allocation4 + $0x3a0] sm:$0xff]  ;;  %v15698_v55 = vcombine.high %v342_v49, %v346_v50  ;;  %v350_v57 = vld [vmem:[#allocation4 + $0x3c8] sm:$0xff]  ;;  %v15697_v60 = vcombine.low %v342_v49, %v346_v50 }
  0xd4   :  { %v15696_v53 = vcombine.high %v341_v47, %v345_v48  ;;  %v349_v54 = vld [vmem:[#allocation4 + $0x3c0] sm:$0xff]  ;;  %v354_v58 = vld [vmem:[#allocation4 + $0x3e8] sm:$0xff]  ;;  %v15695_v59 = vcombine.low %v341_v47, %v345_v48 }
  0xd5   :  { %v353_v56 = vld [vmem:[#allocation4 + $0x3e0] sm:$0xff]  ;;  %v15706_v62 = vcombine.high %v350_v57, %v354_v58  ;;  %v358_v1 = vld [vmem:[#allocation4 + $0x408] sm:$0xff] }
  0xd6   :  { %2142 = vmatpush1.bf16.msra.mxu0 %v15639_v3  ;;  %2528 = vmatpush1.bf16.msra.mxu1 %v15641_v4  ;;  %v15704_v61 = vcombine.high %v349_v54, %v353_v56  ;;  %v357_v63 = vld [vmem:[#allocation4 + $0x400] sm:$0xff]  ;;  %v362_v2 = vld [vmem:[#allocation4 + $0x428] sm:$0xff]  ;;  %v15703_v3 = vcombine.low %v349_v54, %v353_v56  ;;  %v15705_v4 = vcombine.low %v350_v57, %v354_v58 }
  0xd7   :  { %2143 = vmatprep.subr.bf16.mxu0 %v15648_v5  ;;  %2529 = vmatprep.subr.bf16.mxu1 %v15650_v6  ;;  %v361_v0 = vld [vmem:[#allocation4 + $0x420] sm:$0xff]  ;;  %v15714_v7 = vcombine.high %v358_v1, %v362_v2  ;;  %v15713_v17 = vcombine.low %v358_v1, %v362_v2  ;;  %v374_v18 = vld [vmem:[#allocation4 + $0x488] sm:$0xff] }
  0xd8   :  { %v15712_v5 = vcombine.high %v357_v63, %v361_v0  ;;  %v18581_v6 = vld [vmem:[%s22904_s0] ss:$16 sps:$4 sm:$0xff]   ;;  %v18582_v8 = vld [vmem:[%s22904_s0 + $0x24] ss:$16 sps:$4 sm:$0xff]   ;;  %v382_v31 = vld [vmem:[#allocation4 + $0x4c8] sm:$0xff] }
  0xd9   :  { %v365_v9 = vld [vmem:[#allocation4 + $0x440] sm:$0xff]  ;;  %v386_v32 = vld [vmem:[#allocation4 + $0x4e8] sm:$0xff] }
  0xda   :  { %2144 = vmatpush1.bf16.msra.mxu0 %v15647_v11  ;;  %2530 = vmatpush1.bf16.msra.mxu1 %v15649_v12  ;;  %v369_v10 = vld [vmem:[#allocation4 + $0x460] sm:$0xff]  ;;  %v366_v11 = vld [vmem:[#allocation4 + $0x448] sm:$0xff]  ;;  %v15711_v12 = vcombine.low %v357_v63, %v361_v0  ;;  %v15738_v39 = vcombine.high %v382_v31, %v386_v32  ;;  %v15737_v48 = vcombine.low %v382_v31, %v386_v32 }
  0xdb   :  { %2145 = vmatprep.subr.bf16.mxu0 %v15656_v13  ;;  %2531 = vmatprep.subr.bf16.mxu1 %v15658_v14  ;;  %v373_v13 = vld [vmem:[#allocation4 + $0x480] sm:$0xff]  ;;  %v370_v14 = vld [vmem:[#allocation4 + $0x468] sm:$0xff]  ;;  %v15720_v16 = vcombine.high %v365_v9, %v369_v10 }
  0xdc   :  { %v377_v15 = vld [vmem:[#allocation4 + $0x4a0] sm:$0xff]  ;;  %v390_v40 = vld [vmem:[#allocation4 + $0x508] sm:$0xff] }
  0xdd   :  { %v18584_v24 = vld [vmem:[%s22904_s0 + $0x20] ss:$16 sps:$4 sm:$0xff]   ;;  %v15728_v25 = vcombine.high %v373_v13, %v377_v15  ;;  %v15727_v34 = vcombine.low %v373_v13, %v377_v15  ;;  %v394_v41 = vld [vmem:[#allocation4 + $0x528] sm:$0xff]  ;;  %v18591_v0 = vld [vmem:[%s22904_s0 + $0x84] ss:$16 sps:$4 sm:$0xff]  }
  0xde   :  { %2146 = vmatpush1.bf16.msra.mxu0 %v15655_v19  ;;  %2532 = vmatpush1.bf16.msra.mxu1 %v15657_v20  ;;  %v15722_v19 = vcombine.high %v366_v11, %v370_v14  ;;  %v15719_v20 = vcombine.low %v365_v9, %v369_v10  ;;  %v381_v26 = vld [vmem:[#allocation4 + $0x4c0] sm:$0xff]  ;;  %v398_v49 = vld [vmem:[#allocation4 + $0x548] sm:$0xff]  ;;  %v15745_v56 = vcombine.low %v390_v40, %v394_v41 }
  0xdf   :  { %2147 = vmatprep.subr.bf16.mxu0 %v15664_v21  ;;  %2533 = vmatprep.subr.bf16.mxu1 %v15666_v22  ;;  %v378_v21 = vld [vmem:[#allocation4 + $0x4a8] sm:$0xff]  ;;  %v20698_v22 = vld [vmem:[#allocation4 + $0x10] sm:$0xff]  ;;  %v409_v54 = vld [vmem:[#allocation4 + $0x5a0] sm:$0xff] }
  0xe0   :  { %v15730_v33 = vcombine.high %v374_v18, %v378_v21  ;;  %v18587_v42 = vld [vmem:[%s22904_s0 + $0x40] ss:$16 sps:$4 sm:$0xff]   ;;  %v402_v50 = vld [vmem:[#allocation4 + $0x568] sm:$0xff] }
  0xe1   :  { %v15754_v57 = vcombine.high %v398_v49, %v402_v50  ;;  %v406_v58 = vld [vmem:[#allocation4 + $0x588] sm:$0xff]  ;;  %v417_v63 = vld [vmem:[#allocation4 + $0x5e0] sm:$0xff]  ;;  %v15753_v2 = vcombine.low %v398_v49, %v402_v50 }
  0xe2   :  { %2148 = vmatpush1.bf16.msra.mxu0 %v15663_v27  ;;  %2534 = vmatpush1.bf16.msra.mxu1 %v15665_v28  ;;  %v385_v27 = vld [vmem:[#allocation4 + $0x4e0] sm:$0xff]  ;;  %v15587_v28 = vcombine.low %v20698_v22, %v20700_v23  ;;  %v426_v13 = vld [vmem:[#allocation4 + $0x628] sm:$0xff] }
  0xe3   :  { %2149 = vmatprep.subr.bf16.mxu0 %v15672_v29  ;;  %2535 = vmatprep.subr.bf16.mxu1 %v15674_v30  ;;  %v18585_v29 = vld [vmem:[%s22904_s0 + $0x44] ss:$16 sps:$4 sm:$0xff]   ;;  %v15721_v30 = vcombine.low %v366_v11, %v370_v14  ;;  %v18593_v14 = vld [vmem:[%s22904_s0 + $0x80] ss:$16 sps:$4 sm:$0xff]  }
  0xe6   :  { %2150 = vmatpush1.bf16.msra.mxu0 %v15671_v35  ;;  %2536 = vmatpush1.bf16.msra.mxu1 %v15673_v36  ;;  %v389_v35 = vld [vmem:[#allocation4 + $0x500] sm:$0xff] }
  0xe7   :  { %2151 = vmatprep.subr.bf16.mxu0 %v15680_v37  ;;  %2537 = vmatprep.subr.bf16.mxu1 %v15682_v38  ;;  %v393_v36 = vld [vmem:[#allocation4 + $0x520] sm:$0xff]  ;;  %v15736_v37 = vcombine.high %v381_v26, %v385_v27  ;;  %v15729_v38 = vcombine.low %v374_v18, %v378_v21  ;;  %v430_v21 = vld [vmem:[#allocation4 + $0x648] sm:$0xff] }
  0xe8   :  { %v15744_v47 = vcombine.high %v389_v35, %v393_v36  ;;  %v18594_v18 = vld [vmem:[%s22904_s0 + $0xa4] ss:$16 sps:$4 sm:$0xff]  }
  0xea   :  { %2152 = vmatpush1.bf16.msra.mxu0 %v15679_v43  ;;  %2538 = vmatpush1.bf16.msra.mxu1 %v15681_v44  ;;  %v15735_v43 = vcombine.low %v381_v26, %v385_v27  ;;  %v397_v44 = vld [vmem:[#allocation4 + $0x540] sm:$0xff] }
  0xeb   :  { %2153 = vmatprep.subr.bf16.mxu0 %v15688_v45  ;;  %2539 = vmatprep.subr.bf16.mxu1 %v15690_v46  ;;  %v401_v45 = vld [vmem:[#allocation4 + $0x560] sm:$0xff] }
  0xec   :  { %v18588_v46 = vld [vmem:[%s22904_s0 + $0x64] ss:$16 sps:$4 sm:$0xff]  }
  0xed   :  { %v437_v27 = vld [vmem:[#allocation4 + $0x680] sm:$0xff] }
  0xee   :  { %2154 = vmatpush1.bf16.msra.mxu0 %v15687_v51  ;;  %2540 = vmatpush1.bf16.msra.mxu1 %v15689_v52  ;;  %v15746_v51 = vcombine.high %v390_v40, %v394_v41  ;;  %v15743_v52 = vcombine.low %v389_v35, %v393_v36  ;;  %v18596_v35 = vld [vmem:[%s22904_s0 + $0xa0] ss:$16 sps:$4 sm:$0xff]  }
  0xef   :  { %2155 = vmatprep.subr.bf16.mxu0 %v15696_v53  ;;  %2541 = vmatprep.subr.bf16.mxu1 %v15698_v55  ;;  %v405_v53 = vld [vmem:[#allocation4 + $0x580] sm:$0xff]  ;;  %v15752_v55 = vcombine.high %v397_v44, %v401_v45 }
  0xf0   :  { %v15760_v1 = vcombine.high %v405_v53, %v409_v54 }
  0xf2   :  { %2156 = vmatpush1.bf16.msra.mxu0 %v15695_v59  ;;  %2542 = vmatpush1.bf16.msra.mxu1 %v15697_v60  ;;  %v410_v59 = vld [vmem:[#allocation4 + $0x5a8] sm:$0xff]  ;;  %v18590_v60 = vld [vmem:[%s22904_s0 + $0x60] ss:$16 sps:$4 sm:$0xff]  }
  0xf3   :  { %2157 = vmatprep.subr.bf16.mxu0 %v15704_v61  ;;  %2543 = vmatprep.subr.bf16.mxu1 %v15706_v62  ;;  %v15751_v61 = vcombine.low %v397_v44, %v401_v45  ;;  %v413_v62 = vld [vmem:[#allocation4 + $0x5c0] sm:$0xff]  ;;  %v15761_v10 = vcombine.low %v406_v58, %v410_v59 }
  0xf4   :  { %v15768_v9 = vcombine.high %v413_v62, %v417_v63  ;;  %v15767_v15 = vcombine.low %v413_v62, %v417_v63 }
  0xf6   :  { %2158 = vmatpush1.bf16.msra.mxu0 %v15703_v3  ;;  %2544 = vmatpush1.bf16.msra.mxu1 %v15705_v4  ;;  %v414_v3 = vld [vmem:[#allocation4 + $0x5c8] sm:$0xff] }
  0xf7   :  { %2320 = vmatprep.subr.bf16.mxu0 %v15712_v5  ;;  %2706 = vmatprep.subr.bf16.mxu1 %v15714_v7  ;;  %v418_v4 = vld [vmem:[#allocation4 + $0x5e8] sm:$0xff]  ;;  %v15762_v5 = vcombine.high %v406_v58, %v410_v59  ;;  %v421_v7 = vld [vmem:[#allocation4 + $0x600] sm:$0xff] }
  0xf8   :  { %v15770_v11 = vcombine.high %v414_v3, %v418_v4 }
  0xf9   :  { %2160 = vmatmul.mubr.bf16.vlgmr.msra.gmra.mrb[0].mxu0 %v18581_v6  ;;  %2546 = vmatmul.mubr.bf16.vlgmr.msra.gmra.mrb[0].mxu1 %v18581_v6  ;;  %v15759_v6 = vcombine.low %v405_v53, %v409_v54  ;;  %v18599_v53 = vld [vmem:[%s22904_s0 + $0xc0] ss:$16 sps:$4 sm:$0xff]  }
  0xfa   :  { %2321 = vmatpush1.bf16.msra.mxu0 %v15711_v12  ;;  %2169 = vmatprep.mubr.bf16.mxu0 %v18582_v8  ;;  %v422_v12 = vld [vmem:[#allocation4 + $0x608] sm:$0xff] }
  0xfb   :  { %2555 = vmatprep.mubr.bf16.mxu1 %v18582_v8  ;;  %2322 = vmatprep.subr.bf16.mxu0 %v15720_v16  ;;  %v425_v8 = vld [vmem:[#allocation4 + $0x620] sm:$0xff]  ;;  %v15777_v31 = vcombine.low %v422_v12, %v426_v13 }
  0xfc   :  { %2707 = vmatpush1.bf16.msra.mxu1 %v15713_v17  ;;  %v429_v16 = vld [vmem:[#allocation4 + $0x640] sm:$0xff]  ;;  %v15775_v26 = vcombine.low %v421_v7, %v425_v8 }
  0xfd   :  { %2708 = vmatprep.subr.bf16.mxu1 %v15722_v19  ;;  %v433_v17 = vld [vmem:[#allocation4 + $0x660] sm:$0xff]  ;;  %v15776_v19 = vcombine.high %v421_v7, %v425_v8 }
  0xfe   :  { %2323 = vmatpush1.bf16.msra.mxu0 %v15719_v20  ;;  %v15769_v20 = vcombine.low %v414_v3, %v418_v4  ;;  %v15783_v36 = vcombine.low %v429_v16, %v433_v17  ;;  %v18602_v7 = vld [vmem:[%s22904_s0 + $0xe0] ss:$16 sps:$4 sm:$0xff]  }
  0xff   :  { %2324 = vmatprep.subr.bf16.mxu0 %v15728_v25  ;;  %v15778_v25 = vcombine.high %v422_v12, %v426_v13 }
 0x100   :  { %2709 = vmatpush1.bf16.msra.mxu1 %v15721_v30  ;;  %v15784_v30 = vcombine.high %v429_v16, %v433_v17 }
 0x101   :  { %2170 = vmatmul.mubr.bf16.gmra.mrb[4].mxu0 %v18584_v24  ;;  %2710 = vmatprep.subr.bf16.mxu1 %v15730_v33  ;;  %v438_v33 = vld [vmem:[#allocation4 + $0x688] sm:$0xff] }
 0x102   :  { %2556 = vmatmul.mubr.bf16.gmra.mrb[4].mxu1 %v18584_v24  ;;  %2179 = vmatprep.mubr.bf16.mxu0 %v18585_v29  ;;  %v434_v24 = vld [vmem:[#allocation4 + $0x668] sm:$0xff] }
 0x103   :  { %2565 = vmatprep.mubr.bf16.mxu1 %v18585_v29  ;;  %2325 = vmatpush1.bf16.msra.mxu0 %v15727_v34  ;;  %v441_v29 = vld [vmem:[#allocation4 + $0x6a0] sm:$0xff]  ;;  %v15786_v32 = vcombine.high %v430_v21, %v434_v24  ;;  %v442_v34 = vld [vmem:[#allocation4 + $0x6a8] sm:$0xff]  ;;  %v15785_v41 = vcombine.low %v430_v21, %v434_v24 }
 0x104   :  { %2326 = vmatprep.subr.bf16.mxu0 %v15736_v37  ;;  %2711 = vmatpush1.bf16.msra.mxu1 %v15729_v38  ;;  %v445_v37 = vld [vmem:[#allocation4 + $0x6c0] sm:$0xff]  ;;  %v15792_v40 = vcombine.high %v437_v27, %v441_v29  ;;  %v15794_v44 = vcombine.high %v438_v33, %v442_v34  ;;  %v15791_v45 = vcombine.low %v437_v27, %v441_v29  ;;  %v20754_v29 = vld [vmem:[#allocation4 + $0x18] sm:$0xff] }
 0x105   :  { %2712 = vmatprep.subr.bf16.mxu1 %v15738_v39  ;;  %v449_v38 = vld [vmem:[#allocation4 + $0x6e0] sm:$0xff]  ;;  %v15793_v49 = vcombine.low %v438_v33, %v442_v34  ;;  %v15588_v27 = vcombine.high %v20698_v22, %v20700_v23  ;;  %v256_v23 = vld [vmem:[#allocation4 + $0xd8] sm:$0xff] }
 0x106   :  { %v18597_v39 = vld [vmem:[%s22904_s0 + $0xc4] ss:$16 sps:$4 sm:$0xff]   ;;  %v15799_v54 = vcombine.low %v445_v37, %v449_v38  ;;  %v18605_v21 = vld [vmem:[%s22904_s0 + $0x100] ss:$16 sps:$4 sm:$0xff]  }
 0x107   :  { %2327 = vmatpush1.bf16.msra.mxu0 %v15735_v43  ;;  %v450_v43 = vld [vmem:[#allocation4 + $0x6e8] sm:$0xff]  ;;  %v18608_v33 = vld [vmem:[%s22904_s0 + $0x120] ss:$16 sps:$4 sm:$0xff]   ;;  %v18609_v34 = vld [vmem:[%s22904_s0 + $0x144] ss:$16 sps:$4 sm:$0xff]  }
 0x108   :  { %2328 = vmatprep.subr.bf16.mxu0 %v15744_v47  ;;  %2713 = vmatpush1.bf16.msra.mxu1 %v15737_v48  ;;  %v457_v47 = vld [vmem:[#allocation4 + $0x720] sm:$0xff]  ;;  %v15800_v48 = vcombine.high %v445_v37, %v449_v38 }
 0x109   :  { %2180 = vmatmul.mubr.bf16.gmra.mrb[8].mxu0 %v18587_v42  ;;  %2714 = vmatprep.subr.bf16.mxu1 %v15746_v51  ;;  %v454_v51 = vld [vmem:[#allocation4 + $0x708] sm:$0xff]  ;;  %v18614_v37 = vld [vmem:[%s22904_s0 + $0x160] ss:$16 sps:$4 sm:$0xff]   ;;  %v18615_v38 = vld [vmem:[%s22904_s0 + $0x184] ss:$16 sps:$4 sm:$0xff]  }
 0x10a   :  { %2566 = vmatmul.mubr.bf16.gmra.mrb[8].mxu1 %v18587_v42  ;;  %2189 = vmatprep.mubr.bf16.mxu0 %v18588_v46  ;;  %v446_v42 = vld [vmem:[#allocation4 + $0x6c8] sm:$0xff] }
 0x10b   :  { %2575 = vmatprep.mubr.bf16.mxu1 %v18588_v46  ;;  %2329 = vmatpush1.bf16.msra.mxu0 %v15743_v52  ;;  %v453_v46 = vld [vmem:[#allocation4 + $0x700] sm:$0xff]  ;;  %v15802_v50 = vcombine.high %v446_v42, %v450_v43  ;;  %v458_v52 = vld [vmem:[#allocation4 + $0x728] sm:$0xff]  ;;  %v15801_v59 = vcombine.low %v446_v42, %v450_v43 }
 0x10c   :  { %2330 = vmatprep.subr.bf16.mxu0 %v15752_v55  ;;  %2715 = vmatpush1.bf16.msra.mxu1 %v15745_v56  ;;  %v461_v55 = vld [vmem:[#allocation4 + $0x740] sm:$0xff]  ;;  %v15808_v58 = vcombine.high %v453_v46, %v457_v47  ;;  %v15810_v62 = vcombine.high %v454_v51, %v458_v52  ;;  %v15807_v63 = vcombine.low %v453_v46, %v457_v47  ;;  %v18629_v46 = vld [vmem:[%s22904_s0 + $0xc] ss:$16 sps:$4 sm:$0xff]   ;;  %v18627_v47 = vld [vmem:[%s22904_s0 + $0x8] ss:$16 sps:$4 sm:$0xff]  }
 0x10d   :  { %2716 = vmatprep.subr.bf16.mxu1 %v15754_v57  ;;  %v465_v56 = vld [vmem:[#allocation4 + $0x760] sm:$0xff]  ;;  %v15809_v3 = vcombine.low %v454_v51, %v458_v52  ;;  %v244_v51 = vld [vmem:[#allocation4 + $0x78] sm:$0xff] }
 0x10e   :  { %v18600_v57 = vld [vmem:[%s22904_s0 + $0xe4] ss:$16 sps:$4 sm:$0xff]   ;;  %v15815_v8 = vcombine.low %v461_v55, %v465_v56  ;;  %v18623_v43 = vld [vmem:[%s22904_s0 + $0x1c0] ss:$16 sps:$4 sm:$0xff]   ;;  %v18630_v52 = vld [vmem:[%s22904_s0 + $0x2c] ss:$16 sps:$4 sm:$0xff]  }
 0x10f   :  { %2331 = vmatpush1.bf16.msra.mxu0 %v15751_v61  ;;  %v466_v61 = vld [vmem:[#allocation4 + $0x768] sm:$0xff]  ;;  %v18621_v42 = vld [vmem:[%s22904_s0 + $0x1c4] ss:$16 sps:$4 sm:$0xff]  }
 0x110   :  { %2332 = vmatprep.subr.bf16.mxu0 %v15760_v1  ;;  %2717 = vmatpush1.bf16.msra.mxu1 %v15753_v2  ;;  %v473_v1 = vld [vmem:[#allocation4 + $0x7a0] sm:$0xff]  ;;  %v15816_v2 = vcombine.high %v461_v55, %v465_v56  ;;  %v248_v56 = vld [vmem:[#allocation4 + $0x98] sm:$0xff] }
 0x111   :  { %2190 = vmatmul.mubr.bf16.gmra.mrb[12].mxu0 %v18590_v60  ;;  %2718 = vmatprep.subr.bf16.mxu1 %v15762_v5  ;;  %v470_v5 = vld [vmem:[#allocation4 + $0x788] sm:$0xff] }
 0x112   :  { %2576 = vmatmul.mubr.bf16.gmra.mrb[12].mxu1 %v18590_v60  ;;  %2199 = vmatprep.mubr.bf16.mxu0 %v18591_v0  ;;  %v462_v60 = vld [vmem:[#allocation4 + $0x748] sm:$0xff] }
 0x113   :  { %2585 = vmatprep.mubr.bf16.mxu1 %v18591_v0  ;;  %2333 = vmatpush1.bf16.msra.mxu0 %v15759_v6  ;;  %v469_v0 = vld [vmem:[#allocation4 + $0x780] sm:$0xff]  ;;  %v15818_v4 = vcombine.high %v462_v60, %v466_v61  ;;  %v474_v6 = vld [vmem:[#allocation4 + $0x7a8] sm:$0xff]  ;;  %v15817_v13 = vcombine.low %v462_v60, %v466_v61  ;;  %v20812_v60 = vld [vmem:[#allocation4 + $0x430] sm:$0xff] }
 0x114   :  { %2334 = vmatprep.subr.bf16.mxu0 %v15768_v9  ;;  %2719 = vmatpush1.bf16.msra.mxu1 %v15761_v10  ;;  %v477_v9 = vld [vmem:[#allocation4 + $0x7c0] sm:$0xff]  ;;  %v15824_v12 = vcombine.high %v469_v0, %v473_v1  ;;  %v15826_v16 = vcombine.high %v470_v5, %v474_v6  ;;  %v15823_v17 = vcombine.low %v469_v0, %v473_v1  ;;  %v255_v1 = vld [vmem:[#allocation4 + $0xd0] sm:$0xff] }
 0x115   :  { %2720 = vmatprep.subr.bf16.mxu1 %v15770_v11  ;;  %v481_v10 = vld [vmem:[#allocation4 + $0x7e0] sm:$0xff] }
 0x116   :  { %v18603_v11 = vld [vmem:[%s22904_s0 + $0x104] ss:$16 sps:$4 sm:$0xff]   ;;  %v15831_v24 = vcombine.low %v477_v9, %v481_v10 }
 0x117   :  { %2335 = vmatpush1.bf16.msra.mxu0 %v15767_v15  ;;  %v482_v15 = vld [vmem:[#allocation4 + $0x7e8] sm:$0xff] }
 0x118   :  { %2336 = vmatprep.subr.bf16.mxu0 %v15776_v19  ;;  %2721 = vmatpush1.bf16.msra.mxu1 %v15769_v20  ;;  %v15825_v19 = vcombine.low %v470_v5, %v474_v6  ;;  %v263_v6 = vld [vmem:[#allocation4 + $0x110] sm:$0xff] }
 0x119   :  { %2200 = vmatmul.mubr.bf16.gmra.mrb[16].mxu0 %v18593_v14  ;;  %2722 = vmatprep.subr.bf16.mxu1 %v15778_v25  ;;  %v18606_v25 = vld [vmem:[%s22904_s0 + $0x124] ss:$16 sps:$4 sm:$0xff]  }
 0x11a   :  { %2586 = vmatmul.mubr.bf16.gmra.mrb[16].mxu1 %v18593_v14  ;;  %2209 = vmatprep.mubr.bf16.mxu0 %v18594_v18  ;;  %v478_v14 = vld [vmem:[#allocation4 + $0x7c8] sm:$0xff] }
 0x11b   :  { %2595 = vmatprep.mubr.bf16.mxu1 %v18594_v18  ;;  %2337 = vmatpush1.bf16.msra.mxu0 %v15775_v26  ;;  %v15832_v18 = vcombine.high %v477_v9, %v481_v10  ;;  %v15834_v20 = vcombine.high %v478_v14, %v482_v15  ;;  %v15833_v26 = vcombine.low %v478_v14, %v482_v15  ;;  %v271_v15 = vld [vmem:[#allocation4 + $0x150] sm:$0xff] }
 0x11c   :  { %2338 = vmatprep.subr.bf16.mxu0 %v15784_v30  ;;  %2723 = vmatpush1.bf16.msra.mxu1 %v15777_v31  ;;  %v20756_v30 = vld [vmem:[#allocation4 + $0x38] sm:$0xff] }
 0x11d   :  { %2724 = vmatprep.subr.bf16.mxu1 %v15786_v32  ;;  %v15590_v31 = vcombine.high %v20754_v29, %v20756_v30  ;;  %v15589_v32 = vcombine.low %v20754_v29, %v20756_v30 }
 0x11f   :  { %2339 = vmatpush1.bf16.msra.mxu0 %v15783_v36  ;;  %v18612_v36 = vld [vmem:[%s22904_s0 + $0x164] ss:$16 sps:$4 sm:$0xff]  }
 0x120   :  { %2340 = vmatprep.subr.bf16.mxu0 %v15792_v40  ;;  %2725 = vmatpush1.bf16.msra.mxu1 %v15785_v41  ;;  %v18618_v40 = vld [vmem:[%s22904_s0 + $0x1a4] ss:$16 sps:$4 sm:$0xff]   ;;  %v18620_v41 = vld [vmem:[%s22904_s0 + $0x1a0] ss:$16 sps:$4 sm:$0xff]  }
 0x121   :  { %2210 = vmatmul.mubr.bf16.gmra.mrb[20].mxu0 %v18596_v35  ;;  %2726 = vmatprep.subr.bf16.mxu1 %v15794_v44  ;;  %v18624_v44 = vld [vmem:[%s22904_s0 + $0x1e4] ss:$16 sps:$4 sm:$0xff]  }
 0x122   :  { %2596 = vmatmul.mubr.bf16.gmra.mrb[20].mxu1 %v18596_v35  ;;  %2219 = vmatprep.mubr.bf16.mxu0 %v18597_v39  ;;  %v18611_v35 = vld [vmem:[%s22904_s0 + $0x140] ss:$16 sps:$4 sm:$0xff]  }
 0x123   :  { %2605 = vmatprep.mubr.bf16.mxu1 %v18597_v39  ;;  %2341 = vmatpush1.bf16.msra.mxu0 %v15791_v45  ;;  %v18617_v39 = vld [vmem:[%s22904_s0 + $0x180] ss:$16 sps:$4 sm:$0xff]  }
 0x124   :  { %2342 = vmatprep.subr.bf16.mxu0 %v15800_v48  ;;  %2727 = vmatpush1.bf16.msra.mxu1 %v15793_v49  ;;  %v18626_v45 = vld [vmem:[%s22904_s0 + $0x1e0] ss:$16 sps:$4 sm:$0xff]  }
 0x125   :  { %2728 = vmatprep.subr.bf16.mxu1 %v15802_v50  ;;  %v239_v48 = vld [vmem:[#allocation4 + $0x50] sm:$0xff]  ;;  %v240_v50 = vld [vmem:[#allocation4 + $0x58] sm:$0xff] }
 0x126   :  { %v243_v49 = vld [vmem:[#allocation4 + $0x70] sm:$0xff]  ;;  %v15597_v22 = vcombine.low %v240_v50, %v244_v51 }
 0x127   :  { %2343 = vmatpush1.bf16.msra.mxu0 %v15799_v54  ;;  %v251_v54 = vld [vmem:[#allocation4 + $0xb0] sm:$0xff]  ;;  %v15596_v55 = vcombine.high %v239_v48, %v243_v49  ;;  %v15595_v61 = vcombine.low %v239_v48, %v243_v49 }
 0x128   :  { %2344 = vmatprep.subr.bf16.mxu0 %v15808_v58  ;;  %2729 = vmatpush1.bf16.msra.mxu1 %v15801_v59  ;;  %v15598_v58 = vcombine.high %v240_v50, %v244_v51  ;;  %v20810_v59 = vld [vmem:[#allocation4 + $0x410] sm:$0xff]  ;;  %v296_v50 = vld [vmem:[#allocation4 + $0x218] sm:$0xff] }
 0x129   :  { %2220 = vmatmul.mubr.bf16.gmra.mrb[24].mxu0 %v18599_v53  ;;  %2730 = vmatprep.subr.bf16.mxu1 %v15810_v62  ;;  %v15715_v62 = vcombine.low %v20810_v59, %v20812_v60  ;;  %v300_v51 = vld [vmem:[#allocation4 + $0x238] sm:$0xff] }
 0x12a   :  { %2606 = vmatmul.mubr.bf16.gmra.mrb[24].mxu1 %v18599_v53  ;;  %2229 = vmatprep.mubr.bf16.mxu0 %v18600_v57  ;;  %v247_v53 = vld [vmem:[#allocation4 + $0x90] sm:$0xff] }
 0x12b   :  { %2615 = vmatprep.mubr.bf16.mxu1 %v18600_v57  ;;  %2345 = vmatpush1.bf16.msra.mxu0 %v15807_v63  ;;  %v252_v57 = vld [vmem:[#allocation4 + $0xb8] sm:$0xff]  ;;  %v15604_v0 = vcombine.high %v247_v53, %v251_v54  ;;  %v15603_v5 = vcombine.low %v247_v53, %v251_v54  ;;  %v303_v54 = vld [vmem:[#allocation4 + $0x250] sm:$0xff] }
 0x12c   :  { %2346 = vmatprep.subr.bf16.mxu0 %v15816_v2  ;;  %2731 = vmatpush1.bf16.msra.mxu1 %v15809_v3  ;;  %v18632_v63 = vld [vmem:[%s22904_s0 + $0x28] ss:$16 sps:$4 sm:$0xff]   ;;  %v259_v2 = vld [vmem:[#allocation4 + $0xf0] sm:$0xff]  ;;  %v18633_v3 = vld [vmem:[%s22904_s0 + $0x4c] ss:$16 sps:$4 sm:$0xff]   ;;  %v15605_v9 = vcombine.low %v248_v56, %v252_v57 }
 0x12d   :  { %2732 = vmatprep.subr.bf16.mxu1 %v15818_v4  ;;  %v15606_v4 = vcombine.high %v248_v56, %v252_v57  ;;  %v15611_v14 = vcombine.low %v255_v1, %v259_v2  ;;  %v18642_v56 = vld [vmem:[%s22904_s0 + $0xac] ss:$16 sps:$4 sm:$0xff]  }
 0x12f   :  { %2347 = vmatpush1.bf16.msra.mxu0 %v15815_v8  ;;  %v15612_v8 = vcombine.high %v255_v1, %v259_v2  ;;  %v311_v2 = vld [vmem:[#allocation4 + $0x290] sm:$0xff] }
 0x130   :  { %2348 = vmatprep.subr.bf16.mxu0 %v15824_v12  ;;  %2733 = vmatpush1.bf16.msra.mxu1 %v15817_v13  ;;  %v268_v12 = vld [vmem:[#allocation4 + $0x138] sm:$0xff] }
 0x131   :  { %2230 = vmatmul.mubr.bf16.gmra.mrb[28].mxu0 %v18602_v7  ;;  %2734 = vmatprep.subr.bf16.mxu1 %v15826_v16  ;;  %v18635_v13 = vld [vmem:[%s22904_s0 + $0x48] ss:$16 sps:$4 sm:$0xff]   ;;  %v275_v16 = vld [vmem:[#allocation4 + $0x170] sm:$0xff] }
 0x132   :  { %2616 = vmatmul.mubr.bf16.gmra.mrb[28].mxu1 %v18602_v7  ;;  %2239 = vmatprep.mubr.bf16.mxu0 %v18603_v11  ;;  %v267_v7 = vld [vmem:[#allocation4 + $0x130] sm:$0xff]  ;;  %v15628_v29 = vcombine.high %v271_v15, %v275_v16 }
 0x133   :  { %2625 = vmatprep.mubr.bf16.mxu1 %v18603_v11  ;;  %2349 = vmatpush1.bf16.msra.mxu0 %v15823_v17  ;;  %v264_v11 = vld [vmem:[#allocation4 + $0x118] sm:$0xff] }
 0x134   :  { %2350 = vmatprep.subr.bf16.mxu0 %v15832_v18  ;;  %2735 = vmatpush1.bf16.msra.mxu1 %v15825_v19  ;;  %v18636_v17 = vld [vmem:[%s22904_s0 + $0x6c] ss:$16 sps:$4 sm:$0xff]   ;;  %v15620_v18 = vcombine.high %v263_v6, %v267_v7  ;;  %v15621_v30 = vcombine.low %v264_v11, %v268_v12 }
 0x135   :  { %2736 = vmatprep.subr.bf16.mxu1 %v15834_v20  ;;  %v272_v20 = vld [vmem:[#allocation4 + $0x158] sm:$0xff] }
 0x137   :  { %2351 = vmatpush1.bf16.msra.mxu0 %v15831_v24  ;;  %v15622_v24 = vcombine.high %v264_v11, %v268_v12 }
 0x138   :  { %2737 = vmatpush1.bf16.msra.mxu1 %v15833_v26  ;;  %2899 = vmatprep.subr.bf16.mxu0 %v15588_v27  ;;  %v279_v26 = vld [vmem:[#allocation4 + $0x190] sm:$0xff] }
 0x139   :  { %2240 = vmatmul.mubr.bf16.gmra.mrb[32].mxu0 %v18605_v21  ;;  %3285 = vmatprep.subr.bf16.mxu1 %v15590_v31  ;;  %v283_v27 = vld [vmem:[#allocation4 + $0x1b0] sm:$0xff] }
 0x13a   :  { %2626 = vmatmul.mubr.bf16.gmra.mrb[32].mxu1 %v18605_v21  ;;  %2249 = vmatprep.mubr.bf16.mxu0 %v18606_v25  ;;  %v276_v21 = vld [vmem:[#allocation4 + $0x178] sm:$0xff] }
 0x13b   :  { %2635 = vmatprep.mubr.bf16.mxu1 %v18606_v25  ;;  %v15619_v25 = vcombine.low %v263_v6, %v267_v7  ;;  %v15630_v31 = vcombine.high %v272_v20, %v276_v21  ;;  %v18644_v6 = vld [vmem:[%s22904_s0 + $0xa8] ss:$16 sps:$4 sm:$0xff]  }
 0x141   :  { %2250 = vmatmul.mubr.bf16.gmra.mrb[36].mxu0 %v18608_v33 }
 0x142   :  { %2636 = vmatmul.mubr.bf16.gmra.mrb[36].mxu1 %v18608_v33  ;;  %2259 = vmatprep.mubr.bf16.mxu0 %v18609_v34  ;;  %v284_v33 = vld [vmem:[#allocation4 + $0x1b8] sm:$0xff] }
 0x143   :  { %2645 = vmatprep.mubr.bf16.mxu1 %v18609_v34  ;;  %v18638_v34 = vld [vmem:[%s22904_s0 + $0x68] ss:$16 sps:$4 sm:$0xff]  }
 0x149   :  { %2260 = vmatmul.mubr.bf16.gmra.mrb[40].mxu0 %v18611_v35 }
 0x14a   :  { %2646 = vmatmul.mubr.bf16.gmra.mrb[40].mxu1 %v18611_v35  ;;  %2269 = vmatprep.mubr.bf16.mxu0 %v18612_v36  ;;  %v15627_v35 = vcombine.low %v271_v15, %v275_v16 }
 0x14b   :  { %2655 = vmatprep.mubr.bf16.mxu1 %v18612_v36  ;;  %v287_v36 = vld [vmem:[#allocation4 + $0x1d0] sm:$0xff] }
 0x151   :  { %2270 = vmatmul.mubr.bf16.gmra.mrb[44].mxu0 %v18614_v37 }
 0x152   :  { %2656 = vmatmul.mubr.bf16.gmra.mrb[44].mxu1 %v18614_v37  ;;  %2279 = vmatprep.mubr.bf16.mxu0 %v18615_v38  ;;  %v291_v37 = vld [vmem:[#allocation4 + $0x1f0] sm:$0xff] }
 0x153   :  { %2665 = vmatprep.mubr.bf16.mxu1 %v18615_v38  ;;  %v18639_v38 = vld [vmem:[%s22904_s0 + $0x8c] ss:$16 sps:$4 sm:$0xff]   ;;  %v15643_v53 = vcombine.low %v287_v36, %v291_v37 }
 0x159   :  { %2280 = vmatmul.mubr.bf16.gmra.mrb[48].mxu0 %v18617_v39 }
 0x15a   :  { %2666 = vmatmul.mubr.bf16.gmra.mrb[48].mxu1 %v18617_v39  ;;  %2289 = vmatprep.mubr.bf16.mxu0 %v18618_v40  ;;  %v15636_v39 = vcombine.high %v279_v26, %v283_v27 }
 0x15b   :  { %2675 = vmatprep.mubr.bf16.mxu1 %v18618_v40  ;;  %v15629_v40 = vcombine.low %v272_v20, %v276_v21 }
 0x161   :  { %2290 = vmatmul.mubr.bf16.gmra.mrb[52].mxu0 %v18620_v41 }
 0x162   :  { %2676 = vmatmul.mubr.bf16.gmra.mrb[52].mxu1 %v18620_v41  ;;  %2299 = vmatprep.mubr.bf16.mxu0 %v18621_v42  ;;  %v288_v41 = vld [vmem:[#allocation4 + $0x1d8] sm:$0xff] }
 0x163   :  { %2685 = vmatprep.mubr.bf16.mxu1 %v18621_v42  ;;  %v292_v42 = vld [vmem:[#allocation4 + $0x1f8] sm:$0xff] }
 0x164   :  { %v15646_v49 = vcombine.high %v288_v41, %v292_v42 }
 0x169   :  { %2300 = vmatmul.mubr.bf16.gmra.mrb[56].mxu0 %v18623_v43 }
 0x16a   :  { %2686 = vmatmul.mubr.bf16.gmra.mrb[56].mxu1 %v18623_v43  ;;  %2309 = vmatprep.mubr.bf16.mxu0 %v18624_v44 }
 0x16b   :  { %2695 = vmatprep.mubr.bf16.mxu1 %v18624_v44  ;;  %v15635_v44 = vcombine.low %v279_v26, %v283_v27  ;;  %v18647_v26 = vld [vmem:[%s22904_s0 + $0xc8] ss:$16 sps:$4 sm:$0xff]  }
 0x171   :  { %2310 = vmatmul.mubr.bf16.gmra.mrb[60].mxu0 %v18626_v45 }
 0x172   :  { %2696 = vmatmul.mubr.bf16.gmra.mrb[60].mxu1 %v18626_v45  ;;  %2352 = vmatprep.mubr.bf16.mxu0 %v18629_v46  ;;  %v295_v45 = vld [vmem:[#allocation4 + $0x210] sm:$0xff] }
 0x173   :  { %2738 = vmatprep.mubr.bf16.mxu1 %v18629_v46  ;;  %v299_v46 = vld [vmem:[#allocation4 + $0x230] sm:$0xff] }
 0x174   :  { %v15652_v57 = vcombine.high %v295_v45, %v299_v46  ;;  %v15651_v1 = vcombine.low %v295_v45, %v299_v46  ;;  %v18650_v45 = vld [vmem:[%s22904_s0 + $0xe8] ss:$16 sps:$4 sm:$0xff]  }
 0x179   :  { %2353 = vmatmul.mubr.bf16.vlgmr.msra.gmra.mrb[0].mxu0 %v18627_v47 }
 0x17a   :  { %2739 = vmatmul.mubr.bf16.vlgmr.msra.gmra.mrb[0].mxu1 %v18627_v47  ;;  %2900 = vmatpush1.bf16.msra.mxu0 %v15587_v28  ;;  %v260_v28 = vld [vmem:[#allocation4 + $0xf8] sm:$0xff]  ;;  %v15644_v47 = vcombine.high %v287_v36, %v291_v37 }
 0x17b   :  { %2362 = vmatprep.mubr.bf16.mxu0 %v18630_v52  ;;  %2748 = vmatprep.mubr.bf16.mxu1 %v18630_v52  ;;  %v15614_v10 = vcombine.high %v256_v23, %v260_v28  ;;  %v15613_v19 = vcombine.low %v256_v23, %v260_v28  ;;  %v18641_v52 = vld [vmem:[%s22904_s0 + $0x88] ss:$16 sps:$4 sm:$0xff]   ;;  %v15653_v23 = vcombine.low %v296_v50, %v300_v51 }
 0x17c   :  { %2901 = vmatprep.subr.bf16.mxu0 %v15596_v55  ;;  %3286 = vmatpush1.bf16.msra.mxu1 %v15589_v32  ;;  %v280_v32 = vld [vmem:[#allocation4 + $0x198] sm:$0xff]  ;;  %v307_v55 = vld [vmem:[#allocation4 + $0x270] sm:$0xff] }
 0x17d   :  { %3287 = vmatprep.subr.bf16.mxu1 %v15598_v58  ;;  %v15638_v43 = vcombine.high %v280_v32, %v284_v33  ;;  %v15637_v48 = vcombine.low %v280_v32, %v284_v33  ;;  %v15645_v58 = vcombine.low %v288_v41, %v292_v42  ;;  %v15659_v7 = vcombine.low %v303_v54, %v307_v55 }
 0x17e   :  { %2902 = vmatpush1.bf16.msra.mxu0 %v15595_v61  ;;  %v304_v61 = vld [vmem:[#allocation4 + $0x258] sm:$0xff] }
 0x17f   :  { %2903 = vmatprep.subr.bf16.mxu0 %v15604_v0  ;;  %v15654_v0 = vcombine.high %v296_v50, %v300_v51 }
 0x180   :  { %3288 = vmatpush1.bf16.msra.mxu1 %v15597_v22  ;;  %v15660_v22 = vcombine.high %v303_v54, %v307_v55 }
 0x181   :  { %2363 = vmatmul.mubr.bf16.gmra.mrb[4].mxu0 %v18632_v63  ;;  %3289 = vmatprep.subr.bf16.mxu1 %v15606_v4  ;;  %v312_v4 = vld [vmem:[#allocation4 + $0x298] sm:$0xff] }
 0x182   :  { %2749 = vmatmul.mubr.bf16.gmra.mrb[4].mxu1 %v18632_v63  ;;  %2372 = vmatprep.mubr.bf16.mxu0 %v18633_v3  ;;  %v308_v63 = vld [vmem:[#allocation4 + $0x278] sm:$0xff] }
 0x183   :  { %2758 = vmatprep.mubr.bf16.mxu1 %v18633_v3  ;;  %2904 = vmatpush1.bf16.msra.mxu0 %v15603_v5  ;;  %v315_v3 = vld [vmem:[#allocation4 + $0x2b0] sm:$0xff]  ;;  %v15662_v28 = vcombine.high %v304_v61, %v308_v63  ;;  %v316_v5 = vld [vmem:[#allocation4 + $0x2b8] sm:$0xff]  ;;  %v15661_v12 = vcombine.low %v304_v61, %v308_v63 }
 0x184   :  { %2905 = vmatprep.subr.bf16.mxu0 %v15612_v8  ;;  %3290 = vmatpush1.bf16.msra.mxu1 %v15605_v9  ;;  %v319_v8 = vld [vmem:[#allocation4 + $0x2d0] sm:$0xff]  ;;  %v15668_v11 = vcombine.high %v311_v2, %v315_v3  ;;  %v15670_v15 = vcombine.high %v312_v4, %v316_v5  ;;  %v15667_v16 = vcombine.low %v311_v2, %v315_v3  ;;  %v18653_v61 = vld [vmem:[%s22904_s0 + $0x108] ss:$16 sps:$4 sm:$0xff]  }
 0x185   :  { %3291 = vmatprep.subr.bf16.mxu1 %v15614_v10  ;;  %v323_v9 = vld [vmem:[#allocation4 + $0x2f0] sm:$0xff]  ;;  %v18645_v10 = vld [vmem:[%s22904_s0 + $0xcc] ss:$16 sps:$4 sm:$0xff]   ;;  %v15669_v20 = vcombine.low %v312_v4, %v316_v5  ;;  %v15716_v2 = vcombine.high %v20810_v59, %v20812_v60  ;;  %v18656_v4 = vld [vmem:[%s22904_s0 + $0x128] ss:$16 sps:$4 sm:$0xff]  }
 0x186   :  { %v15675_v27 = vcombine.low %v319_v8, %v323_v9  ;;  %v20872_v3 = vld [vmem:[#allocation4 + $0x418] sm:$0xff] }
 0x187   :  { %2906 = vmatpush1.bf16.msra.mxu0 %v15611_v14  ;;  %v324_v14 = vld [vmem:[#allocation4 + $0x2f8] sm:$0xff] }
 0x188   :  { %2907 = vmatprep.subr.bf16.mxu0 %v15620_v18  ;;  %3292 = vmatpush1.bf16.msra.mxu1 %v15613_v19  ;;  %v331_v18 = vld [vmem:[#allocation4 + $0x330] sm:$0xff]  ;;  %v15676_v19 = vcombine.high %v319_v8, %v323_v9  ;;  %v18657_v5 = vld [vmem:[%s22904_s0 + $0x14c] ss:$16 sps:$4 sm:$0xff]   ;;  %v18662_v8 = vld [vmem:[%s22904_s0 + $0x168] ss:$16 sps:$4 sm:$0xff]  }
 0x189   :  { %2373 = vmatmul.mubr.bf16.gmra.mrb[8].mxu0 %v18635_v13  ;;  %3293 = vmatprep.subr.bf16.mxu1 %v15622_v24  ;;  %v328_v24 = vld [vmem:[#allocation4 + $0x318] sm:$0xff] }
 0x18a   :  { %2759 = vmatmul.mubr.bf16.gmra.mrb[8].mxu1 %v18635_v13  ;;  %2382 = vmatprep.mubr.bf16.mxu0 %v18636_v17  ;;  %v320_v13 = vld [vmem:[#allocation4 + $0x2d8] sm:$0xff] }
 0x18b   :  { %2768 = vmatprep.mubr.bf16.mxu1 %v18636_v17  ;;  %2908 = vmatpush1.bf16.msra.mxu0 %v15619_v25  ;;  %v327_v17 = vld [vmem:[#allocation4 + $0x310] sm:$0xff]  ;;  %v15678_v21 = vcombine.high %v320_v13, %v324_v14  ;;  %v332_v25 = vld [vmem:[#allocation4 + $0x338] sm:$0xff]  ;;  %v15677_v33 = vcombine.low %v320_v13, %v324_v14 }
 0x18c   :  { %2909 = vmatprep.subr.bf16.mxu0 %v15628_v29  ;;  %3294 = vmatpush1.bf16.msra.mxu1 %v15621_v30  ;;  %v335_v29 = vld [vmem:[#allocation4 + $0x350] sm:$0xff]  ;;  %v15684_v32 = vcombine.high %v327_v17, %v331_v18  ;;  %v15686_v36 = vcombine.high %v328_v24, %v332_v25  ;;  %v15683_v37 = vcombine.low %v327_v17, %v331_v18  ;;  %v18663_v9 = vld [vmem:[%s22904_s0 + $0x18c] ss:$16 sps:$4 sm:$0xff]   ;;  %v18671_v14 = vld [vmem:[%s22904_s0 + $0x1c8] ss:$16 sps:$4 sm:$0xff]  }
 0x18d   :  { %3295 = vmatprep.subr.bf16.mxu1 %v15630_v31  ;;  %v339_v30 = vld [vmem:[#allocation4 + $0x370] sm:$0xff]  ;;  %v18648_v31 = vld [vmem:[%s22904_s0 + $0xec] ss:$16 sps:$4 sm:$0xff]   ;;  %v15685_v41 = vcombine.low %v328_v24, %v332_v25 }
 0x18e   :  { %v15691_v46 = vcombine.low %v335_v29, %v339_v30  ;;  %v18669_v13 = vld [vmem:[%s22904_s0 + $0x1cc] ss:$16 sps:$4 sm:$0xff]   ;;  %v20187_v17 = vld [vmem:[%s22904_s0 + $0x4] ss:$16 sps:$4 sm:$0xff]  }
 0x18f   :  { %2910 = vmatpush1.bf16.msra.mxu0 %v15627_v35  ;;  %v340_v35 = vld [vmem:[#allocation4 + $0x378] sm:$0xff]  ;;  %v367_v18 = vld [vmem:[#allocation4 + $0x450] sm:$0xff] }
 0x190   :  { %2911 = vmatprep.subr.bf16.mxu0 %v15636_v39  ;;  %3296 = vmatpush1.bf16.msra.mxu1 %v15629_v40  ;;  %v347_v39 = vld [vmem:[#allocation4 + $0x3b0] sm:$0xff]  ;;  %v15692_v40 = vcombine.high %v335_v29, %v339_v30  ;;  %v380_v29 = vld [vmem:[#allocation4 + $0x4b8] sm:$0xff] }
 0x191   :  { %2383 = vmatmul.mubr.bf16.gmra.mrb[12].mxu0 %v18638_v34  ;;  %3297 = vmatprep.subr.bf16.mxu1 %v15638_v43  ;;  %v344_v43 = vld [vmem:[#allocation4 + $0x398] sm:$0xff]  ;;  %v375_v24 = vld [vmem:[#allocation4 + $0x490] sm:$0xff] }
 0x192   :  { %2769 = vmatmul.mubr.bf16.gmra.mrb[12].mxu1 %v18638_v34  ;;  %2392 = vmatprep.mubr.bf16.mxu0 %v18639_v38  ;;  %v336_v34 = vld [vmem:[#allocation4 + $0x358] sm:$0xff]  ;;  %v379_v25 = vld [vmem:[#allocation4 + $0x4b0] sm:$0xff] }
 0x193   :  { %2778 = vmatprep.mubr.bf16.mxu1 %v18639_v38  ;;  %2912 = vmatpush1.bf16.msra.mxu0 %v15635_v44  ;;  %v343_v38 = vld [vmem:[#allocation4 + $0x390] sm:$0xff]  ;;  %v15694_v42 = vcombine.high %v336_v34, %v340_v35  ;;  %v348_v44 = vld [vmem:[#allocation4 + $0x3b8] sm:$0xff]  ;;  %v15693_v51 = vcombine.low %v336_v34, %v340_v35  ;;  %v15732_v34 = vcombine.high %v375_v24, %v379_v25 }
 0x194   :  { %2913 = vmatprep.subr.bf16.mxu0 %v15644_v47  ;;  %3298 = vmatpush1.bf16.msra.mxu1 %v15637_v48  ;;  %v351_v47 = vld [vmem:[#allocation4 + $0x3d0] sm:$0xff]  ;;  %v15700_v50 = vcombine.high %v343_v38, %v347_v39  ;;  %v15702_v54 = vcombine.high %v344_v43, %v348_v44  ;;  %v15699_v55 = vcombine.low %v343_v38, %v347_v39  ;;  %v384_v38 = vld [vmem:[#allocation4 + $0x4d8] sm:$0xff] }
 0x195   :  { %3299 = vmatprep.subr.bf16.mxu1 %v15646_v49  ;;  %v355_v48 = vld [vmem:[#allocation4 + $0x3f0] sm:$0xff]  ;;  %v18651_v49 = vld [vmem:[%s22904_s0 + $0x10c] ss:$16 sps:$4 sm:$0xff]   ;;  %v15731_v60 = vcombine.low %v375_v24, %v379_v25 }
 0x196   :  { %v15707_v63 = vcombine.low %v351_v47, %v355_v48  ;;  %v20188_v30 = vld [vmem:[%s22904_s0] ss:$16 sps:$4 sm:$0xff]   ;;  %v388_v39 = vld [vmem:[#allocation4 + $0x4f8] sm:$0xff] }
 0x197   :  { %2914 = vmatpush1.bf16.msra.mxu0 %v15643_v53  ;;  %v356_v53 = vld [vmem:[#allocation4 + $0x3f8] sm:$0xff]  ;;  %v383_v35 = vld [vmem:[#allocation4 + $0x4d0] sm:$0xff] }
 0x198   :  { %2915 = vmatprep.subr.bf16.mxu0 %v15652_v57  ;;  %3300 = vmatpush1.bf16.msra.mxu1 %v15645_v58  ;;  %v15701_v57 = vcombine.low %v344_v43, %v348_v44  ;;  %v392_v43 = vld [vmem:[#allocation4 + $0x518] sm:$0xff]  ;;  %v435_v24 = vld [vmem:[#allocation4 + $0x670] sm:$0xff] }
 0x199   :  { %2393 = vmatmul.mubr.bf16.gmra.mrb[16].mxu0 %v18641_v52  ;;  %3301 = vmatprep.subr.bf16.mxu1 %v15654_v0  ;;  %v18654_v0 = vld [vmem:[%s22904_s0 + $0x12c] ss:$16 sps:$4 sm:$0xff]  }
 0x19a   :  { %2779 = vmatmul.mubr.bf16.gmra.mrb[16].mxu1 %v18641_v52  ;;  %2402 = vmatprep.mubr.bf16.mxu0 %v18642_v56  ;;  %v352_v52 = vld [vmem:[#allocation4 + $0x3d8] sm:$0xff] }
 0x19b   :  { %2788 = vmatprep.mubr.bf16.mxu1 %v18642_v56  ;;  %2916 = vmatpush1.bf16.msra.mxu0 %v15651_v1  ;;  %v15708_v56 = vcombine.high %v351_v47, %v355_v48  ;;  %v15710_v58 = vcombine.high %v352_v52, %v356_v53  ;;  %v15709_v1 = vcombine.low %v352_v52, %v356_v53  ;;  %v396_v44 = vld [vmem:[#allocation4 + $0x538] sm:$0xff]  ;;  %v20191_v47 = vld [vmem:[%s22904_s0 + $0x44] ss:$16 sps:$4 sm:$0xff]  }
 0x19c   :  { %2917 = vmatprep.subr.bf16.mxu0 %v15660_v22  ;;  %3302 = vmatpush1.bf16.msra.mxu1 %v15653_v23  ;;  %v20874_v22 = vld [vmem:[#allocation4 + $0x438] sm:$0xff]  ;;  %v15741_v52 = vcombine.low %v384_v38, %v388_v39 }
 0x19d   :  { %3303 = vmatprep.subr.bf16.mxu1 %v15662_v28  ;;  %v15718_v23 = vcombine.high %v20872_v3, %v20874_v22  ;;  %v15717_v28 = vcombine.low %v20872_v3, %v20874_v22  ;;  %v400_v53 = vld [vmem:[#allocation4 + $0x558] sm:$0xff]  ;;  %v20193_v22 = vld [vmem:[%s22904_s0 + $0x64] ss:$16 sps:$4 sm:$0xff]  }
 0x19f   :  { %2918 = vmatpush1.bf16.msra.mxu0 %v15659_v7  ;;  %v18660_v7 = vld [vmem:[%s22904_s0 + $0x16c] ss:$16 sps:$4 sm:$0xff]  }
 0x1a0   :  { %2919 = vmatprep.subr.bf16.mxu0 %v15668_v11  ;;  %3304 = vmatpush1.bf16.msra.mxu1 %v15661_v12  ;;  %v18666_v11 = vld [vmem:[%s22904_s0 + $0x1ac] ss:$16 sps:$4 sm:$0xff]   ;;  %v18668_v12 = vld [vmem:[%s22904_s0 + $0x1a8] ss:$16 sps:$4 sm:$0xff]  }
 0x1a1   :  { %2403 = vmatmul.mubr.bf16.gmra.mrb[20].mxu0 %v18644_v6  ;;  %3305 = vmatprep.subr.bf16.mxu1 %v15670_v15  ;;  %v18672_v15 = vld [vmem:[%s22904_s0 + $0x1ec] ss:$16 sps:$4 sm:$0xff]  }
 0x1a2   :  { %2789 = vmatmul.mubr.bf16.gmra.mrb[20].mxu1 %v18644_v6  ;;  %2412 = vmatprep.mubr.bf16.mxu0 %v18645_v10  ;;  %v18659_v6 = vld [vmem:[%s22904_s0 + $0x148] ss:$16 sps:$4 sm:$0xff]  }
 0x1a3   :  { %2798 = vmatprep.mubr.bf16.mxu1 %v18645_v10  ;;  %2920 = vmatpush1.bf16.msra.mxu0 %v15667_v16  ;;  %v18665_v10 = vld [vmem:[%s22904_s0 + $0x188] ss:$16 sps:$4 sm:$0xff]  }
 0x1a4   :  { %2921 = vmatprep.subr.bf16.mxu0 %v15676_v19  ;;  %3306 = vmatpush1.bf16.msra.mxu1 %v15669_v20  ;;  %v18674_v16 = vld [vmem:[%s22904_s0 + $0x1e8] ss:$16 sps:$4 sm:$0xff]   ;;  %v371_v19 = vld [vmem:[#allocation4 + $0x470] sm:$0xff] }
 0x1a5   :  { %3307 = vmatprep.subr.bf16.mxu1 %v15678_v21  ;;  %v368_v20 = vld [vmem:[#allocation4 + $0x458] sm:$0xff] }
 0x1a6   :  { %v372_v21 = vld [vmem:[#allocation4 + $0x478] sm:$0xff] }
 0x1a7   :  { %2922 = vmatpush1.bf16.msra.mxu0 %v15675_v27  ;;  %v376_v27 = vld [vmem:[#allocation4 + $0x498] sm:$0xff] }
 0x1a8   :  { %2923 = vmatprep.subr.bf16.mxu0 %v15684_v32  ;;  %3308 = vmatpush1.bf16.msra.mxu1 %v15677_v33  ;;  %v15723_v32 = vcombine.low %v367_v18, %v371_v19  ;;  %v20189_v33 = vld [vmem:[%s22904_s0 + $0x24] ss:$16 sps:$4 sm:$0xff]   ;;  %v15734_v59 = vcombine.high %v376_v27, %v380_v29 }
 0x1a9   :  { %2413 = vmatmul.mubr.bf16.gmra.mrb[24].mxu0 %v18647_v26  ;;  %3309 = vmatprep.subr.bf16.mxu1 %v15686_v36  ;;  %v387_v36 = vld [vmem:[#allocation4 + $0x4f0] sm:$0xff] }
 0x1aa   :  { %2799 = vmatmul.mubr.bf16.gmra.mrb[24].mxu1 %v18647_v26  ;;  %2422 = vmatprep.mubr.bf16.mxu0 %v18648_v31  ;;  %v15724_v26 = vcombine.high %v367_v18, %v371_v19  ;;  %v15739_v48 = vcombine.low %v383_v35, %v387_v36  ;;  %v20195_v19 = vld [vmem:[%s22904_s0 + $0x84] ss:$16 sps:$4 sm:$0xff]  }
 0x1ab   :  { %2808 = vmatprep.mubr.bf16.mxu1 %v18648_v31  ;;  %2924 = vmatpush1.bf16.msra.mxu0 %v15683_v37  ;;  %v15726_v31 = vcombine.high %v368_v20, %v372_v21  ;;  %v15725_v37 = vcombine.low %v368_v20, %v372_v21  ;;  %v431_v21 = vld [vmem:[#allocation4 + $0x650] sm:$0xff] }
 0x1ac   :  { %2925 = vmatprep.subr.bf16.mxu0 %v15692_v40  ;;  %3310 = vmatpush1.bf16.msra.mxu1 %v15685_v41  ;;  %v395_v40 = vld [vmem:[#allocation4 + $0x530] sm:$0xff]  ;;  %v15740_v41 = vcombine.high %v383_v35, %v387_v36  ;;  %v440_v36 = vld [vmem:[#allocation4 + $0x698] sm:$0xff] }
 0x1ad   :  { %3311 = vmatprep.subr.bf16.mxu1 %v15694_v42  ;;  %v15733_v42 = vcombine.low %v376_v27, %v380_v29  ;;  %v432_v27 = vld [vmem:[#allocation4 + $0x658] sm:$0xff] }
 0x1ae   :  { %v436_v29 = vld [vmem:[#allocation4 + $0x678] sm:$0xff] }
 0x1af   :  { %2926 = vmatpush1.bf16.msra.mxu0 %v15691_v46  ;;  %v15742_v46 = vcombine.high %v384_v38, %v388_v39  ;;  %v20196_v38 = vld [vmem:[%s22904_s0 + $0x80] ss:$16 sps:$4 sm:$0xff]   ;;  %v15790_v39 = vcombine.high %v432_v27, %v436_v29 }
 0x1b0   :  { %2927 = vmatprep.subr.bf16.mxu0 %v15700_v50  ;;  %3312 = vmatpush1.bf16.msra.mxu1 %v15693_v51  ;;  %v403_v50 = vld [vmem:[#allocation4 + $0x570] sm:$0xff] }
 0x1b1   :  { %2423 = vmatmul.mubr.bf16.gmra.mrb[28].mxu0 %v18650_v45  ;;  %3313 = vmatprep.subr.bf16.mxu1 %v15702_v54  ;;  %v404_v54 = vld [vmem:[#allocation4 + $0x578] sm:$0xff] }
 0x1b2   :  { %2809 = vmatmul.mubr.bf16.gmra.mrb[28].mxu1 %v18650_v45  ;;  %2432 = vmatprep.mubr.bf16.mxu0 %v18651_v49  ;;  %v20190_v45 = vld [vmem:[%s22904_s0 + $0x20] ss:$16 sps:$4 sm:$0xff]   ;;  %v15758_v3 = vcombine.high %v400_v53, %v404_v54 }
 0x1b3   :  { %2818 = vmatprep.mubr.bf16.mxu1 %v18651_v49  ;;  %2928 = vmatpush1.bf16.msra.mxu0 %v15699_v55  ;;  %v399_v49 = vld [vmem:[#allocation4 + $0x550] sm:$0xff]  ;;  %v15750_v55 = vcombine.high %v392_v43, %v396_v44 }
 0x1b4   :  { %2929 = vmatprep.subr.bf16.mxu0 %v15708_v56  ;;  %3314 = vmatpush1.bf16.msra.mxu1 %v15701_v57  ;;  %v407_v57 = vld [vmem:[#allocation4 + $0x590] sm:$0xff] }
 0x1b5   :  { %3315 = vmatprep.subr.bf16.mxu1 %v15710_v58  ;;  %v411_v58 = vld [vmem:[#allocation4 + $0x5b0] sm:$0xff] }
 0x1b7   :  { %2930 = vmatpush1.bf16.msra.mxu0 %v15707_v63  ;;  %v15749_v63 = vcombine.low %v392_v43, %v396_v44  ;;  %v448_v43 = vld [vmem:[#allocation4 + $0x6d8] sm:$0xff] }
 0x1b8   :  { %3316 = vmatpush1.bf16.msra.mxu1 %v15709_v1  ;;  %3092 = vmatprep.subr.bf16.mxu0 %v15716_v2  ;;  %v412_v1 = vld [vmem:[#allocation4 + $0x5b8] sm:$0xff]  ;;  %v20192_v2 = vld [vmem:[%s22904_s0 + $0x40] ss:$16 sps:$4 sm:$0xff]  }
 0x1b9   :  { %2433 = vmatmul.mubr.bf16.gmra.mrb[32].mxu0 %v18653_v61  ;;  %3478 = vmatprep.subr.bf16.mxu1 %v15718_v23  ;;  %v15755_v23 = vcombine.low %v399_v49, %v403_v50  ;;  %v452_v44 = vld [vmem:[#allocation4 + $0x6f8] sm:$0xff] }
 0x1ba   :  { %2819 = vmatmul.mubr.bf16.gmra.mrb[32].mxu1 %v18653_v61  ;;  %2442 = vmatprep.mubr.bf16.mxu0 %v18654_v0  ;;  %v15756_v61 = vcombine.high %v399_v49, %v403_v50 }
 0x1bb   :  { %2828 = vmatprep.mubr.bf16.mxu1 %v18654_v0  ;;  %v408_v0 = vld [vmem:[#allocation4 + $0x598] sm:$0xff] }
 0x1c1   :  { %2443 = vmatmul.mubr.bf16.gmra.mrb[36].mxu0 %v18656_v4 }
 0x1c2   :  { %2829 = vmatmul.mubr.bf16.gmra.mrb[36].mxu1 %v18656_v4  ;;  %2452 = vmatprep.mubr.bf16.mxu0 %v18657_v5  ;;  %v419_v4 = vld [vmem:[#allocation4 + $0x5f0] sm:$0xff] }
 0x1c3   :  { %2838 = vmatprep.mubr.bf16.mxu1 %v18657_v5  ;;  %v15764_v5 = vcombine.high %v407_v57, %v411_v58 }
 0x1c9   :  { %2453 = vmatmul.mubr.bf16.gmra.mrb[40].mxu0 %v18659_v6 }
 0x1ca   :  { %2839 = vmatmul.mubr.bf16.gmra.mrb[40].mxu1 %v18659_v6  ;;  %2462 = vmatprep.mubr.bf16.mxu0 %v18660_v7  ;;  %v15757_v6 = vcombine.low %v400_v53, %v404_v54  ;;  %v20198_v53 = vld [vmem:[%s22904_s0 + $0xa0] ss:$16 sps:$4 sm:$0xff]   ;;  %v15806_v54 = vcombine.high %v448_v43, %v452_v44 }
 0x1cb   :  { %2848 = vmatprep.mubr.bf16.mxu1 %v18660_v7  ;;  %v416_v7 = vld [vmem:[#allocation4 + $0x5d8] sm:$0xff] }
 0x1d1   :  { %2463 = vmatmul.mubr.bf16.gmra.mrb[44].mxu0 %v18662_v8 }
 0x1d2   :  { %2849 = vmatmul.mubr.bf16.gmra.mrb[44].mxu1 %v18662_v8  ;;  %2472 = vmatprep.mubr.bf16.mxu0 %v18663_v9  ;;  %v420_v8 = vld [vmem:[#allocation4 + $0x5f8] sm:$0xff] }
 0x1d3   :  { %2858 = vmatprep.mubr.bf16.mxu1 %v18663_v9  ;;  %v15766_v9 = vcombine.high %v408_v0, %v412_v1  ;;  %v15774_v18 = vcombine.high %v416_v7, %v420_v8 }
 0x1d9   :  { %2473 = vmatmul.mubr.bf16.gmra.mrb[48].mxu0 %v18665_v10 }
 0x1da   :  { %2859 = vmatmul.mubr.bf16.gmra.mrb[48].mxu1 %v18665_v10  ;;  %2482 = vmatprep.mubr.bf16.mxu0 %v18666_v11  ;;  %v15763_v10 = vcombine.low %v407_v57, %v411_v58  ;;  %v463_v57 = vld [vmem:[#allocation4 + $0x750] sm:$0xff] }
 0x1db   :  { %2868 = vmatprep.mubr.bf16.mxu1 %v18666_v11  ;;  %v423_v11 = vld [vmem:[#allocation4 + $0x610] sm:$0xff] }
 0x1dc   :  { %v467_v58 = vld [vmem:[#allocation4 + $0x770] sm:$0xff] }
 0x1e1   :  { %2483 = vmatmul.mubr.bf16.gmra.mrb[52].mxu0 %v18668_v12 }
 0x1e2   :  { %2869 = vmatmul.mubr.bf16.gmra.mrb[52].mxu1 %v18668_v12  ;;  %2492 = vmatprep.mubr.bf16.mxu0 %v18669_v13  ;;  %v427_v12 = vld [vmem:[#allocation4 + $0x630] sm:$0xff] }
 0x1e3   :  { %2878 = vmatprep.mubr.bf16.mxu1 %v18669_v13  ;;  %v15780_v25 = vcombine.high %v423_v11, %v427_v12 }
 0x1e9   :  { %2493 = vmatmul.mubr.bf16.gmra.mrb[56].mxu0 %v18671_v14 }
 0x1ea   :  { %2879 = vmatmul.mubr.bf16.gmra.mrb[56].mxu1 %v18671_v14  ;;  %2502 = vmatprep.mubr.bf16.mxu0 %v18672_v15  ;;  %v15765_v14 = vcombine.low %v408_v0, %v412_v1  ;;  %v464_v0 = vld [vmem:[#allocation4 + $0x758] sm:$0xff] }
 0x1eb   :  { %2888 = vmatprep.mubr.bf16.mxu1 %v18672_v15  ;;  %v424_v15 = vld [vmem:[#allocation4 + $0x618] sm:$0xff] }
 0x1ec   :  { %v468_v1 = vld [vmem:[#allocation4 + $0x778] sm:$0xff] }
 0x1f1   :  { %2503 = vmatmul.mubr.bf16.gmra.mrb[60].mxu0 %v18674_v16 }
 0x1f2   :  { %2889 = vmatmul.mubr.bf16.gmra.mrb[60].mxu1 %v18674_v16  ;;  %2931 = vmatprep.mubr.bf16.mxu0 %v20187_v17  ;;  %v428_v16 = vld [vmem:[#allocation4 + $0x638] sm:$0xff] }
 0x1f3   :  { %3317 = vmatprep.mubr.bf16.mxu1 %v20187_v17  ;;  %v20194_v17 = vld [vmem:[%s22904_s0 + $0x60] ss:$16 sps:$4 sm:$0xff]   ;;  %v15781_v35 = vcombine.low %v424_v15, %v428_v16 }
 0x1f9   :  { %2932 = vmatmul.mubr.bf16.vlgmr.msra.gmra.mrb[64].mxu0 %v20188_v30 }
 0x1fa   :  { %3318 = vmatmul.mubr.bf16.vlgmr.msra.gmra.mrb[64].mxu1 %v20188_v30  ;;  %3093 = vmatpush1.bf16.msra.mxu0 %v15715_v62  ;;  %v391_v62 = vld [vmem:[#allocation4 + $0x510] sm:$0xff]  ;;  %v15782_v30 = vcombine.high %v424_v15, %v428_v16  ;;  %v480_v15 = vld [vmem:[#allocation4 + $0x7d8] sm:$0xff] }
 0x1fb   :  { %2941 = vmatprep.mubr.bf16.mxu0 %v20189_v33  ;;  %3327 = vmatprep.mubr.bf16.mxu1 %v20189_v33  ;;  %v15748_v51 = vcombine.high %v391_v62, %v395_v40  ;;  %v15747_v56 = vcombine.low %v391_v62, %v395_v40  ;;  %v443_v33 = vld [vmem:[#allocation4 + $0x6b0] sm:$0xff]  ;;  %v484_v16 = vld [vmem:[#allocation4 + $0x7f8] sm:$0xff] }
 0x1fc   :  { %3094 = vmatprep.subr.bf16.mxu0 %v15724_v26  ;;  %3479 = vmatpush1.bf16.msra.mxu1 %v15717_v28  ;;  %v415_v28 = vld [vmem:[#allocation4 + $0x5d0] sm:$0xff]  ;;  %v15773_v26 = vcombine.low %v416_v7, %v420_v8  ;;  %v15822_v8 = vcombine.high %v464_v0, %v468_v1 }
 0x1fd   :  { %3480 = vmatprep.subr.bf16.mxu1 %v15726_v31  ;;  %v15772_v13 = vcombine.high %v415_v28, %v419_v4  ;;  %v15771_v20 = vcombine.low %v415_v28, %v419_v4  ;;  %v15779_v31 = vcombine.low %v423_v11, %v427_v12  ;;  %v447_v62 = vld [vmem:[#allocation4 + $0x6d0] sm:$0xff]  ;;  %v15820_v28 = vcombine.high %v463_v57, %v467_v58 }
 0x1fe   :  { %3095 = vmatpush1.bf16.msra.mxu0 %v15723_v32  ;;  %v439_v32 = vld [vmem:[#allocation4 + $0x690] sm:$0xff] }
 0x1ff   :  { %3096 = vmatprep.subr.bf16.mxu0 %v15732_v34  ;;  %v15788_v34 = vcombine.high %v431_v21, %v435_v24  ;;  %v451_v40 = vld [vmem:[#allocation4 + $0x6f0] sm:$0xff] }
 0x200   :  { %3481 = vmatpush1.bf16.msra.mxu1 %v15725_v37  ;;  %v444_v37 = vld [vmem:[#allocation4 + $0x6b8] sm:$0xff]  ;;  %v15804_v49 = vcombine.high %v447_v62, %v451_v40  ;;  %v20200_v7 = vld [vmem:[%s22904_s0 + $0xc0] ss:$16 sps:$4 sm:$0xff]  }
 0x201   :  { %2942 = vmatmul.mubr.bf16.gmra.mrb[68].mxu0 %v20190_v45  ;;  %3482 = vmatprep.subr.bf16.mxu1 %v15734_v59  ;;  %v20197_v59 = vld [vmem:[%s22904_s0 + $0xa4] ss:$16 sps:$4 sm:$0xff]   ;;  %v15797_v50 = vcombine.low %v440_v36, %v444_v37 }
 0x202   :  { %3328 = vmatmul.mubr.bf16.gmra.mrb[68].mxu1 %v20190_v45  ;;  %2951 = vmatprep.mubr.bf16.mxu0 %v20191_v47  ;;  %v15798_v45 = vcombine.high %v440_v36, %v444_v37  ;;  %v479_v11 = vld [vmem:[#allocation4 + $0x7d0] sm:$0xff] }
 0x203   :  { %3337 = vmatprep.mubr.bf16.mxu1 %v20191_v47  ;;  %3097 = vmatpush1.bf16.msra.mxu0 %v15731_v60  ;;  %v15787_v60 = vcombine.low %v431_v21, %v435_v24  ;;  %v455_v47 = vld [vmem:[#allocation4 + $0x710] sm:$0xff]  ;;  %v15838_v24 = vcombine.high %v480_v15, %v484_v16 }
 0x204   :  { %3098 = vmatprep.subr.bf16.mxu0 %v15740_v41  ;;  %3483 = vmatpush1.bf16.msra.mxu1 %v15733_v42  ;;  %v15796_v41 = vcombine.high %v439_v32, %v443_v33  ;;  %v15789_v42 = vcombine.low %v432_v27, %v436_v29  ;;  %v483_v12 = vld [vmem:[#allocation4 + $0x7f0] sm:$0xff]  ;;  %v15837_v27 = vcombine.low %v480_v15, %v484_v16 }
 0x205   :  { %3484 = vmatprep.subr.bf16.mxu1 %v15742_v46  ;;  %v15795_v46 = vcombine.low %v439_v32, %v443_v33  ;;  %v20202_v21 = vld [vmem:[%s22904_s0 + $0xe0] ss:$16 sps:$4 sm:$0xff]   ;;  %v20207_v32 = vld [vmem:[%s22904_s0 + $0x144] ss:$16 sps:$4 sm:$0xff]  }
 0x206   :  { %v20204_v29 = vld [vmem:[%s22904_s0 + $0x100] ss:$16 sps:$4 sm:$0xff]  }
 0x207   :  { %3099 = vmatpush1.bf16.msra.mxu0 %v15739_v48  ;;  %v459_v48 = vld [vmem:[#allocation4 + $0x730] sm:$0xff] }
 0x208   :  { %3100 = vmatprep.subr.bf16.mxu0 %v15748_v51  ;;  %3485 = vmatpush1.bf16.msra.mxu1 %v15741_v52  ;;  %v456_v51 = vld [vmem:[#allocation4 + $0x718] sm:$0xff]  ;;  %v20208_v33 = vld [vmem:[%s22904_s0 + $0x140] ss:$16 sps:$4 sm:$0xff]  }
 0x209   :  { %2952 = vmatmul.mubr.bf16.gmra.mrb[72].mxu0 %v20192_v2  ;;  %3486 = vmatprep.subr.bf16.mxu1 %v15750_v55  ;;  %v460_v52 = vld [vmem:[#allocation4 + $0x738] sm:$0xff]  ;;  %v20199_v55 = vld [vmem:[%s22904_s0 + $0xc4] ss:$16 sps:$4 sm:$0xff]   ;;  %v20218_v16 = vld [vmem:[%s22904_s0 + $0x1e0] ss:$16 sps:$4 sm:$0xff]  }
 0x20a   :  { %3338 = vmatmul.mubr.bf16.gmra.mrb[72].mxu1 %v20192_v2  ;;  %2961 = vmatprep.mubr.bf16.mxu0 %v20193_v22  ;;  %v15814_v2 = vcombine.high %v456_v51, %v460_v52  ;;  %v15813_v4 = vcombine.low %v456_v51, %v460_v52  ;;  %v20213_v51 = vld [vmem:[%s22904_s0 + $0x1a4] ss:$16 sps:$4 sm:$0xff]  }
 0x20b   :  { %3347 = vmatprep.mubr.bf16.mxu1 %v20193_v22  ;;  %3101 = vmatpush1.bf16.msra.mxu0 %v15747_v56  ;;  %v15803_v56 = vcombine.low %v447_v62, %v451_v40  ;;  %v471_v22 = vld [vmem:[#allocation4 + $0x790] sm:$0xff] }
 0x20c   :  { %3102 = vmatprep.subr.bf16.mxu0 %v15756_v61  ;;  %3487 = vmatpush1.bf16.msra.mxu1 %v15749_v63  ;;  %v15812_v61 = vcombine.high %v455_v47, %v459_v48  ;;  %v15805_v63 = vcombine.low %v448_v43, %v452_v44  ;;  %v20210_v40 = vld [vmem:[%s22904_s0 + $0x160] ss:$16 sps:$4 sm:$0xff]  }
 0x20d   :  { %3488 = vmatprep.subr.bf16.mxu1 %v15758_v3  ;;  %v15811_v3 = vcombine.low %v455_v47, %v459_v48 }
 0x20f   :  { %3103 = vmatpush1.bf16.msra.mxu0 %v15755_v23  ;;  %v475_v23 = vld [vmem:[#allocation4 + $0x7b0] sm:$0xff] }
 0x210   :  { %3104 = vmatprep.subr.bf16.mxu0 %v15764_v5  ;;  %3489 = vmatpush1.bf16.msra.mxu1 %v15757_v6  ;;  %v472_v5 = vld [vmem:[#allocation4 + $0x798] sm:$0xff] }
 0x211   :  { %2962 = vmatmul.mubr.bf16.gmra.mrb[76].mxu0 %v20194_v17  ;;  %3490 = vmatprep.subr.bf16.mxu1 %v15766_v9  ;;  %v476_v6 = vld [vmem:[#allocation4 + $0x7b8] sm:$0xff]  ;;  %v20201_v9 = vld [vmem:[%s22904_s0 + $0xe4] ss:$16 sps:$4 sm:$0xff]  }
 0x212   :  { %3348 = vmatmul.mubr.bf16.gmra.mrb[76].mxu1 %v20194_v17  ;;  %2971 = vmatprep.mubr.bf16.mxu0 %v20195_v19  ;;  %v15830_v17 = vcombine.high %v472_v5, %v476_v6 }
 0x213   :  { %3357 = vmatprep.mubr.bf16.mxu1 %v20195_v19  ;;  %3105 = vmatpush1.bf16.msra.mxu0 %v15763_v10  ;;  %v15819_v10 = vcombine.low %v463_v57, %v467_v58  ;;  %v15836_v19 = vcombine.high %v479_v11, %v483_v12 }
 0x214   :  { %3106 = vmatprep.subr.bf16.mxu0 %v15772_v13  ;;  %3491 = vmatpush1.bf16.msra.mxu1 %v15765_v14  ;;  %v15828_v13 = vcombine.high %v471_v22, %v475_v23  ;;  %v15821_v14 = vcombine.low %v464_v0, %v468_v1  ;;  %v20215_v0 = vld [vmem:[%s22904_s0 + $0x1c4] ss:$16 sps:$4 sm:$0xff]  }
 0x215   :  { %3492 = vmatprep.subr.bf16.mxu1 %v15774_v18  ;;  %v15827_v18 = vcombine.low %v471_v22, %v475_v23 }
 0x217   :  { %3107 = vmatpush1.bf16.msra.mxu0 %v15771_v20  ;;  %v15829_v20 = vcombine.low %v472_v5, %v476_v6  ;;  %v20216_v6 = vld [vmem:[%s22904_s0 + $0x1c0] ss:$16 sps:$4 sm:$0xff]  }
 0x218   :  { %3108 = vmatprep.subr.bf16.mxu0 %v15780_v25  ;;  %3493 = vmatpush1.bf16.msra.mxu1 %v15773_v26  ;;  %v20203_v25 = vld [vmem:[%s22904_s0 + $0x104] ss:$16 sps:$4 sm:$0xff]   ;;  %v15835_v26 = vcombine.low %v479_v11, %v483_v12 }
 0x219   :  { %2972 = vmatmul.mubr.bf16.gmra.mrb[80].mxu0 %v20196_v38  ;;  %3494 = vmatprep.subr.bf16.mxu1 %v15782_v30  ;;  %v20205_v30 = vld [vmem:[%s22904_s0 + $0x124] ss:$16 sps:$4 sm:$0xff]  }
 0x21a   :  { %3358 = vmatmul.mubr.bf16.gmra.mrb[80].mxu1 %v20196_v38  ;;  %2981 = vmatprep.mubr.bf16.mxu0 %v20197_v59 }
 0x21b   :  { %3367 = vmatprep.mubr.bf16.mxu1 %v20197_v59  ;;  %3109 = vmatpush1.bf16.msra.mxu0 %v15779_v31  ;;  %v20206_v31 = vld [vmem:[%s22904_s0 + $0x120] ss:$16 sps:$4 sm:$0xff]  }
 0x21c   :  { %3110 = vmatprep.subr.bf16.mxu0 %v15788_v34  ;;  %3495 = vmatpush1.bf16.msra.mxu1 %v15781_v35  ;;  %v20209_v34 = vld [vmem:[%s22904_s0 + $0x164] ss:$16 sps:$4 sm:$0xff]  }
 0x21d   :  { %3496 = vmatprep.subr.bf16.mxu1 %v15790_v39 }
 0x21f   :  { %3111 = vmatpush1.bf16.msra.mxu0 %v15787_v60 }
 0x220   :  { %3112 = vmatprep.subr.bf16.mxu0 %v15796_v41  ;;  %3497 = vmatpush1.bf16.msra.mxu1 %v15789_v42  ;;  %v20211_v41 = vld [vmem:[%s22904_s0 + $0x184] ss:$16 sps:$4 sm:$0xff]  }
 0x221   :  { %2982 = vmatmul.mubr.bf16.gmra.mrb[84].mxu0 %v20198_v53  ;;  %3498 = vmatprep.subr.bf16.mxu1 %v15798_v45 }
 0x222   :  { %3368 = vmatmul.mubr.bf16.gmra.mrb[84].mxu1 %v20198_v53  ;;  %2991 = vmatprep.mubr.bf16.mxu0 %v20199_v55 }
 0x223   :  { %3377 = vmatprep.mubr.bf16.mxu1 %v20199_v55  ;;  %3113 = vmatpush1.bf16.msra.mxu0 %v15795_v46 }
 0x224   :  { %3114 = vmatprep.subr.bf16.mxu0 %v15804_v49  ;;  %3499 = vmatpush1.bf16.msra.mxu1 %v15797_v50  ;;  %v20212_v50 = vld [vmem:[%s22904_s0 + $0x180] ss:$16 sps:$4 sm:$0xff]  }
 0x225   :  { %3500 = vmatprep.subr.bf16.mxu1 %v15806_v54 }
 0x227   :  { %3115 = vmatpush1.bf16.msra.mxu0 %v15803_v56 }
 0x228   :  { %3116 = vmatprep.subr.bf16.mxu0 %v15812_v61  ;;  %3501 = vmatpush1.bf16.msra.mxu1 %v15805_v63  ;;  %v20214_v63 = vld [vmem:[%s22904_s0 + $0x1a0] ss:$16 sps:$4 sm:$0xff]  }
 0x229   :  { %2992 = vmatmul.mubr.bf16.gmra.mrb[88].mxu0 %v20200_v7  ;;  %3502 = vmatprep.subr.bf16.mxu1 %v15814_v2 }
 0x22a   :  { %3378 = vmatmul.mubr.bf16.gmra.mrb[88].mxu1 %v20200_v7  ;;  %3001 = vmatprep.mubr.bf16.mxu0 %v20201_v9  ;;  %v20217_v7 = vld [vmem:[%s22904_s0 + $0x1e4] ss:$16 sps:$4 sm:$0xff]  }
 0x22b   :  { %3387 = vmatprep.mubr.bf16.mxu1 %v20201_v9  ;;  %3117 = vmatpush1.bf16.msra.mxu0 %v15811_v3 }
 0x22c   :  { %3118 = vmatprep.subr.bf16.mxu0 %v15820_v28  ;;  %3503 = vmatpush1.bf16.msra.mxu1 %v15813_v4 }
 0x22d   :  { %3504 = vmatprep.subr.bf16.mxu1 %v15822_v8 }
 0x22f   :  { %3119 = vmatpush1.bf16.msra.mxu0 %v15819_v10 }
 0x230   :  { %3120 = vmatprep.subr.bf16.mxu0 %v15828_v13  ;;  %3505 = vmatpush1.bf16.msra.mxu1 %v15821_v14 }
 0x231   :  { %3002 = vmatmul.mubr.bf16.gmra.mrb[92].mxu0 %v20202_v21  ;;  %3506 = vmatprep.subr.bf16.mxu1 %v15830_v17  ;;  %v20219_v17 = vld [vmem:[%s22904_s0 + $0xc] ss:$16 sps:$4 sm:$0xff]  }
 0x232   :  { %3388 = vmatmul.mubr.bf16.gmra.mrb[92].mxu1 %v20202_v21  ;;  %3011 = vmatprep.mubr.bf16.mxu0 %v20203_v25 }
 0x233   :  { %3397 = vmatprep.mubr.bf16.mxu1 %v20203_v25  ;;  %3121 = vmatpush1.bf16.msra.mxu0 %v15827_v18  ;;  %v18677_v18 = vld [vmem:[#allocation8 + $0x404] ss:$16 sps:$4 sm:$0xff]  }
 0x234   :  { %3122 = vmatprep.subr.bf16.mxu0 %v15836_v19  ;;  %3507 = vmatpush1.bf16.msra.mxu1 %v15829_v20  ;;  %v18680_v19 = vld [vmem:[#allocation8 + $0x40c] ss:$16 sps:$4 sm:$0xff]  }
 0x235   :  { %3508 = vmatprep.subr.bf16.mxu1 %v15838_v24 }
 0x237   :  { %3123 = vmatpush1.bf16.msra.mxu0 %v15835_v26 }
 0x238   :  { %3509 = vmatpush1.bf16.msra.mxu1 %v15837_v27  ;;  %5283 = vmatprep.subr.bf16.mxu0 %v18677_v18 }
 0x239   :  { %3012 = vmatmul.mubr.bf16.gmra.mrb[96].mxu0 %v20204_v29  ;;  %5509 = vmatprep.subr.bf16.mxu1 %v18680_v19 }
 0x23a   :  { %3398 = vmatmul.mubr.bf16.gmra.mrb[96].mxu1 %v20204_v29  ;;  %3021 = vmatprep.mubr.bf16.mxu0 %v20205_v30 }
 0x23b   :  { %3407 = vmatprep.mubr.bf16.mxu1 %v20205_v30  ;;  %v18675_v30 = vld [vmem:[#allocation8 + $0x400] ss:$16 sps:$4 sm:$0xff]  }
 0x241   :  { %3022 = vmatmul.mubr.bf16.gmra.mrb[100].mxu0 %v20206_v31 }
 0x242   :  { %3408 = vmatmul.mubr.bf16.gmra.mrb[100].mxu1 %v20206_v31  ;;  %3031 = vmatprep.mubr.bf16.mxu0 %v20207_v32 }
 0x243   :  { %3417 = vmatprep.mubr.bf16.mxu1 %v20207_v32  ;;  %v18678_v32 = vld [vmem:[#allocation8 + $0x408] ss:$16 sps:$4 sm:$0xff]  }
 0x249   :  { %3032 = vmatmul.mubr.bf16.gmra.mrb[104].mxu0 %v20208_v33 }
 0x24a   :  { %3418 = vmatmul.mubr.bf16.gmra.mrb[104].mxu1 %v20208_v33  ;;  %3041 = vmatprep.mubr.bf16.mxu0 %v20209_v34  ;;  %v18683_v33 = vld [vmem:[#allocation8 + $0x424] ss:$16 sps:$4 sm:$0xff]  }
 0x24b   :  { %3427 = vmatprep.mubr.bf16.mxu1 %v20209_v34  ;;  %v20220_v34 = vld [vmem:[%s22904_s0 + $0x8] ss:$16 sps:$4 sm:$0xff]  }
 0x24c   :  { %v20994_v35 = vpop.f32.mrb[0].mxu0 }
 0x24d   :  { %v20996_v36 = vpop.f32.mrb[0].mxu1  ;;  %v20998_v37 = vpop.f32.mrb[1].mxu0 }
 0x24e   :  { %v21000_v38 = vpop.f32.mrb[1].mxu1  ;;  %v21002_v39 = vpop.f32.mrb[2].mxu0 }
 0x24f   :  { %v21004_v59 = vpop.f32.mrb[2].mxu1  ;;  %v21006_v60 = vpop.f32.mrb[3].mxu0 }
 0x250   :  { %v21008_v62 = vpop.f32.mrb[3].mxu1 }
 0x251   :  { %3042 = vmatmul.mubr.bf16.gmra.mrb[108].mxu0 %v20210_v40 }
 0x252   :  { %3428 = vmatmul.mubr.bf16.gmra.mrb[108].mxu1 %v20210_v40  ;;  %3051 = vmatprep.mubr.bf16.mxu0 %v20211_v41  ;;  %v18686_v40 = vld [vmem:[#allocation8 + $0x42c] ss:$16 sps:$4 sm:$0xff]  }
 0x253   :  { %3437 = vmatprep.mubr.bf16.mxu1 %v20211_v41  ;;  %v20221_v41 = vld [vmem:[%s22904_s0 + $0x2c] ss:$16 sps:$4 sm:$0xff]  }
 0x254   :  { %v21016_v42 = vpop.f32.mrb[4].mxu0 }
 0x255   :  { %v21018_v43 = vpop.f32.mrb[4].mxu1  ;;  %v21020_v44 = vpop.f32.mrb[5].mxu0 }
 0x256   :  { %v21022_v45 = vpop.f32.mrb[5].mxu1  ;;  %v21024_v46 = vpop.f32.mrb[6].mxu0 }
 0x257   :  { %v21026_v47 = vpop.f32.mrb[6].mxu1  ;;  %v21028_v48 = vpop.f32.mrb[7].mxu0 }
 0x258   :  { %v21030_v49 = vpop.f32.mrb[7].mxu1 }
 0x259   :  { %3052 = vmatmul.mubr.bf16.gmra.mrb[112].mxu0 %v20212_v50 }
 0x25a   :  { %3438 = vmatmul.mubr.bf16.gmra.mrb[112].mxu1 %v20212_v50  ;;  %3061 = vmatprep.mubr.bf16.mxu0 %v20213_v51  ;;  %v18681_v50 = vld [vmem:[#allocation8 + $0x420] ss:$16 sps:$4 sm:$0xff]  }
 0x25b   :  { %3447 = vmatprep.mubr.bf16.mxu1 %v20213_v51 }
 0x25c   :  { %v21038_v52 = vpop.f32.mrb[8].mxu0 }
 0x25d   :  { %v21040_v53 = vpop.f32.mrb[8].mxu1  ;;  %v21042_v54 = vpop.f32.mrb[9].mxu0 }
 0x25e   :  { %v21044_v55 = vpop.f32.mrb[9].mxu1  ;;  %v21046_v56 = vpop.f32.mrb[10].mxu0 }
 0x25f   :  { %v21048_v57 = vpop.f32.mrb[10].mxu1  ;;  %v21050_v58 = vpop.f32.mrb[11].mxu0 }
 0x260   :  { %v21052_v61 = vpop.f32.mrb[11].mxu1 }
 0x261   :  { %3062 = vmatmul.mubr.bf16.gmra.mrb[116].mxu0 %v20214_v63 }
 0x262   :  { %3448 = vmatmul.mubr.bf16.gmra.mrb[116].mxu1 %v20214_v63  ;;  %3071 = vmatprep.mubr.bf16.mxu0 %v20215_v0  ;;  %v18684_v63 = vld [vmem:[#allocation8 + $0x428] ss:$16 sps:$4 sm:$0xff]  }
 0x263   :  { %3457 = vmatprep.mubr.bf16.mxu1 %v20215_v0  ;;  %v18689_v0 = vld [vmem:[#allocation8 + $0x444] ss:$16 sps:$4 sm:$0xff]  }
 0x264   :  { %v21060_v1 = vpop.f32.mrb[12].mxu0 }
 0x265   :  { %v21062_v2 = vpop.f32.mrb[12].mxu1  ;;  %v21064_v3 = vpop.f32.mrb[13].mxu0 }
 0x266   :  { %v21066_v22 = vpop.f32.mrb[13].mxu1  ;;  %v21068_v23 = vpop.f32.mrb[14].mxu0 }
 0x267   :  { %v21070_v28 = vpop.f32.mrb[14].mxu1  ;;  %v21072_v4 = vpop.f32.mrb[15].mxu0 }
 0x268   :  { %v21074_v5 = vpop.f32.mrb[15].mxu1 }
 0x269   :  { %3072 = vmatmul.mubr.bf16.gmra.mrb[120].mxu0 %v20216_v6 }
 0x26a   :  { %3458 = vmatmul.mubr.bf16.gmra.mrb[120].mxu1 %v20216_v6  ;;  %3081 = vmatprep.mubr.bf16.mxu0 %v20217_v7 }
 0x26b   :  { %3467 = vmatprep.mubr.bf16.mxu1 %v20217_v7 }
 0x26c   :  { %v21082_v8 = vpop.f32.mrb[16].mxu0 }
 0x26d   :  { %v21084_v9 = vpop.f32.mrb[16].mxu1  ;;  %v21086_v10 = vpop.f32.mrb[17].mxu0 }
 0x26e   :  { %v21088_v11 = vpop.f32.mrb[17].mxu1  ;;  %v21090_v12 = vpop.f32.mrb[18].mxu0 }
 0x26f   :  { %v21092_v13 = vpop.f32.mrb[18].mxu1  ;;  %v21094_v14 = vpop.f32.mrb[19].mxu0 }
 0x270   :  { %v21096_v15 = vpop.f32.mrb[19].mxu1 }
 0x271   :  { %3082 = vmatmul.mubr.bf16.gmra.mrb[124].mxu0 %v20218_v16 }
 0x272   :  { %3468 = vmatmul.mubr.bf16.gmra.mrb[124].mxu1 %v20218_v16  ;;  %3124 = vmatprep.mubr.bf16.mxu0 %v20219_v17  ;;  %v18692_v16 = vld [vmem:[#allocation8 + $0x44c] ss:$16 sps:$4 sm:$0xff]  }
 0x273   :  { %3510 = vmatprep.mubr.bf16.mxu1 %v20219_v17 }
 0x274   :  { %v21104_v20 = vpop.f32.mrb[20].mxu0 }
 0x275   :  { %v21106_v21 = vpop.f32.mrb[20].mxu1  ;;  %v21108_v24 = vpop.f32.mrb[21].mxu0 }
 0x276   :  { %v21110_v25 = vpop.f32.mrb[21].mxu1  ;;  %v21112_v26 = vpop.f32.mrb[22].mxu0 }
 0x277   :  { %v21114_v27 = vpop.f32.mrb[22].mxu1  ;;  %v21116_v29 = vpop.f32.mrb[23].mxu0 }
 0x278   :  { %22972 = vst [vmem:[#allocation26_spill] sm:$0xff] %v21116_v29  ;;  %v21118_v31 = vpop.f32.mrb[23].mxu1 }
 0x279   :  { %22973 = vst [vmem:[#allocation27_spill] sm:$0xff] %v21118_v31  ;;  %3125 = vmatmul.mubr.bf16.vlgmr.msra.gmra.mrb[64].mxu0 %v20220_v34  ;;  %v18719_v31 = vld [vmem:[#allocation8 + $0x4e4] ss:$16 sps:$4 sm:$0xff]  }
 0x27a   :  { %3511 = vmatmul.mubr.bf16.vlgmr.msra.gmra.mrb[64].mxu1 %v20220_v34  ;;  %3134 = vmatprep.mubr.bf16.mxu0 %v20221_v41  ;;  %v18687_v34 = vld [vmem:[#allocation8 + $0x440] ss:$16 sps:$4 sm:$0xff]  }
 0x27b   :  { %3520 = vmatprep.mubr.bf16.mxu1 %v20221_v41  ;;  %5284 = vmatpush1.bf16.msra.mxu0 %v18675_v30  ;;  %v18695_v41 = vld [vmem:[#allocation8 + $0x464] ss:$16 sps:$4 sm:$0xff]  }
 0x27c   :  { %v21126_v51 = vpop.f32.mrb[24].mxu0  ;;  %5510 = vmatpush1.bf16.msra.mxu1 %v18678_v32  ;;  %5285 = vmatprep.subr.bf16.mxu0 %v18683_v33  ;;  %v18690_v33 = vld [vmem:[#allocation8 + $0x448] ss:$16 sps:$4 sm:$0xff]  }
 0x27d   :  { %22974 = vst [vmem:[#allocation28_spill] sm:$0xff] %v21126_v51  ;;  %v21128_v6 = vpop.f32.mrb[24].mxu1  ;;  %v21130_v7 = vpop.f32.mrb[25].mxu0  ;;  %5511 = vmatprep.subr.bf16.mxu1 %v18686_v40  ;;  %v20222_v40 = vld [vmem:[%s22904_s0 + $0x28] ss:$16 sps:$4 sm:$0xff]  }
 0x27e   :  { %22975 = vst [vmem:[#allocation29_spill] sm:$0xff] %v21128_v6  ;;  %22976 = vst [vmem:[#allocation30_spill] sm:$0xff] %v21130_v7  ;;  %v21132_v17 = vpop.f32.mrb[25].mxu1  ;;  %v21134_v18 = vpop.f32.mrb[26].mxu0  ;;  %v18699_v6 = vld [vmem:[#allocation8 + $0x480] ss:$16 sps:$4 sm:$0xff]  }
 0x27f   :  { %22977 = vst [vmem:[#allocation31_spill] sm:$0xff] %v21132_v17  ;;  %22978 = vst [vmem:[#allocation32_spill] sm:$0xff] %v21134_v18  ;;  %v21136_v19 = vpop.f32.mrb[26].mxu1  ;;  %v21138_v30 = vpop.f32.mrb[27].mxu0  ;;  %5286 = vmatpush1.bf16.msra.mxu0 %v18681_v50  ;;  %v18698_v17 = vld [vmem:[#allocation8 + $0x46c] ss:$16 sps:$4 sm:$0xff]  }
 0x280   :  { %22979 = vst [vmem:[#allocation33_spill] sm:$0xff] %v21136_v19  ;;  %22980 = vst [vmem:[#allocation34_spill] sm:$0xff] %v21138_v30  ;;  %v21140_v32 = vpop.f32.mrb[27].mxu1  ;;  %5512 = vmatpush1.bf16.msra.mxu1 %v18684_v63  ;;  %5287 = vmatprep.subr.bf16.mxu0 %v18689_v0  ;;  %v20223_v30 = vld [vmem:[%s22904_s0 + $0x4c] ss:$16 sps:$4 sm:$0xff]  }
 0x281   :  { %22981 = vst [vmem:[#allocation35_spill] sm:$0xff] %v21140_v32  ;;  %3135 = vmatmul.mubr.bf16.gmra.mrb[68].mxu0 %v20222_v40  ;;  %5513 = vmatprep.subr.bf16.mxu1 %v18692_v16  ;;  %v18693_v50 = vld [vmem:[#allocation8 + $0x460] ss:$16 sps:$4 sm:$0xff]   ;;  %v18696_v0 = vld [vmem:[#allocation8 + $0x468] ss:$16 sps:$4 sm:$0xff]  }
 0x282   :  { %3521 = vmatmul.mubr.bf16.gmra.mrb[68].mxu1 %v20222_v40  ;;  %3144 = vmatprep.mubr.bf16.mxu0 %v20223_v30  ;;  %v18701_v32 = vld [vmem:[#allocation8 + $0x484] ss:$16 sps:$4 sm:$0xff]   ;;  %v18704_v16 = vld [vmem:[#allocation8 + $0x48c] ss:$16 sps:$4 sm:$0xff]  }
 0x283   :  { %3530 = vmatprep.mubr.bf16.mxu1 %v20223_v30  ;;  %5288 = vmatpush1.bf16.msra.mxu0 %v18687_v34  ;;  %v18702_v30 = vld [vmem:[#allocation8 + $0x488] ss:$16 sps:$4 sm:$0xff]  }
 0x284   :  { %v21148_v63 = vpop.f32.mrb[28].mxu0  ;;  %5514 = vmatpush1.bf16.msra.mxu1 %v18690_v33  ;;  %5289 = vmatprep.subr.bf16.mxu0 %v18695_v41  ;;  %v18707_v33 = vld [vmem:[#allocation8 + $0x4a4] ss:$16 sps:$4 sm:$0xff]   ;;  %v18710_v41 = vld [vmem:[#allocation8 + $0x4ac] ss:$16 sps:$4 sm:$0xff]  }
 0x285   :  { %22982 = vst [vmem:[#allocation36_spill] sm:$0xff] %v21148_v63  ;;  %v21150_v19 = vpop.f32.mrb[28].mxu1  ;;  %v21152_v18 = vpop.f32.mrb[29].mxu0  ;;  %5515 = vmatprep.subr.bf16.mxu1 %v18698_v17  ;;  %v20224_v17 = vld [vmem:[%s22904_s0 + $0x48] ss:$16 sps:$4 sm:$0xff]  }
 0x286   :  { %22983 = vst [vmem:[#allocation37_spill] sm:$0xff] %v21150_v19  ;;  %22984 = vst [vmem:[#allocation38_spill] sm:$0xff] %v21152_v18  ;;  %v21154_v40 = vpop.f32.mrb[29].mxu1  ;;  %v21156_v7 = vpop.f32.mrb[30].mxu0  ;;  %v18714_v19 = vld [vmem:[#allocation8 + $0x4c8] ss:$16 sps:$4 sm:$0xff]  }
 0x287   :  { %22985 = vst [vmem:[#allocation39_spill] sm:$0xff] %v21154_v40  ;;  %22986 = vst [vmem:[#allocation40_spill] sm:$0xff] %v21156_v7  ;;  %v21158_v34 = vpop.f32.mrb[30].mxu1  ;;  %v21160_v51 = vpop.f32.mrb[31].mxu0  ;;  %5290 = vmatpush1.bf16.msra.mxu0 %v18693_v50  ;;  %v18705_v7 = vld [vmem:[#allocation8 + $0x4a0] ss:$16 sps:$4 sm:$0xff]  }
 0x288   :  { %22987 = vst [vmem:[#allocation41_spill] sm:$0xff] %v21158_v34  ;;  %22988 = vst [vmem:[#allocation42_spill] sm:$0xff] %v21160_v51  ;;  %v21162_v63 = vpop.f32.mrb[31].mxu1  ;;  %5516 = vmatpush1.bf16.msra.mxu1 %v18696_v0  ;;  %5291 = vmatprep.subr.bf16.mxu0 %v18701_v32  ;;  %v20225_v34 = vld [vmem:[%s22904_s0 + $0x6c] ss:$16 sps:$4 sm:$0xff]  }
 0x289   :  { %22989 = vst [vmem:[#allocation43_spill] sm:$0xff] %v21162_v63  ;;  %3145 = vmatmul.mubr.bf16.gmra.mrb[72].mxu0 %v20224_v17  ;;  %5517 = vmatprep.subr.bf16.mxu1 %v18704_v16  ;;  %v18708_v50 = vld [vmem:[#allocation8 + $0x4a8] ss:$16 sps:$4 sm:$0xff]   ;;  %v18713_v51 = vld [vmem:[#allocation8 + $0x4c4] ss:$16 sps:$4 sm:$0xff]  }
 0x28a   :  { %3531 = vmatmul.mubr.bf16.gmra.mrb[72].mxu1 %v20224_v17  ;;  %3154 = vmatprep.mubr.bf16.mxu0 %v20225_v34  ;;  %v18716_v63 = vld [vmem:[#allocation8 + $0x4cc] ss:$16 sps:$4 sm:$0xff]   ;;  %v18711_v16 = vld [vmem:[#allocation8 + $0x4c0] ss:$16 sps:$4 sm:$0xff]  }
 0x28b   :  { %3540 = vmatprep.mubr.bf16.mxu1 %v20225_v34  ;;  %5292 = vmatpush1.bf16.msra.mxu0 %v18699_v6  ;;  %v18722_v34 = vld [vmem:[#allocation8 + $0x4ec] ss:$16 sps:$4 sm:$0xff]  }
 0x28c   :  { %v21170_v0 = vpop.f32.mrb[32].mxu0  ;;  %5518 = vmatpush1.bf16.msra.mxu1 %v18702_v30  ;;  %5293 = vmatprep.subr.bf16.mxu0 %v18707_v33  ;;  %v20226_v33 = vld [vmem:[%s22904_s0 + $0x68] ss:$16 sps:$4 sm:$0xff]  }
 0x28d   :  { %22990 = vst [vmem:[#allocation44_spill] sm:$0xff] %v21170_v0  ;;  %v21172_v32 = vpop.f32.mrb[32].mxu1  ;;  %v21174_v40 = vpop.f32.mrb[33].mxu0  ;;  %5519 = vmatprep.subr.bf16.mxu1 %v18710_v41  ;;  %v18717_v41 = vld [vmem:[#allocation8 + $0x4e0] ss:$16 sps:$4 sm:$0xff]  }
 0x28e   :  { %22991 = vst [vmem:[#allocation45_spill] sm:$0xff] %v21172_v32  ;;  %22992 = vst [vmem:[#allocation46_spill] sm:$0xff] %v21174_v40  ;;  %v21176_v17 = vpop.f32.mrb[33].mxu1  ;;  %v21178_v18 = vpop.f32.mrb[34].mxu0  ;;  %v18726_v40 = vld [vmem:[#allocation8 + $0x508] ss:$16 sps:$4 sm:$0xff]  }
 0x28f   :  { %22993 = vst [vmem:[#allocation47_spill] sm:$0xff] %v21176_v17  ;;  %22994 = vst [vmem:[#allocation48_spill] sm:$0xff] %v21178_v18  ;;  %v21180_v29 = vpop.f32.mrb[34].mxu1  ;;  %v21182_v6 = vpop.f32.mrb[35].mxu0  ;;  %5294 = vmatpush1.bf16.msra.mxu0 %v18705_v7  ;;  %v18725_v7 = vld [vmem:[#allocation8 + $0x504] ss:$16 sps:$4 sm:$0xff]  }
 0x290   :  { %22995 = vst [vmem:[#allocation49_spill] sm:$0xff] %v21180_v29  ;;  %22996 = vst [vmem:[#allocation50_spill] sm:$0xff] %v21182_v6  ;;  %v21184_v30 = vpop.f32.mrb[35].mxu1  ;;  %5520 = vmatpush1.bf16.msra.mxu1 %v18708_v50  ;;  %5295 = vmatprep.subr.bf16.mxu0 %v18713_v51  ;;  %v20227_v29 = vld [vmem:[%s22904_s0 + $0x8c] ss:$16 sps:$4 sm:$0xff]  }
 0x291   :  { %22997 = vst [vmem:[#allocation51_spill] sm:$0xff] %v21184_v30  ;;  %3155 = vmatmul.mubr.bf16.gmra.mrb[76].mxu0 %v20226_v33  ;;  %5521 = vmatprep.subr.bf16.mxu1 %v18716_v63  ;;  %v18720_v6 = vld [vmem:[#allocation8 + $0x4e8] ss:$16 sps:$4 sm:$0xff]   ;;  %v18728_v30 = vld [vmem:[#allocation8 + $0x50c] ss:$16 sps:$4 sm:$0xff]  }
 0x292   :  { %3541 = vmatmul.mubr.bf16.gmra.mrb[76].mxu1 %v20226_v33  ;;  %3164 = vmatprep.mubr.bf16.mxu0 %v20227_v29  ;;  %v18723_v63 = vld [vmem:[#allocation8 + $0x500] ss:$16 sps:$4 sm:$0xff]   ;;  %v18731_v32 = vld [vmem:[#allocation8 + $0x524] ss:$16 sps:$4 sm:$0xff]  }
 0x293   :  { %3550 = vmatprep.mubr.bf16.mxu1 %v20227_v29  ;;  %5296 = vmatpush1.bf16.msra.mxu0 %v18711_v16  ;;  %v18734_v16 = vld [vmem:[#allocation8 + $0x52c] ss:$16 sps:$4 sm:$0xff]  }
 0x294   :  { %v21192_v50 = vpop.f32.mrb[36].mxu0  ;;  %5522 = vmatpush1.bf16.msra.mxu1 %v18714_v19  ;;  %5297 = vmatprep.subr.bf16.mxu0 %v18719_v31  ;;  %v20228_v31 = vld [vmem:[%s22904_s0 + $0x88] ss:$16 sps:$4 sm:$0xff]  }
 0x295   :  { %22998 = vst [vmem:[#allocation52_spill] sm:$0xff] %v21192_v50  ;;  %v21194_v51 = vpop.f32.mrb[36].mxu1  ;;  %v21196_v18 = vpop.f32.mrb[37].mxu0  ;;  %5523 = vmatprep.subr.bf16.mxu1 %v18722_v34  ;;  %v18729_v34 = vld [vmem:[#allocation8 + $0x520] ss:$16 sps:$4 sm:$0xff]  }
 0x296   :  { %22999 = vst [vmem:[#allocation53_spill] sm:$0xff] %v21194_v51  ;;  %23000 = vst [vmem:[#allocation54_spill] sm:$0xff] %v21196_v18  ;;  %v21198_v33 = vpop.f32.mrb[37].mxu1  ;;  %v21200_v17 = vpop.f32.mrb[38].mxu0  ;;  %v18738_v18 = vld [vmem:[#allocation8 + $0x548] ss:$16 sps:$4 sm:$0xff]  }
 0x297   :  { %23001 = vst [vmem:[#allocation55_spill] sm:$0xff] %v21198_v33  ;;  %23002 = vst [vmem:[#allocation56_spill] sm:$0xff] %v21200_v17  ;;  %v21202_v0 = vpop.f32.mrb[38].mxu1  ;;  %v21204_v29 = vpop.f32.mrb[39].mxu0  ;;  %5298 = vmatpush1.bf16.msra.mxu0 %v18717_v41  ;;  %v18737_v41 = vld [vmem:[#allocation8 + $0x544] ss:$16 sps:$4 sm:$0xff]  }
 0x298   :  { %23003 = vst [vmem:[#allocation57_spill] sm:$0xff] %v21202_v0  ;;  %23004 = vst [vmem:[#allocation58_spill] sm:$0xff] %v21204_v29  ;;  %v21206_v19 = vpop.f32.mrb[39].mxu1  ;;  %5524 = vmatpush1.bf16.msra.mxu1 %v18720_v6  ;;  %5299 = vmatprep.subr.bf16.mxu0 %v18725_v7  ;;  %v20229_v0 = vld [vmem:[%s22904_s0 + $0xac] ss:$16 sps:$4 sm:$0xff]  }
 0x299   :  { %23005 = vst [vmem:[#allocation59_spill] sm:$0xff] %v21206_v19  ;;  %3165 = vmatmul.mubr.bf16.gmra.mrb[80].mxu0 %v20228_v31  ;;  %5525 = vmatprep.subr.bf16.mxu1 %v18728_v30  ;;  %v18732_v29 = vld [vmem:[#allocation8 + $0x528] ss:$16 sps:$4 sm:$0xff]   ;;  %v18740_v19 = vld [vmem:[#allocation8 + $0x54c] ss:$16 sps:$4 sm:$0xff]  }
 0x29a   :  { %3551 = vmatmul.mubr.bf16.gmra.mrb[80].mxu1 %v20228_v31  ;;  %3174 = vmatprep.mubr.bf16.mxu0 %v20229_v0  ;;  %v18735_v30 = vld [vmem:[#allocation8 + $0x540] ss:$16 sps:$4 sm:$0xff]   ;;  %v18743_v51 = vld [vmem:[#allocation8 + $0x564] ss:$16 sps:$4 sm:$0xff]  }
 0x29b   :  { %3560 = vmatprep.mubr.bf16.mxu1 %v20229_v0  ;;  %5300 = vmatpush1.bf16.msra.mxu0 %v18723_v63  ;;  %v18746_v63 = vld [vmem:[#allocation8 + $0x56c] ss:$16 sps:$4 sm:$0xff]  }
 0x29c   :  { %v21214_v6 = vpop.f32.mrb[40].mxu0  ;;  %5526 = vmatpush1.bf16.msra.mxu1 %v18726_v40  ;;  %5301 = vmatprep.subr.bf16.mxu0 %v18731_v32  ;;  %v20230_v32 = vld [vmem:[%s22904_s0 + $0xa8] ss:$16 sps:$4 sm:$0xff]  }
 0x29d   :  { %23006 = vst [vmem:[#allocation60_spill] sm:$0xff] %v21214_v6  ;;  %v21216_v7 = vpop.f32.mrb[40].mxu1  ;;  %v21218_v17 = vpop.f32.mrb[41].mxu0  ;;  %5527 = vmatprep.subr.bf16.mxu1 %v18734_v16  ;;  %v18741_v16 = vld [vmem:[#allocation8 + $0x560] ss:$16 sps:$4 sm:$0xff]  }
 0x29e   :  { %23007 = vst [vmem:[#allocation61_spill] sm:$0xff] %v21216_v7  ;;  %23008 = vst [vmem:[#allocation62_spill] sm:$0xff] %v21218_v17  ;;  %v21220_v31 = vpop.f32.mrb[41].mxu1  ;;  %v21222_v33 = vpop.f32.mrb[42].mxu0  ;;  %v18750_v17 = vld [vmem:[#allocation8 + $0x588] ss:$16 sps:$4 sm:$0xff]  }
 0x29f   :  { %23009 = vst [vmem:[#allocation63_spill] sm:$0xff] %v21220_v31  ;;  %23010 = vst [vmem:[#allocation64_spill] sm:$0xff] %v21222_v33  ;;  %v21224_v50 = vpop.f32.mrb[42].mxu1  ;;  %v21226_v0 = vpop.f32.mrb[43].mxu0  ;;  %5302 = vmatpush1.bf16.msra.mxu0 %v18729_v34  ;;  %v18749_v34 = vld [vmem:[#allocation8 + $0x584] ss:$16 sps:$4 sm:$0xff]  }
 0x2a0   :  { %23011 = vst [vmem:[#allocation65_spill] sm:$0xff] %v21224_v50  ;;  %23012 = vst [vmem:[#allocation66_spill] sm:$0xff] %v21226_v0  ;;  %v21228_v40 = vpop.f32.mrb[43].mxu1  ;;  %5528 = vmatpush1.bf16.msra.mxu1 %v18732_v29  ;;  %5303 = vmatprep.subr.bf16.mxu0 %v18737_v41  ;;  %v20231_v50 = vld [vmem:[%s22904_s0 + $0xcc] ss:$16 sps:$4 sm:$0xff]  }
 0x2a1   :  { %23013 = vst [vmem:[#allocation67_spill] sm:$0xff] %v21228_v40  ;;  %3175 = vmatmul.mubr.bf16.gmra.mrb[84].mxu0 %v20230_v32  ;;  %5529 = vmatprep.subr.bf16.mxu1 %v18740_v19  ;;  %v18744_v0 = vld [vmem:[#allocation8 + $0x568] ss:$16 sps:$4 sm:$0xff]   ;;  %v18752_v40 = vld [vmem:[#allocation8 + $0x58c] ss:$16 sps:$4 sm:$0xff]  }
 0x2a2   :  { %3561 = vmatmul.mubr.bf16.gmra.mrb[84].mxu1 %v20230_v32  ;;  %3184 = vmatprep.mubr.bf16.mxu0 %v20231_v50  ;;  %v18747_v19 = vld [vmem:[#allocation8 + $0x580] ss:$16 sps:$4 sm:$0xff]  }
 0x2a3   :  { %3570 = vmatprep.mubr.bf16.mxu1 %v20231_v50  ;;  %5304 = vmatpush1.bf16.msra.mxu0 %v18735_v30 }
 0x2a4   :  { %v21236_v29 = vpop.f32.mrb[44].mxu0  ;;  %5530 = vmatpush1.bf16.msra.mxu1 %v18738_v18  ;;  %5305 = vmatprep.subr.bf16.mxu0 %v18743_v51  ;;  %v20232_v18 = vld [vmem:[%s22904_s0 + $0xc8] ss:$16 sps:$4 sm:$0xff]   ;;  %v20233_v51 = vld [vmem:[%s22904_s0 + $0xec] ss:$16 sps:$4 sm:$0xff]  }
 0x2a5   :  { %23014 = vst [vmem:[#allocation68_spill] sm:$0xff] %v21236_v29  ;;  %v21238_v41 = vpop.f32.mrb[44].mxu1  ;;  %v21240_v33 = vpop.f32.mrb[45].mxu0  ;;  %5531 = vmatprep.subr.bf16.mxu1 %v18746_v63 }
 0x2a6   :  { %23015 = vst [vmem:[#allocation69_spill] sm:$0xff] %v21238_v41  ;;  %23016 = vst [vmem:[#allocation70_spill] sm:$0xff] %v21240_v33  ;;  %v21242_v32 = vpop.f32.mrb[45].mxu1  ;;  %v21244_v31 = vpop.f32.mrb[46].mxu0 }
 0x2a7   :  { %23017 = vst [vmem:[#allocation71_spill] sm:$0xff] %v21242_v32  ;;  %23018 = vst [vmem:[#allocation72_spill] sm:$0xff] %v21244_v31  ;;  %v21246_v7 = vpop.f32.mrb[46].mxu1  ;;  %v21248_v50 = vpop.f32.mrb[47].mxu0  ;;  %5306 = vmatpush1.bf16.msra.mxu0 %v18741_v16 }
 0x2a8   :  { %23019 = vst [vmem:[#allocation73_spill] sm:$0xff] %v21246_v7  ;;  %23020 = vst [vmem:[#allocation74_spill] sm:$0xff] %v21248_v50  ;;  %v21250_v30 = vpop.f32.mrb[47].mxu1  ;;  %5532 = vmatpush1.bf16.msra.mxu1 %v18744_v0  ;;  %5307 = vmatprep.subr.bf16.mxu0 %v18749_v34 }
 0x2a9   :  { %23021 = vst [vmem:[#allocation75_spill] sm:$0xff] %v21250_v30  ;;  %3185 = vmatmul.mubr.bf16.gmra.mrb[88].mxu0 %v20232_v18  ;;  %5533 = vmatprep.subr.bf16.mxu1 %v18752_v40 }
 0x2aa   :  { %3571 = vmatmul.mubr.bf16.gmra.mrb[88].mxu1 %v20232_v18  ;;  %3194 = vmatprep.mubr.bf16.mxu0 %v20233_v51 }
 0x2ab   :  { %3580 = vmatprep.mubr.bf16.mxu1 %v20233_v51  ;;  %5308 = vmatpush1.bf16.msra.mxu0 %v18747_v19  ;;  %v20234_v19 = vld [vmem:[%s22904_s0 + $0xe8] ss:$16 sps:$4 sm:$0xff]  }
 0x2ac   :  { %v21258_v63 = vpop.f32.mrb[48].mxu0  ;;  %5534 = vmatpush1.bf16.msra.mxu1 %v18750_v17  ;;  %v20235_v17 = vld [vmem:[%s22904_s0 + $0x10c] ss:$16 sps:$4 sm:$0xff]  }
 0x2ad   :  { %23022 = vst [vmem:[#allocation76_spill] sm:$0xff] %v21258_v63  ;;  %v21260_v16 = vpop.f32.mrb[48].mxu1  ;;  %v21262_v0 = vpop.f32.mrb[49].mxu0  ;;  %v18765_v63 = vld [vmem:[#allocation8 + $0x5e0] ss:$16 sps:$4 sm:$0xff]  }
 0x2ae   :  { %23023 = vst [vmem:[#allocation77_spill] sm:$0xff] %v21260_v16  ;;  %23024 = vst [vmem:[#allocation78_spill] sm:$0xff] %v21262_v0  ;;  %v21264_v34 = vpop.f32.mrb[49].mxu1  ;;  %v21266_v30 = vpop.f32.mrb[50].mxu0  ;;  %v18762_v16 = vld [vmem:[#allocation8 + $0x5c8] ss:$16 sps:$4 sm:$0xff]  }
 0x2af   :  { %23025 = vst [vmem:[#allocation79_spill] sm:$0xff] %v21264_v34  ;;  %23026 = vst [vmem:[#allocation80_spill] sm:$0xff] %v21266_v30  ;;  %v21268_v40 = vpop.f32.mrb[50].mxu1  ;;  %v21270_v18 = vpop.f32.mrb[51].mxu0 }
 0x2b0   :  { %23027 = vst [vmem:[#allocation81_spill] sm:$0xff] %v21268_v40  ;;  %23028 = vst [vmem:[#allocation82_spill] sm:$0xff] %v21270_v18  ;;  %v21272_v50 = vpop.f32.mrb[51].mxu1 }
 0x2b1   :  { %23029 = vst [vmem:[#allocation83_spill] sm:$0xff] %v21272_v50  ;;  %3195 = vmatmul.mubr.bf16.gmra.mrb[92].mxu0 %v20234_v19 }
 0x2b2   :  { %3581 = vmatmul.mubr.bf16.gmra.mrb[92].mxu1 %v20234_v19  ;;  %3204 = vmatprep.mubr.bf16.mxu0 %v20235_v17 }
 0x2b3   :  { %3590 = vmatprep.mubr.bf16.mxu1 %v20235_v17  ;;  %v20236_v17 = vld [vmem:[%s22904_s0 + $0x108] ss:$16 sps:$4 sm:$0xff]  }
 0x2b4   :  { %v21280_v51 = vpop.f32.mrb[52].mxu0 }
 0x2b5   :  { %23030 = vst [vmem:[#allocation84_spill] sm:$0xff] %v21280_v51  ;;  %v21282_v30 = vpop.f32.mrb[52].mxu1  ;;  %v21284_v40 = vpop.f32.mrb[53].mxu0 }
 0x2b6   :  { %23031 = vst [vmem:[#allocation85_spill] sm:$0xff] %v21282_v30  ;;  %23032 = vst [vmem:[#allocation86_spill] sm:$0xff] %v21284_v40  ;;  %v21286_v18 = vpop.f32.mrb[53].mxu1  ;;  %v21288_v50 = vpop.f32.mrb[54].mxu0  ;;  %v20237_v40 = vld [vmem:[%s22904_s0 + $0x12c] ss:$16 sps:$4 sm:$0xff]  }
 0x2b7   :  { %23033 = vst [vmem:[#allocation87_spill] sm:$0xff] %v21286_v18  ;;  %23034 = vst [vmem:[#allocation88_spill] sm:$0xff] %v21288_v50  ;;  %v21290_v34 = vpop.f32.mrb[54].mxu1  ;;  %v21292_v0 = vpop.f32.mrb[55].mxu0 }
 0x2b8   :  { %23035 = vst [vmem:[#allocation89_spill] sm:$0xff] %v21290_v34  ;;  %23036 = vst [vmem:[#allocation90_spill] sm:$0xff] %v21292_v0  ;;  %v21294_v19 = vpop.f32.mrb[55].mxu1 }
 0x2b9   :  { %23037 = vst [vmem:[#allocation91_spill] sm:$0xff] %v21294_v19  ;;  %3205 = vmatmul.mubr.bf16.gmra.mrb[96].mxu0 %v20236_v17 }
 0x2ba   :  { %3591 = vmatmul.mubr.bf16.gmra.mrb[96].mxu1 %v20236_v17  ;;  %3214 = vmatprep.mubr.bf16.mxu0 %v20237_v40 }
 0x2bb   :  { %3600 = vmatprep.mubr.bf16.mxu1 %v20237_v40  ;;  %v20238_v40 = vld [vmem:[%s22904_s0 + $0x128] ss:$16 sps:$4 sm:$0xff]  }
 0x2bc   :  { %v21302_v18 = vpop.f32.mrb[56].mxu0 }
 0x2bd   :  { %23038 = vst [vmem:[#allocation92_spill] sm:$0xff] %v21302_v18  ;;  %v21304_v50 = vpop.f32.mrb[56].mxu1  ;;  %v21306_v34 = vpop.f32.mrb[57].mxu0 }
 0x2be   :  { %23039 = vst [vmem:[#allocation93_spill] sm:$0xff] %v21304_v50  ;;  %23040 = vst [vmem:[#allocation94_spill] sm:$0xff] %v21306_v34  ;;  %v21308_v0 = vpop.f32.mrb[57].mxu1  ;;  %v21310_v19 = vpop.f32.mrb[58].mxu0  ;;  %v20239_v34 = vld [vmem:[%s22904_s0 + $0x14c] ss:$16 sps:$4 sm:$0xff]  }
 0x2bf   :  { %23041 = vst [vmem:[#allocation95_spill] sm:$0xff] %v21308_v0  ;;  %23042 = vst [vmem:[#allocation96_spill] sm:$0xff] %v21310_v19  ;;  %v21312_v30 = vpop.f32.mrb[58].mxu1  ;;  %v21314_v51 = vpop.f32.mrb[59].mxu0 }
 0x2c0   :  { %23043 = vst [vmem:[#allocation97_spill] sm:$0xff] %v21312_v30  ;;  %23044 = vst [vmem:[#allocation98_spill] sm:$0xff] %v21314_v51  ;;  %v21316_v17 = vpop.f32.mrb[59].mxu1 }
 0x2c1   :  { %23045 = vst [vmem:[#allocation99_spill] sm:$0xff] %v21316_v17  ;;  %3215 = vmatmul.mubr.bf16.gmra.mrb[100].mxu0 %v20238_v40 }
 0x2c2   :  { %3601 = vmatmul.mubr.bf16.gmra.mrb[100].mxu1 %v20238_v40  ;;  %3224 = vmatprep.mubr.bf16.mxu0 %v20239_v34 }
 0x2c3   :  { %3610 = vmatprep.mubr.bf16.mxu1 %v20239_v34  ;;  %v20240_v34 = vld [vmem:[%s22904_s0 + $0x148] ss:$16 sps:$4 sm:$0xff]  }
 0x2c4   :  { %v21324_v0 = vpop.f32.mrb[60].mxu0 }
 0x2c5   :  { %23046 = vst [vmem:[#allocation100_spill] sm:$0xff] %v21324_v0  ;;  %v21326_v19 = vpop.f32.mrb[60].mxu1  ;;  %v21328_v30 = vpop.f32.mrb[61].mxu0  ;;  %v18759_v0 = vld [vmem:[#allocation8 + $0x5c0] ss:$16 sps:$4 sm:$0xff]  }
 0x2c6   :  { %23047 = vst [vmem:[#allocation101_spill] sm:$0xff] %v21326_v19  ;;  %23048 = vst [vmem:[#allocation102_spill] sm:$0xff] %v21328_v30  ;;  %v21330_v51 = vpop.f32.mrb[61].mxu1  ;;  %v21332_v17 = vpop.f32.mrb[62].mxu0  ;;  %v20241_v30 = vld [vmem:[%s22904_s0 + $0x16c] ss:$16 sps:$4 sm:$0xff]  }
 0x2c7   :  { %23049 = vst [vmem:[#allocation103_spill] sm:$0xff] %v21330_v51  ;;  %23050 = vst [vmem:[#allocation104_spill] sm:$0xff] %v21332_v17  ;;  %v21334_v50 = vpop.f32.mrb[62].mxu1  ;;  %v21336_v18 = vpop.f32.mrb[63].mxu0  ;;  %v18755_v51 = vld [vmem:[#allocation8 + $0x5a4] ss:$16 sps:$4 sm:$0xff]  }
 0x2c8   :  { %23051 = vst [vmem:[#allocation105_spill] sm:$0xff] %v21334_v50  ;;  %23052 = vst [vmem:[#allocation106_spill] sm:$0xff] %v21336_v18  ;;  %v21338_v40 = vpop.f32.mrb[63].mxu1  ;;  %v18758_v17 = vld [vmem:[#allocation8 + $0x5ac] ss:$16 sps:$4 sm:$0xff]   ;;  %5309 = vmatprep.subr.bf16.mxu0 %v18755_v51 }
 0x2c9   :  { %23053 = vst [vmem:[#allocation107_spill] sm:$0xff] %v21338_v40  ;;  %3225 = vmatmul.mubr.bf16.gmra.mrb[104].mxu0 %v20240_v34  ;;  %v18753_v19 = vld [vmem:[#allocation8 + $0x5a0] ss:$16 sps:$4 sm:$0xff]   ;;  %v18756_v50 = vld [vmem:[#allocation8 + $0x5a8] ss:$16 sps:$4 sm:$0xff]   ;;  %5535 = vmatprep.subr.bf16.mxu1 %v18758_v17 }
 0x2ca   :  { %3611 = vmatmul.mubr.bf16.gmra.mrb[104].mxu1 %v20240_v34  ;;  %3234 = vmatprep.mubr.bf16.mxu0 %v20241_v30  ;;  %v20242_v40 = vld [vmem:[%s22904_s0 + $0x168] ss:$16 sps:$4 sm:$0xff]   ;;  %v20243_v34 = vld [vmem:[%s22904_s0 + $0x18c] ss:$16 sps:$4 sm:$0xff]   ;;  %v18770_v17 = vld [vmem:[#allocation8 + $0x5ec] ss:$16 sps:$4 sm:$0xff]  }
 0x2cb   :  { %3620 = vmatprep.mubr.bf16.mxu1 %v20241_v30  ;;  %5536 = vmatpush1.bf16.msra.mxu1 %v18756_v50  ;;  %v18761_v18 = vld [vmem:[#allocation8 + $0x5c4] ss:$16 sps:$4 sm:$0xff]   ;;  %v18764_v30 = vld [vmem:[#allocation8 + $0x5cc] ss:$16 sps:$4 sm:$0xff]   ;;  %v18768_v50 = vld [vmem:[#allocation8 + $0x5e8] ss:$16 sps:$4 sm:$0xff]  }
 0x2cc   :  { %5310 = vmatpush1.bf16.msra.mxu0 %v18753_v19  ;;  %5537 = vmatprep.subr.bf16.mxu1 %v18764_v30  ;;  %v18767_v51 = vld [vmem:[#allocation8 + $0x5e4] ss:$16 sps:$4 sm:$0xff]   ;;  %v20248_v19 = vld [vmem:[%s22904_s0 + $0x1c8] ss:$16 sps:$4 sm:$0xff]  }
 0x2cd   :  { %5311 = vmatprep.subr.bf16.mxu0 %v18761_v18  ;;  %v20245_v18 = vld [vmem:[%s22904_s0 + $0x1ac] ss:$16 sps:$4 sm:$0xff]  }
 0x2ce   :  { %v18773_v30 = vld [vmem:[#allocation8 + $0x604] ss:$16 sps:$4 sm:$0xff]  }
 0x2cf   :  { %5538 = vmatpush1.bf16.msra.mxu1 %v18762_v16  ;;  %v20246_v16 = vld [vmem:[%s22904_s0 + $0x1a8] ss:$16 sps:$4 sm:$0xff]  }
 0x2d0   :  { %5312 = vmatpush1.bf16.msra.mxu0 %v18759_v0  ;;  %5539 = vmatprep.subr.bf16.mxu1 %v18770_v17  ;;  %v20247_v0 = vld [vmem:[%s22904_s0 + $0x1cc] ss:$16 sps:$4 sm:$0xff]   ;;  %v487_v17 = vlaneseq }
 0x2d1   :  { %3235 = vmatmul.mubr.bf16.gmra.mrb[108].mxu0 %v20242_v40  ;;  %5313 = vmatprep.subr.bf16.mxu0 %v18767_v51  ;;  %v18776_v51 = vld [vmem:[#allocation8 + $0x60c] ss:$16 sps:$4 sm:$0xff]  }
 0x2d2   :  { %3621 = vmatmul.mubr.bf16.gmra.mrb[108].mxu1 %v20242_v40  ;;  %3244 = vmatprep.mubr.bf16.mxu0 %v20243_v34  ;;  %v20244_v40 = vld [vmem:[%s22904_s0 + $0x188] ss:$16 sps:$4 sm:$0xff]  }
 0x2d3   :  { %3630 = vmatprep.mubr.bf16.mxu1 %v20243_v34  ;;  %5540 = vmatpush1.bf16.msra.mxu1 %v18768_v50  ;;  %v20250_v34 = vld [vmem:[%s22904_s0 + $0x1e8] ss:$16 sps:$4 sm:$0xff]   ;;  %v488_v50 = vshrl.u32 %v487_v17, 7 }
 0x2d4   :  { %5314 = vmatpush1.bf16.msra.mxu0 %v18765_v63  ;;  %v20249_v63 = vld [vmem:[%s22904_s0 + $0x1ec] ss:$16 sps:$4 sm:$0xff]   ;;  %5622 = vmatprep.subr.bf16.mxu1 %v18776_v51 }
 0x2d5   :  { %5396 = vmatprep.subr.bf16.mxu0 %v18773_v30  ;;  %v513_v31 = vsub.s32 6, %v488_v50 }
 0x2d9   :  { %3245 = vmatmul.mubr.bf16.gmra.mrb[112].mxu0 %v20244_v40 }
 0x2da   :  { %3631 = vmatmul.mubr.bf16.gmra.mrb[112].mxu1 %v20244_v40  ;;  %3254 = vmatprep.mubr.bf16.mxu0 %v20245_v18  ;;  %v21373_v40 = vsub.s32 0, %v488_v50 }
 0x2db   :  { %3640 = vmatprep.mubr.bf16.mxu1 %v20245_v18  ;;  %v485_v18 = vld [vmem:[#allocation6] sm:$0xff] }
 0x2dc   :  { %23054 = vst [vmem:[#allocation108_spill] sm:$0xff] %v21373_v40 }
 0x2e1   :  { %3255 = vmatmul.mubr.bf16.gmra.mrb[116].mxu0 %v20246_v16 }
 0x2e2   :  { %3641 = vmatmul.mubr.bf16.gmra.mrb[116].mxu1 %v20246_v16  ;;  %3264 = vmatprep.mubr.bf16.mxu0 %v20247_v0  ;;  %v21375_v16 = vsub.s32 2, %v488_v50 }
 0x2e3   :  { %3650 = vmatprep.mubr.bf16.mxu1 %v20247_v0  ;;  %v21377_v0 = vsub.s32 1, %v488_v50 }
 0x2e4   :  { %23055 = vst [vmem:[#allocation109_spill] sm:$0xff] %v21375_v16 }
 0x2e5   :  { %23056 = vst [vmem:[#allocation110_spill] sm:$0xff] %v21377_v0  ;;  %v21388_v30 = vrot.slane %v485_v18, %v21377_v0  ;;  %v505_v0 = vsub.s32 4, %v488_v50 }
 0x2e7   :  { %v21435_v32 = vadd.f32 %v21020_v44, %v21388_v30 }
 0x2e9   :  { %3265 = vmatmul.mubr.bf16.gmra.mrb[120].mxu0 %v20248_v19 }
 0x2ea   :  { %3651 = vmatmul.mubr.bf16.gmra.mrb[120].mxu1 %v20248_v19  ;;  %3274 = vmatprep.mubr.bf16.mxu0 %v20249_v63  ;;  %v21379_v19 = vsub.s32 3, %v488_v50 }
 0x2eb   :  { %3660 = vmatprep.mubr.bf16.mxu1 %v20249_v63  ;;  %v21382_v63 = vrot.slane %v485_v18, %v21373_v40  ;;  %v21403_v40 = vadd.f32 %v20998_v37, %v21388_v30 }
 0x2ec   :  { %23057 = vst [vmem:[#allocation111_spill] sm:$0xff] %v21379_v19  ;;  %v21391_v51 = vrot.slane %v485_v18, %v21379_v19 }
 0x2ed   :  { %v21395_v17 = vadd.f32 %v20994_v35, %v21382_v63  ;;  %v21411_v19 = vadd.f32 %v21002_v39, %v21382_v63 }
 0x2ee   :  { %v21423_v37 = vadd.f32 %v21008_v62, %v21391_v51  ;;  %v21443_v62 = vadd.f32 %v21024_v46, %v21382_v63  ;;  %v21455_v44 = vadd.f32 %v21030_v49, %v21391_v51  ;;  %v21477_v49 = vadd.f32 %v21046_v56, %v21382_v63 }
 0x2ef   :  { %v21497_v56 = vadd.f32 %v21060_v1, %v21382_v63 }
 0x2f1   :  { %3275 = vmatmul.mubr.bf16.gmra.mrb[124].mxu0 %v20250_v34 }
 0x2f2   :  { %3661 = vmatmul.mubr.bf16.gmra.mrb[124].mxu1 %v20250_v34  ;;  %v21385_v34 = vrot.slane %v485_v18, %v21375_v16  ;;  %v21407_v16 = vadd.f32 %v21000_v38, %v21391_v51  ;;  %v21427_v38 = vadd.f32 %v21016_v42, %v21382_v63  ;;  %v517_v42 = vsub.s32 7, %v488_v50 }
 0x2f4   :  { %v21399_v7 = vadd.f32 %v20996_v36, %v21385_v34  ;;  %v21415_v35 = vadd.f32 %v21004_v59, %v21385_v34  ;;  %v21419_v36 = vadd.f32 %v21006_v60, %v21388_v30  ;;  %v21431_v39 = vadd.f32 %v21018_v43, %v21385_v34 }
 0x2f5   :  { %v509_v59 = vsub.s32 5, %v488_v50  ;;  %v21439_v60 = vadd.f32 %v21022_v45, %v21391_v51  ;;  %v21447_v33 = vadd.f32 %v21026_v47, %v21385_v34  ;;  %v21451_v43 = vadd.f32 %v21028_v48, %v21388_v30 }
 0x2f6   :  { %v21459_v45 = vadd.f32 %v21038_v52, %v21382_v63  ;;  %v21463_v46 = vadd.f32 %v21040_v53, %v21385_v34  ;;  %v21467_v47 = vadd.f32 %v21042_v54, %v21388_v30  ;;  %v21471_v48 = vadd.f32 %v21044_v55, %v21391_v51 }
 0x2f7   :  { %v21473_v50 = vrot.slane %v485_v18, %v505_v0  ;;  %v21481_v52 = vadd.f32 %v21048_v57, %v21385_v34  ;;  %v21483_v53 = vrot.slane %v485_v18, %v513_v31  ;;  %v21485_v41 = vrot.slane %v485_v18, %v509_v59 }
 0x2f8   :  { %v21489_v54 = vadd.f32 %v21050_v58, %v21388_v30  ;;  %v21493_v55 = vadd.f32 %v21052_v61, %v21391_v51  ;;  %v21499_v0 = vrot.slane %v485_v18, %v517_v42  ;;  %v21503_v57 = vadd.f32 %v21062_v2, %v21385_v34 }
 0x2f9   :  { %v21507_v31 = vadd.f32 %v21064_v3, %v21388_v30  ;;  %v21511_v58 = vadd.f32 %v21066_v22, %v21391_v51  ;;  %v21515_v61 = vadd.f32 %v21068_v23, %v21382_v63  ;;  %v21519_v18 = vadd.f32 %v21070_v28, %v21385_v34 }
 0x2fa   :  { %v21523_v2 = vadd.f32 %v21072_v4, %v21388_v30  ;;  %v21527_v3 = vadd.f32 %v21074_v5, %v21391_v51  ;;  %v21532_v23 = vadd.f32 %v21082_v8, %v21382_v63  ;;  %v21536_v28 = vadd.f32 %v21084_v9, %v21385_v34 }
 0x2fb   :  { %23058 = vst [vmem:[#allocation112_spill] sm:$0xff] %v21515_v61  ;;  %23059 = vst [vmem:[#allocation113_spill] sm:$0xff] %v21519_v18  ;;  %v21542_v5 = vadd.f32 %v21086_v10, %v21388_v30  ;;  %v21553_v10 = vadd.f32 %v21088_v11, %v21391_v51  ;;  %v21570_v11 = vadd.f32 %v21094_v14, %v21388_v30 }
 0x2fc   :  { %23060 = vst [vmem:[#allocation114_spill] sm:$0xff] %v21523_v2  ;;  %23061 = vst [vmem:[#allocation115_spill] sm:$0xff] %v21527_v3  ;;  %v21587_v14 = vadd.f32 %v21108_v24, %v21388_v30 }
 0x2fd   :  { %23062 = vst [vmem:[#allocation116_spill] sm:$0xff] %v21532_v23  ;;  %23063 = vst [vmem:[#allocation117_spill] sm:$0xff] %v21536_v28 }
 0x34c   :  { %v3126_v1 = vpop.f32.mrb[64].mxu0 }
 0x34d   :  { %v17472_v22 = vadd.f32 %v3126_v1, %v21473_v50  ;;  %v3512_v59 = vpop.f32.mrb[64].mxu1  ;;  %v3128_v42 = vpop.f32.mrb[65].mxu0 }
 0x34e   :  { %v17536_v29 = vadd.f32 %v3512_v59, %v21483_v53  ;;  %v17473_v4 = vadd.f32 %v3128_v42, %v21485_v41  ;;  %v3514_v6 = vpop.f32.mrb[65].mxu1  ;;  %v3130_v2 = vpop.f32.mrb[66].mxu0 }
 0x34f   :  { %v3671_v1 = vmax.f32 %v21395_v17, %v17472_v22  ;;  %v17537_v3 = vadd.f32 %v3514_v6, %v21499_v0  ;;  %v17474_v8 = vadd.f32 %v3130_v2, %v21473_v50  ;;  %v3516_v23 = vpop.f32.mrb[66].mxu1  ;;  %v3132_v18 = vpop.f32.mrb[67].mxu0 }
 0x350   :  { %v3673_v9 = vmax.f32 %v21399_v7, %v17536_v29  ;;  %v3672_v59 = vmax.f32 %v21403_v40, %v17473_v4  ;;  %v17538_v42 = vadd.f32 %v3516_v23, %v21483_v53  ;;  %v17475_v28 = vadd.f32 %v3132_v18, %v21485_v41  ;;  %v3518_v61 = vpop.f32.mrb[67].mxu1 }
 0x351   :  { %v3674_v17 = vmax.f32 %v21407_v16, %v17537_v3  ;;  %v3675_v6 = vmax.f32 %v21411_v19, %v17474_v8  ;;  %v17539_v2 = vadd.f32 %v3518_v61, %v21499_v0  ;;  %v21560_v7 = vadd.f32 %v21090_v12, %v21382_v63 }
 0x352   :  { %v21564_v29 = vadd.f32 %v21092_v13, %v21385_v34  ;;  %v3677_v40 = vmax.f32 %v21415_v35, %v17538_v42  ;;  %v3676_v18 = vmax.f32 %v21419_v36, %v17475_v28  ;;  %v21574_v16 = vadd.f32 %v21096_v15, %v21391_v51 }
 0x353   :  { %v3799_v19 = vmax.f32 %v3671_v1, %v3675_v6  ;;  %v3678_v12 = vmax.f32 %v21423_v37, %v17539_v2  ;;  %v21579_v61 = vadd.f32 %v21104_v20, %v21382_v63  ;;  %v21583_v13 = vadd.f32 %v21106_v21, %v21385_v34 }
 0x354   :  { %v3801_v35 = vmax.f32 %v3673_v9, %v3677_v40  ;;  %v3800_v36 = vmax.f32 %v3672_v59, %v3676_v18  ;;  %v3136_v3 = vpop.f32.mrb[68].mxu0  ;;  %v21591_v15 = vadd.f32 %v21110_v25, %v21391_v51 }
 0x355   :  { %v3802_v37 = vmax.f32 %v3674_v17, %v3678_v12  ;;  %v17476_v22 = vadd.f32 %v3136_v3, %v21473_v50  ;;  %v3522_v20 = vpop.f32.mrb[68].mxu1  ;;  %v3138_v23 = vpop.f32.mrb[69].mxu0 }
 0x356   :  { %v17540_v28 = vadd.f32 %v3522_v20, %v21483_v53  ;;  %v17477_v21 = vadd.f32 %v3138_v23, %v21485_v41  ;;  %v3524_v4 = vpop.f32.mrb[69].mxu1  ;;  %v3140_v1 = vpop.f32.mrb[70].mxu0  ;;  %v17113_v8 = vpack.c.bf16 %v3800_v36, %v3799_v19  ;;  %v22924_v20 = vmov 0  }
 0x357   :  { %v3679_v9 = vmax.f32 %v21427_v38, %v17476_v22  ;;  %v17541_v24 = vadd.f32 %v3524_v4, %v21499_v0  ;;  %v17478_v59 = vadd.f32 %v3140_v1, %v21473_v50  ;;  %v3526_v25 = vpop.f32.mrb[70].mxu1  ;;  %v3142_v42 = vpop.f32.mrb[71].mxu0  ;;  %v21599_v17 = vpack.c.bf16 %v3802_v37, %v3801_v35 }
 0x358   :  { %v3681_v6 = vmax.f32 %v21431_v39, %v17540_v28  ;;  %v3680_v2 = vmax.f32 %v21435_v32, %v17477_v21  ;;  %v17542_v40 = vadd.f32 %v3526_v25, %v21483_v53  ;;  %v17479_v18 = vadd.f32 %v3142_v42, %v21485_v41  ;;  %v3528_v12 = vpop.f32.mrb[71].mxu1  ;;  %v18771_v21 = vld [vmem:[#allocation8 + $0x600] ss:$16 sps:$4 sm:$0xff]   ;;  %v18779_v42 = vld [vmem:[#allocation8 + $0x624] ss:$16 sps:$4 sm:$0xff]  }
 0x359   :  { %v3682_v3 = vmax.f32 %v21439_v60, %v17541_v24  ;;  %v3683_v38 = vmax.f32 %v21443_v62, %v17478_v59  ;;  %v17543_v22 = vadd.f32 %v3528_v12, %v21499_v0  ;;  %v15871_v23 = vcombine.low %v22924_v20, %v17113_v8  ;;  %v23064_v62 = vld [vmem:[#allocation26_spill] sm:$0xff]  ;;  %v18774_v59 = vld [vmem:[#allocation8 + $0x608] ss:$16 sps:$4 sm:$0xff]  }
 0x35a   :  { %v21611_v4 = vadd.f32 %v21112_v26, %v21382_v63  ;;  %v3685_v32 = vmax.f32 %v21447_v33, %v17542_v40  ;;  %v3684_v39 = vmax.f32 %v21451_v43, %v17479_v18  ;;  %v15872_v28 = vcombine.high %v22924_v20, %v17113_v8  ;;  %v23065_v33 = vld [vmem:[#allocation27_spill] sm:$0xff] }
 0x35b   :  { %v21618_v60 = vadd.f32 %v21114_v27, %v21385_v34  ;;  %v21622_v1 = vadd.f32 %v23064_v62, %v21388_v30  ;;  %v21624_v24 = vmax.f32 %v3679_v9, %v3683_v38  ;;  %v3686_v26 = vmax.f32 %v21455_v44, %v17543_v22  ;;  %v18782_v38 = vld [vmem:[#allocation8 + $0x62c] ss:$16 sps:$4 sm:$0xff]  }
 0x35c   :  { %v21629_v25 = vadd.f32 %v23065_v33, %v21391_v51  ;;  %v21631_v43 = vmax.f32 %v3681_v6, %v3685_v32  ;;  %v21633_v8 = vmax.f32 %v3680_v2, %v3684_v39  ;;  %5315 = vmatprep.mubr.bf16.mxu0 %v15872_v28  ;;  %5541 = vmatprep.mubr.bf16.mxu1 %v15872_v28  ;;  %v3146_v27 = vpop.f32.mrb[72].mxu0  ;;  %v18777_v39 = vld [vmem:[#allocation8 + $0x620] ss:$16 sps:$4 sm:$0xff]   ;;  %v18780_v33 = vld [vmem:[#allocation8 + $0x628] ss:$16 sps:$4 sm:$0xff]  }
 0x35d   :  { %v21636_v40 = vpack.c.bf16 %v21624_v24, %v3799_v19  ;;  %v21638_v9 = vmax.f32 %v3682_v3, %v3686_v26  ;;  %5316 = vmatmul.mubr.bf16.vlgmr.msra.gmra.mrb[128].mxu0 %v15871_v23  ;;  %5542 = vmatmul.mubr.bf16.vlgmr.msra.gmra.mrb[128].mxu1 %v15871_v23  ;;  %v17480_v44 = vadd.f32 %v3146_v27, %v21473_v50  ;;  %v3532_v18 = vpop.f32.mrb[72].mxu1  ;;  %v3148_v12 = vpop.f32.mrb[73].mxu0  ;;  %v18785_v27 = vld [vmem:[#allocation8 + $0x644] ss:$16 sps:$4 sm:$0xff]  }
 0x35e   :  { %v21642_v6 = vpack.c.bf16 %v21631_v43, %v3801_v35  ;;  %v21645_v2 = vpack.c.bf16 %v21633_v8, %v3800_v36  ;;  %v17544_v22 = vadd.f32 %v3532_v18, %v21483_v53  ;;  %v17481_v19 = vadd.f32 %v3148_v12, %v21485_v41  ;;  %v3534_v32 = vpop.f32.mrb[73].mxu1  ;;  %v3150_v3 = vpop.f32.mrb[74].mxu0  ;;  %5397 = vmatpush1.bf16.msra.mxu0 %v18771_v21 }
 0x35f   :  { %23066 = vst [vmem:[#allocation26_spill] sm:$0xff] %v21636_v40  ;;  %v21650_v23 = vpack.c.bf16 %v21638_v9, %v3802_v37  ;;  %v3687_v28 = vmax.f32 %v21459_v45, %v17480_v44  ;;  %v17545_v62 = vadd.f32 %v3534_v32, %v21499_v0  ;;  %v17482_v35 = vadd.f32 %v3150_v3, %v21473_v50  ;;  %v3536_v26 = vpop.f32.mrb[74].mxu1  ;;  %v3152_v36 = vpop.f32.mrb[75].mxu0  ;;  %v18788_v45 = vld [vmem:[#allocation8 + $0x64c] ss:$16 sps:$4 sm:$0xff]  }
 0x360   :  { %23067 = vst [vmem:[#allocation27_spill] sm:$0xff] %v21642_v6  ;;  %23068 = vst [vmem:[#allocation118_spill] sm:$0xff] %v21645_v2  ;;  %5623 = vmatpush1.bf16.msra.mxu1 %v18774_v59  ;;  %v3689_v18 = vmax.f32 %v21463_v46, %v17544_v22  ;;  %v3688_v12 = vmax.f32 %v21467_v47, %v17481_v19  ;;  %v17546_v21 = vadd.f32 %v3536_v26, %v21483_v53  ;;  %v3538_v20 = vpop.f32.mrb[75].mxu1  ;;  %v23070_v44 = vld [vmem:[#allocation28_spill] sm:$0xff]  ;;  %v23071_v46 = vld [vmem:[#allocation29_spill] sm:$0xff] }
 0x361   :  { %23069 = vst [vmem:[#allocation119_spill] sm:$0xff] %v21650_v23  ;;  %v17483_v37 = vadd.f32 %v3152_v36, %v21485_v41  ;;  %5398 = vmatprep.subr.bf16.mxu0 %v18779_v42  ;;  %v21661_v32 = vadd.f32 %v23070_v44, %v21382_v63  ;;  %v3690_v3 = vmax.f32 %v21471_v48, %v17545_v62  ;;  %v23072_v22 = vld [vmem:[#allocation30_spill] sm:$0xff]  ;;  %v23073_v48 = vld [vmem:[#allocation31_spill] sm:$0xff] }
 0x362   :  { %v3691_v59 = vmax.f32 %v21477_v49, %v17482_v35  ;;  %v17547_v6 = vadd.f32 %v3538_v20, %v21499_v0  ;;  %5624 = vmatprep.subr.bf16.mxu1 %v18782_v38  ;;  %v21668_v47 = vadd.f32 %v23071_v46, %v21385_v34  ;;  %v21672_v19 = vadd.f32 %v23072_v22, %v21388_v30  ;;  %v18783_v36 = vld [vmem:[#allocation8 + $0x640] ss:$16 sps:$4 sm:$0xff]   ;;  %v18786_v62 = vld [vmem:[#allocation8 + $0x648] ss:$16 sps:$4 sm:$0xff]  }
 0x363   :  { %v3693_v42 = vmax.f32 %v21481_v52, %v17546_v21  ;;  %v3692_v26 = vmax.f32 %v21489_v54, %v17483_v37  ;;  %5399 = vmatpush1.bf16.msra.mxu0 %v18777_v39  ;;  %v21678_v49 = vadd.f32 %v23073_v48, %v21391_v51  ;;  %v23074_v35 = vld [vmem:[#allocation32_spill] sm:$0xff]  ;;  %v23075_v52 = vld [vmem:[#allocation33_spill] sm:$0xff] }
 0x364   :  { %v21680_v20 = vmax.f32 %v3687_v28, %v3691_v59  ;;  %v3694_v38 = vmax.f32 %v21493_v55, %v17547_v6  ;;  %5625 = vmatpush1.bf16.msra.mxu1 %v18780_v33  ;;  %5400 = vmatprep.subr.bf16.mxu0 %v18785_v27  ;;  %v21685_v44 = vadd.f32 %v23074_v35, %v21382_v63  ;;  %v3156_v37 = vpop.f32.mrb[76].mxu0  ;;  %v23076_v28 = vld [vmem:[#allocation34_spill] sm:$0xff] }
 0x365   :  { %v21689_v54 = vadd.f32 %v23075_v52, %v21385_v34  ;;  %v21691_v39 = vmax.f32 %v3689_v18, %v3693_v42  ;;  %v21693_v21 = vmax.f32 %v3688_v12, %v3692_v26  ;;  %5626 = vmatprep.subr.bf16.mxu1 %v18788_v45  ;;  %v21697_v55 = vadd.f32 %v23076_v28, %v21388_v30  ;;  %v3542_v59 = vpop.f32.mrb[76].mxu1  ;;  %v3158_v46 = vpop.f32.mrb[77].mxu0  ;;  %v18789_v52 = vld [vmem:[#allocation8 + $0x660] ss:$16 sps:$4 sm:$0xff]  }
 0x366   :  { %v21701_v6 = vpack.c.bf16 %v21680_v20, %v21624_v24  ;;  %v21703_v33 = vmax.f32 %v3690_v3, %v3694_v38  ;;  %v17484_v27 = vadd.f32 %v3156_v37, %v21473_v50  ;;  %v17548_v45 = vadd.f32 %v3542_v59, %v21483_v53  ;;  %v3544_v24 = vpop.f32.mrb[77].mxu1  ;;  %v3160_v42 = vpop.f32.mrb[78].mxu0  ;;  %v18791_v3 = vld [vmem:[#allocation8 + $0x664] ss:$16 sps:$4 sm:$0xff]   ;;  %v18794_v37 = vld [vmem:[#allocation8 + $0x66c] ss:$16 sps:$4 sm:$0xff]  }
 0x367   :  { %v21708_v18 = vpack.c.bf16 %v21691_v39, %v21631_v43  ;;  %v21712_v12 = vpack.c.bf16 %v21693_v21, %v21633_v8  ;;  %v17485_v22 = vadd.f32 %v3158_v46, %v21485_v41  ;;  %5401 = vmatpush1.bf16.msra.mxu0 %v18783_v36  ;;  %v17549_v43 = vadd.f32 %v3544_v24, %v21499_v0  ;;  %v3546_v8 = vpop.f32.mrb[78].mxu1  ;;  %v3162_v35 = vpop.f32.mrb[79].mxu0 }
 0x368   :  { %23077 = vst [vmem:[#allocation28_spill] sm:$0xff] %v21701_v6  ;;  %v21718_v26 = vpack.c.bf16 %v21703_v33, %v21638_v9  ;;  %v3695_v48 = vmax.f32 %v21497_v56, %v17484_v27  ;;  %v17486_v38 = vadd.f32 %v3160_v42, %v21473_v50  ;;  %5627 = vmatpush1.bf16.msra.mxu1 %v18786_v62  ;;  %v3548_v46 = vpop.f32.mrb[79].mxu1  ;;  %v18792_v56 = vld [vmem:[#allocation8 + $0x668] ss:$16 sps:$4 sm:$0xff]   ;;  %v18797_v27 = vld [vmem:[#allocation8 + $0x684] ss:$16 sps:$4 sm:$0xff]  }
 0x369   :  { %23078 = vst [vmem:[#allocation29_spill] sm:$0xff] %v21712_v12  ;;  %v3697_v28 = vmax.f32 %v21503_v57, %v17548_v45  ;;  %v3696_v36 = vmax.f32 %v21507_v31, %v17485_v22  ;;  %v17550_v59 = vadd.f32 %v3546_v8, %v21483_v53  ;;  %v17487_v9 = vadd.f32 %v3162_v35, %v21485_v41  ;;  %v23079_v42 = vld [vmem:[#allocation112_spill] sm:$0xff]  ;;  %v23080_v31 = vld [vmem:[#allocation35_spill] sm:$0xff]  ;;  %v23081_v22 = vld [vmem:[#allocation113_spill] sm:$0xff] }
 0x36a   :  { %5325 = vmatprep.mubr.bf16.mxu0 %v21712_v12  ;;  %v3698_v24 = vmax.f32 %v21511_v58, %v17549_v43  ;;  %v3699_v23 = vmax.f32 %v23079_v42, %v17486_v38  ;;  %v17551_v62 = vadd.f32 %v3548_v46, %v21499_v0  ;;  %5551 = vmatprep.mubr.bf16.mxu1 %v21712_v12  ;;  %v18800_v57 = vld [vmem:[#allocation8 + $0x68c] ss:$16 sps:$4 sm:$0xff]   ;;  %v23084_v46 = vld [vmem:[#allocation115_spill] sm:$0xff]  ;;  %v18795_v12 = vld [vmem:[#allocation8 + $0x680] ss:$16 sps:$4 sm:$0xff]  }
 0x36b   :  { %5326 = vmatmul.mubr.bf16.gmra.mrb[132].mxu0 %v21701_v6  ;;  %v21735_v45 = vadd.f32 %v23080_v31, %v21391_v51  ;;  %v3701_v8 = vmax.f32 %v23081_v22, %v17550_v59  ;;  %v23082_v35 = vld [vmem:[#allocation114_spill] sm:$0xff]  ;;  %5552 = vmatmul.mubr.bf16.gmra.mrb[132].mxu1 %v21701_v6  ;;  %v23083_v58 = vld [vmem:[#allocation36_spill] sm:$0xff]  ;;  %v23085_v31 = vld [vmem:[#allocation37_spill] sm:$0xff] }
 0x36c   :  { %v3700_v40 = vmax.f32 %v23082_v35, %v17487_v9  ;;  %5402 = vmatprep.subr.bf16.mxu0 %v18791_v3  ;;  %v21742_v43 = vadd.f32 %v23083_v58, %v21382_v63  ;;  %v21744_v38 = vmax.f32 %v3695_v48, %v3699_v23  ;;  %v3702_v42 = vmax.f32 %v23084_v46, %v17551_v62  ;;  %v3166_v3 = vpop.f32.mrb[80].mxu0  ;;  %v18798_v22 = vld [vmem:[#allocation8 + $0x688] ss:$16 sps:$4 sm:$0xff]   ;;  %v23086_v23 = vld [vmem:[#allocation38_spill] sm:$0xff] }
 0x36d   :  { %5628 = vmatprep.subr.bf16.mxu1 %v18794_v37  ;;  %5403 = vmatpush1.bf16.msra.mxu0 %v18789_v52  ;;  %v21749_v2 = vadd.f32 %v23085_v31, %v21385_v34  ;;  %v21751_v59 = vmax.f32 %v3697_v28, %v3701_v8  ;;  %v21757_v48 = vadd.f32 %v23086_v23, %v21388_v30  ;;  %v3552_v28 = vpop.f32.mrb[80].mxu1  ;;  %v3168_v8 = vpop.f32.mrb[81].mxu0  ;;  %v23091_v6 = vld [vmem:[#allocation117_spill] sm:$0xff] }
 0x36e   :  { %v21753_v9 = vmax.f32 %v3696_v36, %v3700_v40  ;;  %5629 = vmatpush1.bf16.msra.mxu1 %v18792_v56  ;;  %5404 = vmatprep.subr.bf16.mxu0 %v18797_v27  ;;  %v21761_v52 = vpack.c.bf16 %v21744_v38, %v21680_v20  ;;  %v21763_v37 = vmax.f32 %v3698_v24, %v3702_v42  ;;  %v18803_v40 = vld [vmem:[#allocation8 + $0x6a4] ss:$16 sps:$4 sm:$0xff]   ;;  %v18806_v36 = vld [vmem:[#allocation8 + $0x6ac] ss:$16 sps:$4 sm:$0xff]   ;;  %v3554_v35 = vpop.f32.mrb[81].mxu1  ;;  %v3170_v58 = vpop.f32.mrb[82].mxu0 }
 0x36f   :  { %v17488_v62 = vadd.f32 %v3166_v3, %v21473_v50  ;;  %5630 = vmatprep.subr.bf16.mxu1 %v18800_v57  ;;  %v21768_v56 = vpack.c.bf16 %v21751_v59, %v21691_v39  ;;  %v17552_v20 = vadd.f32 %v3552_v28, %v21483_v53  ;;  %v17489_v24 = vadd.f32 %v3168_v8, %v21485_v41  ;;  %v23090_v57 = vld [vmem:[#allocation116_spill] sm:$0xff]  ;;  %v3556_v3 = vpop.f32.mrb[82].mxu1  ;;  %v3172_v23 = vpop.f32.mrb[83].mxu0 }
 0x370   :  { %23087 = vst [vmem:[#allocation30_spill] sm:$0xff] %v21761_v52  ;;  %v21772_v27 = vpack.c.bf16 %v21753_v9, %v21693_v21  ;;  %v21778_v46 = vpack.c.bf16 %v21763_v37, %v21703_v33  ;;  %v17553_v31 = vadd.f32 %v3554_v35, %v21499_v0  ;;  %v17490_v39 = vadd.f32 %v3170_v58, %v21473_v50  ;;  %v18801_v21 = vld [vmem:[#allocation8 + $0x6a0] ss:$16 sps:$4 sm:$0xff]   ;;  %v3558_v33 = vpop.f32.mrb[83].mxu1 }
 0x371   :  { %23088 = vst [vmem:[#allocation31_spill] sm:$0xff] %v21768_v56  ;;  %v3703_v42 = vmax.f32 %v23090_v57, %v17488_v62  ;;  %5405 = vmatpush1.bf16.msra.mxu0 %v18795_v12  ;;  %v3705_v28 = vmax.f32 %v23091_v6, %v17552_v20  ;;  %v3704_v8 = vmax.f32 %v21542_v5, %v17489_v24  ;;  %v18809_v62 = vld [vmem:[#allocation8 + $0x6c4] ss:$16 sps:$4 sm:$0xff]   ;;  %v18812_v12 = vld [vmem:[#allocation8 + $0x6cc] ss:$16 sps:$4 sm:$0xff]  }
 0x372   :  { %23089 = vst [vmem:[#allocation32_spill] sm:$0xff] %v21778_v46  ;;  %v17554_v56 = vadd.f32 %v3556_v3, %v21483_v53  ;;  %v17491_v52 = vadd.f32 %v3172_v23, %v21485_v41  ;;  %5631 = vmatpush1.bf16.msra.mxu1 %v18798_v22  ;;  %v18804_v46 = vld [vmem:[#allocation8 + $0x6a8] ss:$16 sps:$4 sm:$0xff]   ;;  %v3706_v35 = vmax.f32 %v21553_v10, %v17553_v31  ;;  %v23093_v20 = vld [vmem:[#allocation40_spill] sm:$0xff] }
 0x373   :  { %v3707_v58 = vmax.f32 %v21560_v7, %v17490_v39  ;;  %v17555_v57 = vadd.f32 %v3558_v33, %v21499_v0  ;;  %5406 = vmatprep.subr.bf16.mxu0 %v18803_v40  ;;  %5632 = vmatprep.subr.bf16.mxu1 %v18806_v36  ;;  %v23092_v6 = vld [vmem:[#allocation39_spill] sm:$0xff]  ;;  %v21796_v24 = vadd.f32 %v23093_v20, %v21382_v63  ;;  %v23094_v10 = vld [vmem:[#allocation41_spill] sm:$0xff]  ;;  %v23095_v40 = vld [vmem:[#allocation42_spill] sm:$0xff] }
 0x374   :  { %v21792_v5 = vadd.f32 %v23092_v6, %v21391_v51  ;;  %v3709_v22 = vmax.f32 %v21564_v29, %v17554_v56  ;;  %v3708_v3 = vmax.f32 %v21570_v11, %v17491_v52  ;;  %v21802_v7 = vadd.f32 %v23094_v10, %v21385_v34  ;;  %v18807_v23 = vld [vmem:[#allocation8 + $0x6c0] ss:$16 sps:$4 sm:$0xff]   ;;  %v23096_v33 = vld [vmem:[#allocation43_spill] sm:$0xff]  ;;  %v3176_v52 = vpop.f32.mrb[84].mxu0 }
 0x375   :  { %v21806_v36 = vadd.f32 %v23095_v40, %v21388_v30  ;;  %v21808_v31 = vmax.f32 %v3703_v42, %v3707_v58  ;;  %v3710_v39 = vmax.f32 %v21574_v16, %v17555_v57  ;;  %5407 = vmatpush1.bf16.msra.mxu0 %v18801_v21  ;;  %v21813_v6 = vadd.f32 %v23096_v33, %v21391_v51  ;;  %v23097_v56 = vld [vmem:[#allocation44_spill] sm:$0xff]  ;;  %v3562_v58 = vpop.f32.mrb[84].mxu1 }
 0x376   :  { %v21815_v29 = vmax.f32 %v3705_v28, %v3709_v22  ;;  %v21817_v11 = vmax.f32 %v3704_v8, %v3708_v3  ;;  %5633 = vmatpush1.bf16.msra.mxu1 %v18804_v46  ;;  %5408 = vmatprep.subr.bf16.mxu0 %v18809_v62  ;;  %v21821_v20 = vadd.f32 %v23097_v56, %v21382_v63  ;;  %v3178_v28 = vpop.f32.mrb[85].mxu0  ;;  %v3564_v57 = vpop.f32.mrb[85].mxu1  ;;  %v18815_v22 = vld [vmem:[#allocation8 + $0x6e4] ss:$16 sps:$4 sm:$0xff]   ;;  %v18813_v33 = vld [vmem:[#allocation8 + $0x6e0] ss:$16 sps:$4 sm:$0xff]  }
 0x377   :  { %v21825_v16 = vpack.c.bf16 %v21808_v31, %v21744_v38  ;;  %v21827_v42 = vmax.f32 %v3706_v35, %v3710_v39  ;;  %v17492_v21 = vadd.f32 %v3176_v52, %v21473_v50  ;;  %5634 = vmatprep.subr.bf16.mxu1 %v18812_v12  ;;  %v17556_v62 = vadd.f32 %v3562_v58, %v21483_v53  ;;  %v3180_v35 = vpop.f32.mrb[86].mxu0  ;;  %v3566_v40 = vpop.f32.mrb[86].mxu1  ;;  %v18810_v39 = vld [vmem:[#allocation8 + $0x6c8] ss:$16 sps:$4 sm:$0xff]  }
 0x378   :  { %v21832_v8 = vpack.c.bf16 %v21815_v29, %v21751_v59  ;;  %v21836_v46 = vpack.c.bf16 %v21817_v11, %v21753_v9  ;;  %v17493_v38 = vadd.f32 %v3178_v28, %v21485_v41  ;;  %v17557_v59 = vadd.f32 %v3564_v57, %v21499_v0  ;;  %v3182_v9 = vpop.f32.mrb[87].mxu0  ;;  %v3568_v28 = vpop.f32.mrb[87].mxu1 }
 0x379   :  { %23098 = vst [vmem:[#allocation33_spill] sm:$0xff] %v21825_v16  ;;  %v21842_v3 = vpack.c.bf16 %v21827_v42, %v21763_v37  ;;  %v3711_v12 = vmax.f32 %v21579_v61, %v17492_v21  ;;  %v17494_v10 = vadd.f32 %v3180_v35, %v21473_v50  ;;  %5409 = vmatpush1.bf16.msra.mxu0 %v18807_v23  ;;  %v18818_v61 = vld [vmem:[#allocation8 + $0x6ec] ss:$16 sps:$4 sm:$0xff]   ;;  %v18821_v21 = vld [vmem:[#allocation8 + $0x704] ss:$16 sps:$4 sm:$0xff]  }
 0x37a   :  { %23099 = vst [vmem:[#allocation34_spill] sm:$0xff] %v21836_v46  ;;  %v3713_v52 = vmax.f32 %v21583_v13, %v17556_v62  ;;  %v3712_v56 = vmax.f32 %v21587_v14, %v17493_v38  ;;  %v17558_v58 = vadd.f32 %v3566_v40, %v21483_v53  ;;  %v17495_v37 = vadd.f32 %v3182_v9, %v21485_v41  ;;  %v23100_v13 = vld [vmem:[#allocation45_spill] sm:$0xff]  ;;  %v23102_v9 = vld [vmem:[#allocation47_spill] sm:$0xff] }
 0x37b   :  { %5335 = vmatprep.mubr.bf16.mxu0 %v21836_v46  ;;  %v3714_v57 = vmax.f32 %v21591_v15, %v17557_v59  ;;  %v3715_v35 = vmax.f32 %v21611_v4, %v17494_v10  ;;  %v17559_v23 = vadd.f32 %v3568_v28, %v21499_v0  ;;  %5561 = vmatprep.mubr.bf16.mxu1 %v21836_v46  ;;  %v23101_v15 = vld [vmem:[#allocation46_spill] sm:$0xff]  ;;  %v18816_v40 = vld [vmem:[#allocation8 + $0x6e8] ss:$16 sps:$4 sm:$0xff]  }
 0x37c   :  { %5336 = vmatmul.mubr.bf16.gmra.mrb[136].mxu0 %v21825_v16  ;;  %v21859_v14 = vadd.f32 %v23100_v13, %v21385_v34  ;;  %v3717_v62 = vmax.f32 %v21618_v60, %v17558_v58  ;;  %v3716_v38 = vmax.f32 %v21622_v1, %v17495_v37  ;;  %5562 = vmatmul.mubr.bf16.gmra.mrb[136].mxu1 %v21825_v16  ;;  %v18824_v58 = vld [vmem:[#allocation8 + $0x70c] ss:$16 sps:$4 sm:$0xff]  }
 0x37d   :  { %5410 = vmatprep.subr.bf16.mxu0 %v18815_v22  ;;  %v21866_v4 = vadd.f32 %v23101_v15, %v21388_v30  ;;  %v21868_v59 = vmax.f32 %v3711_v12, %v3715_v35  ;;  %v3718_v10 = vmax.f32 %v21629_v25, %v17559_v23  ;;  %5635 = vmatpush1.bf16.msra.mxu1 %v18810_v39  ;;  %v3186_v22 = vpop.f32.mrb[88].mxu0  ;;  %v23103_v12 = vld [vmem:[#allocation48_spill] sm:$0xff] }
 0x37e   :  { %5411 = vmatpush1.bf16.msra.mxu0 %v18813_v33  ;;  %v21873_v28 = vadd.f32 %v23102_v9, %v21391_v51  ;;  %v21875_v60 = vmax.f32 %v3713_v52, %v3717_v62  ;;  %v21877_v1 = vmax.f32 %v3712_v56, %v3716_v38  ;;  %5636 = vmatprep.subr.bf16.mxu1 %v18818_v61  ;;  %v3572_v52 = vpop.f32.mrb[88].mxu1  ;;  %v3188_v35 = vpop.f32.mrb[89].mxu0  ;;  %v18819_v56 = vld [vmem:[#allocation8 + $0x700] ss:$16 sps:$4 sm:$0xff]   ;;  %v18827_v62 = vld [vmem:[#allocation8 + $0x724] ss:$16 sps:$4 sm:$0xff]  }
 0x37f   :  { %5412 = vmatprep.subr.bf16.mxu0 %v18821_v21  ;;  %v21881_v37 = vadd.f32 %v23103_v12, %v21382_v63  ;;  %v21885_v25 = vpack.c.bf16 %v21868_v59, %v21808_v31  ;;  %v21887_v39 = vmax.f32 %v3714_v57, %v3718_v10  ;;  %v17496_v33 = vadd.f32 %v3186_v22, %v21473_v50  ;;  %v3574_v13 = vpop.f32.mrb[89].mxu1  ;;  %v3190_v57 = vpop.f32.mrb[90].mxu0  ;;  %v18822_v22 = vld [vmem:[#allocation8 + $0x708] ss:$16 sps:$4 sm:$0xff]   ;;  %v18830_v46 = vld [vmem:[#allocation8 + $0x72c] ss:$16 sps:$4 sm:$0xff]  }
 0x380   :  { %v21892_v61 = vpack.c.bf16 %v21875_v60, %v21815_v29  ;;  %v21896_v21 = vpack.c.bf16 %v21877_v1, %v21817_v11  ;;  %v17560_v23 = vadd.f32 %v3572_v52, %v21483_v53  ;;  %v17497_v31 = vadd.f32 %v3188_v35, %v21485_v41  ;;  %v3576_v9 = vpop.f32.mrb[90].mxu1  ;;  %v3192_v11 = vpop.f32.mrb[91].mxu0 }
 0x381   :  { %v21902_v38 = vpack.c.bf16 %v21887_v39, %v21827_v42  ;;  %v3719_v15 = vmax.f32 %v21661_v32, %v17496_v33  ;;  %v17561_v29 = vadd.f32 %v3574_v13, %v21499_v0  ;;  %v17498_v10 = vadd.f32 %v3190_v57, %v21473_v50  ;;  %5637 = vmatpush1.bf16.msra.mxu1 %v18816_v40  ;;  %v3578_v42 = vpop.f32.mrb[91].mxu1  ;;  %v23106_v32 = vld [vmem:[#allocation49_spill] sm:$0xff] }
 0x382   :  { %23104 = vst [vmem:[#allocation112_spill] sm:$0xff] %v21892_v61  ;;  %v3721_v12 = vmax.f32 %v21668_v47, %v17560_v23  ;;  %v3720_v52 = vmax.f32 %v21672_v19, %v17497_v31  ;;  %v17562_v35 = vadd.f32 %v3576_v9, %v21483_v53  ;;  %v17499_v16 = vadd.f32 %v3192_v11, %v21485_v41  ;;  %v18825_v47 = vld [vmem:[#allocation8 + $0x720] ss:$16 sps:$4 sm:$0xff]   ;;  %v23108_v31 = vld [vmem:[#allocation51_spill] sm:$0xff] }
 0x383   :  { %23105 = vst [vmem:[#allocation35_spill] sm:$0xff] %v21902_v38  ;;  %5638 = vmatprep.subr.bf16.mxu1 %v18824_v58  ;;  %v21913_v33 = vadd.f32 %v23106_v32, %v21385_v34  ;;  %v3722_v13 = vmax.f32 %v21678_v49, %v17561_v29  ;;  %v3723_v40 = vmax.f32 %v21685_v44, %v17498_v10  ;;  %v23107_v19 = vld [vmem:[#allocation50_spill] sm:$0xff]  ;;  %v18833_v49 = vld [vmem:[#allocation8 + $0x744] ss:$16 sps:$4 sm:$0xff]   ;;  %v23109_v44 = vld [vmem:[#allocation52_spill] sm:$0xff] }
 0x384   :  { %v17563_v57 = vadd.f32 %v3578_v42, %v21499_v0  ;;  %5413 = vmatpush1.bf16.msra.mxu0 %v18819_v56  ;;  %v21920_v23 = vadd.f32 %v23107_v19, %v21388_v30  ;;  %v21924_v58 = vadd.f32 %v23108_v31, %v21391_v51  ;;  %v3725_v9 = vmax.f32 %v21689_v54, %v17562_v35  ;;  %v23110_v56 = vld [vmem:[#allocation53_spill] sm:$0xff]  ;;  %v23111_v54 = vld [vmem:[#allocation54_spill] sm:$0xff] }
 0x385   :  { %v3724_v11 = vmax.f32 %v21697_v55, %v17499_v16  ;;  %5414 = vmatprep.subr.bf16.mxu0 %v18827_v62  ;;  %v21930_v29 = vadd.f32 %v23109_v44, %v21382_v63  ;;  %v21934_v10 = vadd.f32 %v23110_v56, %v21385_v34  ;;  %v21936_v42 = vmax.f32 %v3719_v15, %v3723_v40  ;;  %v18828_v19 = vld [vmem:[#allocation8 + $0x728] ss:$16 sps:$4 sm:$0xff]   ;;  %v3196_v44 = vpop.f32.mrb[92].mxu0  ;;  %v23113_v15 = vld [vmem:[#allocation56_spill] sm:$0xff]  ;;  %v3582_v56 = vpop.f32.mrb[92].mxu1 }
 0x386   :  { %v3726_v32 = vmax.f32 %v21735_v45, %v17563_v57  ;;  %5639 = vmatpush1.bf16.msra.mxu1 %v18822_v22  ;;  %v21941_v35 = vadd.f32 %v23111_v54, %v21388_v30  ;;  %v23112_v55 = vld [vmem:[#allocation55_spill] sm:$0xff]  ;;  %v21947_v62 = vmax.f32 %v3721_v12, %v3725_v9  ;;  %v21953_v40 = vadd.f32 %v23113_v15, %v21382_v63  ;;  %v3198_v54 = vpop.f32.mrb[93].mxu0  ;;  %v3584_v9 = vpop.f32.mrb[93].mxu1  ;;  %v18831_v15 = vld [vmem:[#allocation8 + $0x740] ss:$16 sps:$4 sm:$0xff]  }
 0x387   :  { %v21945_v16 = vadd.f32 %v23112_v55, %v21391_v51  ;;  %v21949_v31 = vmax.f32 %v3720_v52, %v3724_v11  ;;  %5640 = vmatprep.subr.bf16.mxu1 %v18830_v46  ;;  %v21957_v45 = vpack.c.bf16 %v21936_v42, %v21868_v59  ;;  %v17500_v57 = vadd.f32 %v3196_v44, %v21473_v50  ;;  %v18836_v11 = vld [vmem:[#allocation8 + $0x74c] ss:$16 sps:$4 sm:$0xff]  }
 0x388   :  { %v21959_v22 = vmax.f32 %v3722_v13, %v3726_v32  ;;  %5415 = vmatpush1.bf16.msra.mxu0 %v18825_v47  ;;  %v21964_v12 = vpack.c.bf16 %v21947_v62, %v21875_v60  ;;  %v17564_v52 = vadd.f32 %v3582_v56, %v21483_v53  ;;  %v17501_v59 = vadd.f32 %v3198_v54, %v21485_v41  ;;  %v3200_v13 = vpop.f32.mrb[94].mxu0  ;;  %v18834_v56 = vld [vmem:[#allocation8 + $0x748] ss:$16 sps:$4 sm:$0xff]  }
 0x389   :  { %23114 = vst [vmem:[#allocation113_spill] sm:$0xff] %v21957_v45  ;;  %v21968_v46 = vpack.c.bf16 %v21949_v31, %v21877_v1  ;;  %5416 = vmatprep.subr.bf16.mxu0 %v18833_v49  ;;  %v3727_v47 = vmax.f32 %v21742_v43, %v17500_v57  ;;  %v17565_v60 = vadd.f32 %v3584_v9, %v21499_v0  ;;  %v3586_v1 = vpop.f32.mrb[94].mxu1  ;;  %v3202_v44 = vpop.f32.mrb[95].mxu0  ;;  %v18839_v43 = vld [vmem:[#allocation8 + $0x764] ss:$16 sps:$4 sm:$0xff]  }
 0x38a   :  { %v21974_v32 = vpack.c.bf16 %v21959_v22, %v21887_v39  ;;  %v17502_v55 = vadd.f32 %v3200_v13, %v21473_v50  ;;  %5641 = vmatpush1.bf16.msra.mxu1 %v18828_v19  ;;  %v3729_v54 = vmax.f32 %v21749_v2, %v17564_v52  ;;  %v3728_v49 = vmax.f32 %v21757_v48, %v17501_v59  ;;  %v3588_v38 = vpop.f32.mrb[95].mxu1  ;;  %v18842_v57 = vld [vmem:[#allocation8 + $0x76c] ss:$16 sps:$4 sm:$0xff]   ;;  %v23116_v2 = vld [vmem:[#allocation57_spill] sm:$0xff] }
 0x38b   :  { %23115 = vst [vmem:[#allocation114_spill] sm:$0xff] %v21968_v46  ;;  %v17566_v61 = vadd.f32 %v3586_v1, %v21483_v53  ;;  %v17503_v39 = vadd.f32 %v3202_v44, %v21485_v41  ;;  %5345 = vmatprep.mubr.bf16.mxu0 %v21968_v46  ;;  %v3730_v9 = vmax.f32 %v21792_v5, %v17565_v60  ;;  %v23117_v5 = vld [vmem:[#allocation58_spill] sm:$0xff]  ;;  %v23118_v1 = vld [vmem:[#allocation59_spill] sm:$0xff] }
 0x38c   :  { %v3731_v13 = vmax.f32 %v21796_v24, %v17502_v55  ;;  %v17567_v19 = vadd.f32 %v3588_v38, %v21499_v0  ;;  %5571 = vmatprep.mubr.bf16.mxu1 %v21968_v46  ;;  %5346 = vmatmul.mubr.bf16.gmra.mrb[140].mxu0 %v21957_v45  ;;  %v21991_v48 = vadd.f32 %v23116_v2, %v21385_v34  ;;  %v18837_v55 = vld [vmem:[#allocation8 + $0x760] ss:$16 sps:$4 sm:$0xff]   ;;  %v18846_v46 = vld [vmem:[#allocation8 + $0x788] ss:$16 sps:$4 sm:$0xff]  }
 0x38d   :  { %v3733_v52 = vmax.f32 %v21802_v7, %v17566_v61  ;;  %v3732_v59 = vmax.f32 %v21806_v36, %v17503_v39  ;;  %5572 = vmatmul.mubr.bf16.gmra.mrb[140].mxu1 %v21957_v45  ;;  %5642 = vmatprep.subr.bf16.mxu1 %v18836_v11  ;;  %v21998_v24 = vadd.f32 %v23117_v5, %v21388_v30  ;;  %v3206_v61 = vpop.f32.mrb[96].mxu0  ;;  %v18840_v11 = vld [vmem:[#allocation8 + $0x768] ss:$16 sps:$4 sm:$0xff]  }
 0x38e   :  { %v22000_v38 = vmax.f32 %v3727_v47, %v3731_v13  ;;  %v3734_v60 = vmax.f32 %v21813_v6, %v17567_v19  ;;  %5417 = vmatpush1.bf16.msra.mxu0 %v18831_v15  ;;  %5643 = vmatpush1.bf16.msra.mxu1 %v18834_v56  ;;  %v22005_v44 = vadd.f32 %v23118_v1, %v21391_v51  ;;  %v23119_v47 = vld [vmem:[#allocation60_spill] sm:$0xff]  ;;  %v3208_v13 = vpop.f32.mrb[97].mxu0 }
 0x38f   :  { %v22007_v7 = vmax.f32 %v3729_v54, %v3733_v52  ;;  %v22009_v36 = vmax.f32 %v3728_v49, %v3732_v59  ;;  %5418 = vmatprep.subr.bf16.mxu0 %v18839_v43  ;;  %5644 = vmatprep.subr.bf16.mxu1 %v18842_v57  ;;  %v22013_v39 = vadd.f32 %v23119_v47, %v21382_v63  ;;  %v3592_v54 = vpop.f32.mrb[96].mxu1  ;;  %v18845_v49 = vld [vmem:[#allocation8 + $0x784] ss:$16 sps:$4 sm:$0xff]   ;;  %v18848_v19 = vld [vmem:[#allocation8 + $0x78c] ss:$16 sps:$4 sm:$0xff]   ;;  %v3210_v52 = vpop.f32.mrb[98].mxu0 }
 0x390   :  { %v22017_v6 = vpack.c.bf16 %v22000_v38, %v21936_v42  ;;  %v22019_v15 = vmax.f32 %v3730_v9, %v3734_v60  ;;  %v17504_v56 = vadd.f32 %v3206_v61, %v21473_v50  ;;  %v17568_v2 = vadd.f32 %v3592_v54, %v21483_v53  ;;  %v3594_v9 = vpop.f32.mrb[97].mxu1  ;;  %v3212_v61 = vpop.f32.mrb[99].mxu0 }
 0x391   :  { %v22024_v43 = vpack.c.bf16 %v22007_v7, %v21947_v62  ;;  %v22028_v57 = vpack.c.bf16 %v22009_v36, %v21949_v31  ;;  %v17505_v42 = vadd.f32 %v3208_v13, %v21485_v41  ;;  %v17569_v60 = vadd.f32 %v3594_v9, %v21499_v0  ;;  %v3596_v1 = vpop.f32.mrb[98].mxu1  ;;  %v18843_v31 = vld [vmem:[#allocation8 + $0x780] ss:$16 sps:$4 sm:$0xff]  }
 0x392   :  { %v22034_v59 = vpack.c.bf16 %v22019_v15, %v21959_v22  ;;  %v3735_v5 = vmax.f32 %v21821_v20, %v17504_v56  ;;  %v17506_v62 = vadd.f32 %v3210_v52, %v21473_v50  ;;  %5419 = vmatpush1.bf16.msra.mxu0 %v18837_v55  ;;  %v3737_v47 = vmax.f32 %v21859_v14, %v17568_v2  ;;  %v3598_v22 = vpop.f32.mrb[99].mxu1  ;;  %v18851_v20 = vld [vmem:[#allocation8 + $0x7a4] ss:$16 sps:$4 sm:$0xff]   ;;  %v18854_v55 = vld [vmem:[#allocation8 + $0x7ac] ss:$16 sps:$4 sm:$0xff]  }
 0x393   :  { %23120 = vst [vmem:[#allocation36_spill] sm:$0xff] %v22024_v43  ;;  %v3736_v54 = vmax.f32 %v21866_v4, %v17505_v42  ;;  %v17570_v13 = vadd.f32 %v3596_v1, %v21483_v53  ;;  %v17507_v45 = vadd.f32 %v3212_v61, %v21485_v41  ;;  %5645 = vmatpush1.bf16.msra.mxu1 %v18840_v11  ;;  %v23122_v14 = vld [vmem:[#allocation61_spill] sm:$0xff]  ;;  %v23123_v2 = vld [vmem:[#allocation62_spill] sm:$0xff] }
 0x394   :  { %23121 = vst [vmem:[#allocation115_spill] sm:$0xff] %v22034_v59  ;;  %v3738_v56 = vmax.f32 %v21873_v28, %v17569_v60  ;;  %v3739_v9 = vmax.f32 %v21881_v37, %v17506_v62  ;;  %v17571_v52 = vadd.f32 %v3598_v22, %v21499_v0  ;;  %5420 = vmatprep.subr.bf16.mxu0 %v18845_v49  ;;  %v23124_v28 = vld [vmem:[#allocation63_spill] sm:$0xff]  ;;  %v23125_v49 = vld [vmem:[#allocation64_spill] sm:$0xff]  ;;  %v23126_v22 = vld [vmem:[#allocation65_spill] sm:$0xff] }
 0x395   :  { %5646 = vmatprep.subr.bf16.mxu1 %v18848_v19  ;;  %v22048_v4 = vadd.f32 %v23122_v14, %v21385_v34  ;;  %v22052_v42 = vadd.f32 %v23123_v2, %v21388_v30  ;;  %v3741_v11 = vmax.f32 %v21913_v33, %v17570_v13  ;;  %v3740_v1 = vmax.f32 %v21920_v23, %v17507_v45  ;;  %v18849_v61 = vld [vmem:[#allocation8 + $0x7a0] ss:$16 sps:$4 sm:$0xff]   ;;  %v3216_v45 = vpop.f32.mrb[100].mxu0 }
 0x396   :  { %v22058_v37 = vadd.f32 %v23124_v28, %v21391_v51  ;;  %v22062_v19 = vadd.f32 %v23125_v49, %v21382_v63  ;;  %v22064_v60 = vmax.f32 %v3735_v5, %v3739_v9  ;;  %v3742_v62 = vmax.f32 %v21924_v58, %v17571_v52  ;;  %5421 = vmatpush1.bf16.msra.mxu0 %v18843_v31  ;;  %v23127_v13 = vld [vmem:[#allocation66_spill] sm:$0xff]  ;;  %v3602_v9 = vpop.f32.mrb[100].mxu1 }
 0x397   :  { %v22069_v14 = vadd.f32 %v23126_v22, %v21385_v34  ;;  %v22071_v33 = vmax.f32 %v3737_v47, %v3741_v11  ;;  %v22073_v23 = vmax.f32 %v3736_v54, %v3740_v1  ;;  %5647 = vmatpush1.bf16.msra.mxu1 %v18846_v46  ;;  %5422 = vmatprep.subr.bf16.mxu0 %v18851_v20  ;;  %v3218_v47 = vpop.f32.mrb[101].mxu0  ;;  %v3604_v52 = vpop.f32.mrb[101].mxu1  ;;  %v18857_v11 = vld [vmem:[#allocation8 + $0x7c4] ss:$16 sps:$4 sm:$0xff]   ;;  %v18855_v22 = vld [vmem:[#allocation8 + $0x7c0] ss:$16 sps:$4 sm:$0xff]  }
 0x398   :  { %v22077_v2 = vadd.f32 %v23127_v13, %v21388_v30  ;;  %v22081_v58 = vpack.c.bf16 %v22064_v60, %v22000_v38  ;;  %v22083_v5 = vmax.f32 %v3738_v56, %v3742_v62  ;;  %v17508_v31 = vadd.f32 %v3216_v45, %v21473_v50  ;;  %5648 = vmatprep.subr.bf16.mxu1 %v18854_v55  ;;  %v3220_v56 = vpop.f32.mrb[102].mxu0  ;;  %v3606_v49 = vpop.f32.mrb[102].mxu1  ;;  %v18852_v62 = vld [vmem:[#allocation8 + $0x7a8] ss:$16 sps:$4 sm:$0xff]  }
 0x399   :  { %v22088_v54 = vpack.c.bf16 %v22071_v33, %v22007_v7  ;;  %v22092_v46 = vpack.c.bf16 %v22073_v23, %v22009_v36  ;;  %v17572_v20 = vadd.f32 %v3602_v9, %v21483_v53  ;;  %v17509_v38 = vadd.f32 %v3218_v47, %v21485_v41  ;;  %v3222_v36 = vpop.f32.mrb[103].mxu0  ;;  %v3608_v47 = vpop.f32.mrb[103].mxu1 }
 0x39a   :  { %23128 = vst [vmem:[#allocation37_spill] sm:$0xff] %v22081_v58  ;;  %v22098_v1 = vpack.c.bf16 %v22083_v5, %v22019_v15  ;;  %v3743_v55 = vmax.f32 %v21930_v29, %v17508_v31  ;;  %v17573_v7 = vadd.f32 %v3604_v52, %v21499_v0  ;;  %v17510_v28 = vadd.f32 %v3220_v56, %v21473_v50  ;;  %v18860_v29 = vld [vmem:[#allocation8 + $0x7cc] ss:$16 sps:$4 sm:$0xff]   ;;  %v18863_v31 = vld [vmem:[#allocation8 + $0x7e4] ss:$16 sps:$4 sm:$0xff]  }
 0x39b   :  { %23129 = vst [vmem:[#allocation38_spill] sm:$0xff] %v22092_v46  ;;  %5423 = vmatpush1.bf16.msra.mxu0 %v18849_v61  ;;  %v3745_v45 = vmax.f32 %v21934_v10, %v17572_v20  ;;  %v3744_v13 = vmax.f32 %v21941_v35, %v17509_v38  ;;  %v17574_v9 = vadd.f32 %v3606_v49, %v21483_v53  ;;  %v23130_v10 = vld [vmem:[#allocation67_spill] sm:$0xff] }
 0x39c   :  { %v17511_v15 = vadd.f32 %v3222_v36, %v21485_v41  ;;  %5355 = vmatprep.mubr.bf16.mxu0 %v22092_v46  ;;  %v3746_v52 = vmax.f32 %v21945_v16, %v17573_v7  ;;  %v3747_v56 = vmax.f32 %v21953_v40, %v17510_v28  ;;  %v17575_v61 = vadd.f32 %v3608_v47, %v21499_v0  ;;  %v23131_v16 = vld [vmem:[#allocation68_spill] sm:$0xff]  ;;  %v18858_v49 = vld [vmem:[#allocation8 + $0x7c8] ss:$16 sps:$4 sm:$0xff]  }
 0x39d   :  { %5581 = vmatprep.mubr.bf16.mxu1 %v22092_v46  ;;  %5356 = vmatmul.mubr.bf16.gmra.mrb[144].mxu0 %v22081_v58  ;;  %v22115_v35 = vadd.f32 %v23130_v10, %v21391_v51  ;;  %v3749_v20 = vmax.f32 %v21991_v48, %v17574_v9  ;;  %v22122_v40 = vadd.f32 %v23131_v16, %v21382_v63  ;;  %v23132_v36 = vld [vmem:[#allocation69_spill] sm:$0xff]  ;;  %v3226_v9 = vpop.f32.mrb[104].mxu0  ;;  %v18872_v46 = vld [vmem:[#allocation8 + $0xc] ss:$16 sps:$4 sm:$0xff]  }
 0x39e   :  { %v3748_v38 = vmax.f32 %v21998_v24, %v17511_v15  ;;  %5582 = vmatmul.mubr.bf16.gmra.mrb[144].mxu1 %v22081_v58  ;;  %5424 = vmatprep.subr.bf16.mxu0 %v18857_v11  ;;  %v22124_v7 = vmax.f32 %v3743_v55, %v3747_v56  ;;  %v3750_v28 = vmax.f32 %v22005_v44, %v17575_v61  ;;  %v18866_v11 = vld [vmem:[#allocation8 + $0x7ec] ss:$16 sps:$4 sm:$0xff]   ;;  %v3228_v56 = vpop.f32.mrb[105].mxu0  ;;  %v18861_v61 = vld [vmem:[#allocation8 + $0x7e0] ss:$16 sps:$4 sm:$0xff]  }
 0x39f   :  { %5649 = vmatpush1.bf16.msra.mxu1 %v18852_v62  ;;  %5425 = vmatpush1.bf16.msra.mxu0 %v18855_v22  ;;  %v22129_v47 = vadd.f32 %v23132_v36, %v21385_v34  ;;  %v3837_v48 = vmax.f32 %v3745_v45, %v3749_v20  ;;  %v23133_v15 = vld [vmem:[#allocation70_spill] sm:$0xff]  ;;  %v17512_v62 = vadd.f32 %v3226_v9, %v21473_v50  ;;  %v3612_v22 = vpop.f32.mrb[104].mxu1 }
 0x3a0   :  { %v3836_v24 = vmax.f32 %v3744_v13, %v3748_v38  ;;  %5650 = vmatprep.subr.bf16.mxu1 %v18860_v29  ;;  %5426 = vmatprep.subr.bf16.mxu0 %v18863_v31  ;;  %v22133_v10 = vadd.f32 %v23133_v15, %v21388_v30  ;;  %v22137_v44 = vpack.c.bf16 %v22124_v7, %v22064_v60  ;;  %v3614_v20 = vpop.f32.mrb[105].mxu1  ;;  %v3230_v38 = vpop.f32.mrb[106].mxu0  ;;  %v18869_v60 = vld [vmem:[#allocation8 + $0x4] ss:$16 sps:$4 sm:$0xff]  }
 0x3a1   :  { %v3838_v55 = vmax.f32 %v3746_v52, %v3750_v28  ;;  %v22141_v45 = vpack.c.bf16 %v3837_v48, %v22071_v33  ;;  %v17576_v29 = vadd.f32 %v3612_v22, %v21483_v53  ;;  %v17513_v31 = vadd.f32 %v3228_v56, %v21485_v41  ;;  %v3616_v36 = vpop.f32.mrb[106].mxu1  ;;  %v3232_v9 = vpop.f32.mrb[107].mxu0 }
 0x3a2   :  { %v22144_v13 = vpack.c.bf16 %v3836_v24, %v22073_v23  ;;  %v3751_v16 = vmax.f32 %v22013_v39, %v17512_v62  ;;  %v17577_v28 = vadd.f32 %v3614_v20, %v21499_v0  ;;  %v17514_v33 = vadd.f32 %v3230_v38, %v21473_v50  ;;  %v18864_v23 = vld [vmem:[#allocation8 + $0x7e8] ss:$16 sps:$4 sm:$0xff]  }
 0x3a3   :  { %23134 = vst [vmem:[#allocation116_spill] sm:$0xff] %v22141_v45  ;;  %v22149_v52 = vpack.c.bf16 %v3838_v55, %v22083_v5  ;;  %5651 = vmatpush1.bf16.msra.mxu1 %v18858_v49  ;;  %v3753_v15 = vmax.f32 %v22048_v4, %v17576_v29  ;;  %v3752_v22 = vmax.f32 %v22052_v42, %v17513_v31  ;;  %v3618_v5 = vpop.f32.mrb[107].mxu1  ;;  %v23136_v39 = vld [vmem:[#allocation71_spill] sm:$0xff]  ;;  %v23137_v4 = vld [vmem:[#allocation72_spill] sm:$0xff]  ;;  %v23138_v29 = vld [vmem:[#allocation73_spill] sm:$0xff] }
 0x3a4   :  { %v17578_v56 = vadd.f32 %v3616_v36, %v21483_v53  ;;  %v17515_v58 = vadd.f32 %v3232_v9, %v21485_v41  ;;  %5652 = vmatprep.subr.bf16.mxu1 %v18866_v11  ;;  %v22160_v62 = vadd.f32 %v23136_v39, %v21391_v51  ;;  %v3754_v20 = vmax.f32 %v22058_v37, %v17577_v28  ;;  %v23139_v9 = vld [vmem:[#allocation74_spill] sm:$0xff]  ;;  %v23140_v37 = vld [vmem:[#allocation75_spill] sm:$0xff]  ;;  %v23158_v45 = vld [vmem:[#allocation88_spill] sm:$0xff] }
 0x3a5   :  { %23135 = vst [vmem:[#allocation117_spill] sm:$0xff] %v22149_v52  ;;  %v3755_v49 = vmax.f32 %v22062_v19, %v17514_v33  ;;  %v17579_v38 = vadd.f32 %v3618_v5, %v21499_v0  ;;  %5427 = vmatpush1.bf16.msra.mxu0 %v18861_v61  ;;  %v17390_v42 = vadd.f32 %v23137_v4, %v21382_v63  ;;  %v23141_v33 = vld [vmem:[#allocation76_spill] sm:$0xff]  ;;  %v23142_v4 = vld [vmem:[#allocation77_spill] sm:$0xff] }
 0x3a6   :  { %v17454_v31 = vadd.f32 %v23138_v29, %v21385_v34  ;;  %v3757_v11 = vmax.f32 %v22069_v14, %v17578_v56  ;;  %v3756_v36 = vmax.f32 %v22077_v2, %v17515_v58  ;;  %6535 = vmatprep.subr.bf16.mxu0 %v18869_v60  ;;  %v17391_v39 = vadd.f32 %v23139_v9, %v21388_v30  ;;  %v3236_v60 = vpop.f32.mrb[108].mxu0  ;;  %v23143_v56 = vld [vmem:[#allocation78_spill] sm:$0xff] }
 0x3a7   :  { %v17455_v19 = vadd.f32 %v23140_v37, %v21391_v51  ;;  %v3839_v28 = vmax.f32 %v3751_v16, %v3755_v49  ;;  %v3758_v61 = vmax.f32 %v22115_v35, %v17579_v38  ;;  %5653 = vmatpush1.bf16.msra.mxu1 %v18864_v23  ;;  %v22178_v5 = vadd.f32 %v23141_v33, %v21382_v63  ;;  %v3622_v49 = vpop.f32.mrb[108].mxu1  ;;  %v3238_v38 = vpop.f32.mrb[109].mxu0 }
 0x3a8   :  { %v22182_v14 = vadd.f32 %v23142_v4, %v21385_v34  ;;  %v3841_v2 = vmax.f32 %v3753_v15, %v3757_v11  ;;  %v3840_v58 = vmax.f32 %v3752_v22, %v3756_v36  ;;  %6761 = vmatprep.subr.bf16.mxu1 %v18872_v46  ;;  %v22186_v29 = vadd.f32 %v23143_v56, %v21388_v30  ;;  %v3624_v22 = vpop.f32.mrb[109].mxu1  ;;  %v3240_v11 = vpop.f32.mrb[110].mxu0 }
 0x3a9   :  { %v22189_v16 = vpack.c.bf16 %v3839_v28, %v22124_v7  ;;  %v3842_v35 = vmax.f32 %v3754_v20, %v3758_v61  ;;  %v17516_v23 = vadd.f32 %v3236_v60, %v21473_v50  ;;  %v17580_v15 = vadd.f32 %v3622_v49, %v21483_v53  ;;  %v3626_v33 = vpop.f32.mrb[110].mxu1  ;;  %v3242_v4 = vpop.f32.mrb[111].mxu0 }
 0x3aa   :  { %v22192_v9 = vpack.c.bf16 %v3841_v2, %v3837_v48  ;;  %v22194_v37 = vpack.c.bf16 %v3840_v58, %v3836_v24  ;;  %v17517_v46 = vadd.f32 %v3238_v38, %v21485_v41  ;;  %v17581_v20 = vadd.f32 %v3624_v22, %v21499_v0  ;;  %v3628_v49 = vpop.f32.mrb[111].mxu1 }
 0x3ab   :  { %23144 = vst [vmem:[#allocation39_spill] sm:$0xff] %v22189_v16  ;;  %v22198_v36 = vpack.c.bf16 %v3842_v35, %v3838_v55  ;;  %v3759_v7 = vmax.f32 %v22122_v40, %v17516_v23  ;;  %v17518_v61 = vadd.f32 %v3240_v11, %v21473_v50  ;;  %v3761_v48 = vmax.f32 %v22129_v47, %v17580_v15  ;;  %v23146_v47 = vld [vmem:[#allocation79_spill] sm:$0xff]  ;;  %v23148_v11 = vld [vmem:[#allocation81_spill] sm:$0xff] }
 0x3ac   :  { %23145 = vst [vmem:[#allocation40_spill] sm:$0xff] %v22194_v37  ;;  %v3760_v24 = vmax.f32 %v22133_v10, %v17517_v46  ;;  %v17582_v60 = vadd.f32 %v3626_v33, %v21483_v53  ;;  %v17519_v56 = vadd.f32 %v3242_v4, %v21485_v41  ;;  %5365 = vmatprep.mubr.bf16.mxu0 %v22194_v37  ;;  %v23147_v10 = vld [vmem:[#allocation80_spill] sm:$0xff]  ;;  %v23150_v4 = vld [vmem:[#allocation83_spill] sm:$0xff] }
 0x3ad   :  { %v3762_v55 = vmax.f32 %v22160_v62, %v17581_v20  ;;  %v3763_v40 = vmax.f32 %v17390_v42, %v17518_v61  ;;  %v17583_v23 = vadd.f32 %v3628_v49, %v21499_v0  ;;  %5591 = vmatprep.mubr.bf16.mxu1 %v22194_v37  ;;  %5366 = vmatmul.mubr.bf16.gmra.mrb[148].mxu0 %v22189_v16  ;;  %v23149_v42 = vld [vmem:[#allocation82_spill] sm:$0xff] }
 0x3ae   :  { %v17457_v38 = vadd.f32 %v23146_v47, %v21391_v51  ;;  %v17394_v15 = vadd.f32 %v23147_v10, %v21382_v63  ;;  %v3765_v46 = vmax.f32 %v17454_v31, %v17582_v60  ;;  %v3764_v22 = vmax.f32 %v17391_v39, %v17519_v56  ;;  %5592 = vmatmul.mubr.bf16.gmra.mrb[148].mxu1 %v22189_v16  ;;  %v23151_v47 = vld [vmem:[#allocation84_spill] sm:$0xff]  ;;  %v3246_v39 = vpop.f32.mrb[112].mxu0  ;;  %v23152_v60 = vld [vmem:[#allocation85_spill] sm:$0xff] }
 0x3af   :  { %v17458_v62 = vadd.f32 %v23148_v11, %v21385_v34  ;;  %v17395_v20 = vadd.f32 %v23149_v42, %v21388_v30  ;;  %v3843_v61 = vmax.f32 %v3759_v7, %v3763_v40  ;;  %v3766_v33 = vmax.f32 %v17455_v19, %v17583_v23  ;;  %v3632_v19 = vpop.f32.mrb[112].mxu1  ;;  %v3248_v40 = vpop.f32.mrb[113].mxu0 }
 0x3b0   :  { %v17459_v49 = vadd.f32 %v23150_v4, %v21391_v51  ;;  %v22225_v37 = vadd.f32 %v23151_v47, %v21382_v63  ;;  %v3845_v10 = vmax.f32 %v3761_v48, %v3765_v46  ;;  %v3844_v31 = vmax.f32 %v3760_v24, %v3764_v22  ;;  %v3634_v24 = vpop.f32.mrb[113].mxu1  ;;  %v3250_v46 = vpop.f32.mrb[114].mxu0 }
 0x3b1   :  { %v22229_v56 = vadd.f32 %v23152_v60, %v21385_v34  ;;  %v22231_v11 = vpack.c.bf16 %v3843_v61, %v3839_v28  ;;  %v3846_v16 = vmax.f32 %v3762_v55, %v3766_v33  ;;  %v17520_v7 = vadd.f32 %v3246_v39, %v21473_v50  ;;  %v3636_v47 = vpop.f32.mrb[114].mxu1  ;;  %v3252_v39 = vpop.f32.mrb[115].mxu0 }
 0x3b2   :  { %v22234_v23 = vpack.c.bf16 %v3845_v10, %v3841_v2  ;;  %v22236_v42 = vpack.c.bf16 %v3844_v31, %v3840_v58  ;;  %v17584_v4 = vadd.f32 %v3632_v19, %v21483_v53  ;;  %v17521_v48 = vadd.f32 %v3248_v40, %v21485_v41  ;;  %v3638_v40 = vpop.f32.mrb[115].mxu1 }
 0x3b3   :  { %23153 = vst [vmem:[#allocation41_spill] sm:$0xff] %v22231_v11  ;;  %v22240_v22 = vpack.c.bf16 %v3846_v16, %v3842_v35  ;;  %v3767_v28 = vmax.f32 %v22178_v5, %v17520_v7  ;;  %v17585_v55 = vadd.f32 %v3634_v24, %v21499_v0  ;;  %v17522_v33 = vadd.f32 %v3250_v46, %v21473_v50  ;;  %v23156_v35 = vld [vmem:[#allocation86_spill] sm:$0xff]  ;;  %v23157_v24 = vld [vmem:[#allocation87_spill] sm:$0xff] }
 0x3b4   :  { %23154 = vst [vmem:[#allocation42_spill] sm:$0xff] %v22234_v23  ;;  %v3769_v2 = vmax.f32 %v22182_v14, %v17584_v4  ;;  %v3768_v58 = vmax.f32 %v22186_v29, %v17521_v48  ;;  %v17586_v60 = vadd.f32 %v3636_v47, %v21483_v53  ;;  %v17523_v19 = vadd.f32 %v3252_v39, %v21485_v41  ;;  %v23159_v48 = vld [vmem:[#allocation89_spill] sm:$0xff]  ;;  %v23160_v39 = vld [vmem:[#allocation90_spill] sm:$0xff] }
 0x3b5   :  { %23155 = vst [vmem:[#allocation43_spill] sm:$0xff] %v22240_v22  ;;  %v17397_v23 = vadd.f32 %v23156_v35, %v21388_v30  ;;  %v3770_v22 = vmax.f32 %v17457_v38, %v17585_v55  ;;  %v3771_v5 = vmax.f32 %v17394_v15, %v17522_v33  ;;  %v17587_v7 = vadd.f32 %v3638_v40, %v21499_v0  ;;  %v23161_v38 = vld [vmem:[#allocation91_spill] sm:$0xff]  ;;  %v23162_v55 = vld [vmem:[#allocation92_spill] sm:$0xff] }
 0x3b6   :  { %v17461_v46 = vadd.f32 %v23157_v24, %v21391_v51  ;;  %v17398_v14 = vadd.f32 %v23158_v45, %v21382_v63  ;;  %v3773_v4 = vmax.f32 %v17458_v62, %v17586_v60  ;;  %v3772_v29 = vmax.f32 %v17395_v20, %v17523_v19  ;;  %v3256_v45 = vpop.f32.mrb[116].mxu0  ;;  %v23163_v62 = vld [vmem:[#allocation93_spill] sm:$0xff] }
 0x3b7   :  { %v17462_v47 = vadd.f32 %v23159_v48, %v21385_v34  ;;  %v17399_v52 = vadd.f32 %v23160_v39, %v21388_v30  ;;  %v3847_v43 = vmax.f32 %v3767_v28, %v3771_v5  ;;  %v3774_v35 = vmax.f32 %v17459_v49, %v17587_v7  ;;  %v3642_v49 = vpop.f32.mrb[116].mxu1  ;;  %v3258_v5 = vpop.f32.mrb[117].mxu0 }
 0x3b8   :  { %v17463_v15 = vadd.f32 %v23161_v38, %v21391_v51  ;;  %v22264_v33 = vadd.f32 %v23162_v55, %v21382_v63  ;;  %v3849_v40 = vmax.f32 %v3769_v2, %v3773_v4  ;;  %v3848_v24 = vmax.f32 %v3768_v58, %v3772_v29  ;;  %v3644_v58 = vpop.f32.mrb[117].mxu1  ;;  %v3260_v4 = vpop.f32.mrb[118].mxu0 }
 0x3b9   :  { %v22268_v20 = vadd.f32 %v23163_v62, %v21385_v34  ;;  %v22270_v60 = vpack.c.bf16 %v3847_v43, %v3843_v61  ;;  %v3850_v19 = vmax.f32 %v3770_v22, %v3774_v35  ;;  %v17524_v28 = vadd.f32 %v3256_v45, %v21473_v50  ;;  %v3646_v38 = vpop.f32.mrb[118].mxu1  ;;  %v3262_v55 = vpop.f32.mrb[119].mxu0 }
 0x3ba   :  { %v22273_v7 = vpack.c.bf16 %v3849_v40, %v3845_v10  ;;  %v22275_v48 = vpack.c.bf16 %v3848_v24, %v3844_v31  ;;  %v17588_v39 = vadd.f32 %v3642_v49, %v21483_v53  ;;  %v17525_v2 = vadd.f32 %v3258_v5, %v21485_v41  ;;  %v3648_v49 = vpop.f32.mrb[119].mxu1 }
 0x3bb   :  { %23164 = vst [vmem:[#allocation44_spill] sm:$0xff] %v22270_v60  ;;  %v22279_v29 = vpack.c.bf16 %v3850_v19, %v3846_v16  ;;  %v3775_v61 = vmax.f32 %v22225_v37, %v17524_v28  ;;  %v17589_v22 = vadd.f32 %v3644_v58, %v21499_v0  ;;  %v17526_v35 = vadd.f32 %v3260_v4, %v21473_v50  ;;  %v23166_v28 = vld [vmem:[#allocation94_spill] sm:$0xff]  ;;  %v23168_v4 = vld [vmem:[#allocation96_spill] sm:$0xff] }
 0x3bc   :  { %23165 = vst [vmem:[#allocation45_spill] sm:$0xff] %v22275_v48  ;;  %v3777_v10 = vmax.f32 %v22229_v56, %v17588_v39  ;;  %v3776_v31 = vmax.f32 %v17397_v23, %v17525_v2  ;;  %v17590_v45 = vadd.f32 %v3646_v38, %v21483_v53  ;;  %v17527_v62 = vadd.f32 %v3262_v55, %v21485_v41  ;;  %v23167_v56 = vld [vmem:[#allocation95_spill] sm:$0xff]  ;;  %v23170_v55 = vld [vmem:[#allocation98_spill] sm:$0xff] }
 0x3bd   :  { %5375 = vmatprep.mubr.bf16.mxu0 %v22275_v48  ;;  %v3778_v16 = vmax.f32 %v17461_v46, %v17589_v22  ;;  %v3779_v5 = vmax.f32 %v17398_v14, %v17526_v35  ;;  %v17591_v37 = vadd.f32 %v3648_v49, %v21499_v0  ;;  %5601 = vmatprep.mubr.bf16.mxu1 %v22275_v48  ;;  %v23169_v14 = vld [vmem:[#allocation97_spill] sm:$0xff] }
 0x3be   :  { %5376 = vmatmul.mubr.bf16.gmra.mrb[152].mxu0 %v22270_v60  ;;  %v17401_v58 = vadd.f32 %v23166_v28, %v21388_v30  ;;  %v17465_v23 = vadd.f32 %v23167_v56, %v21391_v51  ;;  %v3781_v39 = vmax.f32 %v17462_v47, %v17590_v45  ;;  %v3780_v2 = vmax.f32 %v17399_v52, %v17527_v62  ;;  %v23171_v28 = vld [vmem:[#allocation99_spill] sm:$0xff]  ;;  %v3266_v47 = vpop.f32.mrb[120].mxu0  ;;  %v23172_v52 = vld [vmem:[#allocation100_spill] sm:$0xff] }
 0x3bf   :  { %5602 = vmatmul.mubr.bf16.gmra.mrb[152].mxu1 %v22270_v60  ;;  %v17402_v46 = vadd.f32 %v23168_v4, %v21382_v63  ;;  %v17466_v22 = vadd.f32 %v23169_v14, %v21385_v34  ;;  %v3851_v35 = vmax.f32 %v3775_v61, %v3779_v5  ;;  %v3782_v38 = vmax.f32 %v17463_v15, %v17591_v37  ;;  %v3652_v61 = vpop.f32.mrb[120].mxu1  ;;  %v3268_v15 = vpop.f32.mrb[121].mxu0  ;;  %v23177_v60 = vld [vmem:[#allocation101_spill] sm:$0xff] }
 0x3c0   :  { %v17403_v49 = vadd.f32 %v23170_v55, %v21388_v30  ;;  %v17467_v48 = vadd.f32 %v23171_v28, %v21391_v51  ;;  %v3853_v59 = vmax.f32 %v3777_v10, %v3781_v39  ;;  %v3852_v56 = vmax.f32 %v3776_v31, %v3780_v2  ;;  %v3654_v31 = vpop.f32.mrb[121].mxu1  ;;  %v3270_v39 = vpop.f32.mrb[122].mxu0 }
 0x3c1   :  { %v22306_v45 = vadd.f32 %v23172_v52, %v21382_v63  ;;  %v22308_v62 = vpack.c.bf16 %v3851_v35, %v3847_v43  ;;  %v3854_v4 = vmax.f32 %v3778_v16, %v3782_v38  ;;  %v17528_v14 = vadd.f32 %v3266_v47, %v21473_v50  ;;  %v3656_v28 = vpop.f32.mrb[122].mxu1  ;;  %v3272_v47 = vpop.f32.mrb[123].mxu0 }
 0x3c2   :  { %v22311_v5 = vpack.c.bf16 %v3853_v59, %v3849_v40  ;;  %v22313_v37 = vpack.c.bf16 %v3852_v56, %v3848_v24  ;;  %v17592_v55 = vadd.f32 %v3652_v61, %v21483_v53  ;;  %v17529_v10 = vadd.f32 %v3268_v15, %v21485_v41  ;;  %v3658_v15 = vpop.f32.mrb[123].mxu1 }
 0x3c3   :  { %23173 = vst [vmem:[#allocation46_spill] sm:$0xff] %v22308_v62  ;;  %v22317_v2 = vpack.c.bf16 %v3854_v4, %v3850_v19  ;;  %v3783_v43 = vmax.f32 %v22264_v33, %v17528_v14  ;;  %v17593_v16 = vadd.f32 %v3654_v31, %v21499_v0  ;;  %v17530_v38 = vadd.f32 %v3270_v39, %v21473_v50  ;;  %v23178_v14 = vld [vmem:[#allocation102_spill] sm:$0xff]  ;;  %v23179_v39 = vld [vmem:[#allocation103_spill] sm:$0xff] }
 0x3c4   :  { %23174 = vst [vmem:[#allocation47_spill] sm:$0xff] %v22311_v5  ;;  %23175 = vst [vmem:[#allocation48_spill] sm:$0xff] %v22313_v37  ;;  %v3785_v40 = vmax.f32 %v22268_v20, %v17592_v55  ;;  %v3784_v24 = vmax.f32 %v17401_v58, %v17529_v10  ;;  %v17594_v52 = vadd.f32 %v3656_v28, %v21483_v53  ;;  %v23180_v55 = vld [vmem:[#allocation104_spill] sm:$0xff]  ;;  %v23181_v28 = vld [vmem:[#allocation105_spill] sm:$0xff]  ;;  %v3276_v11 = vpop.f32.mrb[124].mxu0 }
 0x3c5   :  { %23176 = vst [vmem:[#allocation49_spill] sm:$0xff] %v22317_v2  ;;  %v17531_v61 = vadd.f32 %v3272_v47, %v21485_v41  ;;  %v17468_v19 = vadd.f32 %v23177_v60, %v21385_v34  ;;  %v3786_v5 = vmax.f32 %v17465_v23, %v17593_v16  ;;  %v3787_v2 = vmax.f32 %v17402_v46, %v17530_v38  ;;  %v23182_v23 = vld [vmem:[#allocation106_spill] sm:$0xff]  ;;  %v23183_v16 = vld [vmem:[#allocation107_spill] sm:$0xff] }
 0x3c6   :  { %v17595_v33 = vadd.f32 %v3658_v15, %v21499_v0  ;;  %v17405_v31 = vadd.f32 %v23178_v14, %v21388_v30  ;;  %v17469_v62 = vadd.f32 %v23179_v39, %v21391_v51  ;;  %v3789_v20 = vmax.f32 %v17466_v22, %v17594_v52  ;;  %v3278_v52 = vpop.f32.mrb[125].mxu0 }
 0x3c7   :  { %v3788_v58 = vmax.f32 %v17403_v49, %v17531_v61  ;;  %v17406_v10 = vadd.f32 %v23180_v55, %v21382_v63  ;;  %v17470_v47 = vadd.f32 %v23181_v28, %v21385_v34  ;;  %v3855_v37 = vmax.f32 %v3783_v43, %v3787_v2  ;;  %v3662_v63 = vpop.f32.mrb[124].mxu1 }
 0x3c8   :  { %v3790_v60 = vmax.f32 %v17467_v48, %v17595_v33  ;;  %v17407_v46 = vadd.f32 %v23182_v23, %v21388_v30  ;;  %v17471_v38 = vadd.f32 %v23183_v16, %v21391_v51  ;;  %v3857_v15 = vmax.f32 %v3785_v40, %v3789_v20  ;;  %v3664_v40 = vpop.f32.mrb[125].mxu1 }
 0x3c9   :  { %v3856_v14 = vmax.f32 %v3784_v24, %v3788_v58  ;;  %v22340_v39 = vpack.c.bf16 %v3855_v37, %v3851_v35  ;;  %v17532_v49 = vadd.f32 %v3276_v11, %v21473_v50  ;;  %v23184_v34 = vmov 0   ;;  %v3280_v24 = vpop.f32.mrb[126].mxu0  ;;  %v3666_v33 = vpop.f32.mrb[126].mxu1 }
 0x3ca   :  { %v3858_v22 = vmax.f32 %v3786_v5, %v3790_v60  ;;  %v15874_v2 = vcombine.high %v23184_v34, %v21599_v17  ;;  %v22345_v48 = vpack.c.bf16 %v3857_v15, %v3853_v59  ;;  %v17596_v30 = vadd.f32 %v3662_v63, %v21483_v53  ;;  %v3282_v20 = vpop.f32.mrb[127].mxu0  ;;  %v3668_v28 = vpop.f32.mrb[127].mxu1 }
 0x3cb   :  { %v22347_v43 = vpack.c.bf16 %v3856_v14, %v3852_v56  ;;  %v17533_v51 = vadd.f32 %v3278_v52, %v21485_v41  ;;  %v3791_v5 = vmax.f32 %v22306_v45, %v17532_v49  ;;  %v17597_v11 = vadd.f32 %v3664_v40, %v21499_v0  ;;  %v18887_v40 = vld [vmem:[#allocation8 + $0x64] ss:$16 sps:$4 sm:$0xff]  }
 0x3cc   :  { %v22351_v35 = vpack.c.bf16 %v3858_v22, %v3854_v4  ;;  %v17534_v61 = vadd.f32 %v3280_v24, %v21473_v50  ;;  %v3793_v59 = vmax.f32 %v17468_v19, %v17596_v30  ;;  %v17598_v56 = vadd.f32 %v3666_v33, %v21483_v53  ;;  %v18879_v30 = vld [vmem:[#allocation8 + $0x40] ss:$16 sps:$4 sm:$0xff]   ;;  %v18890_v24 = vld [vmem:[#allocation8 + $0x6c] ss:$16 sps:$4 sm:$0xff]  }
 0x3cd   :  { %v3792_v58 = vmax.f32 %v17405_v31, %v17533_v51  ;;  %v17535_v55 = vadd.f32 %v3282_v20, %v21485_v41  ;;  %5385 = vmatprep.mubr.bf16.mxu0 %v22347_v43  ;;  %v3794_v60 = vmax.f32 %v17469_v62, %v17597_v11  ;;  %v17599_v23 = vadd.f32 %v3668_v28, %v21499_v0  ;;  %v18882_v51 = vld [vmem:[#allocation8 + $0x48] ss:$16 sps:$4 sm:$0xff]   ;;  %v18896_v33 = vld [vmem:[#allocation8 + $0x8c] ss:$16 sps:$4 sm:$0xff]   ;;  %v18891_v20 = vld [vmem:[#allocation8 + $0x80] ss:$16 sps:$4 sm:$0xff]  }
 0x3ce   :  { %v3795_v4 = vmax.f32 %v17406_v10, %v17534_v61  ;;  %5611 = vmatprep.mubr.bf16.mxu1 %v22347_v43  ;;  %5386 = vmatmul.mubr.bf16.gmra.mrb[156].mxu0 %v22340_v39  ;;  %v3797_v50 = vmax.f32 %v17470_v47, %v17598_v56  ;;  %v15873_v47 = vcombine.low %v23184_v34, %v21599_v17  ;;  %v18884_v17 = vld [vmem:[#allocation8 + $0x4c] ss:$16 sps:$4 sm:$0xff]   ;;  %v18888_v11 = vld [vmem:[#allocation8 + $0x68] ss:$16 sps:$4 sm:$0xff]   ;;  %v18893_v61 = vld [vmem:[#allocation8 + $0x84] ss:$16 sps:$4 sm:$0xff]  }
 0x3cf   :  { %v3796_v45 = vmax.f32 %v17407_v46, %v17535_v55  ;;  %5612 = vmatmul.mubr.bf16.gmra.mrb[156].mxu1 %v22340_v39  ;;  %5428 = vmatprep.mubr.bf16.mxu0 %v15874_v2  ;;  %v3798_v53 = vmax.f32 %v17471_v38, %v17599_v23  ;;  %v18867_v46 = vld [vmem:[#allocation8] ss:$16 sps:$4 sm:$0xff]   ;;  %v18870_v38 = vld [vmem:[#allocation8 + $0x8] ss:$16 sps:$4 sm:$0xff]   ;;  %v18902_v56 = vld [vmem:[#allocation8 + $0xac] ss:$16 sps:$4 sm:$0xff]  }
 0x3d0   :  { %v3859_v19 = vmax.f32 %v3791_v5, %v3795_v4  ;;  %5654 = vmatprep.mubr.bf16.mxu1 %v15874_v2  ;;  %v3861_v41 = vmax.f32 %v3793_v59, %v3797_v50  ;;  %v18875_v2 = vld [vmem:[#allocation8 + $0x24] ss:$16 sps:$4 sm:$0xff]   ;;  %v18885_v5 = vld [vmem:[#allocation8 + $0x60] ss:$16 sps:$4 sm:$0xff]   ;;  %v18894_v59 = vld [vmem:[#allocation8 + $0x88] ss:$16 sps:$4 sm:$0xff]  }
 0x3d1   :  { %v3860_v31 = vmax.f32 %v3792_v58, %v3796_v45  ;;  %v3862_v62 = vmax.f32 %v3794_v60, %v3798_v53  ;;  %v18899_v58 = vld [vmem:[#allocation8 + $0xa4] ss:$16 sps:$4 sm:$0xff]   ;;  %v18897_v55 = vld [vmem:[#allocation8 + $0xa0] ss:$16 sps:$4 sm:$0xff]   ;;  %v18900_v28 = vld [vmem:[#allocation8 + $0xa8] ss:$16 sps:$4 sm:$0xff]  }
 0x3d2   :  { %v22363_v16 = vpack.c.bf16 %v3859_v19, %v3855_v37  ;;  %v22365_v10 = vpack.c.bf16 %v3861_v41, %v3857_v15  ;;  %v18878_v37 = vld [vmem:[#allocation8 + $0x2c] ss:$16 sps:$4 sm:$0xff]   ;;  %v18873_v15 = vld [vmem:[#allocation8 + $0x20] ss:$16 sps:$4 sm:$0xff]   ;;  %v18905_v60 = vld [vmem:[#allocation8 + $0xc4] ss:$16 sps:$4 sm:$0xff]  }
 0x3d3   :  { %v22367_v0 = vpack.c.bf16 %v3860_v31, %v3856_v14  ;;  %v22369_v49 = vpack.c.bf16 %v3860_v31, %v3859_v19  ;;  %v22371_v63 = vpack.c.bf16 %v3862_v62, %v3858_v22  ;;  %v22375_v52 = vpack.c.bf16 %v3862_v62, %v3861_v41  ;;  %v18876_v14 = vld [vmem:[#allocation8 + $0x28] ss:$16 sps:$4 sm:$0xff]   ;;  %v18881_v22 = vld [vmem:[#allocation8 + $0x44] ss:$16 sps:$4 sm:$0xff]   ;;  %v18908_v4 = vld [vmem:[#allocation8 + $0xcc] ss:$16 sps:$4 sm:$0xff]  }
 0x3d4   :  { %v18903_v23 = vld [vmem:[#allocation8 + $0xc0] ss:$16 sps:$4 sm:$0xff]   ;;  %v18906_v50 = vld [vmem:[#allocation8 + $0xc8] ss:$16 sps:$4 sm:$0xff]   ;;  %v18911_v45 = vld [vmem:[#allocation8 + $0xe4] ss:$16 sps:$4 sm:$0xff]  }
 0x3d5   :  { %v18914_v19 = vld [vmem:[#allocation8 + $0xec] ss:$16 sps:$4 sm:$0xff]   ;;  %v18909_v53 = vld [vmem:[#allocation8 + $0xe0] ss:$16 sps:$4 sm:$0xff]   ;;  %v18912_v41 = vld [vmem:[#allocation8 + $0xe8] ss:$16 sps:$4 sm:$0xff]  }
 0x3d6   :  { %5429 = vmatmul.mubr.bf16.vlgmr.msra.gmra.mrb[128].mxu0 %v15873_v47  ;;  %v18917_v31 = vld [vmem:[#allocation8 + $0x104] ss:$16 sps:$4 sm:$0xff]   ;;  %v18920_v62 = vld [vmem:[#allocation8 + $0x10c] ss:$16 sps:$4 sm:$0xff]  }
 0x3d7   :  { %5655 = vmatmul.mubr.bf16.vlgmr.msra.gmra.mrb[128].mxu1 %v15873_v47  ;;  %5438 = vmatprep.mubr.bf16.mxu0 %v21718_v26  ;;  %v18915_v47 = vld [vmem:[#allocation8 + $0x100] ss:$16 sps:$4 sm:$0xff]  }
 0x3d8   :  { %5664 = vmatprep.mubr.bf16.mxu1 %v21718_v26  ;;  %6536 = vmatpush1.bf16.msra.mxu0 %v18867_v46  ;;  %v18918_v46 = vld [vmem:[#allocation8 + $0x108] ss:$16 sps:$4 sm:$0xff]  }
 0x3d9   :  { %6762 = vmatpush1.bf16.msra.mxu1 %v18870_v38  ;;  %6537 = vmatprep.subr.bf16.mxu0 %v18875_v2  ;;  %v18923_v38 = vld [vmem:[#allocation8 + $0x124] ss:$16 sps:$4 sm:$0xff]   ;;  %v18926_v2 = vld [vmem:[#allocation8 + $0x12c] ss:$16 sps:$4 sm:$0xff]  }
 0x3da   :  { %6763 = vmatprep.subr.bf16.mxu1 %v18878_v37  ;;  %v18921_v37 = vld [vmem:[#allocation8 + $0x120] ss:$16 sps:$4 sm:$0xff]  }
 0x3dc   :  { %6538 = vmatpush1.bf16.msra.mxu0 %v18873_v15  ;;  %v18924_v15 = vld [vmem:[#allocation8 + $0x128] ss:$16 sps:$4 sm:$0xff]  }
 0x3dd   :  { %6764 = vmatpush1.bf16.msra.mxu1 %v18876_v14  ;;  %6539 = vmatprep.subr.bf16.mxu0 %v18881_v22  ;;  %v18929_v14 = vld [vmem:[#allocation8 + $0x144] ss:$16 sps:$4 sm:$0xff]   ;;  %v18932_v22 = vld [vmem:[#allocation8 + $0x14c] ss:$16 sps:$4 sm:$0xff]  }
 0x3de   :  { %5439 = vmatmul.mubr.bf16.gmra.mrb[132].mxu0 %v21708_v18  ;;  %6765 = vmatprep.subr.bf16.mxu1 %v18884_v17  ;;  %v18927_v17 = vld [vmem:[#allocation8 + $0x140] ss:$16 sps:$4 sm:$0xff]  }
 0x3df   :  { %5665 = vmatmul.mubr.bf16.gmra.mrb[132].mxu1 %v21708_v18  ;;  %5448 = vmatprep.mubr.bf16.mxu0 %v21842_v3 }
 0x3e0   :  { %5674 = vmatprep.mubr.bf16.mxu1 %v21842_v3  ;;  %6540 = vmatpush1.bf16.msra.mxu0 %v18879_v30  ;;  %v18930_v30 = vld [vmem:[#allocation8 + $0x148] ss:$16 sps:$4 sm:$0xff]  }
 0x3e1   :  { %6766 = vmatpush1.bf16.msra.mxu1 %v18882_v51  ;;  %6541 = vmatprep.subr.bf16.mxu0 %v18887_v40  ;;  %v18935_v51 = vld [vmem:[#allocation8 + $0x164] ss:$16 sps:$4 sm:$0xff]   ;;  %v18938_v40 = vld [vmem:[#allocation8 + $0x16c] ss:$16 sps:$4 sm:$0xff]  }
 0x3e2   :  { %6767 = vmatprep.subr.bf16.mxu1 %v18890_v24  ;;  %v18933_v24 = vld [vmem:[#allocation8 + $0x160] ss:$16 sps:$4 sm:$0xff]  }
 0x3e4   :  { %6542 = vmatpush1.bf16.msra.mxu0 %v18885_v5  ;;  %v18936_v5 = vld [vmem:[#allocation8 + $0x168] ss:$16 sps:$4 sm:$0xff]  }
 0x3e5   :  { %6768 = vmatpush1.bf16.msra.mxu1 %v18888_v11  ;;  %6543 = vmatprep.subr.bf16.mxu0 %v18893_v61  ;;  %v18941_v11 = vld [vmem:[#allocation8 + $0x184] ss:$16 sps:$4 sm:$0xff]   ;;  %v18944_v61 = vld [vmem:[#allocation8 + $0x18c] ss:$16 sps:$4 sm:$0xff]  }
 0x3e6   :  { %5449 = vmatmul.mubr.bf16.gmra.mrb[136].mxu0 %v21832_v8  ;;  %6769 = vmatprep.subr.bf16.mxu1 %v18896_v33  ;;  %v18939_v33 = vld [vmem:[#allocation8 + $0x180] ss:$16 sps:$4 sm:$0xff]  }
 0x3e7   :  { %5675 = vmatmul.mubr.bf16.gmra.mrb[136].mxu1 %v21832_v8  ;;  %5458 = vmatprep.mubr.bf16.mxu0 %v21974_v32 }
 0x3e8   :  { %5684 = vmatprep.mubr.bf16.mxu1 %v21974_v32  ;;  %6544 = vmatpush1.bf16.msra.mxu0 %v18891_v20  ;;  %v18942_v20 = vld [vmem:[#allocation8 + $0x188] ss:$16 sps:$4 sm:$0xff]  }
 0x3e9   :  { %6770 = vmatpush1.bf16.msra.mxu1 %v18894_v59  ;;  %6545 = vmatprep.subr.bf16.mxu0 %v18899_v58  ;;  %v18947_v59 = vld [vmem:[#allocation8 + $0x1a4] ss:$16 sps:$4 sm:$0xff]   ;;  %v18950_v58 = vld [vmem:[#allocation8 + $0x1ac] ss:$16 sps:$4 sm:$0xff]  }
 0x3ea   :  { %6771 = vmatprep.subr.bf16.mxu1 %v18902_v56  ;;  %v18945_v56 = vld [vmem:[#allocation8 + $0x1a0] ss:$16 sps:$4 sm:$0xff]  }
 0x3ec   :  { %6546 = vmatpush1.bf16.msra.mxu0 %v18897_v55  ;;  %v18948_v55 = vld [vmem:[#allocation8 + $0x1a8] ss:$16 sps:$4 sm:$0xff]  }
 0x3ed   :  { %6772 = vmatpush1.bf16.msra.mxu1 %v18900_v28  ;;  %6547 = vmatprep.subr.bf16.mxu0 %v18905_v60  ;;  %v18953_v28 = vld [vmem:[#allocation8 + $0x1c4] ss:$16 sps:$4 sm:$0xff]   ;;  %v18956_v60 = vld [vmem:[#allocation8 + $0x1cc] ss:$16 sps:$4 sm:$0xff]  }
 0x3ee   :  { %5459 = vmatmul.mubr.bf16.gmra.mrb[140].mxu0 %v21964_v12  ;;  %6773 = vmatprep.subr.bf16.mxu1 %v18908_v4  ;;  %v22405_v4 = vcombine.high %v23184_v34, %v23184_v34 }
 0x3ef   :  { %5685 = vmatmul.mubr.bf16.gmra.mrb[140].mxu1 %v21964_v12  ;;  %5468 = vmatprep.mubr.bf16.mxu0 %v22098_v1 }
 0x3f0   :  { %5694 = vmatprep.mubr.bf16.mxu1 %v22098_v1  ;;  %6548 = vmatpush1.bf16.msra.mxu0 %v18903_v23  ;;  %v18951_v23 = vld [vmem:[#allocation8 + $0x1c0] ss:$16 sps:$4 sm:$0xff]  }
 0x3f1   :  { %6774 = vmatpush1.bf16.msra.mxu1 %v18906_v50  ;;  %6549 = vmatprep.subr.bf16.mxu0 %v18911_v45  ;;  %v18954_v50 = vld [vmem:[#allocation8 + $0x1c8] ss:$16 sps:$4 sm:$0xff]   ;;  %v18959_v45 = vld [vmem:[#allocation8 + $0x1e4] ss:$16 sps:$4 sm:$0xff]  }
 0x3f2   :  { %6775 = vmatprep.subr.bf16.mxu1 %v18914_v19  ;;  %v18962_v19 = vld [vmem:[#allocation8 + $0x1ec] ss:$16 sps:$4 sm:$0xff]  }
 0x3f4   :  { %6550 = vmatpush1.bf16.msra.mxu0 %v18909_v53  ;;  %v18957_v53 = vld [vmem:[#allocation8 + $0x1e0] ss:$16 sps:$4 sm:$0xff]  }
 0x3f5   :  { %6776 = vmatpush1.bf16.msra.mxu1 %v18912_v41  ;;  %6551 = vmatprep.subr.bf16.mxu0 %v18917_v31  ;;  %v18960_v41 = vld [vmem:[#allocation8 + $0x1e8] ss:$16 sps:$4 sm:$0xff]   ;;  %v18965_v31 = vld [vmem:[#allocation8 + $0x204] ss:$16 sps:$4 sm:$0xff]  }
 0x3f6   :  { %5469 = vmatmul.mubr.bf16.gmra.mrb[144].mxu0 %v22088_v54  ;;  %6777 = vmatprep.subr.bf16.mxu1 %v18920_v62  ;;  %v18968_v62 = vld [vmem:[#allocation8 + $0x20c] ss:$16 sps:$4 sm:$0xff]  }
 0x3f7   :  { %5695 = vmatmul.mubr.bf16.gmra.mrb[144].mxu1 %v22088_v54  ;;  %5478 = vmatprep.mubr.bf16.mxu0 %v22198_v36 }
 0x3f8   :  { %5704 = vmatprep.mubr.bf16.mxu1 %v22198_v36  ;;  %6552 = vmatpush1.bf16.msra.mxu0 %v18915_v47  ;;  %v22413_v47 = vcombine.low %v23184_v34, %v23184_v34 }
 0x3f9   :  { %6778 = vmatpush1.bf16.msra.mxu1 %v18918_v46  ;;  %6553 = vmatprep.subr.bf16.mxu0 %v18923_v38  ;;  %v18963_v46 = vld [vmem:[#allocation8 + $0x200] ss:$16 sps:$4 sm:$0xff]   ;;  %v18966_v38 = vld [vmem:[#allocation8 + $0x208] ss:$16 sps:$4 sm:$0xff]  }
 0x3fa   :  { %6779 = vmatprep.subr.bf16.mxu1 %v18926_v2  ;;  %23185 = vst [vmem:[#allocation50_spill] sm:$0xff] %v22413_v47  ;;  %v18971_v2 = vld [vmem:[#allocation8 + $0x224] ss:$16 sps:$4 sm:$0xff]  }
 0x3fc   :  { %6554 = vmatpush1.bf16.msra.mxu0 %v18921_v37  ;;  %v18974_v37 = vld [vmem:[#allocation8 + $0x22c] ss:$16 sps:$4 sm:$0xff]  }
 0x3fd   :  { %6780 = vmatpush1.bf16.msra.mxu1 %v18924_v15  ;;  %6555 = vmatprep.subr.bf16.mxu0 %v18929_v14  ;;  %v23186_v15 = vld [vmem:[#allocation118_spill] sm:$0xff] }
 0x3fe   :  { %5479 = vmatmul.mubr.bf16.gmra.mrb[148].mxu0 %v22192_v9  ;;  %6781 = vmatprep.subr.bf16.mxu1 %v18932_v22  ;;  %v18969_v14 = vld [vmem:[#allocation8 + $0x220] ss:$16 sps:$4 sm:$0xff]   ;;  %v18972_v22 = vld [vmem:[#allocation8 + $0x228] ss:$16 sps:$4 sm:$0xff]  }
 0x3ff   :  { %5705 = vmatmul.mubr.bf16.gmra.mrb[148].mxu1 %v22192_v9  ;;  %5488 = vmatprep.mubr.bf16.mxu0 %v22279_v29 }
 0x400   :  { %5714 = vmatprep.mubr.bf16.mxu1 %v22279_v29  ;;  %6556 = vmatpush1.bf16.msra.mxu0 %v18927_v17  ;;  %v18977_v17 = vld [vmem:[#allocation8 + $0x244] ss:$16 sps:$4 sm:$0xff]  }
 0x401   :  { %6782 = vmatpush1.bf16.msra.mxu1 %v18930_v30  ;;  %6557 = vmatprep.subr.bf16.mxu0 %v18935_v51  ;;  %v18980_v30 = vld [vmem:[#allocation8 + $0x24c] ss:$16 sps:$4 sm:$0xff]   ;;  %v18975_v51 = vld [vmem:[#allocation8 + $0x240] ss:$16 sps:$4 sm:$0xff]  }
 0x402   :  { %6783 = vmatprep.subr.bf16.mxu1 %v18938_v40  ;;  %v18978_v40 = vld [vmem:[#allocation8 + $0x248] ss:$16 sps:$4 sm:$0xff]  }
 0x404   :  { %6558 = vmatpush1.bf16.msra.mxu0 %v18933_v24  ;;  %v18983_v24 = vld [vmem:[#allocation8 + $0x264] ss:$16 sps:$4 sm:$0xff]  }
 0x405   :  { %6784 = vmatpush1.bf16.msra.mxu1 %v18936_v5  ;;  %6559 = vmatprep.subr.bf16.mxu0 %v18941_v11  ;;  %v23187_v5 = vld [vmem:[#allocation26_spill] sm:$0xff] }
 0x406   :  { %5489 = vmatmul.mubr.bf16.gmra.mrb[152].mxu0 %v22273_v7  ;;  %6785 = vmatprep.subr.bf16.mxu1 %v18944_v61  ;;  %v18986_v11 = vld [vmem:[#allocation8 + $0x26c] ss:$16 sps:$4 sm:$0xff]   ;;  %v18981_v61 = vld [vmem:[#allocation8 + $0x260] ss:$16 sps:$4 sm:$0xff]  }
 0x407   :  { %5715 = vmatmul.mubr.bf16.gmra.mrb[152].mxu1 %v22273_v7  ;;  %5498 = vmatprep.mubr.bf16.mxu0 %v22351_v35 }
 0x408   :  { %5724 = vmatprep.mubr.bf16.mxu1 %v22351_v35  ;;  %6560 = vmatpush1.bf16.msra.mxu0 %v18939_v33  ;;  %v18984_v33 = vld [vmem:[#allocation8 + $0x268] ss:$16 sps:$4 sm:$0xff]  }
 0x409   :  { %6786 = vmatpush1.bf16.msra.mxu1 %v18942_v20  ;;  %6561 = vmatprep.subr.bf16.mxu0 %v18947_v59  ;;  %v18989_v20 = vld [vmem:[#allocation8 + $0x284] ss:$16 sps:$4 sm:$0xff]   ;;  %v18992_v59 = vld [vmem:[#allocation8 + $0x28c] ss:$16 sps:$4 sm:$0xff]  }
 0x40a   :  { %6787 = vmatprep.subr.bf16.mxu1 %v18950_v58  ;;  %v18987_v58 = vld [vmem:[#allocation8 + $0x280] ss:$16 sps:$4 sm:$0xff]  }
 0x40c   :  { %6562 = vmatpush1.bf16.msra.mxu0 %v18945_v56  ;;  %v18990_v56 = vld [vmem:[#allocation8 + $0x288] ss:$16 sps:$4 sm:$0xff]  }
 0x40d   :  { %6788 = vmatpush1.bf16.msra.mxu1 %v18948_v55  ;;  %6563 = vmatprep.subr.bf16.mxu0 %v18953_v28  ;;  %v18995_v55 = vld [vmem:[#allocation8 + $0x2a4] ss:$16 sps:$4 sm:$0xff]   ;;  %v23188_v28 = vld [vmem:[#allocation30_spill] sm:$0xff] }
 0x40e   :  { %5499 = vmatmul.mubr.bf16.gmra.mrb[156].mxu0 %v22345_v48  ;;  %6789 = vmatprep.subr.bf16.mxu1 %v18956_v60  ;;  %v18998_v60 = vld [vmem:[#allocation8 + $0x2ac] ss:$16 sps:$4 sm:$0xff]  }
 0x40f   :  { %5725 = vmatmul.mubr.bf16.gmra.mrb[156].mxu1 %v22345_v48  ;;  %6567 = vmatprep.mubr.bf16.mxu0 %v22405_v4 }
 0x410   :  { %6564 = vmatpush1.bf16.msra.mxu0 %v18951_v23  ;;  %6793 = vmatprep.mubr.bf16.mxu1 %v22405_v4  ;;  %v18993_v23 = vld [vmem:[#allocation8 + $0x2a0] ss:$16 sps:$4 sm:$0xff]  }
 0x411   :  { %6790 = vmatpush1.bf16.msra.mxu1 %v18954_v50  ;;  %6565 = vmatprep.subr.bf16.mxu0 %v18959_v45  ;;  %v18996_v50 = vld [vmem:[#allocation8 + $0x2a8] ss:$16 sps:$4 sm:$0xff]   ;;  %v19001_v45 = vld [vmem:[#allocation8 + $0x2c4] ss:$16 sps:$4 sm:$0xff]  }
 0x412   :  { %6791 = vmatprep.subr.bf16.mxu1 %v18962_v19  ;;  %v19004_v19 = vld [vmem:[#allocation8 + $0x2cc] ss:$16 sps:$4 sm:$0xff]  }
 0x414   :  { %6566 = vmatpush1.bf16.msra.mxu0 %v18957_v53  ;;  %v18999_v53 = vld [vmem:[#allocation8 + $0x2c0] ss:$16 sps:$4 sm:$0xff]  }
 0x415   :  { %6792 = vmatpush1.bf16.msra.mxu1 %v18960_v41  ;;  %6648 = vmatprep.subr.bf16.mxu0 %v18965_v31  ;;  %v19002_v41 = vld [vmem:[#allocation8 + $0x2c8] ss:$16 sps:$4 sm:$0xff]   ;;  %v19007_v31 = vld [vmem:[#allocation8 + $0x2e4] ss:$16 sps:$4 sm:$0xff]  }
 0x416   :  { %6874 = vmatprep.subr.bf16.mxu1 %v18968_v62  ;;  %v19010_v62 = vld [vmem:[#allocation8 + $0x2ec] ss:$16 sps:$4 sm:$0xff]  }
 0x417   :  { %6568 = vmatmul.mubr.bf16.vlgmr.msra.gmra.mrb[128].mxu0 %v22413_v47 }
 0x418   :  { %6794 = vmatmul.mubr.bf16.vlgmr.msra.gmra.mrb[128].mxu1 %v22413_v47  ;;  %6577 = vmatprep.mubr.bf16.mxu0 %v23186_v15 }
 0x419   :  { %6649 = vmatpush1.bf16.msra.mxu0 %v18963_v46  ;;  %6803 = vmatprep.mubr.bf16.mxu1 %v23186_v15  ;;  %v19005_v46 = vld [vmem:[#allocation8 + $0x2e0] ss:$16 sps:$4 sm:$0xff]  }
 0x41a   :  { %6875 = vmatpush1.bf16.msra.mxu1 %v18966_v38  ;;  %6650 = vmatprep.subr.bf16.mxu0 %v18971_v2  ;;  %v19008_v38 = vld [vmem:[#allocation8 + $0x2e8] ss:$16 sps:$4 sm:$0xff]   ;;  %v19013_v2 = vld [vmem:[#allocation8 + $0x304] ss:$16 sps:$4 sm:$0xff]  }
 0x41b   :  { %6876 = vmatprep.subr.bf16.mxu1 %v18974_v37  ;;  %v19016_v37 = vld [vmem:[#allocation8 + $0x30c] ss:$16 sps:$4 sm:$0xff]  }
 0x41d   :  { %6651 = vmatpush1.bf16.msra.mxu0 %v18969_v14  ;;  %v19011_v14 = vld [vmem:[#allocation8 + $0x300] ss:$16 sps:$4 sm:$0xff]  }
 0x41e   :  { %6877 = vmatpush1.bf16.msra.mxu1 %v18972_v22  ;;  %6652 = vmatprep.subr.bf16.mxu0 %v18977_v17  ;;  %v19014_v22 = vld [vmem:[#allocation8 + $0x308] ss:$16 sps:$4 sm:$0xff]   ;;  %v19019_v17 = vld [vmem:[#allocation8 + $0x324] ss:$16 sps:$4 sm:$0xff]  }
 0x41f   :  { %6578 = vmatmul.mubr.bf16.gmra.mrb[132].mxu0 %v23187_v5  ;;  %6878 = vmatprep.subr.bf16.mxu1 %v18980_v30  ;;  %v19022_v30 = vld [vmem:[#allocation8 + $0x32c] ss:$16 sps:$4 sm:$0xff]  }
 0x420   :  { %6804 = vmatmul.mubr.bf16.gmra.mrb[132].mxu1 %v23187_v5  ;;  %6587 = vmatprep.mubr.bf16.mxu0 %v21772_v27 }
 0x421   :  { %6653 = vmatpush1.bf16.msra.mxu0 %v18975_v51  ;;  %6813 = vmatprep.mubr.bf16.mxu1 %v21772_v27  ;;  %v19017_v51 = vld [vmem:[#allocation8 + $0x320] ss:$16 sps:$4 sm:$0xff]  }
 0x422   :  { %6879 = vmatpush1.bf16.msra.mxu1 %v18978_v40  ;;  %6654 = vmatprep.subr.bf16.mxu0 %v18983_v24  ;;  %v19020_v40 = vld [vmem:[#allocation8 + $0x328] ss:$16 sps:$4 sm:$0xff]   ;;  %v19025_v24 = vld [vmem:[#allocation8 + $0x344] ss:$16 sps:$4 sm:$0xff]  }
 0x423   :  { %6880 = vmatprep.subr.bf16.mxu1 %v18986_v11  ;;  %v19028_v11 = vld [vmem:[#allocation8 + $0x34c] ss:$16 sps:$4 sm:$0xff]  }
 0x425   :  { %6655 = vmatpush1.bf16.msra.mxu0 %v18981_v61  ;;  %v19023_v61 = vld [vmem:[#allocation8 + $0x340] ss:$16 sps:$4 sm:$0xff]  }
 0x426   :  { %6881 = vmatpush1.bf16.msra.mxu1 %v18984_v33  ;;  %6656 = vmatprep.subr.bf16.mxu0 %v18989_v20  ;;  %v19026_v33 = vld [vmem:[#allocation8 + $0x348] ss:$16 sps:$4 sm:$0xff]   ;;  %v19031_v20 = vld [vmem:[#allocation8 + $0x364] ss:$16 sps:$4 sm:$0xff]  }
 0x427   :  { %6588 = vmatmul.mubr.bf16.gmra.mrb[136].mxu0 %v23188_v28  ;;  %6882 = vmatprep.subr.bf16.mxu1 %v18992_v59  ;;  %v19034_v59 = vld [vmem:[#allocation8 + $0x36c] ss:$16 sps:$4 sm:$0xff]  }
 0x428   :  { %6814 = vmatmul.mubr.bf16.gmra.mrb[136].mxu1 %v23188_v28  ;;  %6597 = vmatprep.mubr.bf16.mxu0 %v21896_v21 }
 0x429   :  { %6657 = vmatpush1.bf16.msra.mxu0 %v18987_v58  ;;  %6823 = vmatprep.mubr.bf16.mxu1 %v21896_v21  ;;  %v19029_v58 = vld [vmem:[#allocation8 + $0x360] ss:$16 sps:$4 sm:$0xff]  }
 0x42a   :  { %6883 = vmatpush1.bf16.msra.mxu1 %v18990_v56  ;;  %6658 = vmatprep.subr.bf16.mxu0 %v18995_v55  ;;  %v19032_v56 = vld [vmem:[#allocation8 + $0x368] ss:$16 sps:$4 sm:$0xff]   ;;  %v19037_v55 = vld [vmem:[#allocation8 + $0x384] ss:$16 sps:$4 sm:$0xff]  }
 0x42b   :  { %6884 = vmatprep.subr.bf16.mxu1 %v18998_v60  ;;  %v19040_v60 = vld [vmem:[#allocation8 + $0x38c] ss:$16 sps:$4 sm:$0xff]  }
 0x42d   :  { %6659 = vmatpush1.bf16.msra.mxu0 %v18993_v23  ;;  %v19035_v23 = vld [vmem:[#allocation8 + $0x380] ss:$16 sps:$4 sm:$0xff]  }
 0x42e   :  { %6885 = vmatpush1.bf16.msra.mxu1 %v18996_v50  ;;  %6660 = vmatprep.subr.bf16.mxu0 %v19001_v45  ;;  %v19038_v50 = vld [vmem:[#allocation8 + $0x388] ss:$16 sps:$4 sm:$0xff]   ;;  %v19043_v45 = vld [vmem:[#allocation8 + $0x3a4] ss:$16 sps:$4 sm:$0xff]  }
 0x42f   :  { %6598 = vmatmul.mubr.bf16.gmra.mrb[140].mxu0 %v21885_v25  ;;  %6886 = vmatprep.subr.bf16.mxu1 %v19004_v19  ;;  %v23189_v19 = vld [vmem:[#allocation41_spill] sm:$0xff] }
 0x430   :  { %6824 = vmatmul.mubr.bf16.gmra.mrb[140].mxu1 %v21885_v25  ;;  %6607 = vmatprep.mubr.bf16.mxu0 %v22028_v57 }
 0x431   :  { %6661 = vmatpush1.bf16.msra.mxu0 %v18999_v53  ;;  %6833 = vmatprep.mubr.bf16.mxu1 %v22028_v57  ;;  %v19046_v53 = vld [vmem:[#allocation8 + $0x3ac] ss:$16 sps:$4 sm:$0xff]  }
 0x432   :  { %6887 = vmatpush1.bf16.msra.mxu1 %v19002_v41  ;;  %6662 = vmatprep.subr.bf16.mxu0 %v19007_v31  ;;  %v23190_v41 = vld [vmem:[#allocation48_spill] sm:$0xff] }
 0x433   :  { %6888 = vmatprep.subr.bf16.mxu1 %v19010_v62  ;;  %v19041_v31 = vld [vmem:[#allocation8 + $0x3a0] ss:$16 sps:$4 sm:$0xff]   ;;  %v19044_v62 = vld [vmem:[#allocation8 + $0x3a8] ss:$16 sps:$4 sm:$0xff]  }
 0x435   :  { %6663 = vmatpush1.bf16.msra.mxu0 %v19005_v46  ;;  %v19049_v46 = vld [vmem:[#allocation8 + $0x3c4] ss:$16 sps:$4 sm:$0xff]  }
 0x436   :  { %6889 = vmatpush1.bf16.msra.mxu1 %v19008_v38  ;;  %6664 = vmatprep.subr.bf16.mxu0 %v19013_v2  ;;  %v19052_v38 = vld [vmem:[#allocation8 + $0x3cc] ss:$16 sps:$4 sm:$0xff]   ;;  %v19047_v2 = vld [vmem:[#allocation8 + $0x3c0] ss:$16 sps:$4 sm:$0xff]  }
 0x437   :  { %6608 = vmatmul.mubr.bf16.gmra.mrb[144].mxu0 %v22017_v6  ;;  %6890 = vmatprep.subr.bf16.mxu1 %v19016_v37  ;;  %v19050_v37 = vld [vmem:[#allocation8 + $0x3c8] ss:$16 sps:$4 sm:$0xff]  }
 0x438   :  { %6834 = vmatmul.mubr.bf16.gmra.mrb[144].mxu1 %v22017_v6  ;;  %6617 = vmatprep.mubr.bf16.mxu0 %v22144_v13 }
 0x439   :  { %6665 = vmatpush1.bf16.msra.mxu0 %v19011_v14  ;;  %6843 = vmatprep.mubr.bf16.mxu1 %v22144_v13  ;;  %v19055_v14 = vld [vmem:[#allocation8 + $0x3e4] ss:$16 sps:$4 sm:$0xff]  }
 0x43a   :  { %6891 = vmatpush1.bf16.msra.mxu1 %v19014_v22  ;;  %6666 = vmatprep.subr.bf16.mxu0 %v19019_v17  ;;  %v23191_v22 = vld [vmem:[#allocation46_spill] sm:$0xff] }
 0x43b   :  { %6892 = vmatprep.subr.bf16.mxu1 %v19022_v30  ;;  %v19058_v17 = vld [vmem:[#allocation8 + $0x3ec] ss:$16 sps:$4 sm:$0xff]   ;;  %v19053_v30 = vld [vmem:[#allocation8 + $0x3e0] ss:$16 sps:$4 sm:$0xff]  }
 0x43d   :  { %6667 = vmatpush1.bf16.msra.mxu0 %v19017_v51  ;;  %v19056_v51 = vld [vmem:[#allocation8 + $0x3e8] ss:$16 sps:$4 sm:$0xff]  }
 0x43e   :  { %6893 = vmatpush1.bf16.msra.mxu1 %v19020_v40  ;;  %6668 = vmatprep.subr.bf16.mxu0 %v19025_v24  ;;  %v19061_v40 = vld [vmem:[#allocation8 + $0x804] ss:$16 sps:$4 sm:$0xff]   ;;  %v19064_v24 = vld [vmem:[#allocation8 + $0x80c] ss:$16 sps:$4 sm:$0xff]  }
 0x43f   :  { %6618 = vmatmul.mubr.bf16.gmra.mrb[148].mxu0 %v22137_v44  ;;  %6894 = vmatprep.subr.bf16.mxu1 %v19028_v11  ;;  %v19059_v11 = vld [vmem:[#allocation8 + $0x800] ss:$16 sps:$4 sm:$0xff]  }
 0x440   :  { %6844 = vmatmul.mubr.bf16.gmra.mrb[148].mxu1 %v22137_v44  ;;  %6627 = vmatprep.mubr.bf16.mxu0 %v22236_v42 }
 0x441   :  { %6669 = vmatpush1.bf16.msra.mxu0 %v19023_v61  ;;  %6853 = vmatprep.mubr.bf16.mxu1 %v22236_v42  ;;  %v19062_v61 = vld [vmem:[#allocation8 + $0x808] ss:$16 sps:$4 sm:$0xff]  }
 0x442   :  { %6895 = vmatpush1.bf16.msra.mxu1 %v19026_v33  ;;  %6670 = vmatprep.subr.bf16.mxu0 %v19031_v20  ;;  %v19067_v33 = vld [vmem:[#allocation8 + $0x824] ss:$16 sps:$4 sm:$0xff]   ;;  %v19070_v20 = vld [vmem:[#allocation8 + $0x82c] ss:$16 sps:$4 sm:$0xff]  }
 0x443   :  { %6896 = vmatprep.subr.bf16.mxu1 %v19034_v59  ;;  %v23192_v59 = vld [vmem:[#allocation119_spill] sm:$0xff] }
 0x445   :  { %6671 = vmatpush1.bf16.msra.mxu0 %v19029_v58  ;;  %v19065_v58 = vld [vmem:[#allocation8 + $0x820] ss:$16 sps:$4 sm:$0xff]  }
 0x446   :  { %6897 = vmatpush1.bf16.msra.mxu1 %v19032_v56  ;;  %6672 = vmatprep.subr.bf16.mxu0 %v19037_v55  ;;  %v19068_v56 = vld [vmem:[#allocation8 + $0x828] ss:$16 sps:$4 sm:$0xff]   ;;  %v19073_v55 = vld [vmem:[#allocation8 + $0x844] ss:$16 sps:$4 sm:$0xff]  }
 0x447   :  { %6628 = vmatmul.mubr.bf16.gmra.mrb[152].mxu0 %v23189_v19  ;;  %6898 = vmatprep.subr.bf16.mxu1 %v19040_v60  ;;  %v19076_v60 = vld [vmem:[#allocation8 + $0x84c] ss:$16 sps:$4 sm:$0xff]  }
 0x448   :  { %6854 = vmatmul.mubr.bf16.gmra.mrb[152].mxu1 %v23189_v19  ;;  %6637 = vmatprep.mubr.bf16.mxu0 %v23190_v41 }
 0x449   :  { %6673 = vmatpush1.bf16.msra.mxu0 %v19035_v23  ;;  %6863 = vmatprep.mubr.bf16.mxu1 %v23190_v41  ;;  %v19071_v23 = vld [vmem:[#allocation8 + $0x840] ss:$16 sps:$4 sm:$0xff]  }
 0x44a   :  { %6899 = vmatpush1.bf16.msra.mxu1 %v19038_v50  ;;  %6674 = vmatprep.subr.bf16.mxu0 %v19043_v45  ;;  %v19074_v50 = vld [vmem:[#allocation8 + $0x848] ss:$16 sps:$4 sm:$0xff]   ;;  %v19079_v45 = vld [vmem:[#allocation8 + $0x864] ss:$16 sps:$4 sm:$0xff]  }
 0x44b   :  { %6900 = vmatprep.subr.bf16.mxu1 %v19046_v53  ;;  %v23193_v53 = vld [vmem:[#allocation27_spill] sm:$0xff] }
 0x44d   :  { %6675 = vmatpush1.bf16.msra.mxu0 %v19041_v31  ;;  %v19082_v31 = vld [vmem:[#allocation8 + $0x86c] ss:$16 sps:$4 sm:$0xff]  }
 0x44e   :  { %6901 = vmatpush1.bf16.msra.mxu1 %v19044_v62  ;;  %6676 = vmatprep.subr.bf16.mxu0 %v19049_v46  ;;  %v23194_v62 = vld [vmem:[#allocation32_spill] sm:$0xff] }
 0x44f   :  { %6638 = vmatmul.mubr.bf16.gmra.mrb[156].mxu0 %v23191_v22  ;;  %6902 = vmatprep.subr.bf16.mxu1 %v19052_v38  ;;  %v19077_v46 = vld [vmem:[#allocation8 + $0x860] ss:$16 sps:$4 sm:$0xff]   ;;  %v19080_v38 = vld [vmem:[#allocation8 + $0x868] ss:$16 sps:$4 sm:$0xff]  }
 0x450   :  { %6864 = vmatmul.mubr.bf16.gmra.mrb[156].mxu1 %v23191_v22  ;;  %6680 = vmatprep.mubr.bf16.mxu0 %v22405_v4 }
 0x451   :  { %6677 = vmatpush1.bf16.msra.mxu0 %v19047_v2  ;;  %6906 = vmatprep.mubr.bf16.mxu1 %v22405_v4  ;;  %v19085_v2 = vld [vmem:[#allocation8 + $0x884] ss:$16 sps:$4 sm:$0xff]  }
 0x452   :  { %6903 = vmatpush1.bf16.msra.mxu1 %v19050_v37  ;;  %6678 = vmatprep.subr.bf16.mxu0 %v19055_v14  ;;  %v19088_v37 = vld [vmem:[#allocation8 + $0x88c] ss:$16 sps:$4 sm:$0xff]   ;;  %v19083_v14 = vld [vmem:[#allocation8 + $0x880] ss:$16 sps:$4 sm:$0xff]  }
 0x453   :  { %6904 = vmatprep.subr.bf16.mxu1 %v19058_v17  ;;  %v19086_v17 = vld [vmem:[#allocation8 + $0x888] ss:$16 sps:$4 sm:$0xff]  }
 0x455   :  { %6679 = vmatpush1.bf16.msra.mxu0 %v19053_v30  ;;  %v19091_v30 = vld [vmem:[#allocation8 + $0x8a4] ss:$16 sps:$4 sm:$0xff]  }
 0x456   :  { %6905 = vmatpush1.bf16.msra.mxu1 %v19056_v51  ;;  %7948 = vmatprep.subr.bf16.mxu0 %v19061_v40  ;;  %v23195_v51 = vld [vmem:[#allocation31_spill] sm:$0xff]  ;;  %v19094_v40 = vld [vmem:[#allocation8 + $0x8ac] ss:$16 sps:$4 sm:$0xff]  }
 0x457   :  { %8174 = vmatprep.subr.bf16.mxu1 %v19064_v24  ;;  %v23196_v24 = vld [vmem:[#allocation35_spill] sm:$0xff] }
 0x458   :  { %6681 = vmatmul.mubr.bf16.vlgmr.msra.gmra.mrb[128].mxu0 %v22413_v47 }
 0x459   :  { %6907 = vmatmul.mubr.bf16.vlgmr.msra.gmra.mrb[128].mxu1 %v22413_v47  ;;  %6690 = vmatprep.mubr.bf16.mxu0 %v23192_v59  ;;  %v19154_v47 = vld [vmem:[#allocation8 + $0x9ec] ss:$16 sps:$4 sm:$0xff]  }
 0x45a   :  { %6916 = vmatprep.mubr.bf16.mxu1 %v23192_v59  ;;  %7949 = vmatpush1.bf16.msra.mxu0 %v19059_v11  ;;  %v19089_v11 = vld [vmem:[#allocation8 + $0x8a0] ss:$16 sps:$4 sm:$0xff]  }
 0x45b   :  { %8175 = vmatpush1.bf16.msra.mxu1 %v19062_v61  ;;  %7950 = vmatprep.subr.bf16.mxu0 %v19067_v33  ;;  %v19092_v61 = vld [vmem:[#allocation8 + $0x8a8] ss:$16 sps:$4 sm:$0xff]   ;;  %v19097_v33 = vld [vmem:[#allocation8 + $0x8c4] ss:$16 sps:$4 sm:$0xff]  }
 0x45c   :  { %8176 = vmatprep.subr.bf16.mxu1 %v19070_v20  ;;  %v19100_v20 = vld [vmem:[#allocation8 + $0x8cc] ss:$16 sps:$4 sm:$0xff]  }
 0x45e   :  { %7951 = vmatpush1.bf16.msra.mxu0 %v19065_v58  ;;  %v19095_v58 = vld [vmem:[#allocation8 + $0x8c0] ss:$16 sps:$4 sm:$0xff]  }
 0x45f   :  { %8177 = vmatpush1.bf16.msra.mxu1 %v19068_v56  ;;  %7952 = vmatprep.subr.bf16.mxu0 %v19073_v55  ;;  %v19098_v56 = vld [vmem:[#allocation8 + $0x8c8] ss:$16 sps:$4 sm:$0xff]   ;;  %v19103_v55 = vld [vmem:[#allocation8 + $0x8e4] ss:$16 sps:$4 sm:$0xff]  }
 0x460   :  { %6691 = vmatmul.mubr.bf16.gmra.mrb[132].mxu0 %v23193_v53  ;;  %8178 = vmatprep.subr.bf16.mxu1 %v19076_v60  ;;  %v23197_v60 = vld [vmem:[#allocation112_spill] sm:$0xff] }
 0x461   :  { %6917 = vmatmul.mubr.bf16.gmra.mrb[132].mxu1 %v23193_v53  ;;  %6700 = vmatprep.mubr.bf16.mxu0 %v23194_v62 }
 0x462   :  { %6926 = vmatprep.mubr.bf16.mxu1 %v23194_v62  ;;  %7953 = vmatpush1.bf16.msra.mxu0 %v19071_v23  ;;  %v19106_v23 = vld [vmem:[#allocation8 + $0x8ec] ss:$16 sps:$4 sm:$0xff]  }
 0x463   :  { %8179 = vmatpush1.bf16.msra.mxu1 %v19074_v50  ;;  %7954 = vmatprep.subr.bf16.mxu0 %v19079_v45  ;;  %v23198_v50 = vld [vmem:[#allocation115_spill] sm:$0xff]  ;;  %v19101_v45 = vld [vmem:[#allocation8 + $0x8e0] ss:$16 sps:$4 sm:$0xff]  }
 0x464   :  { %8180 = vmatprep.subr.bf16.mxu1 %v19082_v31  ;;  %v19104_v31 = vld [vmem:[#allocation8 + $0x8e8] ss:$16 sps:$4 sm:$0xff]  }
 0x466   :  { %7955 = vmatpush1.bf16.msra.mxu0 %v19077_v46  ;;  %v19109_v46 = vld [vmem:[#allocation8 + $0x904] ss:$16 sps:$4 sm:$0xff]  }
 0x467   :  { %8181 = vmatpush1.bf16.msra.mxu1 %v19080_v38  ;;  %7956 = vmatprep.subr.bf16.mxu0 %v19085_v2  ;;  %v19112_v38 = vld [vmem:[#allocation8 + $0x90c] ss:$16 sps:$4 sm:$0xff]   ;;  %v19107_v2 = vld [vmem:[#allocation8 + $0x900] ss:$16 sps:$4 sm:$0xff]  }
 0x468   :  { %6701 = vmatmul.mubr.bf16.gmra.mrb[136].mxu0 %v23195_v51  ;;  %8182 = vmatprep.subr.bf16.mxu1 %v19088_v37  ;;  %v19110_v37 = vld [vmem:[#allocation8 + $0x908] ss:$16 sps:$4 sm:$0xff]  }
 0x469   :  { %6927 = vmatmul.mubr.bf16.gmra.mrb[136].mxu1 %v23195_v51  ;;  %6710 = vmatprep.mubr.bf16.mxu0 %v23196_v24 }
 0x46a   :  { %6936 = vmatprep.mubr.bf16.mxu1 %v23196_v24  ;;  %7957 = vmatpush1.bf16.msra.mxu0 %v19083_v14  ;;  %v19115_v14 = vld [vmem:[#allocation8 + $0x924] ss:$16 sps:$4 sm:$0xff]  }
 0x46b   :  { %8183 = vmatpush1.bf16.msra.mxu1 %v19086_v17  ;;  %7958 = vmatprep.subr.bf16.mxu0 %v19091_v30  ;;  %v23199_v17 = vld [vmem:[#allocation36_spill] sm:$0xff] }
 0x46c   :  { %8184 = vmatprep.subr.bf16.mxu1 %v19094_v40  ;;  %v19118_v30 = vld [vmem:[#allocation8 + $0x92c] ss:$16 sps:$4 sm:$0xff]   ;;  %v23200_v40 = vld [vmem:[#allocation117_spill] sm:$0xff] }
 0x46e   :  { %7959 = vmatpush1.bf16.msra.mxu0 %v19089_v11  ;;  %v19113_v11 = vld [vmem:[#allocation8 + $0x920] ss:$16 sps:$4 sm:$0xff]  }
 0x46f   :  { %8185 = vmatpush1.bf16.msra.mxu1 %v19092_v61  ;;  %7960 = vmatprep.subr.bf16.mxu0 %v19097_v33  ;;  %v19116_v61 = vld [vmem:[#allocation8 + $0x928] ss:$16 sps:$4 sm:$0xff]   ;;  %v19121_v33 = vld [vmem:[#allocation8 + $0x944] ss:$16 sps:$4 sm:$0xff]  }
 0x470   :  { %6711 = vmatmul.mubr.bf16.gmra.mrb[140].mxu0 %v23197_v60  ;;  %8186 = vmatprep.subr.bf16.mxu1 %v19100_v20  ;;  %v19124_v20 = vld [vmem:[#allocation8 + $0x94c] ss:$16 sps:$4 sm:$0xff]  }
 0x471   :  { %6937 = vmatmul.mubr.bf16.gmra.mrb[140].mxu1 %v23197_v60  ;;  %6720 = vmatprep.mubr.bf16.mxu0 %v23198_v50 }
 0x472   :  { %6946 = vmatprep.mubr.bf16.mxu1 %v23198_v50  ;;  %7961 = vmatpush1.bf16.msra.mxu0 %v19095_v58  ;;  %v19119_v58 = vld [vmem:[#allocation8 + $0x940] ss:$16 sps:$4 sm:$0xff]  }
 0x473   :  { %8187 = vmatpush1.bf16.msra.mxu1 %v19098_v56  ;;  %7962 = vmatprep.subr.bf16.mxu0 %v19103_v55  ;;  %v19122_v56 = vld [vmem:[#allocation8 + $0x948] ss:$16 sps:$4 sm:$0xff]   ;;  %v19127_v55 = vld [vmem:[#allocation8 + $0x964] ss:$16 sps:$4 sm:$0xff]  }
 0x474   :  { %8188 = vmatprep.subr.bf16.mxu1 %v19106_v23  ;;  %v23201_v23 = vld [vmem:[#allocation116_spill] sm:$0xff] }
 0x476   :  { %7963 = vmatpush1.bf16.msra.mxu0 %v19101_v45  ;;  %v19130_v45 = vld [vmem:[#allocation8 + $0x96c] ss:$16 sps:$4 sm:$0xff]  }
 0x477   :  { %8189 = vmatpush1.bf16.msra.mxu1 %v19104_v31  ;;  %7964 = vmatprep.subr.bf16.mxu0 %v19109_v46  ;;  %v23202_v31 = vld [vmem:[#allocation43_spill] sm:$0xff]  ;;  %v19125_v46 = vld [vmem:[#allocation8 + $0x960] ss:$16 sps:$4 sm:$0xff]  }
 0x478   :  { %6721 = vmatmul.mubr.bf16.gmra.mrb[144].mxu0 %v23199_v17  ;;  %8190 = vmatprep.subr.bf16.mxu1 %v19112_v38  ;;  %v19128_v38 = vld [vmem:[#allocation8 + $0x968] ss:$16 sps:$4 sm:$0xff]  }
 0x479   :  { %6947 = vmatmul.mubr.bf16.gmra.mrb[144].mxu1 %v23199_v17  ;;  %6730 = vmatprep.mubr.bf16.mxu0 %v23200_v40 }
 0x47a   :  { %6956 = vmatprep.mubr.bf16.mxu1 %v23200_v40  ;;  %7965 = vmatpush1.bf16.msra.mxu0 %v19107_v2  ;;  %v19133_v2 = vld [vmem:[#allocation8 + $0x984] ss:$16 sps:$4 sm:$0xff]  }
 0x47b   :  { %8191 = vmatpush1.bf16.msra.mxu1 %v19110_v37  ;;  %7966 = vmatprep.subr.bf16.mxu0 %v19115_v14  ;;  %v19136_v37 = vld [vmem:[#allocation8 + $0x98c] ss:$16 sps:$4 sm:$0xff]   ;;  %v19131_v14 = vld [vmem:[#allocation8 + $0x980] ss:$16 sps:$4 sm:$0xff]  }
 0x47c   :  { %8192 = vmatprep.subr.bf16.mxu1 %v19118_v30  ;;  %v19134_v30 = vld [vmem:[#allocation8 + $0x988] ss:$16 sps:$4 sm:$0xff]  }
 0x47e   :  { %7967 = vmatpush1.bf16.msra.mxu0 %v19113_v11  ;;  %v19139_v11 = vld [vmem:[#allocation8 + $0x9a4] ss:$16 sps:$4 sm:$0xff]  }
 0x47f   :  { %8193 = vmatpush1.bf16.msra.mxu1 %v19116_v61  ;;  %7968 = vmatprep.subr.bf16.mxu0 %v19121_v33  ;;  %v23203_v61 = vld [vmem:[#allocation42_spill] sm:$0xff] }
 0x480   :  { %6731 = vmatmul.mubr.bf16.gmra.mrb[148].mxu0 %v23201_v23  ;;  %8194 = vmatprep.subr.bf16.mxu1 %v19124_v20  ;;  %v19142_v33 = vld [vmem:[#allocation8 + $0x9ac] ss:$16 sps:$4 sm:$0xff]   ;;  %v23204_v20 = vld [vmem:[#allocation49_spill] sm:$0xff] }
 0x481   :  { %6957 = vmatmul.mubr.bf16.gmra.mrb[148].mxu1 %v23201_v23  ;;  %6740 = vmatprep.mubr.bf16.mxu0 %v23202_v31 }
 0x482   :  { %6966 = vmatprep.mubr.bf16.mxu1 %v23202_v31  ;;  %7969 = vmatpush1.bf16.msra.mxu0 %v19119_v58  ;;  %v19137_v58 = vld [vmem:[#allocation8 + $0x9a0] ss:$16 sps:$4 sm:$0xff]  }
 0x483   :  { %8195 = vmatpush1.bf16.msra.mxu1 %v19122_v56  ;;  %7970 = vmatprep.subr.bf16.mxu0 %v19127_v55  ;;  %v19140_v56 = vld [vmem:[#allocation8 + $0x9a8] ss:$16 sps:$4 sm:$0xff]   ;;  %v19145_v55 = vld [vmem:[#allocation8 + $0x9c4] ss:$16 sps:$4 sm:$0xff]  }
 0x484   :  { %8196 = vmatprep.subr.bf16.mxu1 %v19130_v45  ;;  %v19148_v45 = vld [vmem:[#allocation8 + $0x9cc] ss:$16 sps:$4 sm:$0xff]  }
 0x486   :  { %7971 = vmatpush1.bf16.msra.mxu0 %v19125_v46  ;;  %v19143_v46 = vld [vmem:[#allocation8 + $0x9c0] ss:$16 sps:$4 sm:$0xff]  }
 0x487   :  { %8197 = vmatpush1.bf16.msra.mxu1 %v19128_v38  ;;  %7972 = vmatprep.subr.bf16.mxu0 %v19133_v2  ;;  %v19146_v38 = vld [vmem:[#allocation8 + $0x9c8] ss:$16 sps:$4 sm:$0xff]   ;;  %v19151_v2 = vld [vmem:[#allocation8 + $0x9e4] ss:$16 sps:$4 sm:$0xff]  }
 0x488   :  { %6741 = vmatmul.mubr.bf16.gmra.mrb[152].mxu0 %v23203_v61  ;;  %8198 = vmatprep.subr.bf16.mxu1 %v19136_v37  ;;  %v23205_v37 = vld [vmem:[#allocation47_spill] sm:$0xff] }
 0x489   :  { %6967 = vmatmul.mubr.bf16.gmra.mrb[152].mxu1 %v23203_v61  ;;  %6750 = vmatprep.mubr.bf16.mxu0 %v23204_v20 }
 0x48a   :  { %6976 = vmatprep.mubr.bf16.mxu1 %v23204_v20  ;;  %7973 = vmatpush1.bf16.msra.mxu0 %v19131_v14  ;;  %v19149_v14 = vld [vmem:[#allocation8 + $0x9e0] ss:$16 sps:$4 sm:$0xff]  }
 0x48b   :  { %8199 = vmatpush1.bf16.msra.mxu1 %v19134_v30  ;;  %7974 = vmatprep.subr.bf16.mxu0 %v19139_v11  ;;  %v19152_v30 = vld [vmem:[#allocation8 + $0x9e8] ss:$16 sps:$4 sm:$0xff]   ;;  %v19157_v11 = vld [vmem:[#allocation8 + $0xa04] ss:$16 sps:$4 sm:$0xff]  }
 0x48c   :  { %8200 = vmatprep.subr.bf16.mxu1 %v19142_v33  ;;  %v19160_v33 = vld [vmem:[#allocation8 + $0xa0c] ss:$16 sps:$4 sm:$0xff]  }
 0x48e   :  { %7975 = vmatpush1.bf16.msra.mxu0 %v19137_v58  ;;  %v19155_v58 = vld [vmem:[#allocation8 + $0xa00] ss:$16 sps:$4 sm:$0xff]  }
 0x48f   :  { %8201 = vmatpush1.bf16.msra.mxu1 %v19140_v56  ;;  %7976 = vmatprep.subr.bf16.mxu0 %v19145_v55  ;;  %v19158_v56 = vld [vmem:[#allocation8 + $0xa08] ss:$16 sps:$4 sm:$0xff]   ;;  %v19163_v55 = vld [vmem:[#allocation8 + $0xa24] ss:$16 sps:$4 sm:$0xff]  }
 0x490   :  { %6751 = vmatmul.mubr.bf16.gmra.mrb[156].mxu0 %v23205_v37  ;;  %8202 = vmatprep.subr.bf16.mxu1 %v19148_v45  ;;  %v19166_v45 = vld [vmem:[#allocation8 + $0xa2c] ss:$16 sps:$4 sm:$0xff]  }
 0x491   :  { %6977 = vmatmul.mubr.bf16.gmra.mrb[156].mxu1 %v23205_v37  ;;  %7980 = vmatprep.mubr.bf16.mxu0 %v23186_v15 }
 0x492   :  { %7977 = vmatpush1.bf16.msra.mxu0 %v19143_v46  ;;  %8206 = vmatprep.mubr.bf16.mxu1 %v23186_v15  ;;  %v19161_v15 = vld [vmem:[#allocation8 + $0xa20] ss:$16 sps:$4 sm:$0xff]   ;;  %v19169_v46 = vld [vmem:[#allocation8 + $0xa44] ss:$16 sps:$4 sm:$0xff]  }
 0x493   :  { %8203 = vmatpush1.bf16.msra.mxu1 %v19146_v38  ;;  %7978 = vmatprep.subr.bf16.mxu0 %v19151_v2  ;;  %v19172_v38 = vld [vmem:[#allocation8 + $0xa4c] ss:$16 sps:$4 sm:$0xff]   ;;  %v19167_v2 = vld [vmem:[#allocation8 + $0xa40] ss:$16 sps:$4 sm:$0xff]  }
 0x494   :  { %8204 = vmatprep.subr.bf16.mxu1 %v19154_v47  ;;  %v19164_v47 = vld [vmem:[#allocation8 + $0xa28] ss:$16 sps:$4 sm:$0xff]  }
 0x496   :  { %7979 = vmatpush1.bf16.msra.mxu0 %v19149_v14  ;;  %v19170_v14 = vld [vmem:[#allocation8 + $0xa48] ss:$16 sps:$4 sm:$0xff]  }
 0x497   :  { %8205 = vmatpush1.bf16.msra.mxu1 %v19152_v30  ;;  %8061 = vmatprep.subr.bf16.mxu0 %v19157_v11  ;;  %v19175_v30 = vld [vmem:[#allocation8 + $0xa64] ss:$16 sps:$4 sm:$0xff]   ;;  %v19173_v11 = vld [vmem:[#allocation8 + $0xa60] ss:$16 sps:$4 sm:$0xff]  }
 0x498   :  { %8287 = vmatprep.subr.bf16.mxu1 %v19160_v33  ;;  %v19176_v33 = vld [vmem:[#allocation8 + $0xa68] ss:$16 sps:$4 sm:$0xff]  }
 0x499   :  { %7981 = vmatmul.mubr.bf16.vlgmr.msra.gmra.mrb[128].mxu0 %v23187_v5 }
 0x49a   :  { %8207 = vmatmul.mubr.bf16.vlgmr.msra.gmra.mrb[128].mxu1 %v23187_v5  ;;  %7990 = vmatprep.mubr.bf16.mxu0 %v21772_v27  ;;  %v19178_v5 = vld [vmem:[#allocation8 + $0xa6c] ss:$16 sps:$4 sm:$0xff]  }
 0x49b   :  { %8062 = vmatpush1.bf16.msra.mxu0 %v19155_v58  ;;  %8216 = vmatprep.mubr.bf16.mxu1 %v21772_v27  ;;  %v19181_v58 = vld [vmem:[#allocation8 + $0xa84] ss:$16 sps:$4 sm:$0xff]  }
 0x49c   :  { %8288 = vmatpush1.bf16.msra.mxu1 %v19158_v56  ;;  %8063 = vmatprep.subr.bf16.mxu0 %v19163_v55  ;;  %v19184_v56 = vld [vmem:[#allocation8 + $0xa8c] ss:$16 sps:$4 sm:$0xff]   ;;  %v19179_v55 = vld [vmem:[#allocation8 + $0xa80] ss:$16 sps:$4 sm:$0xff]  }
 0x49d   :  { %8289 = vmatprep.subr.bf16.mxu1 %v19166_v45  ;;  %v19182_v45 = vld [vmem:[#allocation8 + $0xa88] ss:$16 sps:$4 sm:$0xff]  }
 0x49f   :  { %8064 = vmatpush1.bf16.msra.mxu0 %v19161_v15  ;;  %v19187_v15 = vld [vmem:[#allocation8 + $0xaa4] ss:$16 sps:$4 sm:$0xff]  }
 0x4a0   :  { %8290 = vmatpush1.bf16.msra.mxu1 %v19164_v47  ;;  %8065 = vmatprep.subr.bf16.mxu0 %v19169_v46  ;;  %v19190_v47 = vld [vmem:[#allocation8 + $0xaac] ss:$16 sps:$4 sm:$0xff]   ;;  %v19185_v46 = vld [vmem:[#allocation8 + $0xaa0] ss:$16 sps:$4 sm:$0xff]  }
 0x4a1   :  { %7991 = vmatmul.mubr.bf16.gmra.mrb[132].mxu0 %v23188_v28  ;;  %8291 = vmatprep.subr.bf16.mxu1 %v19172_v38  ;;  %v19188_v38 = vld [vmem:[#allocation8 + $0xaa8] ss:$16 sps:$4 sm:$0xff]  }
 0x4a2   :  { %8217 = vmatmul.mubr.bf16.gmra.mrb[132].mxu1 %v23188_v28  ;;  %8000 = vmatprep.mubr.bf16.mxu0 %v21896_v21 }
 0x4a3   :  { %8066 = vmatpush1.bf16.msra.mxu0 %v19167_v2  ;;  %8226 = vmatprep.mubr.bf16.mxu1 %v21896_v21  ;;  %v19193_v2 = vld [vmem:[#allocation8 + $0xac4] ss:$16 sps:$4 sm:$0xff]  }
 0x4a4   :  { %8292 = vmatpush1.bf16.msra.mxu1 %v19170_v14  ;;  %8067 = vmatprep.subr.bf16.mxu0 %v19175_v30  ;;  %v19196_v14 = vld [vmem:[#allocation8 + $0xacc] ss:$16 sps:$4 sm:$0xff]   ;;  %v19191_v30 = vld [vmem:[#allocation8 + $0xac0] ss:$16 sps:$4 sm:$0xff]  }
 0x4a5   :  { %8293 = vmatprep.subr.bf16.mxu1 %v19178_v5  ;;  %v19194_v5 = vld [vmem:[#allocation8 + $0xac8] ss:$16 sps:$4 sm:$0xff]  }
 0x4a7   :  { %8068 = vmatpush1.bf16.msra.mxu0 %v19173_v11  ;;  %v19199_v11 = vld [vmem:[#allocation8 + $0xae4] ss:$16 sps:$4 sm:$0xff]  }
 0x4a8   :  { %8294 = vmatpush1.bf16.msra.mxu1 %v19176_v33  ;;  %8069 = vmatprep.subr.bf16.mxu0 %v19181_v58  ;;  %v19202_v33 = vld [vmem:[#allocation8 + $0xaec] ss:$16 sps:$4 sm:$0xff]   ;;  %v19197_v58 = vld [vmem:[#allocation8 + $0xae0] ss:$16 sps:$4 sm:$0xff]  }
 0x4a9   :  { %8001 = vmatmul.mubr.bf16.gmra.mrb[136].mxu0 %v21885_v25  ;;  %8295 = vmatprep.subr.bf16.mxu1 %v19184_v56  ;;  %v19200_v56 = vld [vmem:[#allocation8 + $0xae8] ss:$16 sps:$4 sm:$0xff]  }
 0x4aa   :  { %8227 = vmatmul.mubr.bf16.gmra.mrb[136].mxu1 %v21885_v25  ;;  %8010 = vmatprep.mubr.bf16.mxu0 %v22028_v57 }
 0x4ab   :  { %8070 = vmatpush1.bf16.msra.mxu0 %v19179_v55  ;;  %8236 = vmatprep.mubr.bf16.mxu1 %v22028_v57  ;;  %v19205_v55 = vld [vmem:[#allocation8 + $0xb04] ss:$16 sps:$4 sm:$0xff]  }
 0x4ac   :  { %8296 = vmatpush1.bf16.msra.mxu1 %v19182_v45  ;;  %8071 = vmatprep.subr.bf16.mxu0 %v19187_v15  ;;  %v19208_v45 = vld [vmem:[#allocation8 + $0xb0c] ss:$16 sps:$4 sm:$0xff]   ;;  %v19203_v15 = vld [vmem:[#allocation8 + $0xb00] ss:$16 sps:$4 sm:$0xff]  }
 0x4ad   :  { %8297 = vmatprep.subr.bf16.mxu1 %v19190_v47  ;;  %v19206_v47 = vld [vmem:[#allocation8 + $0xb08] ss:$16 sps:$4 sm:$0xff]  }
 0x4af   :  { %8072 = vmatpush1.bf16.msra.mxu0 %v19185_v46  ;;  %v19211_v46 = vld [vmem:[#allocation8 + $0xb24] ss:$16 sps:$4 sm:$0xff]  }
 0x4b0   :  { %8298 = vmatpush1.bf16.msra.mxu1 %v19188_v38  ;;  %8073 = vmatprep.subr.bf16.mxu0 %v19193_v2  ;;  %v19214_v38 = vld [vmem:[#allocation8 + $0xb2c] ss:$16 sps:$4 sm:$0xff]   ;;  %v19209_v2 = vld [vmem:[#allocation8 + $0xb20] ss:$16 sps:$4 sm:$0xff]  }
 0x4b1   :  { %8011 = vmatmul.mubr.bf16.gmra.mrb[140].mxu0 %v22017_v6  ;;  %8299 = vmatprep.subr.bf16.mxu1 %v19196_v14  ;;  %v19212_v14 = vld [vmem:[#allocation8 + $0xb28] ss:$16 sps:$4 sm:$0xff]  }
 0x4b2   :  { %8237 = vmatmul.mubr.bf16.gmra.mrb[140].mxu1 %v22017_v6  ;;  %8020 = vmatprep.mubr.bf16.mxu0 %v22144_v13 }
 0x4b3   :  { %8074 = vmatpush1.bf16.msra.mxu0 %v19191_v30  ;;  %8246 = vmatprep.mubr.bf16.mxu1 %v22144_v13  ;;  %v19217_v30 = vld [vmem:[#allocation8 + $0xb44] ss:$16 sps:$4 sm:$0xff]  }
 0x4b4   :  { %8300 = vmatpush1.bf16.msra.mxu1 %v19194_v5  ;;  %8075 = vmatprep.subr.bf16.mxu0 %v19199_v11  ;;  %v19220_v5 = vld [vmem:[#allocation8 + $0xb4c] ss:$16 sps:$4 sm:$0xff]   ;;  %v19215_v11 = vld [vmem:[#allocation8 + $0xb40] ss:$16 sps:$4 sm:$0xff]  }
 0x4b5   :  { %8301 = vmatprep.subr.bf16.mxu1 %v19202_v33  ;;  %v19218_v33 = vld [vmem:[#allocation8 + $0xb48] ss:$16 sps:$4 sm:$0xff]  }
 0x4b7   :  { %8076 = vmatpush1.bf16.msra.mxu0 %v19197_v58  ;;  %v19223_v58 = vld [vmem:[#allocation8 + $0xb64] ss:$16 sps:$4 sm:$0xff]  }
 0x4b8   :  { %8302 = vmatpush1.bf16.msra.mxu1 %v19200_v56  ;;  %8077 = vmatprep.subr.bf16.mxu0 %v19205_v55  ;;  %v19226_v56 = vld [vmem:[#allocation8 + $0xb6c] ss:$16 sps:$4 sm:$0xff]   ;;  %v19221_v55 = vld [vmem:[#allocation8 + $0xb60] ss:$16 sps:$4 sm:$0xff]  }
 0x4b9   :  { %8021 = vmatmul.mubr.bf16.gmra.mrb[144].mxu0 %v22137_v44  ;;  %8303 = vmatprep.subr.bf16.mxu1 %v19208_v45  ;;  %v19224_v45 = vld [vmem:[#allocation8 + $0xb68] ss:$16 sps:$4 sm:$0xff]  }
 0x4ba   :  { %8247 = vmatmul.mubr.bf16.gmra.mrb[144].mxu1 %v22137_v44  ;;  %8030 = vmatprep.mubr.bf16.mxu0 %v22236_v42 }
 0x4bb   :  { %8078 = vmatpush1.bf16.msra.mxu0 %v19203_v15  ;;  %8256 = vmatprep.mubr.bf16.mxu1 %v22236_v42  ;;  %v19229_v15 = vld [vmem:[#allocation8 + $0xb84] ss:$16 sps:$4 sm:$0xff]  }
 0x4bc   :  { %8304 = vmatpush1.bf16.msra.mxu1 %v19206_v47  ;;  %8079 = vmatprep.subr.bf16.mxu0 %v19211_v46  ;;  %v19232_v47 = vld [vmem:[#allocation8 + $0xb8c] ss:$16 sps:$4 sm:$0xff]   ;;  %v19227_v46 = vld [vmem:[#allocation8 + $0xb80] ss:$16 sps:$4 sm:$0xff]  }
 0x4bd   :  { %8305 = vmatprep.subr.bf16.mxu1 %v19214_v38  ;;  %v19230_v38 = vld [vmem:[#allocation8 + $0xb88] ss:$16 sps:$4 sm:$0xff]  }
 0x4bf   :  { %8080 = vmatpush1.bf16.msra.mxu0 %v19209_v2  ;;  %v19235_v2 = vld [vmem:[#allocation8 + $0xba4] ss:$16 sps:$4 sm:$0xff]  }
 0x4c0   :  { %8306 = vmatpush1.bf16.msra.mxu1 %v19212_v14  ;;  %8081 = vmatprep.subr.bf16.mxu0 %v19217_v30  ;;  %v19238_v14 = vld [vmem:[#allocation8 + $0xbac] ss:$16 sps:$4 sm:$0xff]   ;;  %v19233_v30 = vld [vmem:[#allocation8 + $0xba0] ss:$16 sps:$4 sm:$0xff]  }
 0x4c1   :  { %8031 = vmatmul.mubr.bf16.gmra.mrb[148].mxu0 %v23189_v19  ;;  %8307 = vmatprep.subr.bf16.mxu1 %v19220_v5  ;;  %v19236_v5 = vld [vmem:[#allocation8 + $0xba8] ss:$16 sps:$4 sm:$0xff]  }
 0x4c2   :  { %8257 = vmatmul.mubr.bf16.gmra.mrb[148].mxu1 %v23189_v19  ;;  %8040 = vmatprep.mubr.bf16.mxu0 %v23190_v41 }
 0x4c3   :  { %8082 = vmatpush1.bf16.msra.mxu0 %v19215_v11  ;;  %8266 = vmatprep.mubr.bf16.mxu1 %v23190_v41  ;;  %v19241_v11 = vld [vmem:[#allocation8 + $0xbc4] ss:$16 sps:$4 sm:$0xff]  }
 0x4c4   :  { %8308 = vmatpush1.bf16.msra.mxu1 %v19218_v33  ;;  %8083 = vmatprep.subr.bf16.mxu0 %v19223_v58  ;;  %v19244_v33 = vld [vmem:[#allocation8 + $0xbcc] ss:$16 sps:$4 sm:$0xff]   ;;  %v19239_v58 = vld [vmem:[#allocation8 + $0xbc0] ss:$16 sps:$4 sm:$0xff]  }
 0x4c5   :  { %8309 = vmatprep.subr.bf16.mxu1 %v19226_v56  ;;  %v19242_v56 = vld [vmem:[#allocation8 + $0xbc8] ss:$16 sps:$4 sm:$0xff]  }
 0x4c7   :  { %8084 = vmatpush1.bf16.msra.mxu0 %v19221_v55  ;;  %v19247_v55 = vld [vmem:[#allocation8 + $0xbe4] ss:$16 sps:$4 sm:$0xff]  }
 0x4c8   :  { %8310 = vmatpush1.bf16.msra.mxu1 %v19224_v45  ;;  %8085 = vmatprep.subr.bf16.mxu0 %v19229_v15  ;;  %v19250_v45 = vld [vmem:[#allocation8 + $0xbec] ss:$16 sps:$4 sm:$0xff]   ;;  %v19245_v15 = vld [vmem:[#allocation8 + $0xbe0] ss:$16 sps:$4 sm:$0xff]  }
 0x4c9   :  { %8041 = vmatmul.mubr.bf16.gmra.mrb[152].mxu0 %v23191_v22  ;;  %8311 = vmatprep.subr.bf16.mxu1 %v19232_v47  ;;  %v19248_v47 = vld [vmem:[#allocation8 + $0xbe8] ss:$16 sps:$4 sm:$0xff]  }
 0x4ca   :  { %8267 = vmatmul.mubr.bf16.gmra.mrb[152].mxu1 %v23191_v22  ;;  %8050 = vmatprep.mubr.bf16.mxu0 %v22367_v0 }
 0x4cb   :  { %8086 = vmatpush1.bf16.msra.mxu0 %v19227_v46  ;;  %8276 = vmatprep.mubr.bf16.mxu1 %v22367_v0  ;;  %v19253_v46 = vld [vmem:[#allocation8 + $0xc04] ss:$16 sps:$4 sm:$0xff]  }
 0x4cc   :  { %8312 = vmatpush1.bf16.msra.mxu1 %v19230_v38  ;;  %8087 = vmatprep.subr.bf16.mxu0 %v19235_v2  ;;  %v19256_v38 = vld [vmem:[#allocation8 + $0xc0c] ss:$16 sps:$4 sm:$0xff]   ;;  %v19251_v2 = vld [vmem:[#allocation8 + $0xc00] ss:$16 sps:$4 sm:$0xff]  }
 0x4cd   :  { %8313 = vmatprep.subr.bf16.mxu1 %v19238_v14  ;;  %v19254_v14 = vld [vmem:[#allocation8 + $0xc08] ss:$16 sps:$4 sm:$0xff]  }
 0x4cf   :  { %8088 = vmatpush1.bf16.msra.mxu0 %v19233_v30  ;;  %v19259_v30 = vld [vmem:[#allocation8 + $0xc24] ss:$16 sps:$4 sm:$0xff]  }
 0x4d0   :  { %8314 = vmatpush1.bf16.msra.mxu1 %v19236_v5  ;;  %8089 = vmatprep.subr.bf16.mxu0 %v19241_v11  ;;  %v19262_v5 = vld [vmem:[#allocation8 + $0xc2c] ss:$16 sps:$4 sm:$0xff]   ;;  %v19260_v11 = vld [vmem:[#allocation8 + $0xc28] ss:$16 sps:$4 sm:$0xff]  }
 0x4d1   :  { %8051 = vmatmul.mubr.bf16.gmra.mrb[156].mxu0 %v22363_v16  ;;  %8315 = vmatprep.subr.bf16.mxu1 %v19244_v33  ;;  %v19265_v33 = vld [vmem:[#allocation8 + $0xc44] ss:$16 sps:$4 sm:$0xff]  }
 0x4d2   :  { %8277 = vmatmul.mubr.bf16.gmra.mrb[156].mxu1 %v22363_v16  ;;  %8093 = vmatprep.mubr.bf16.mxu0 %v23192_v59 }
 0x4d3   :  { %8090 = vmatpush1.bf16.msra.mxu0 %v19239_v58  ;;  %8319 = vmatprep.mubr.bf16.mxu1 %v23192_v59  ;;  %v19257_v59 = vld [vmem:[#allocation8 + $0xc20] ss:$16 sps:$4 sm:$0xff]   ;;  %v19268_v58 = vld [vmem:[#allocation8 + $0xc4c] ss:$16 sps:$4 sm:$0xff]  }
 0x4d4   :  { %8316 = vmatpush1.bf16.msra.mxu1 %v19242_v56  ;;  %8091 = vmatprep.subr.bf16.mxu0 %v19247_v55  ;;  %v19263_v56 = vld [vmem:[#allocation8 + $0xc40] ss:$16 sps:$4 sm:$0xff]   ;;  %v19266_v55 = vld [vmem:[#allocation8 + $0xc48] ss:$16 sps:$4 sm:$0xff]  }
 0x4d5   :  { %8317 = vmatprep.subr.bf16.mxu1 %v19250_v45  ;;  %v19271_v45 = vld [vmem:[#allocation8 + $0xc64] ss:$16 sps:$4 sm:$0xff]  }
 0x4d7   :  { %8092 = vmatpush1.bf16.msra.mxu0 %v19245_v15  ;;  %v19269_v15 = vld [vmem:[#allocation8 + $0xc60] ss:$16 sps:$4 sm:$0xff]  }
 0x4d8   :  { %8318 = vmatpush1.bf16.msra.mxu1 %v19248_v47  ;;  %9426 = vmatprep.subr.bf16.mxu0 %v19253_v46  ;;  %v19272_v47 = vld [vmem:[#allocation8 + $0xc68] ss:$16 sps:$4 sm:$0xff]   ;;  %v19277_v46 = vld [vmem:[#allocation8 + $0xc84] ss:$16 sps:$4 sm:$0xff]  }
 0x4d9   :  { %9652 = vmatprep.subr.bf16.mxu1 %v19256_v38  ;;  %v19280_v38 = vld [vmem:[#allocation8 + $0xc8c] ss:$16 sps:$4 sm:$0xff]  }
 0x4da   :  { %8094 = vmatmul.mubr.bf16.vlgmr.msra.gmra.mrb[128].mxu0 %v23193_v53 }
 0x4db   :  { %8320 = vmatmul.mubr.bf16.vlgmr.msra.gmra.mrb[128].mxu1 %v23193_v53  ;;  %8103 = vmatprep.mubr.bf16.mxu0 %v23194_v62  ;;  %v19274_v53 = vld [vmem:[#allocation8 + $0xc6c] ss:$16 sps:$4 sm:$0xff]  }
 0x4dc   :  { %8329 = vmatprep.mubr.bf16.mxu1 %v23194_v62  ;;  %9427 = vmatpush1.bf16.msra.mxu0 %v19251_v2  ;;  %v19275_v2 = vld [vmem:[#allocation8 + $0xc80] ss:$16 sps:$4 sm:$0xff]  }
 0x4dd   :  { %9653 = vmatpush1.bf16.msra.mxu1 %v19254_v14  ;;  %9428 = vmatprep.subr.bf16.mxu0 %v19259_v30  ;;  %v19278_v14 = vld [vmem:[#allocation8 + $0xc88] ss:$16 sps:$4 sm:$0xff]   ;;  %v19283_v30 = vld [vmem:[#allocation8 + $0xca4] ss:$16 sps:$4 sm:$0xff]  }
 0x4de   :  { %9654 = vmatprep.subr.bf16.mxu1 %v19262_v5  ;;  %v19286_v5 = vld [vmem:[#allocation8 + $0xcac] ss:$16 sps:$4 sm:$0xff]  }
 0x4e0   :  { %9429 = vmatpush1.bf16.msra.mxu0 %v19257_v59  ;;  %v19281_v59 = vld [vmem:[#allocation8 + $0xca0] ss:$16 sps:$4 sm:$0xff]  }
 0x4e1   :  { %9655 = vmatpush1.bf16.msra.mxu1 %v19260_v11  ;;  %9430 = vmatprep.subr.bf16.mxu0 %v19265_v33  ;;  %v19284_v11 = vld [vmem:[#allocation8 + $0xca8] ss:$16 sps:$4 sm:$0xff]   ;;  %v19289_v33 = vld [vmem:[#allocation8 + $0xcc4] ss:$16 sps:$4 sm:$0xff]  }
 0x4e2   :  { %8104 = vmatmul.mubr.bf16.gmra.mrb[132].mxu0 %v23195_v51  ;;  %9656 = vmatprep.subr.bf16.mxu1 %v19268_v58  ;;  %v19292_v58 = vld [vmem:[#allocation8 + $0xccc] ss:$16 sps:$4 sm:$0xff]  }
 0x4e3   :  { %8330 = vmatmul.mubr.bf16.gmra.mrb[132].mxu1 %v23195_v51  ;;  %8113 = vmatprep.mubr.bf16.mxu0 %v23196_v24 }
 0x4e4   :  { %8339 = vmatprep.mubr.bf16.mxu1 %v23196_v24  ;;  %9431 = vmatpush1.bf16.msra.mxu0 %v19263_v56  ;;  %v19287_v56 = vld [vmem:[#allocation8 + $0xcc0] ss:$16 sps:$4 sm:$0xff]  }
 0x4e5   :  { %9657 = vmatpush1.bf16.msra.mxu1 %v19266_v55  ;;  %9432 = vmatprep.subr.bf16.mxu0 %v19271_v45  ;;  %v19290_v55 = vld [vmem:[#allocation8 + $0xcc8] ss:$16 sps:$4 sm:$0xff]   ;;  %v19295_v45 = vld [vmem:[#allocation8 + $0xce4] ss:$16 sps:$4 sm:$0xff]  }
 0x4e6   :  { %9658 = vmatprep.subr.bf16.mxu1 %v19274_v53  ;;  %v19298_v53 = vld [vmem:[#allocation8 + $0xcec] ss:$16 sps:$4 sm:$0xff]  }
 0x4e8   :  { %9433 = vmatpush1.bf16.msra.mxu0 %v19269_v15  ;;  %v19293_v15 = vld [vmem:[#allocation8 + $0xce0] ss:$16 sps:$4 sm:$0xff]  }
 0x4e9   :  { %9659 = vmatpush1.bf16.msra.mxu1 %v19272_v47  ;;  %9434 = vmatprep.subr.bf16.mxu0 %v19277_v46  ;;  %v19296_v47 = vld [vmem:[#allocation8 + $0xce8] ss:$16 sps:$4 sm:$0xff]   ;;  %v19301_v46 = vld [vmem:[#allocation8 + $0xd04] ss:$16 sps:$4 sm:$0xff]  }
 0x4ea   :  { %8114 = vmatmul.mubr.bf16.gmra.mrb[136].mxu0 %v23197_v60  ;;  %9660 = vmatprep.subr.bf16.mxu1 %v19280_v38  ;;  %v19304_v38 = vld [vmem:[#allocation8 + $0xd0c] ss:$16 sps:$4 sm:$0xff]  }
 0x4eb   :  { %8340 = vmatmul.mubr.bf16.gmra.mrb[136].mxu1 %v23197_v60  ;;  %8123 = vmatprep.mubr.bf16.mxu0 %v23198_v50 }
 0x4ec   :  { %8349 = vmatprep.mubr.bf16.mxu1 %v23198_v50  ;;  %9435 = vmatpush1.bf16.msra.mxu0 %v19275_v2  ;;  %v19299_v2 = vld [vmem:[#allocation8 + $0xd00] ss:$16 sps:$4 sm:$0xff]  }
 0x4ed   :  { %9661 = vmatpush1.bf16.msra.mxu1 %v19278_v14  ;;  %9436 = vmatprep.subr.bf16.mxu0 %v19283_v30  ;;  %v19302_v14 = vld [vmem:[#allocation8 + $0xd08] ss:$16 sps:$4 sm:$0xff]   ;;  %v19307_v30 = vld [vmem:[#allocation8 + $0xd24] ss:$16 sps:$4 sm:$0xff]  }
 0x4ee   :  { %9662 = vmatprep.subr.bf16.mxu1 %v19286_v5  ;;  %v19310_v5 = vld [vmem:[#allocation8 + $0xd2c] ss:$16 sps:$4 sm:$0xff]  }
 0x4f0   :  { %9437 = vmatpush1.bf16.msra.mxu0 %v19281_v59  ;;  %v19305_v59 = vld [vmem:[#allocation8 + $0xd20] ss:$16 sps:$4 sm:$0xff]  }
 0x4f1   :  { %9663 = vmatpush1.bf16.msra.mxu1 %v19284_v11  ;;  %9438 = vmatprep.subr.bf16.mxu0 %v19289_v33  ;;  %v19308_v11 = vld [vmem:[#allocation8 + $0xd28] ss:$16 sps:$4 sm:$0xff]   ;;  %v19313_v33 = vld [vmem:[#allocation8 + $0xd44] ss:$16 sps:$4 sm:$0xff]  }
 0x4f2   :  { %8124 = vmatmul.mubr.bf16.gmra.mrb[140].mxu0 %v23199_v17  ;;  %9664 = vmatprep.subr.bf16.mxu1 %v19292_v58  ;;  %v19316_v58 = vld [vmem:[#allocation8 + $0xd4c] ss:$16 sps:$4 sm:$0xff]  }
 0x4f3   :  { %8350 = vmatmul.mubr.bf16.gmra.mrb[140].mxu1 %v23199_v17  ;;  %8133 = vmatprep.mubr.bf16.mxu0 %v23200_v40 }
 0x4f4   :  { %8359 = vmatprep.mubr.bf16.mxu1 %v23200_v40  ;;  %9439 = vmatpush1.bf16.msra.mxu0 %v19287_v56  ;;  %v19311_v56 = vld [vmem:[#allocation8 + $0xd40] ss:$16 sps:$4 sm:$0xff]  }
 0x4f5   :  { %9665 = vmatpush1.bf16.msra.mxu1 %v19290_v55  ;;  %9440 = vmatprep.subr.bf16.mxu0 %v19295_v45  ;;  %v19314_v55 = vld [vmem:[#allocation8 + $0xd48] ss:$16 sps:$4 sm:$0xff]   ;;  %v19319_v45 = vld [vmem:[#allocation8 + $0xd64] ss:$16 sps:$4 sm:$0xff]  }
 0x4f6   :  { %9666 = vmatprep.subr.bf16.mxu1 %v19298_v53  ;;  %v19322_v53 = vld [vmem:[#allocation8 + $0xd6c] ss:$16 sps:$4 sm:$0xff]  }
 0x4f8   :  { %9441 = vmatpush1.bf16.msra.mxu0 %v19293_v15  ;;  %v19317_v15 = vld [vmem:[#allocation8 + $0xd60] ss:$16 sps:$4 sm:$0xff]  }
 0x4f9   :  { %9667 = vmatpush1.bf16.msra.mxu1 %v19296_v47  ;;  %9442 = vmatprep.subr.bf16.mxu0 %v19301_v46  ;;  %v19320_v47 = vld [vmem:[#allocation8 + $0xd68] ss:$16 sps:$4 sm:$0xff]   ;;  %v19325_v46 = vld [vmem:[#allocation8 + $0xd84] ss:$16 sps:$4 sm:$0xff]  }
 0x4fa   :  { %8134 = vmatmul.mubr.bf16.gmra.mrb[144].mxu0 %v23201_v23  ;;  %9668 = vmatprep.subr.bf16.mxu1 %v19304_v38  ;;  %v19328_v38 = vld [vmem:[#allocation8 + $0xd8c] ss:$16 sps:$4 sm:$0xff]  }
 0x4fb   :  { %8360 = vmatmul.mubr.bf16.gmra.mrb[144].mxu1 %v23201_v23  ;;  %8143 = vmatprep.mubr.bf16.mxu0 %v23202_v31 }
 0x4fc   :  { %8369 = vmatprep.mubr.bf16.mxu1 %v23202_v31  ;;  %9443 = vmatpush1.bf16.msra.mxu0 %v19299_v2  ;;  %v19323_v2 = vld [vmem:[#allocation8 + $0xd80] ss:$16 sps:$4 sm:$0xff]  }
 0x4fd   :  { %9669 = vmatpush1.bf16.msra.mxu1 %v19302_v14  ;;  %9444 = vmatprep.subr.bf16.mxu0 %v19307_v30  ;;  %v19326_v14 = vld [vmem:[#allocation8 + $0xd88] ss:$16 sps:$4 sm:$0xff]   ;;  %v19331_v30 = vld [vmem:[#allocation8 + $0xda4] ss:$16 sps:$4 sm:$0xff]  }
 0x4fe   :  { %9670 = vmatprep.subr.bf16.mxu1 %v19310_v5  ;;  %v19334_v5 = vld [vmem:[#allocation8 + $0xdac] ss:$16 sps:$4 sm:$0xff]  }
 0x500   :  { %9445 = vmatpush1.bf16.msra.mxu0 %v19305_v59  ;;  %v19329_v59 = vld [vmem:[#allocation8 + $0xda0] ss:$16 sps:$4 sm:$0xff]  }
 0x501   :  { %9671 = vmatpush1.bf16.msra.mxu1 %v19308_v11  ;;  %9446 = vmatprep.subr.bf16.mxu0 %v19313_v33  ;;  %v19332_v11 = vld [vmem:[#allocation8 + $0xda8] ss:$16 sps:$4 sm:$0xff]   ;;  %v19337_v33 = vld [vmem:[#allocation8 + $0xdc4] ss:$16 sps:$4 sm:$0xff]  }
 0x502   :  { %8144 = vmatmul.mubr.bf16.gmra.mrb[148].mxu0 %v23203_v61  ;;  %9672 = vmatprep.subr.bf16.mxu1 %v19316_v58  ;;  %v19340_v58 = vld [vmem:[#allocation8 + $0xdcc] ss:$16 sps:$4 sm:$0xff]  }
 0x503   :  { %8370 = vmatmul.mubr.bf16.gmra.mrb[148].mxu1 %v23203_v61  ;;  %8153 = vmatprep.mubr.bf16.mxu0 %v23204_v20 }
 0x504   :  { %8379 = vmatprep.mubr.bf16.mxu1 %v23204_v20  ;;  %9447 = vmatpush1.bf16.msra.mxu0 %v19311_v56  ;;  %v19335_v56 = vld [vmem:[#allocation8 + $0xdc0] ss:$16 sps:$4 sm:$0xff]  }
 0x505   :  { %9673 = vmatpush1.bf16.msra.mxu1 %v19314_v55  ;;  %9448 = vmatprep.subr.bf16.mxu0 %v19319_v45  ;;  %v19338_v55 = vld [vmem:[#allocation8 + $0xdc8] ss:$16 sps:$4 sm:$0xff]   ;;  %v19343_v45 = vld [vmem:[#allocation8 + $0xde4] ss:$16 sps:$4 sm:$0xff]  }
 0x506   :  { %9674 = vmatprep.subr.bf16.mxu1 %v19322_v53  ;;  %v19346_v53 = vld [vmem:[#allocation8 + $0xdec] ss:$16 sps:$4 sm:$0xff]  }
 0x508   :  { %9449 = vmatpush1.bf16.msra.mxu0 %v19317_v15  ;;  %v23206_v15 = vld [vmem:[#allocation29_spill] sm:$0xff] }
 0x509   :  { %9675 = vmatpush1.bf16.msra.mxu1 %v19320_v47  ;;  %9450 = vmatprep.subr.bf16.mxu0 %v19325_v46  ;;  %v19341_v47 = vld [vmem:[#allocation8 + $0xde0] ss:$16 sps:$4 sm:$0xff]   ;;  %v19344_v46 = vld [vmem:[#allocation8 + $0xde8] ss:$16 sps:$4 sm:$0xff]  }
 0x50a   :  { %8154 = vmatmul.mubr.bf16.gmra.mrb[152].mxu0 %v23205_v37  ;;  %9676 = vmatprep.subr.bf16.mxu1 %v19328_v38  ;;  %v19349_v38 = vld [vmem:[#allocation8 + $0xe04] ss:$16 sps:$4 sm:$0xff]  }
 0x50b   :  { %8380 = vmatmul.mubr.bf16.gmra.mrb[152].mxu1 %v23205_v37  ;;  %8163 = vmatprep.mubr.bf16.mxu0 %v22371_v63 }
 0x50c   :  { %8389 = vmatprep.mubr.bf16.mxu1 %v22371_v63  ;;  %9451 = vmatpush1.bf16.msra.mxu0 %v19323_v2  ;;  %v19352_v2 = vld [vmem:[#allocation8 + $0xe0c] ss:$16 sps:$4 sm:$0xff]  }
 0x50d   :  { %9677 = vmatpush1.bf16.msra.mxu1 %v19326_v14  ;;  %9452 = vmatprep.subr.bf16.mxu0 %v19331_v30  ;;  %v19347_v14 = vld [vmem:[#allocation8 + $0xe00] ss:$16 sps:$4 sm:$0xff]   ;;  %v19350_v30 = vld [vmem:[#allocation8 + $0xe08] ss:$16 sps:$4 sm:$0xff]  }
 0x50e   :  { %9678 = vmatprep.subr.bf16.mxu1 %v19334_v5  ;;  %v19355_v5 = vld [vmem:[#allocation8 + $0xe24] ss:$16 sps:$4 sm:$0xff]  }
 0x510   :  { %9453 = vmatpush1.bf16.msra.mxu0 %v19329_v59  ;;  %v23207_v59 = vld [vmem:[#allocation28_spill] sm:$0xff] }
 0x511   :  { %9679 = vmatpush1.bf16.msra.mxu1 %v19332_v11  ;;  %9454 = vmatprep.subr.bf16.mxu0 %v19337_v33  ;;  %v19358_v11 = vld [vmem:[#allocation8 + $0xe2c] ss:$16 sps:$4 sm:$0xff]  }
 0x512   :  { %8164 = vmatmul.mubr.bf16.gmra.mrb[156].mxu0 %v22365_v10  ;;  %9680 = vmatprep.subr.bf16.mxu1 %v19340_v58  ;;  %v23208_v33 = vld [vmem:[#allocation34_spill] sm:$0xff] }
 0x513   :  { %8390 = vmatmul.mubr.bf16.gmra.mrb[156].mxu1 %v22365_v10  ;;  %9458 = vmatprep.mubr.bf16.mxu0 %v23206_v15  ;;  %v19353_v58 = vld [vmem:[#allocation8 + $0xe20] ss:$16 sps:$4 sm:$0xff]  }
 0x514   :  { %9455 = vmatpush1.bf16.msra.mxu0 %v19335_v56  ;;  %9684 = vmatprep.mubr.bf16.mxu1 %v23206_v15  ;;  %v19356_v56 = vld [vmem:[#allocation8 + $0xe28] ss:$16 sps:$4 sm:$0xff]  }
 0x515   :  { %9681 = vmatpush1.bf16.msra.mxu1 %v19338_v55  ;;  %9456 = vmatprep.subr.bf16.mxu0 %v19343_v45  ;;  %v19361_v55 = vld [vmem:[#allocation8 + $0xe44] ss:$16 sps:$4 sm:$0xff]   ;;  %v19364_v45 = vld [vmem:[#allocation8 + $0xe4c] ss:$16 sps:$4 sm:$0xff]   ;;  %v19362_v15 = vld [vmem:[#allocation8 + $0xe48] ss:$16 sps:$4 sm:$0xff]  }
 0x516   :  { %9682 = vmatprep.subr.bf16.mxu1 %v19346_v53  ;;  %v19359_v53 = vld [vmem:[#allocation8 + $0xe40] ss:$16 sps:$4 sm:$0xff]  }
 0x518   :  { %9457 = vmatpush1.bf16.msra.mxu0 %v19341_v47  ;;  %v19367_v47 = vld [vmem:[#allocation8 + $0xe64] ss:$16 sps:$4 sm:$0xff]  }
 0x519   :  { %9683 = vmatpush1.bf16.msra.mxu1 %v19344_v46  ;;  %9539 = vmatprep.subr.bf16.mxu0 %v19349_v38  ;;  %v23209_v46 = vld [vmem:[#allocation33_spill] sm:$0xff]  ;;  %v19370_v38 = vld [vmem:[#allocation8 + $0xe6c] ss:$16 sps:$4 sm:$0xff]  }
 0x51a   :  { %9765 = vmatprep.subr.bf16.mxu1 %v19352_v2  ;;  %v23210_v2 = vld [vmem:[#allocation114_spill] sm:$0xff] }
 0x51b   :  { %9459 = vmatmul.mubr.bf16.vlgmr.msra.gmra.mrb[128].mxu0 %v23207_v59 }
 0x51c   :  { %9685 = vmatmul.mubr.bf16.vlgmr.msra.gmra.mrb[128].mxu1 %v23207_v59  ;;  %9468 = vmatprep.mubr.bf16.mxu0 %v23208_v33  ;;  %v19376_v59 = vld [vmem:[#allocation8 + $0xe8c] ss:$16 sps:$4 sm:$0xff]  }
 0x51d   :  { %9540 = vmatpush1.bf16.msra.mxu0 %v19347_v14  ;;  %9694 = vmatprep.mubr.bf16.mxu1 %v23208_v33  ;;  %v19365_v14 = vld [vmem:[#allocation8 + $0xe60] ss:$16 sps:$4 sm:$0xff]   ;;  %v19374_v33 = vld [vmem:[#allocation8 + $0xe88] ss:$16 sps:$4 sm:$0xff]  }
 0x51e   :  { %9766 = vmatpush1.bf16.msra.mxu1 %v19350_v30  ;;  %9541 = vmatprep.subr.bf16.mxu0 %v19355_v5  ;;  %v19368_v30 = vld [vmem:[#allocation8 + $0xe68] ss:$16 sps:$4 sm:$0xff]   ;;  %v19373_v5 = vld [vmem:[#allocation8 + $0xe84] ss:$16 sps:$4 sm:$0xff]  }
 0x51f   :  { %9767 = vmatprep.subr.bf16.mxu1 %v19358_v11  ;;  %v19371_v11 = vld [vmem:[#allocation8 + $0xe80] ss:$16 sps:$4 sm:$0xff]  }
 0x521   :  { %9542 = vmatpush1.bf16.msra.mxu0 %v19353_v58  ;;  %v19379_v58 = vld [vmem:[#allocation8 + $0xea4] ss:$16 sps:$4 sm:$0xff]  }
 0x522   :  { %9768 = vmatpush1.bf16.msra.mxu1 %v19356_v56  ;;  %9543 = vmatprep.subr.bf16.mxu0 %v19361_v55  ;;  %v23211_v56 = vld [vmem:[#allocation113_spill] sm:$0xff]  ;;  %v19382_v55 = vld [vmem:[#allocation8 + $0xeac] ss:$16 sps:$4 sm:$0xff]  }
 0x523   :  { %9469 = vmatmul.mubr.bf16.gmra.mrb[132].mxu0 %v23209_v46  ;;  %9769 = vmatprep.subr.bf16.mxu1 %v19364_v45  ;;  %v23212_v45 = vld [vmem:[#allocation38_spill] sm:$0xff] }
 0x524   :  { %9695 = vmatmul.mubr.bf16.gmra.mrb[132].mxu1 %v23209_v46  ;;  %9478 = vmatprep.mubr.bf16.mxu0 %v23210_v2  ;;  %v19388_v46 = vld [vmem:[#allocation8 + $0xecc] ss:$16 sps:$4 sm:$0xff]  }
 0x525   :  { %9544 = vmatpush1.bf16.msra.mxu0 %v19359_v53  ;;  %9704 = vmatprep.mubr.bf16.mxu1 %v23210_v2  ;;  %v19377_v53 = vld [vmem:[#allocation8 + $0xea0] ss:$16 sps:$4 sm:$0xff]   ;;  %v19386_v2 = vld [vmem:[#allocation8 + $0xec8] ss:$16 sps:$4 sm:$0xff]  }
 0x526   :  { %9770 = vmatpush1.bf16.msra.mxu1 %v19362_v15  ;;  %9545 = vmatprep.subr.bf16.mxu0 %v19367_v47  ;;  %v19380_v15 = vld [vmem:[#allocation8 + $0xea8] ss:$16 sps:$4 sm:$0xff]   ;;  %v19385_v47 = vld [vmem:[#allocation8 + $0xec4] ss:$16 sps:$4 sm:$0xff]  }
 0x527   :  { %9771 = vmatprep.subr.bf16.mxu1 %v19370_v38  ;;  %v19383_v38 = vld [vmem:[#allocation8 + $0xec0] ss:$16 sps:$4 sm:$0xff]  }
 0x529   :  { %9546 = vmatpush1.bf16.msra.mxu0 %v19365_v14  ;;  %v19391_v14 = vld [vmem:[#allocation8 + $0xee4] ss:$16 sps:$4 sm:$0xff]  }
 0x52a   :  { %9772 = vmatpush1.bf16.msra.mxu1 %v19368_v30  ;;  %9547 = vmatprep.subr.bf16.mxu0 %v19373_v5  ;;  %v23213_v30 = vld [vmem:[#allocation37_spill] sm:$0xff]  ;;  %v19394_v5 = vld [vmem:[#allocation8 + $0xeec] ss:$16 sps:$4 sm:$0xff]  }
 0x52b   :  { %9479 = vmatmul.mubr.bf16.gmra.mrb[136].mxu0 %v23211_v56  ;;  %9773 = vmatprep.subr.bf16.mxu1 %v19376_v59  ;;  %v23214_v59 = vld [vmem:[#allocation40_spill] sm:$0xff] }
 0x52c   :  { %9705 = vmatmul.mubr.bf16.gmra.mrb[136].mxu1 %v23211_v56  ;;  %9488 = vmatprep.mubr.bf16.mxu0 %v23212_v45  ;;  %v19400_v56 = vld [vmem:[#allocation8 + $0xf0c] ss:$16 sps:$4 sm:$0xff]  }
 0x52d   :  { %9548 = vmatpush1.bf16.msra.mxu0 %v19371_v11  ;;  %9714 = vmatprep.mubr.bf16.mxu1 %v23212_v45  ;;  %v19389_v11 = vld [vmem:[#allocation8 + $0xee0] ss:$16 sps:$4 sm:$0xff]   ;;  %v19398_v45 = vld [vmem:[#allocation8 + $0xf08] ss:$16 sps:$4 sm:$0xff]  }
 0x52e   :  { %9774 = vmatpush1.bf16.msra.mxu1 %v19374_v33  ;;  %9549 = vmatprep.subr.bf16.mxu0 %v19379_v58  ;;  %v19392_v33 = vld [vmem:[#allocation8 + $0xee8] ss:$16 sps:$4 sm:$0xff]   ;;  %v19397_v58 = vld [vmem:[#allocation8 + $0xf04] ss:$16 sps:$4 sm:$0xff]  }
 0x52f   :  { %9775 = vmatprep.subr.bf16.mxu1 %v19382_v55  ;;  %v19395_v55 = vld [vmem:[#allocation8 + $0xf00] ss:$16 sps:$4 sm:$0xff]  }
 0x531   :  { %9550 = vmatpush1.bf16.msra.mxu0 %v19377_v53  ;;  %v19403_v53 = vld [vmem:[#allocation8 + $0xf24] ss:$16 sps:$4 sm:$0xff]  }
 0x532   :  { %9776 = vmatpush1.bf16.msra.mxu1 %v19380_v15  ;;  %9551 = vmatprep.subr.bf16.mxu0 %v19385_v47  ;;  %v23215_v15 = vld [vmem:[#allocation39_spill] sm:$0xff]  ;;  %v19406_v47 = vld [vmem:[#allocation8 + $0xf2c] ss:$16 sps:$4 sm:$0xff]  }
 0x533   :  { %9489 = vmatmul.mubr.bf16.gmra.mrb[140].mxu0 %v23213_v30  ;;  %9777 = vmatprep.subr.bf16.mxu1 %v19388_v46  ;;  %v23216_v46 = vld [vmem:[#allocation45_spill] sm:$0xff] }
 0x534   :  { %9715 = vmatmul.mubr.bf16.gmra.mrb[140].mxu1 %v23213_v30  ;;  %9498 = vmatprep.mubr.bf16.mxu0 %v23214_v59  ;;  %v19412_v30 = vld [vmem:[#allocation8 + $0xf4c] ss:$16 sps:$4 sm:$0xff]  }
 0x535   :  { %9552 = vmatpush1.bf16.msra.mxu0 %v19383_v38  ;;  %9724 = vmatprep.mubr.bf16.mxu1 %v23214_v59  ;;  %v19401_v38 = vld [vmem:[#allocation8 + $0xf20] ss:$16 sps:$4 sm:$0xff]   ;;  %v19410_v59 = vld [vmem:[#allocation8 + $0xf48] ss:$16 sps:$4 sm:$0xff]  }
 0x536   :  { %9778 = vmatpush1.bf16.msra.mxu1 %v19386_v2  ;;  %9553 = vmatprep.subr.bf16.mxu0 %v19391_v14  ;;  %v19404_v2 = vld [vmem:[#allocation8 + $0xf28] ss:$16 sps:$4 sm:$0xff]   ;;  %v19409_v14 = vld [vmem:[#allocation8 + $0xf44] ss:$16 sps:$4 sm:$0xff]  }
 0x537   :  { %9779 = vmatprep.subr.bf16.mxu1 %v19394_v5  ;;  %v19407_v5 = vld [vmem:[#allocation8 + $0xf40] ss:$16 sps:$4 sm:$0xff]  }
 0x539   :  { %9554 = vmatpush1.bf16.msra.mxu0 %v19389_v11  ;;  %v19415_v11 = vld [vmem:[#allocation8 + $0xf64] ss:$16 sps:$4 sm:$0xff]  }
 0x53a   :  { %9780 = vmatpush1.bf16.msra.mxu1 %v19392_v33  ;;  %9555 = vmatprep.subr.bf16.mxu0 %v19397_v58  ;;  %v23217_v33 = vld [vmem:[#allocation44_spill] sm:$0xff] }
 0x53b   :  { %9499 = vmatmul.mubr.bf16.gmra.mrb[144].mxu0 %v23215_v15  ;;  %9781 = vmatprep.subr.bf16.mxu1 %v19400_v56  ;;  %v19418_v58 = vld [vmem:[#allocation8 + $0xf6c] ss:$16 sps:$4 sm:$0xff]   ;;  %v19413_v56 = vld [vmem:[#allocation8 + $0xf60] ss:$16 sps:$4 sm:$0xff]  }
 0x53c   :  { %9725 = vmatmul.mubr.bf16.gmra.mrb[144].mxu1 %v23215_v15  ;;  %9508 = vmatprep.mubr.bf16.mxu0 %v23216_v46  ;;  %v19419_v15 = vld [vmem:[#allocation8 + $0xf80] ss:$16 sps:$4 sm:$0xff]  }
 0x53d   :  { %9556 = vmatpush1.bf16.msra.mxu0 %v19395_v55  ;;  %9734 = vmatprep.mubr.bf16.mxu1 %v23216_v46  ;;  %v19416_v55 = vld [vmem:[#allocation8 + $0xf68] ss:$16 sps:$4 sm:$0xff]   ;;  %v16380_v46 = vcombine.high %v22369_v49, %v23184_v34 }
 0x53e   :  { %9782 = vmatpush1.bf16.msra.mxu1 %v19398_v45  ;;  %9557 = vmatprep.subr.bf16.mxu0 %v19403_v53  ;;  %v19421_v45 = vld [vmem:[#allocation8 + $0xf84] ss:$16 sps:$4 sm:$0xff]   ;;  %v19424_v53 = vld [vmem:[#allocation8 + $0xf8c] ss:$16 sps:$4 sm:$0xff]  }
 0x53f   :  { %9783 = vmatprep.subr.bf16.mxu1 %v19406_v47  ;;  %v19422_v47 = vld [vmem:[#allocation8 + $0xf88] ss:$16 sps:$4 sm:$0xff]  }
 0x541   :  { %9558 = vmatpush1.bf16.msra.mxu0 %v19401_v38  ;;  %v19427_v38 = vld [vmem:[#allocation8 + $0xfa4] ss:$16 sps:$4 sm:$0xff]  }
 0x542   :  { %9784 = vmatpush1.bf16.msra.mxu1 %v19404_v2  ;;  %9559 = vmatprep.subr.bf16.mxu0 %v19409_v14  ;;  %v19425_v2 = vld [vmem:[#allocation8 + $0xfa0] ss:$16 sps:$4 sm:$0xff]   ;;  %v19428_v14 = vld [vmem:[#allocation8 + $0xfa8] ss:$16 sps:$4 sm:$0xff]  }
 0x543   :  { %9509 = vmatmul.mubr.bf16.gmra.mrb[148].mxu0 %v23217_v33  ;;  %9785 = vmatprep.subr.bf16.mxu1 %v19412_v30  ;;  %v19433_v30 = vld [vmem:[#allocation8 + $0xfc4] ss:$16 sps:$4 sm:$0xff]  }
 0x544   :  { %9735 = vmatmul.mubr.bf16.gmra.mrb[148].mxu1 %v23217_v33  ;;  %9518 = vmatprep.mubr.bf16.mxu0 %v22347_v43  ;;  %v19434_v33 = vld [vmem:[#allocation8 + $0xfc8] ss:$16 sps:$4 sm:$0xff]  }
 0x545   :  { %9560 = vmatpush1.bf16.msra.mxu0 %v19407_v5  ;;  %9744 = vmatprep.mubr.bf16.mxu1 %v22347_v43  ;;  %v19430_v43 = vld [vmem:[#allocation8 + $0xfac] ss:$16 sps:$4 sm:$0xff]  }
 0x546   :  { %9786 = vmatpush1.bf16.msra.mxu1 %v19410_v59  ;;  %9561 = vmatprep.subr.bf16.mxu0 %v19415_v11  ;;  %v19436_v5 = vld [vmem:[#allocation8 + $0xfcc] ss:$16 sps:$4 sm:$0xff]   ;;  %v16379_v59 = vcombine.low %v22369_v49, %v23184_v34  ;;  %v19431_v11 = vld [vmem:[#allocation8 + $0xfc0] ss:$16 sps:$4 sm:$0xff]  }
 0x547   :  { %9787 = vmatprep.subr.bf16.mxu1 %v19418_v58  ;;  %v19439_v58 = vld [vmem:[#allocation8 + $0xfe4] ss:$16 sps:$4 sm:$0xff]   ;;  %v19448_v49 = vld [vmem:[#allocation8 + $0x100c] ss:$16 sps:$4 sm:$0xff]  }
 0x549   :  { %9562 = vmatpush1.bf16.msra.mxu0 %v19413_v56  ;;  %v19437_v56 = vld [vmem:[#allocation8 + $0xfe0] ss:$16 sps:$4 sm:$0xff]  }
 0x54a   :  { %9788 = vmatpush1.bf16.msra.mxu1 %v19416_v55  ;;  %9563 = vmatprep.subr.bf16.mxu0 %v19421_v45  ;;  %v19440_v55 = vld [vmem:[#allocation8 + $0xfe8] ss:$16 sps:$4 sm:$0xff]   ;;  %v19445_v45 = vld [vmem:[#allocation8 + $0x1004] ss:$16 sps:$4 sm:$0xff]  }
 0x54b   :  { %9519 = vmatmul.mubr.bf16.gmra.mrb[152].mxu0 %v22340_v39  ;;  %9789 = vmatprep.subr.bf16.mxu1 %v19424_v53  ;;  %v19443_v53 = vld [vmem:[#allocation8 + $0x1000] ss:$16 sps:$4 sm:$0xff]  }
 0x54c   :  { %9745 = vmatmul.mubr.bf16.gmra.mrb[152].mxu1 %v22340_v39  ;;  %9528 = vmatprep.mubr.bf16.mxu0 %v16380_v46  ;;  %v19442_v39 = vld [vmem:[#allocation8 + $0xfec] ss:$16 sps:$4 sm:$0xff]  }
 0x54d   :  { %9564 = vmatpush1.bf16.msra.mxu0 %v19419_v15  ;;  %9754 = vmatprep.mubr.bf16.mxu1 %v16380_v46  ;;  %v19446_v15 = vld [vmem:[#allocation8 + $0x1008] ss:$16 sps:$4 sm:$0xff]   ;;  %v19454_v46 = vld [vmem:[#allocation8 + $0x102c] ss:$16 sps:$4 sm:$0xff]  }
 0x54e   :  { %9790 = vmatpush1.bf16.msra.mxu1 %v19422_v47  ;;  %9565 = vmatprep.subr.bf16.mxu0 %v19427_v38  ;;  %v19451_v47 = vld [vmem:[#allocation8 + $0x1024] ss:$16 sps:$4 sm:$0xff]   ;;  %v19452_v38 = vld [vmem:[#allocation8 + $0x1028] ss:$16 sps:$4 sm:$0xff]  }
 0x54f   :  { %9791 = vmatprep.subr.bf16.mxu1 %v19430_v43  ;;  %v19457_v43 = vld [vmem:[#allocation8 + $0x1044] ss:$16 sps:$4 sm:$0xff]  }
 0x551   :  { %9566 = vmatpush1.bf16.msra.mxu0 %v19425_v2  ;;  %v19460_v2 = vld [vmem:[#allocation8 + $0x104c] ss:$16 sps:$4 sm:$0xff]  }
 0x552   :  { %9792 = vmatpush1.bf16.msra.mxu1 %v19428_v14  ;;  %9567 = vmatprep.subr.bf16.mxu0 %v19433_v30  ;;  %v19455_v14 = vld [vmem:[#allocation8 + $0x1040] ss:$16 sps:$4 sm:$0xff]   ;;  %v19458_v30 = vld [vmem:[#allocation8 + $0x1048] ss:$16 sps:$4 sm:$0xff]  }
 0x553   :  { %9529 = vmatmul.mubr.bf16.gmra.mrb[156].mxu0 %v16379_v59  ;;  %9793 = vmatprep.subr.bf16.mxu1 %v19436_v5  ;;  %v19463_v5 = vld [vmem:[#allocation8 + $0x1064] ss:$16 sps:$4 sm:$0xff]  }
 0x554   :  { %9755 = vmatmul.mubr.bf16.gmra.mrb[156].mxu1 %v16379_v59  ;;  %9571 = vmatprep.mubr.bf16.mxu0 %v21718_v26  ;;  %v19464_v59 = vld [vmem:[#allocation8 + $0x1068] ss:$16 sps:$4 sm:$0xff]  }
 0x555   :  { %9568 = vmatpush1.bf16.msra.mxu0 %v19431_v11  ;;  %9797 = vmatprep.mubr.bf16.mxu1 %v21718_v26  ;;  %v19449_v26 = vld [vmem:[#allocation8 + $0x1020] ss:$16 sps:$4 sm:$0xff]   ;;  %v19469_v11 = vld [vmem:[#allocation8 + $0x1084] ss:$16 sps:$4 sm:$0xff]  }
 0x556   :  { %9794 = vmatpush1.bf16.msra.mxu1 %v19434_v33  ;;  %9569 = vmatprep.subr.bf16.mxu0 %v19439_v58  ;;  %v19472_v33 = vld [vmem:[#allocation8 + $0x108c] ss:$16 sps:$4 sm:$0xff]   ;;  %v19467_v58 = vld [vmem:[#allocation8 + $0x1080] ss:$16 sps:$4 sm:$0xff]  }
 0x557   :  { %9795 = vmatprep.subr.bf16.mxu1 %v19442_v39  ;;  %v19470_v39 = vld [vmem:[#allocation8 + $0x1088] ss:$16 sps:$4 sm:$0xff]  }
 0x559   :  { %9570 = vmatpush1.bf16.msra.mxu0 %v19437_v56  ;;  %v19475_v56 = vld [vmem:[#allocation8 + $0x10a4] ss:$16 sps:$4 sm:$0xff]  }
 0x55a   :  { %9796 = vmatpush1.bf16.msra.mxu1 %v19440_v55  ;;  %10904 = vmatprep.subr.bf16.mxu0 %v19445_v45  ;;  %v19476_v55 = vld [vmem:[#allocation8 + $0x10a8] ss:$16 sps:$4 sm:$0xff]   ;;  %v19481_v45 = vld [vmem:[#allocation8 + $0x10c4] ss:$16 sps:$4 sm:$0xff]  }
 0x55b   :  { %11130 = vmatprep.subr.bf16.mxu1 %v19448_v49  ;;  %v19484_v49 = vld [vmem:[#allocation8 + $0x10cc] ss:$16 sps:$4 sm:$0xff]  }
 0x55c   :  { %9572 = vmatmul.mubr.bf16.vlgmr.msra.gmra.mrb[128].mxu0 %v21708_v18 }
 0x55d   :  { %9798 = vmatmul.mubr.bf16.vlgmr.msra.gmra.mrb[128].mxu1 %v21708_v18  ;;  %9581 = vmatprep.mubr.bf16.mxu0 %v21842_v3  ;;  %v19466_v18 = vld [vmem:[#allocation8 + $0x106c] ss:$16 sps:$4 sm:$0xff]  }
 0x55e   :  { %9807 = vmatprep.mubr.bf16.mxu1 %v21842_v3  ;;  %10905 = vmatpush1.bf16.msra.mxu0 %v19443_v53  ;;  %v19461_v3 = vld [vmem:[#allocation8 + $0x1060] ss:$16 sps:$4 sm:$0xff]  }
 0x55f   :  { %11131 = vmatpush1.bf16.msra.mxu1 %v19446_v15  ;;  %10906 = vmatprep.subr.bf16.mxu0 %v19451_v47  ;;  %v19479_v53 = vld [vmem:[#allocation8 + $0x10c0] ss:$16 sps:$4 sm:$0xff]   ;;  %v19482_v15 = vld [vmem:[#allocation8 + $0x10c8] ss:$16 sps:$4 sm:$0xff]   ;;  %v19487_v47 = vld [vmem:[#allocation8 + $0x10e4] ss:$16 sps:$4 sm:$0xff]  }
 0x560   :  { %11132 = vmatprep.subr.bf16.mxu1 %v19454_v46  ;;  %v19488_v46 = vld [vmem:[#allocation8 + $0x10e8] ss:$16 sps:$4 sm:$0xff]  }
 0x562   :  { %10907 = vmatpush1.bf16.msra.mxu0 %v19449_v26  ;;  %v19493_v26 = vld [vmem:[#allocation8 + $0x1104] ss:$16 sps:$4 sm:$0xff]  }
 0x563   :  { %11133 = vmatpush1.bf16.msra.mxu1 %v19452_v38  ;;  %10908 = vmatprep.subr.bf16.mxu0 %v19457_v43  ;;  %v19496_v38 = vld [vmem:[#allocation8 + $0x110c] ss:$16 sps:$4 sm:$0xff]   ;;  %v19491_v43 = vld [vmem:[#allocation8 + $0x1100] ss:$16 sps:$4 sm:$0xff]  }
 0x564   :  { %9582 = vmatmul.mubr.bf16.gmra.mrb[132].mxu0 %v21832_v8  ;;  %11134 = vmatprep.subr.bf16.mxu1 %v19460_v2  ;;  %v19494_v2 = vld [vmem:[#allocation8 + $0x1108] ss:$16 sps:$4 sm:$0xff]  }
 0x565   :  { %9808 = vmatmul.mubr.bf16.gmra.mrb[132].mxu1 %v21832_v8  ;;  %9591 = vmatprep.mubr.bf16.mxu0 %v21974_v32  ;;  %v19478_v8 = vld [vmem:[#allocation8 + $0x10ac] ss:$16 sps:$4 sm:$0xff]  }
 0x566   :  { %9817 = vmatprep.mubr.bf16.mxu1 %v21974_v32  ;;  %10909 = vmatpush1.bf16.msra.mxu0 %v19455_v14  ;;  %v19473_v32 = vld [vmem:[#allocation8 + $0x10a0] ss:$16 sps:$4 sm:$0xff]   ;;  %v19499_v14 = vld [vmem:[#allocation8 + $0x1124] ss:$16 sps:$4 sm:$0xff]  }
 0x567   :  { %11135 = vmatpush1.bf16.msra.mxu1 %v19458_v30  ;;  %10910 = vmatprep.subr.bf16.mxu0 %v19463_v5  ;;  %v19500_v30 = vld [vmem:[#allocation8 + $0x1128] ss:$16 sps:$4 sm:$0xff]   ;;  %v19505_v5 = vld [vmem:[#allocation8 + $0x1144] ss:$16 sps:$4 sm:$0xff]  }
 0x568   :  { %11136 = vmatprep.subr.bf16.mxu1 %v19466_v18  ;;  %v19508_v18 = vld [vmem:[#allocation8 + $0x114c] ss:$16 sps:$4 sm:$0xff]  }
 0x56a   :  { %10911 = vmatpush1.bf16.msra.mxu0 %v19461_v3  ;;  %v19503_v3 = vld [vmem:[#allocation8 + $0x1140] ss:$16 sps:$4 sm:$0xff]  }
 0x56b   :  { %11137 = vmatpush1.bf16.msra.mxu1 %v19464_v59  ;;  %10912 = vmatprep.subr.bf16.mxu0 %v19469_v11  ;;  %v19506_v59 = vld [vmem:[#allocation8 + $0x1148] ss:$16 sps:$4 sm:$0xff]   ;;  %v19511_v11 = vld [vmem:[#allocation8 + $0x1164] ss:$16 sps:$4 sm:$0xff]  }
 0x56c   :  { %9592 = vmatmul.mubr.bf16.gmra.mrb[136].mxu0 %v21964_v12  ;;  %11138 = vmatprep.subr.bf16.mxu1 %v19472_v33  ;;  %v19512_v33 = vld [vmem:[#allocation8 + $0x1168] ss:$16 sps:$4 sm:$0xff]  }
 0x56d   :  { %9818 = vmatmul.mubr.bf16.gmra.mrb[136].mxu1 %v21964_v12  ;;  %9601 = vmatprep.mubr.bf16.mxu0 %v22098_v1  ;;  %v19490_v12 = vld [vmem:[#allocation8 + $0x10ec] ss:$16 sps:$4 sm:$0xff]  }
 0x56e   :  { %9827 = vmatprep.mubr.bf16.mxu1 %v22098_v1  ;;  %10913 = vmatpush1.bf16.msra.mxu0 %v19467_v58  ;;  %v19485_v1 = vld [vmem:[#allocation8 + $0x10e0] ss:$16 sps:$4 sm:$0xff]   ;;  %v19517_v58 = vld [vmem:[#allocation8 + $0x1184] ss:$16 sps:$4 sm:$0xff]  }
 0x56f   :  { %11139 = vmatpush1.bf16.msra.mxu1 %v19470_v39  ;;  %10914 = vmatprep.subr.bf16.mxu0 %v19475_v56  ;;  %v19520_v39 = vld [vmem:[#allocation8 + $0x118c] ss:$16 sps:$4 sm:$0xff]   ;;  %v19515_v56 = vld [vmem:[#allocation8 + $0x1180] ss:$16 sps:$4 sm:$0xff]  }
 0x570   :  { %11140 = vmatprep.subr.bf16.mxu1 %v19478_v8  ;;  %v19518_v8 = vld [vmem:[#allocation8 + $0x1188] ss:$16 sps:$4 sm:$0xff]  }
 0x572   :  { %10915 = vmatpush1.bf16.msra.mxu0 %v19473_v32  ;;  %v19523_v32 = vld [vmem:[#allocation8 + $0x11a4] ss:$16 sps:$4 sm:$0xff]  }
 0x573   :  { %11141 = vmatpush1.bf16.msra.mxu1 %v19476_v55  ;;  %10916 = vmatprep.subr.bf16.mxu0 %v19481_v45  ;;  %v19521_v55 = vld [vmem:[#allocation8 + $0x11a0] ss:$16 sps:$4 sm:$0xff]   ;;  %v19524_v45 = vld [vmem:[#allocation8 + $0x11a8] ss:$16 sps:$4 sm:$0xff]  }
 0x574   :  { %9602 = vmatmul.mubr.bf16.gmra.mrb[140].mxu0 %v22088_v54  ;;  %11142 = vmatprep.subr.bf16.mxu1 %v19484_v49  ;;  %v19529_v49 = vld [vmem:[#allocation8 + $0x11c4] ss:$16 sps:$4 sm:$0xff]  }
 0x575   :  { %9828 = vmatmul.mubr.bf16.gmra.mrb[140].mxu1 %v22088_v54  ;;  %9611 = vmatprep.mubr.bf16.mxu0 %v22198_v36  ;;  %v19502_v54 = vld [vmem:[#allocation8 + $0x112c] ss:$16 sps:$4 sm:$0xff]  }
 0x576   :  { %9837 = vmatprep.mubr.bf16.mxu1 %v22198_v36  ;;  %10917 = vmatpush1.bf16.msra.mxu0 %v19479_v53  ;;  %v19497_v36 = vld [vmem:[#allocation8 + $0x1120] ss:$16 sps:$4 sm:$0xff]   ;;  %v19532_v53 = vld [vmem:[#allocation8 + $0x11cc] ss:$16 sps:$4 sm:$0xff]  }
 0x577   :  { %11143 = vmatpush1.bf16.msra.mxu1 %v19482_v15  ;;  %10918 = vmatprep.subr.bf16.mxu0 %v19487_v47  ;;  %v16381_v15 = vcombine.low %v22375_v52, %v23184_v34  ;;  %v19527_v47 = vld [vmem:[#allocation8 + $0x11c0] ss:$16 sps:$4 sm:$0xff]  }
 0x578   :  { %11144 = vmatprep.subr.bf16.mxu1 %v19490_v12  ;;  %v19530_v12 = vld [vmem:[#allocation8 + $0x11c8] ss:$16 sps:$4 sm:$0xff]  }
 0x57a   :  { %10919 = vmatpush1.bf16.msra.mxu0 %v19485_v1  ;;  %v19535_v1 = vld [vmem:[#allocation8 + $0x11e4] ss:$16 sps:$4 sm:$0xff]  }
 0x57b   :  { %11145 = vmatpush1.bf16.msra.mxu1 %v19488_v46  ;;  %10920 = vmatprep.subr.bf16.mxu0 %v19493_v26  ;;  %v19533_v46 = vld [vmem:[#allocation8 + $0x11e0] ss:$16 sps:$4 sm:$0xff]   ;;  %v19536_v26 = vld [vmem:[#allocation8 + $0x11e8] ss:$16 sps:$4 sm:$0xff]  }
 0x57c   :  { %9612 = vmatmul.mubr.bf16.gmra.mrb[144].mxu0 %v22192_v9  ;;  %11146 = vmatprep.subr.bf16.mxu1 %v19496_v38  ;;  %v19541_v38 = vld [vmem:[#allocation8 + $0x1204] ss:$16 sps:$4 sm:$0xff]  }
 0x57d   :  { %9838 = vmatmul.mubr.bf16.gmra.mrb[144].mxu1 %v22192_v9  ;;  %9621 = vmatprep.mubr.bf16.mxu0 %v22279_v29  ;;  %v19514_v9 = vld [vmem:[#allocation8 + $0x116c] ss:$16 sps:$4 sm:$0xff]  }
 0x57e   :  { %9847 = vmatprep.mubr.bf16.mxu1 %v22279_v29  ;;  %10921 = vmatpush1.bf16.msra.mxu0 %v19491_v43  ;;  %v19509_v29 = vld [vmem:[#allocation8 + $0x1160] ss:$16 sps:$4 sm:$0xff]  }
 0x57f   :  { %11147 = vmatpush1.bf16.msra.mxu1 %v19494_v2  ;;  %10922 = vmatprep.subr.bf16.mxu0 %v19499_v14  ;;  %v19539_v43 = vld [vmem:[#allocation8 + $0x1200] ss:$16 sps:$4 sm:$0xff]   ;;  %v19542_v2 = vld [vmem:[#allocation8 + $0x1208] ss:$16 sps:$4 sm:$0xff]   ;;  %v19547_v14 = vld [vmem:[#allocation8 + $0x1224] ss:$16 sps:$4 sm:$0xff]  }
 0x580   :  { %11148 = vmatprep.subr.bf16.mxu1 %v19502_v54  ;;  %v19550_v54 = vld [vmem:[#allocation8 + $0x122c] ss:$16 sps:$4 sm:$0xff]  }
 0x582   :  { %10923 = vmatpush1.bf16.msra.mxu0 %v19497_v36  ;;  %v19548_v36 = vld [vmem:[#allocation8 + $0x1228] ss:$16 sps:$4 sm:$0xff]  }
 0x583   :  { %11149 = vmatpush1.bf16.msra.mxu1 %v19500_v30  ;;  %10924 = vmatprep.subr.bf16.mxu0 %v19505_v5  ;;  %v19553_v30 = vld [vmem:[#allocation8 + $0x1244] ss:$16 sps:$4 sm:$0xff]   ;;  %v19556_v5 = vld [vmem:[#allocation8 + $0x124c] ss:$16 sps:$4 sm:$0xff]  }
 0x584   :  { %9622 = vmatmul.mubr.bf16.gmra.mrb[148].mxu0 %v22273_v7  ;;  %11150 = vmatprep.subr.bf16.mxu1 %v19508_v18  ;;  %v19551_v18 = vld [vmem:[#allocation8 + $0x1240] ss:$16 sps:$4 sm:$0xff]  }
 0x585   :  { %9848 = vmatmul.mubr.bf16.gmra.mrb[148].mxu1 %v22273_v7  ;;  %9631 = vmatprep.mubr.bf16.mxu0 %v22351_v35  ;;  %v16382_v7 = vcombine.high %v22375_v52, %v23184_v34  ;;  %v19544_v52 = vld [vmem:[#allocation8 + $0x120c] ss:$16 sps:$4 sm:$0xff]  }
 0x586   :  { %9857 = vmatprep.mubr.bf16.mxu1 %v22351_v35  ;;  %10925 = vmatpush1.bf16.msra.mxu0 %v19503_v3  ;;  %v19526_v35 = vld [vmem:[#allocation8 + $0x11ac] ss:$16 sps:$4 sm:$0xff]   ;;  %v19554_v3 = vld [vmem:[#allocation8 + $0x1248] ss:$16 sps:$4 sm:$0xff]  }
 0x587   :  { %11151 = vmatpush1.bf16.msra.mxu1 %v19506_v59  ;;  %10926 = vmatprep.subr.bf16.mxu0 %v19511_v11  ;;  %v19559_v59 = vld [vmem:[#allocation8 + $0x1264] ss:$16 sps:$4 sm:$0xff]   ;;  %v19560_v11 = vld [vmem:[#allocation8 + $0x1268] ss:$16 sps:$4 sm:$0xff]  }
 0x588   :  { %11152 = vmatprep.subr.bf16.mxu1 %v19514_v9  ;;  %v19565_v9 = vld [vmem:[#allocation8 + $0x1284] ss:$16 sps:$4 sm:$0xff]  }
 0x58a   :  { %10927 = vmatpush1.bf16.msra.mxu0 %v19509_v29  ;;  %v19568_v29 = vld [vmem:[#allocation8 + $0x128c] ss:$16 sps:$4 sm:$0xff]  }
 0x58b   :  { %11153 = vmatpush1.bf16.msra.mxu1 %v19512_v33  ;;  %10928 = vmatprep.subr.bf16.mxu0 %v19517_v58  ;;  %v19563_v33 = vld [vmem:[#allocation8 + $0x1280] ss:$16 sps:$4 sm:$0xff]   ;;  %v19566_v58 = vld [vmem:[#allocation8 + $0x1288] ss:$16 sps:$4 sm:$0xff]  }
 0x58c   :  { %9632 = vmatmul.mubr.bf16.gmra.mrb[152].mxu0 %v22345_v48  ;;  %11154 = vmatprep.subr.bf16.mxu1 %v19520_v39  ;;  %v19571_v39 = vld [vmem:[#allocation8 + $0x12a4] ss:$16 sps:$4 sm:$0xff]  }
 0x58d   :  { %9858 = vmatmul.mubr.bf16.gmra.mrb[152].mxu1 %v22345_v48  ;;  %9641 = vmatprep.mubr.bf16.mxu0 %v16382_v7  ;;  %v19538_v48 = vld [vmem:[#allocation8 + $0x11ec] ss:$16 sps:$4 sm:$0xff]  }
 0x58e   :  { %9867 = vmatprep.mubr.bf16.mxu1 %v16382_v7  ;;  %10929 = vmatpush1.bf16.msra.mxu0 %v19515_v56  ;;  %v19572_v56 = vld [vmem:[#allocation8 + $0x12a8] ss:$16 sps:$4 sm:$0xff]   ;;  %v19580_v7 = vld [vmem:[#allocation8 + $0x12cc] ss:$16 sps:$4 sm:$0xff]  }
 0x58f   :  { %11155 = vmatpush1.bf16.msra.mxu1 %v19518_v8  ;;  %10930 = vmatprep.subr.bf16.mxu0 %v19523_v32  ;;  %v19577_v8 = vld [vmem:[#allocation8 + $0x12c4] ss:$16 sps:$4 sm:$0xff]   ;;  %v19575_v32 = vld [vmem:[#allocation8 + $0x12c0] ss:$16 sps:$4 sm:$0xff]  }
 0x590   :  { %11156 = vmatprep.subr.bf16.mxu1 %v19526_v35  ;;  %v19578_v35 = vld [vmem:[#allocation8 + $0x12c8] ss:$16 sps:$4 sm:$0xff]  }
 0x592   :  { %10931 = vmatpush1.bf16.msra.mxu0 %v19521_v55  ;;  %v19583_v55 = vld [vmem:[#allocation8 + $0x12e4] ss:$16 sps:$4 sm:$0xff]  }
 0x593   :  { %11157 = vmatpush1.bf16.msra.mxu1 %v19524_v45  ;;  %10932 = vmatprep.subr.bf16.mxu0 %v19529_v49  ;;  %v19584_v45 = vld [vmem:[#allocation8 + $0x12e8] ss:$16 sps:$4 sm:$0xff]   ;;  %v19589_v49 = vld [vmem:[#allocation8 + $0x1304] ss:$16 sps:$4 sm:$0xff]  }
 0x594   :  { %9642 = vmatmul.mubr.bf16.gmra.mrb[156].mxu0 %v16381_v15  ;;  %11158 = vmatprep.subr.bf16.mxu1 %v19532_v53  ;;  %v19592_v53 = vld [vmem:[#allocation8 + $0x130c] ss:$16 sps:$4 sm:$0xff]  }
 0x595   :  { %9868 = vmatmul.mubr.bf16.gmra.mrb[156].mxu1 %v16381_v15  ;;  %10936 = vmatprep.mubr.bf16.mxu0 %v21772_v27  ;;  %v19587_v15 = vld [vmem:[#allocation8 + $0x1300] ss:$16 sps:$4 sm:$0xff]  }
 0x596   :  { %10933 = vmatpush1.bf16.msra.mxu0 %v19527_v47  ;;  %11162 = vmatprep.mubr.bf16.mxu1 %v21772_v27  ;;  %v19545_v27 = vld [vmem:[#allocation8 + $0x1220] ss:$16 sps:$4 sm:$0xff]   ;;  %v19590_v47 = vld [vmem:[#allocation8 + $0x1308] ss:$16 sps:$4 sm:$0xff]  }
 0x597   :  { %11159 = vmatpush1.bf16.msra.mxu1 %v19530_v12  ;;  %10934 = vmatprep.subr.bf16.mxu0 %v19535_v1  ;;  %v19595_v12 = vld [vmem:[#allocation8 + $0x1324] ss:$16 sps:$4 sm:$0xff]   ;;  %v19596_v1 = vld [vmem:[#allocation8 + $0x1328] ss:$16 sps:$4 sm:$0xff]  }
 0x598   :  { %11160 = vmatprep.subr.bf16.mxu1 %v19538_v48  ;;  %v19601_v48 = vld [vmem:[#allocation8 + $0x1344] ss:$16 sps:$4 sm:$0xff]  }
 0x59a   :  { %10935 = vmatpush1.bf16.msra.mxu0 %v19533_v46  ;;  %v19604_v46 = vld [vmem:[#allocation8 + $0x134c] ss:$16 sps:$4 sm:$0xff]  }
 0x59b   :  { %11161 = vmatpush1.bf16.msra.mxu1 %v19536_v26  ;;  %11017 = vmatprep.subr.bf16.mxu0 %v19541_v38  ;;  %v19599_v26 = vld [vmem:[#allocation8 + $0x1340] ss:$16 sps:$4 sm:$0xff]   ;;  %v19602_v38 = vld [vmem:[#allocation8 + $0x1348] ss:$16 sps:$4 sm:$0xff]  }
 0x59c   :  { %11243 = vmatprep.subr.bf16.mxu1 %v19544_v52  ;;  %v19607_v52 = vld [vmem:[#allocation8 + $0x1364] ss:$16 sps:$4 sm:$0xff]  }
 0x59d   :  { %10937 = vmatmul.mubr.bf16.vlgmr.msra.gmra.mrb[128].mxu0 %v23188_v28 }
 0x59e   :  { %11163 = vmatmul.mubr.bf16.vlgmr.msra.gmra.mrb[128].mxu1 %v23188_v28  ;;  %10946 = vmatprep.mubr.bf16.mxu0 %v21896_v21  ;;  %v19562_v28 = vld [vmem:[#allocation8 + $0x126c] ss:$16 sps:$4 sm:$0xff]  }
 0x59f   :  { %11018 = vmatpush1.bf16.msra.mxu0 %v19539_v43  ;;  %11172 = vmatprep.mubr.bf16.mxu1 %v21896_v21  ;;  %v19557_v21 = vld [vmem:[#allocation8 + $0x1260] ss:$16 sps:$4 sm:$0xff]   ;;  %v19608_v43 = vld [vmem:[#allocation8 + $0x1368] ss:$16 sps:$4 sm:$0xff]  }
 0x5a0   :  { %11244 = vmatpush1.bf16.msra.mxu1 %v19542_v2  ;;  %11019 = vmatprep.subr.bf16.mxu0 %v19547_v14  ;;  %v19613_v2 = vld [vmem:[#allocation8 + $0x1384] ss:$16 sps:$4 sm:$0xff]   ;;  %v19616_v14 = vld [vmem:[#allocation8 + $0x138c] ss:$16 sps:$4 sm:$0xff]  }
 0x5a1   :  { %11245 = vmatprep.subr.bf16.mxu1 %v19550_v54  ;;  %v19611_v54 = vld [vmem:[#allocation8 + $0x1380] ss:$16 sps:$4 sm:$0xff]  }
 0x5a3   :  { %11020 = vmatpush1.bf16.msra.mxu0 %v19545_v27  ;;  %v19614_v27 = vld [vmem:[#allocation8 + $0x1388] ss:$16 sps:$4 sm:$0xff]  }
 0x5a4   :  { %11246 = vmatpush1.bf16.msra.mxu1 %v19548_v36  ;;  %11021 = vmatprep.subr.bf16.mxu0 %v19553_v30  ;;  %v19619_v36 = vld [vmem:[#allocation8 + $0x13a4] ss:$16 sps:$4 sm:$0xff]   ;;  %v19620_v30 = vld [vmem:[#allocation8 + $0x13a8] ss:$16 sps:$4 sm:$0xff]  }
 0x5a5   :  { %10947 = vmatmul.mubr.bf16.gmra.mrb[132].mxu0 %v21885_v25  ;;  %11247 = vmatprep.subr.bf16.mxu1 %v19556_v5  ;;  %v19625_v5 = vld [vmem:[#allocation8 + $0x13c4] ss:$16 sps:$4 sm:$0xff]  }
 0x5a6   :  { %11173 = vmatmul.mubr.bf16.gmra.mrb[132].mxu1 %v21885_v25  ;;  %10956 = vmatprep.mubr.bf16.mxu0 %v22028_v57  ;;  %v19574_v25 = vld [vmem:[#allocation8 + $0x12ac] ss:$16 sps:$4 sm:$0xff]  }
 0x5a7   :  { %11022 = vmatpush1.bf16.msra.mxu0 %v19551_v18  ;;  %11182 = vmatprep.mubr.bf16.mxu1 %v22028_v57  ;;  %v19569_v57 = vld [vmem:[#allocation8 + $0x12a0] ss:$16 sps:$4 sm:$0xff]   ;;  %v19628_v18 = vld [vmem:[#allocation8 + $0x13cc] ss:$16 sps:$4 sm:$0xff]  }
 0x5a8   :  { %11248 = vmatpush1.bf16.msra.mxu1 %v19554_v3  ;;  %11023 = vmatprep.subr.bf16.mxu0 %v19559_v59  ;;  %v19623_v3 = vld [vmem:[#allocation8 + $0x13c0] ss:$16 sps:$4 sm:$0xff]   ;;  %v19626_v59 = vld [vmem:[#allocation8 + $0x13c8] ss:$16 sps:$4 sm:$0xff]  }
 0x5a9   :  { %11249 = vmatprep.subr.bf16.mxu1 %v19562_v28  ;;  %v19631_v28 = vld [vmem:[#allocation8 + $0x13e4] ss:$16 sps:$4 sm:$0xff]  }
 0x5ab   :  { %11024 = vmatpush1.bf16.msra.mxu0 %v19557_v21  ;;  %v23218_v21 = vld [vmem:[#allocation50_spill] sm:$0xff] }
 0x5ac   :  { %11250 = vmatpush1.bf16.msra.mxu1 %v19560_v11  ;;  %11025 = vmatprep.subr.bf16.mxu0 %v19565_v9  ;;  %v19629_v11 = vld [vmem:[#allocation8 + $0x13e0] ss:$16 sps:$4 sm:$0xff]   ;;  %v19632_v9 = vld [vmem:[#allocation8 + $0x13e8] ss:$16 sps:$4 sm:$0xff]  }
 0x5ad   :  { %10957 = vmatmul.mubr.bf16.gmra.mrb[136].mxu0 %v22017_v6  ;;  %11251 = vmatprep.subr.bf16.mxu1 %v19568_v29  ;;  %v19637_v29 = vld [vmem:[#allocation11 + $0x204] ss:$16 sps:$4 sm:$0xff]  }
 0x5ae   :  { %11183 = vmatmul.mubr.bf16.gmra.mrb[136].mxu1 %v22017_v6  ;;  %10966 = vmatprep.mubr.bf16.mxu0 %v22144_v13  ;;  %v19586_v6 = vld [vmem:[#allocation8 + $0x12ec] ss:$16 sps:$4 sm:$0xff]  }
 0x5af   :  { %11026 = vmatpush1.bf16.msra.mxu0 %v19563_v33  ;;  %11192 = vmatprep.mubr.bf16.mxu1 %v22144_v13  ;;  %v19581_v13 = vld [vmem:[#allocation8 + $0x12e0] ss:$16 sps:$4 sm:$0xff]  }
 0x5b0   :  { %11252 = vmatpush1.bf16.msra.mxu1 %v19566_v58  ;;  %11027 = vmatprep.subr.bf16.mxu0 %v19571_v39  ;;  %v19640_v33 = vld [vmem:[#allocation11 + $0x20c] ss:$16 sps:$4 sm:$0xff]   ;;  %v19635_v58 = vld [vmem:[#allocation11 + $0x200] ss:$16 sps:$4 sm:$0xff]   ;;  %v19638_v39 = vld [vmem:[#allocation11 + $0x208] ss:$16 sps:$4 sm:$0xff]  }
 0x5b1   :  { %11253 = vmatprep.subr.bf16.mxu1 %v19574_v25  ;;  %v19643_v25 = vld [vmem:[#allocation11 + $0x224] ss:$16 sps:$4 sm:$0xff]  }
 0x5b3   :  { %11028 = vmatpush1.bf16.msra.mxu0 %v19569_v57  ;;  %v19646_v57 = vld [vmem:[#allocation11 + $0x22c] ss:$16 sps:$4 sm:$0xff]  }
 0x5b4   :  { %11254 = vmatpush1.bf16.msra.mxu1 %v19572_v56  ;;  %11029 = vmatprep.subr.bf16.mxu0 %v19577_v8  ;;  %v19644_v56 = vld [vmem:[#allocation11 + $0x228] ss:$16 sps:$4 sm:$0xff]   ;;  %v19649_v8 = vld [vmem:[#allocation11 + $0x244] ss:$16 sps:$4 sm:$0xff]  }
 0x5b5   :  { %10967 = vmatmul.mubr.bf16.gmra.mrb[140].mxu0 %v22137_v44  ;;  %11255 = vmatprep.subr.bf16.mxu1 %v19580_v7  ;;  %v19652_v7 = vld [vmem:[#allocation11 + $0x24c] ss:$16 sps:$4 sm:$0xff]  }
 0x5b6   :  { %11193 = vmatmul.mubr.bf16.gmra.mrb[140].mxu1 %v22137_v44  ;;  %10976 = vmatprep.mubr.bf16.mxu0 %v22236_v42  ;;  %v19598_v44 = vld [vmem:[#allocation8 + $0x132c] ss:$16 sps:$4 sm:$0xff]  }
 0x5b7   :  { %11030 = vmatpush1.bf16.msra.mxu0 %v19575_v32  ;;  %11202 = vmatprep.mubr.bf16.mxu1 %v22236_v42  ;;  %v19593_v42 = vld [vmem:[#allocation8 + $0x1320] ss:$16 sps:$4 sm:$0xff]   ;;  %v19647_v32 = vld [vmem:[#allocation11 + $0x240] ss:$16 sps:$4 sm:$0xff]  }
 0x5b8   :  { %11256 = vmatpush1.bf16.msra.mxu1 %v19578_v35  ;;  %11031 = vmatprep.subr.bf16.mxu0 %v19583_v55  ;;  %v19650_v35 = vld [vmem:[#allocation11 + $0x248] ss:$16 sps:$4 sm:$0xff]   ;;  %v19655_v55 = vld [vmem:[#allocation11 + $0x264] ss:$16 sps:$4 sm:$0xff]  }
 0x5b9   :  { %11257 = vmatprep.subr.bf16.mxu1 %v19586_v6  ;;  %v19656_v6 = vld [vmem:[#allocation11 + $0x268] ss:$16 sps:$4 sm:$0xff]  }
 0x5bb   :  { %11032 = vmatpush1.bf16.msra.mxu0 %v19581_v13  ;;  %v19661_v13 = vld [vmem:[#allocation11 + $0x284] ss:$16 sps:$4 sm:$0xff]  }
 0x5bc   :  { %11258 = vmatpush1.bf16.msra.mxu1 %v19584_v45  ;;  %11033 = vmatprep.subr.bf16.mxu0 %v19589_v49  ;;  %v19664_v45 = vld [vmem:[#allocation11 + $0x28c] ss:$16 sps:$4 sm:$0xff]   ;;  %v19659_v49 = vld [vmem:[#allocation11 + $0x280] ss:$16 sps:$4 sm:$0xff]  }
 0x5bd   :  { %10977 = vmatmul.mubr.bf16.gmra.mrb[144].mxu0 %v23189_v19  ;;  %11259 = vmatprep.subr.bf16.mxu1 %v19592_v53  ;;  %v19662_v53 = vld [vmem:[#allocation11 + $0x288] ss:$16 sps:$4 sm:$0xff]  }
 0x5be   :  { %11203 = vmatmul.mubr.bf16.gmra.mrb[144].mxu1 %v23189_v19  ;;  %10986 = vmatprep.mubr.bf16.mxu0 %v23190_v41  ;;  %v19610_v19 = vld [vmem:[#allocation8 + $0x136c] ss:$16 sps:$4 sm:$0xff]  }
 0x5bf   :  { %11034 = vmatpush1.bf16.msra.mxu0 %v19587_v15  ;;  %11212 = vmatprep.mubr.bf16.mxu1 %v23190_v41  ;;  %v19605_v41 = vld [vmem:[#allocation8 + $0x1360] ss:$16 sps:$4 sm:$0xff]   ;;  %v19667_v15 = vld [vmem:[#allocation11 + $0x2a4] ss:$16 sps:$4 sm:$0xff]  }
 0x5c0   :  { %11260 = vmatpush1.bf16.msra.mxu1 %v19590_v47  ;;  %11035 = vmatprep.subr.bf16.mxu0 %v19595_v12  ;;  %v19668_v47 = vld [vmem:[#allocation11 + $0x2a8] ss:$16 sps:$4 sm:$0xff]   ;;  %v19673_v12 = vld [vmem:[#allocation11 + $0x2c4] ss:$16 sps:$4 sm:$0xff]  }
 0x5c1   :  { %11261 = vmatprep.subr.bf16.mxu1 %v19598_v44  ;;  %v19676_v44 = vld [vmem:[#allocation11 + $0x2cc] ss:$16 sps:$4 sm:$0xff]  }
 0x5c3   :  { %11036 = vmatpush1.bf16.msra.mxu0 %v19593_v42  ;;  %v19671_v42 = vld [vmem:[#allocation11 + $0x2c0] ss:$16 sps:$4 sm:$0xff]  }
 0x5c4   :  { %11262 = vmatpush1.bf16.msra.mxu1 %v19596_v1  ;;  %11037 = vmatprep.subr.bf16.mxu0 %v19601_v48  ;;  %v19674_v1 = vld [vmem:[#allocation11 + $0x2c8] ss:$16 sps:$4 sm:$0xff]   ;;  %v19679_v48 = vld [vmem:[#allocation11 + $0x2e4] ss:$16 sps:$4 sm:$0xff]  }
 0x5c5   :  { %10987 = vmatmul.mubr.bf16.gmra.mrb[148].mxu0 %v23191_v22  ;;  %11263 = vmatprep.subr.bf16.mxu1 %v19604_v46  ;;  %v19680_v46 = vld [vmem:[#allocation11 + $0x2e8] ss:$16 sps:$4 sm:$0xff]  }
 0x5c6   :  { %11213 = vmatmul.mubr.bf16.gmra.mrb[148].mxu1 %v23191_v22  ;;  %10996 = vmatprep.mubr.bf16.mxu0 %v22367_v0  ;;  %v19622_v22 = vld [vmem:[#allocation8 + $0x13ac] ss:$16 sps:$4 sm:$0xff]  }
 0x5c7   :  { %11038 = vmatpush1.bf16.msra.mxu0 %v19599_v26  ;;  %11222 = vmatprep.mubr.bf16.mxu1 %v22367_v0  ;;  %v19617_v0 = vld [vmem:[#allocation8 + $0x13a0] ss:$16 sps:$4 sm:$0xff]   ;;  %v19685_v26 = vld [vmem:[#allocation11 + $0x304] ss:$16 sps:$4 sm:$0xff]  }
 0x5c8   :  { %11264 = vmatpush1.bf16.msra.mxu1 %v19602_v38  ;;  %11039 = vmatprep.subr.bf16.mxu0 %v19607_v52  ;;  %v19688_v38 = vld [vmem:[#allocation11 + $0x30c] ss:$16 sps:$4 sm:$0xff]   ;;  %v19683_v52 = vld [vmem:[#allocation11 + $0x300] ss:$16 sps:$4 sm:$0xff]  }
 0x5c9   :  { %11265 = vmatprep.subr.bf16.mxu1 %v19610_v19  ;;  %v19686_v19 = vld [vmem:[#allocation11 + $0x308] ss:$16 sps:$4 sm:$0xff]  }
 0x5cb   :  { %11040 = vmatpush1.bf16.msra.mxu0 %v19605_v41  ;;  %v19691_v41 = vld [vmem:[#allocation11 + $0x324] ss:$16 sps:$4 sm:$0xff]  }
 0x5cc   :  { %11266 = vmatpush1.bf16.msra.mxu1 %v19608_v43  ;;  %11041 = vmatprep.subr.bf16.mxu0 %v19613_v2  ;;  %v19692_v43 = vld [vmem:[#allocation11 + $0x328] ss:$16 sps:$4 sm:$0xff]   ;;  %v19697_v2 = vld [vmem:[#allocation11 + $0x344] ss:$16 sps:$4 sm:$0xff]  }
 0x5cd   :  { %10997 = vmatmul.mubr.bf16.gmra.mrb[152].mxu0 %v22363_v16  ;;  %11267 = vmatprep.subr.bf16.mxu1 %v19616_v14  ;;  %v19700_v14 = vld [vmem:[#allocation11 + $0x34c] ss:$16 sps:$4 sm:$0xff]  }
 0x5ce   :  { %11223 = vmatmul.mubr.bf16.gmra.mrb[152].mxu1 %v22363_v16  ;;  %11006 = vmatprep.mubr.bf16.mxu0 %v22405_v4  ;;  %v19634_v16 = vld [vmem:[#allocation8 + $0x13ec] ss:$16 sps:$4 sm:$0xff]  }
 0x5cf   :  { %11042 = vmatpush1.bf16.msra.mxu0 %v19611_v54  ;;  %11232 = vmatprep.mubr.bf16.mxu1 %v22405_v4  ;;  %v19695_v54 = vld [vmem:[#allocation11 + $0x340] ss:$16 sps:$4 sm:$0xff]  }
 0x5d0   :  { %11268 = vmatpush1.bf16.msra.mxu1 %v19614_v27  ;;  %11043 = vmatprep.subr.bf16.mxu0 %v19619_v36  ;;  %v19698_v27 = vld [vmem:[#allocation11 + $0x348] ss:$16 sps:$4 sm:$0xff]   ;;  %v19703_v36 = vld [vmem:[#allocation11 + $0x364] ss:$16 sps:$4 sm:$0xff]  }
 0x5d1   :  { %11269 = vmatprep.subr.bf16.mxu1 %v19622_v22  ;;  %v19704_v22 = vld [vmem:[#allocation11 + $0x368] ss:$16 sps:$4 sm:$0xff]  }
 0x5d3   :  { %11044 = vmatpush1.bf16.msra.mxu0 %v19617_v0  ;;  %v19709_v0 = vld [vmem:[#allocation11 + $0x384] ss:$16 sps:$4 sm:$0xff]  }
 0x5d4   :  { %11270 = vmatpush1.bf16.msra.mxu1 %v19620_v30  ;;  %11045 = vmatprep.subr.bf16.mxu0 %v19625_v5  ;;  %v19712_v30 = vld [vmem:[#allocation11 + $0x38c] ss:$16 sps:$4 sm:$0xff]   ;;  %v19707_v5 = vld [vmem:[#allocation11 + $0x380] ss:$16 sps:$4 sm:$0xff]  }
 0x5d5   :  { %11007 = vmatmul.mubr.bf16.gmra.mrb[156].mxu0 %v23218_v21  ;;  %11271 = vmatprep.subr.bf16.mxu1 %v19628_v18  ;;  %v19710_v18 = vld [vmem:[#allocation11 + $0x388] ss:$16 sps:$4 sm:$0xff]  }
 0x5d6   :  { %11233 = vmatmul.mubr.bf16.gmra.mrb[156].mxu1 %v23218_v21  ;;  %11049 = vmatprep.mubr.bf16.mxu0 %v23194_v62 }
 0x5d7   :  { %11046 = vmatpush1.bf16.msra.mxu0 %v19623_v3  ;;  %11275 = vmatprep.mubr.bf16.mxu1 %v23194_v62  ;;  %v19641_v62 = vld [vmem:[#allocation11 + $0x220] ss:$16 sps:$4 sm:$0xff]  }
 0x5d8   :  { %11272 = vmatpush1.bf16.msra.mxu1 %v19626_v59  ;;  %11047 = vmatprep.subr.bf16.mxu0 %v19631_v28  ;;  %v19713_v3 = vld [vmem:[#allocation11 + $0x3a0] ss:$16 sps:$4 sm:$0xff]   ;;  %v19716_v59 = vld [vmem:[#allocation11 + $0x3a8] ss:$16 sps:$4 sm:$0xff]   ;;  %v19721_v28 = vld [vmem:[#allocation11 + $0x3c4] ss:$16 sps:$4 sm:$0xff]  }
 0x5d9   :  { %11273 = vmatprep.subr.bf16.mxu1 %v19634_v16  ;;  %v19719_v16 = vld [vmem:[#allocation11 + $0x3c0] ss:$16 sps:$4 sm:$0xff]  }
 0x5db   :  { %11048 = vmatpush1.bf16.msra.mxu0 %v19629_v11  ;;  %v19722_v11 = vld [vmem:[#allocation11 + $0x3c8] ss:$16 sps:$4 sm:$0xff]  }
 0x5dc   :  { %11274 = vmatpush1.bf16.msra.mxu1 %v19632_v9  ;;  %12138 = vmatprep.subr.bf16.mxu0 %v19637_v29  ;;  %v19727_v9 = vld [vmem:[#allocation11 + $0x3e4] ss:$16 sps:$4 sm:$0xff]   ;;  %v19730_v29 = vld [vmem:[#allocation11 + $0x3ec] ss:$16 sps:$4 sm:$0xff]  }
 0x5dd   :  { %12211 = vmatprep.subr.bf16.mxu1 %v19640_v33  ;;  %v19725_v33 = vld [vmem:[#allocation11 + $0x3e0] ss:$16 sps:$4 sm:$0xff]  }
 0x5de   :  { %11050 = vmatmul.mubr.bf16.vlgmr.msra.gmra.mrb[128].mxu0 %v23195_v51 }
 0x5df   :  { %11276 = vmatmul.mubr.bf16.vlgmr.msra.gmra.mrb[128].mxu1 %v23195_v51  ;;  %11059 = vmatprep.mubr.bf16.mxu0 %v23196_v24  ;;  %v19658_v51 = vld [vmem:[#allocation11 + $0x26c] ss:$16 sps:$4 sm:$0xff]  }
 0x5e0   :  { %11285 = vmatprep.mubr.bf16.mxu1 %v23196_v24  ;;  %12139 = vmatpush1.bf16.msra.mxu0 %v19635_v58  ;;  %v19653_v24 = vld [vmem:[#allocation11 + $0x260] ss:$16 sps:$4 sm:$0xff]   ;;  %v19728_v58 = vld [vmem:[#allocation11 + $0x3e8] ss:$16 sps:$4 sm:$0xff]  }
 0x5e1   :  { %12212 = vmatpush1.bf16.msra.mxu1 %v19638_v39  ;;  %12140 = vmatprep.subr.bf16.mxu0 %v19643_v25  ;;  %v19733_v39 = vld [vmem:[#allocation11 + $0x4] ss:$16 sps:$4 sm:$0xff]   ;;  %v19736_v25 = vld [vmem:[#allocation11 + $0xc] ss:$16 sps:$4 sm:$0xff]  }
 0x5e2   :  { %12213 = vmatprep.subr.bf16.mxu1 %v19646_v57  ;;  %v11420_v57 = vld [vmem:[#allocation9] sm:$0xf] }
 0x5e4   :  { %12141 = vmatpush1.bf16.msra.mxu0 %v19641_v62  ;;  %v23219_v62 = vld [vmem:[#allocation108_spill] sm:$0xff] }
 0x5e5   :  { %12214 = vmatpush1.bf16.msra.mxu1 %v19644_v56  ;;  %12142 = vmatprep.subr.bf16.mxu0 %v19649_v8  ;;  %v22670_v56 = vrot.slane %v11420_v57, %v23219_v62  ;;  %v23220_v8 = vld [vmem:[#allocation109_spill] sm:$0xff] }
 0x5e6   :  { %11060 = vmatmul.mubr.bf16.gmra.mrb[132].mxu0 %v23197_v60  ;;  %12215 = vmatprep.subr.bf16.mxu1 %v19652_v7  ;;  %v22673_v7 = vrot.slane %v11420_v57, %v23220_v8 }
 0x5e7   :  { %11286 = vmatmul.mubr.bf16.gmra.mrb[132].mxu1 %v23197_v60  ;;  %11069 = vmatprep.mubr.bf16.mxu0 %v23198_v50  ;;  %v19670_v60 = vld [vmem:[#allocation11 + $0x2ac] ss:$16 sps:$4 sm:$0xff]  }
 0x5e8   :  { %11295 = vmatprep.mubr.bf16.mxu1 %v23198_v50  ;;  %12143 = vmatpush1.bf16.msra.mxu0 %v19647_v32  ;;  %v19665_v50 = vld [vmem:[#allocation11 + $0x2a0] ss:$16 sps:$4 sm:$0xff]   ;;  %v23221_v32 = vld [vmem:[#allocation110_spill] sm:$0xff] }
 0x5e9   :  { %12216 = vmatpush1.bf16.msra.mxu1 %v19650_v35  ;;  %12144 = vmatprep.subr.bf16.mxu0 %v19655_v55  ;;  %v22676_v35 = vrot.slane %v11420_v57, %v23221_v32  ;;  %v23222_v55 = vld [vmem:[#allocation111_spill] sm:$0xff] }
 0x5ea   :  { %12217 = vmatprep.subr.bf16.mxu1 %v19658_v51  ;;  %v22679_v51 = vrot.slane %v11420_v57, %v23222_v55 }
 0x5ec   :  { %12145 = vmatpush1.bf16.msra.mxu0 %v19653_v24 }
 0x5ed   :  { %12218 = vmatpush1.bf16.msra.mxu1 %v19656_v6  ;;  %12146 = vmatprep.subr.bf16.mxu0 %v19661_v13 }
 0x5ee   :  { %11070 = vmatmul.mubr.bf16.gmra.mrb[136].mxu0 %v23199_v17  ;;  %12219 = vmatprep.subr.bf16.mxu1 %v19664_v45 }
 0x5ef   :  { %11296 = vmatmul.mubr.bf16.gmra.mrb[136].mxu1 %v23199_v17  ;;  %11079 = vmatprep.mubr.bf16.mxu0 %v23200_v40  ;;  %v19682_v17 = vld [vmem:[#allocation11 + $0x2ec] ss:$16 sps:$4 sm:$0xff]  }
 0x5f0   :  { %11305 = vmatprep.mubr.bf16.mxu1 %v23200_v40  ;;  %12147 = vmatpush1.bf16.msra.mxu0 %v19659_v49  ;;  %v19677_v40 = vld [vmem:[#allocation11 + $0x2e0] ss:$16 sps:$4 sm:$0xff]  }
 0x5f1   :  { %12220 = vmatpush1.bf16.msra.mxu1 %v19662_v53  ;;  %12148 = vmatprep.subr.bf16.mxu0 %v19667_v15 }
 0x5f2   :  { %12221 = vmatprep.subr.bf16.mxu1 %v19670_v60 }
 0x5f4   :  { %12149 = vmatpush1.bf16.msra.mxu0 %v19665_v50 }
 0x5f5   :  { %12222 = vmatpush1.bf16.msra.mxu1 %v19668_v47  ;;  %12150 = vmatprep.subr.bf16.mxu0 %v19673_v12 }
 0x5f6   :  { %11080 = vmatmul.mubr.bf16.gmra.mrb[140].mxu0 %v23201_v23  ;;  %12223 = vmatprep.subr.bf16.mxu1 %v19676_v44 }
 0x5f7   :  { %11306 = vmatmul.mubr.bf16.gmra.mrb[140].mxu1 %v23201_v23  ;;  %11089 = vmatprep.mubr.bf16.mxu0 %v23202_v31  ;;  %v19694_v23 = vld [vmem:[#allocation11 + $0x32c] ss:$16 sps:$4 sm:$0xff]  }
 0x5f8   :  { %11315 = vmatprep.mubr.bf16.mxu1 %v23202_v31  ;;  %12151 = vmatpush1.bf16.msra.mxu0 %v19671_v42  ;;  %v19689_v31 = vld [vmem:[#allocation11 + $0x320] ss:$16 sps:$4 sm:$0xff]  }
 0x5f9   :  { %12224 = vmatpush1.bf16.msra.mxu1 %v19674_v1  ;;  %12152 = vmatprep.subr.bf16.mxu0 %v19679_v48 }
 0x5fa   :  { %12225 = vmatprep.subr.bf16.mxu1 %v19682_v17 }
 0x5fc   :  { %12153 = vmatpush1.bf16.msra.mxu0 %v19677_v40 }
 0x5fd   :  { %12226 = vmatpush1.bf16.msra.mxu1 %v19680_v46  ;;  %12154 = vmatprep.subr.bf16.mxu0 %v19685_v26 }
 0x5fe   :  { %11090 = vmatmul.mubr.bf16.gmra.mrb[144].mxu0 %v23203_v61  ;;  %12227 = vmatprep.subr.bf16.mxu1 %v19688_v38 }
 0x5ff   :  { %11316 = vmatmul.mubr.bf16.gmra.mrb[144].mxu1 %v23203_v61  ;;  %11099 = vmatprep.mubr.bf16.mxu0 %v23204_v20  ;;  %v19706_v61 = vld [vmem:[#allocation11 + $0x36c] ss:$16 sps:$4 sm:$0xff]  }
 0x600   :  { %11325 = vmatprep.mubr.bf16.mxu1 %v23204_v20  ;;  %12155 = vmatpush1.bf16.msra.mxu0 %v19683_v52  ;;  %v19701_v20 = vld [vmem:[#allocation11 + $0x360] ss:$16 sps:$4 sm:$0xff]  }
 0x601   :  { %12228 = vmatpush1.bf16.msra.mxu1 %v19686_v19  ;;  %12156 = vmatprep.subr.bf16.mxu0 %v19691_v41 }
 0x602   :  { %12229 = vmatprep.subr.bf16.mxu1 %v19694_v23 }
 0x604   :  { %12157 = vmatpush1.bf16.msra.mxu0 %v19689_v31 }
 0x605   :  { %12230 = vmatpush1.bf16.msra.mxu1 %v19692_v43  ;;  %12158 = vmatprep.subr.bf16.mxu0 %v19697_v2 }
 0x606   :  { %11100 = vmatmul.mubr.bf16.gmra.mrb[148].mxu0 %v23205_v37  ;;  %12231 = vmatprep.subr.bf16.mxu1 %v19700_v14 }
 0x607   :  { %11326 = vmatmul.mubr.bf16.gmra.mrb[148].mxu1 %v23205_v37  ;;  %11109 = vmatprep.mubr.bf16.mxu0 %v22371_v63  ;;  %v19718_v37 = vld [vmem:[#allocation11 + $0x3ac] ss:$16 sps:$4 sm:$0xff]  }
 0x608   :  { %11335 = vmatprep.mubr.bf16.mxu1 %v22371_v63  ;;  %12159 = vmatpush1.bf16.msra.mxu0 %v19695_v54  ;;  %v19715_v63 = vld [vmem:[#allocation11 + $0x3a4] ss:$16 sps:$4 sm:$0xff]  }
 0x609   :  { %12232 = vmatpush1.bf16.msra.mxu1 %v19698_v27  ;;  %12160 = vmatprep.subr.bf16.mxu0 %v19703_v36 }
 0x60a   :  { %12233 = vmatprep.subr.bf16.mxu1 %v19706_v61 }
 0x60c   :  { %12161 = vmatpush1.bf16.msra.mxu0 %v19701_v20 }
 0x60d   :  { %12234 = vmatpush1.bf16.msra.mxu1 %v19704_v22  ;;  %12162 = vmatprep.subr.bf16.mxu0 %v19709_v0 }
 0x60e   :  { %11110 = vmatmul.mubr.bf16.gmra.mrb[152].mxu0 %v22365_v10  ;;  %12235 = vmatprep.subr.bf16.mxu1 %v19712_v30 }
 0x60f   :  { %11336 = vmatmul.mubr.bf16.gmra.mrb[152].mxu1 %v22365_v10  ;;  %11119 = vmatprep.mubr.bf16.mxu0 %v22405_v4  ;;  %v19724_v10 = vld [vmem:[#allocation11 + $0x3cc] ss:$16 sps:$4 sm:$0xff]  }
 0x610   :  { %11345 = vmatprep.mubr.bf16.mxu1 %v22405_v4  ;;  %12163 = vmatpush1.bf16.msra.mxu0 %v19707_v5 }
 0x611   :  { %12236 = vmatpush1.bf16.msra.mxu1 %v19710_v18  ;;  %12164 = vmatprep.subr.bf16.mxu0 %v19715_v63 }
 0x612   :  { %12237 = vmatprep.subr.bf16.mxu1 %v19718_v37 }
 0x614   :  { %12165 = vmatpush1.bf16.msra.mxu0 %v19713_v3 }
 0x615   :  { %12238 = vmatpush1.bf16.msra.mxu1 %v19716_v59  ;;  %12166 = vmatprep.subr.bf16.mxu0 %v19721_v28 }
 0x616   :  { %11120 = vmatmul.mubr.bf16.gmra.mrb[156].mxu0 %v23218_v21  ;;  %12239 = vmatprep.subr.bf16.mxu1 %v19724_v10  ;;  %v19731_v10 = vld [vmem:[#allocation11] ss:$16 sps:$4 sm:$0xff]  }
 0x617   :  { %11346 = vmatmul.mubr.bf16.gmra.mrb[156].mxu1 %v23218_v21 }
 0x618   :  { %12167 = vmatpush1.bf16.msra.mxu0 %v19719_v16  ;;  %v19734_v16 = vld [vmem:[#allocation11 + $0x8] ss:$16 sps:$4 sm:$0xff]  }
 0x619   :  { %12240 = vmatpush1.bf16.msra.mxu1 %v19722_v11  ;;  %12168 = vmatprep.subr.bf16.mxu0 %v19727_v9  ;;  %v19739_v9 = vld [vmem:[#allocation11 + $0x24] ss:$16 sps:$4 sm:$0xff]  }
 0x61a   :  { %12241 = vmatprep.subr.bf16.mxu1 %v19730_v29  ;;  %v19742_v29 = vld [vmem:[#allocation11 + $0x2c] ss:$16 sps:$4 sm:$0xff]  }
 0x61c   :  { %12169 = vmatpush1.bf16.msra.mxu0 %v19725_v33 }
 0x61d   :  { %12242 = vmatpush1.bf16.msra.mxu1 %v19728_v58  ;;  %12644 = vmatprep.subr.bf16.mxu0 %v19733_v39 }
 0x61e   :  { %12717 = vmatprep.subr.bf16.mxu1 %v19736_v25 }
 0x6b1   :  { %v11051_v24 = vpop.f32.mrb[128].mxu0 }
 0x6b2   :  { %v11442_v6 = vadd.f32 %v22670_v56, %v11051_v24  ;;  %v11277_v13 = vpop.f32.mrb[128].mxu1  ;;  %v11053_v45 = vpop.f32.mrb[129].mxu0 }
 0x6b3   :  { %v11444_v49 = vadd.f32 %v22673_v7, %v11277_v13  ;;  %v11443_v53 = vadd.f32 %v22676_v35, %v11053_v45  ;;  %v11279_v15 = vpop.f32.mrb[129].mxu1  ;;  %v11055_v60 = vpop.f32.mrb[130].mxu0  ;;  %v19737_v13 = vld [vmem:[#allocation11 + $0x20] ss:$16 sps:$4 sm:$0xff]   ;;  %v19740_v45 = vld [vmem:[#allocation11 + $0x28] ss:$16 sps:$4 sm:$0xff]  }
 0x6b4   :  { %v11445_v50 = vadd.f32 %v22679_v51, %v11279_v15  ;;  %v11446_v47 = vadd.f32 %v22670_v56, %v11055_v60  ;;  %v11281_v12 = vpop.f32.mrb[130].mxu1  ;;  %v11057_v44 = vpop.f32.mrb[131].mxu0 }
 0x6b5   :  { %v11506_v42 = vmax.f32 %v11442_v6, %v11444_v49  ;;  %v11448_v1 = vadd.f32 %v22673_v7, %v11281_v12  ;;  %v11447_v48 = vadd.f32 %v22676_v35, %v11057_v44  ;;  %v11283_v17 = vpop.f32.mrb[131].mxu1  ;;  %v19748_v12 = vld [vmem:[#allocation11 + $0x4c] ss:$16 sps:$4 sm:$0xff]  }
 0x6b6   :  { %v11507_v40 = vmax.f32 %v11443_v53, %v11445_v50  ;;  %v11449_v46 = vadd.f32 %v22679_v51, %v11283_v17 }
 0x6b7   :  { %v11508_v26 = vmax.f32 %v11446_v47, %v11448_v1  ;;  %v19745_v47 = vld [vmem:[#allocation11 + $0x44] ss:$16 sps:$4 sm:$0xff]  }
 0x6b8   :  { %v11509_v38 = vmax.f32 %v11447_v48, %v11449_v46 }
 0x6b9   :  { %v11538_v52 = vmax.f32 %v11506_v42, %v11508_v26  ;;  %v11061_v19 = vpop.f32.mrb[132].mxu0 }
 0x6ba   :  { %v11539_v41 = vmax.f32 %v11507_v40, %v11509_v38  ;;  %v11450_v23 = vadd.f32 %v22670_v56, %v11061_v19  ;;  %v11287_v31 = vpop.f32.mrb[132].mxu1  ;;  %v11063_v43 = vpop.f32.mrb[133].mxu0 }
 0x6bb   :  { %v11452_v2 = vadd.f32 %v22673_v7, %v11287_v31  ;;  %v11451_v14 = vadd.f32 %v22676_v35, %v11063_v43  ;;  %v11289_v54 = vpop.f32.mrb[133].mxu1  ;;  %v11065_v27 = vpop.f32.mrb[134].mxu0  ;;  %v19751_v43 = vld [vmem:[#allocation11 + $0x64] ss:$16 sps:$4 sm:$0xff]  }
 0x6bc   :  { %v11453_v36 = vadd.f32 %v22679_v51, %v11289_v54  ;;  %v11454_v61 = vadd.f32 %v22670_v56, %v11065_v27  ;;  %v11291_v20 = vpop.f32.mrb[134].mxu1  ;;  %v11067_v22 = vpop.f32.mrb[135].mxu0  ;;  %v17145_v0 = vpack.c.bf16 %v11539_v41, %v11538_v52 }
 0x6bd   :  { %v11510_v30 = vmax.f32 %v11450_v23, %v11452_v2  ;;  %v11456_v5 = vadd.f32 %v22673_v7, %v11291_v20  ;;  %v11455_v18 = vadd.f32 %v22676_v35, %v11067_v22  ;;  %v11293_v63 = vpop.f32.mrb[135].mxu1  ;;  %v19743_v23 = vld [vmem:[#allocation11 + $0x40] ss:$16 sps:$4 sm:$0xff]   ;;  %v19754_v2 = vld [vmem:[#allocation11 + $0x6c] ss:$16 sps:$4 sm:$0xff]  }
 0x6be   :  { %v11511_v37 = vmax.f32 %v11451_v14, %v11453_v36  ;;  %v11457_v3 = vadd.f32 %v22679_v51, %v11293_v63  ;;  %v16679_v59 = vcombine.low %v23184_v34, %v17145_v0  ;;  %v16680_v28 = vcombine.high %v23184_v34, %v17145_v0  ;;  %v19749_v0 = vld [vmem:[#allocation11 + $0x60] ss:$16 sps:$4 sm:$0xff]  }
 0x6bf   :  { %v11512_v11 = vmax.f32 %v11454_v61, %v11456_v5 }
 0x6c0   :  { %v11513_v33 = vmax.f32 %v11455_v18, %v11457_v3  ;;  %12170 = vmatprep.mubr.bf16.mxu0 %v16680_v28  ;;  %12243 = vmatprep.mubr.bf16.mxu1 %v16680_v28 }
 0x6c1   :  { %v11540_v58 = vmax.f32 %v11510_v30, %v11512_v11  ;;  %12171 = vmatmul.mubr.bf16.vlgmr.msra.gmra.mrb[160].mxu0 %v16679_v59  ;;  %12244 = vmatmul.mubr.bf16.vlgmr.msra.gmra.mrb[160].mxu1 %v16679_v59  ;;  %v11071_v39 = vpop.f32.mrb[136].mxu0  ;;  %v19752_v30 = vld [vmem:[#allocation11 + $0x68] ss:$16 sps:$4 sm:$0xff]  }
 0x6c2   :  { %v11541_v25 = vmax.f32 %v11511_v37, %v11513_v33  ;;  %12645 = vmatpush1.bf16.msra.mxu0 %v19731_v10  ;;  %12718 = vmatpush1.bf16.msra.mxu1 %v19734_v16  ;;  %v11458_v57 = vadd.f32 %v22670_v56, %v11071_v39  ;;  %v11297_v24 = vpop.f32.mrb[136].mxu1  ;;  %v11073_v6 = vpop.f32.mrb[137].mxu0  ;;  %v19757_v39 = vld [vmem:[#allocation11 + $0x84] ss:$16 sps:$4 sm:$0xff]  }
 0x6c3   :  { %v22700_v49 = vpack.c.bf16 %v11540_v58, %v11538_v52  ;;  %v11460_v53 = vadd.f32 %v22673_v7, %v11297_v24  ;;  %v11459_v15 = vadd.f32 %v22676_v35, %v11073_v6  ;;  %v11299_v60 = vpop.f32.mrb[137].mxu1  ;;  %v11075_v50 = vpop.f32.mrb[138].mxu0  ;;  %12646 = vmatprep.subr.bf16.mxu0 %v19739_v9  ;;  %12719 = vmatprep.subr.bf16.mxu1 %v19742_v29 }
 0x6c4   :  { %v22704_v44 = vpack.c.bf16 %v11541_v25, %v11539_v41  ;;  %v11461_v42 = vadd.f32 %v22679_v51, %v11299_v60  ;;  %v11462_v1 = vadd.f32 %v22670_v56, %v11075_v50  ;;  %v11301_v48 = vpop.f32.mrb[138].mxu1  ;;  %v11077_v17 = vpop.f32.mrb[139].mxu0  ;;  %v19746_v41 = vld [vmem:[#allocation11 + $0x48] ss:$16 sps:$4 sm:$0xff]  }
 0x6c5   :  { %v11514_v40 = vmax.f32 %v11458_v57, %v11460_v53  ;;  %v11464_v46 = vadd.f32 %v22673_v7, %v11301_v48  ;;  %v11463_v26 = vadd.f32 %v22676_v35, %v11077_v17  ;;  %v11303_v38 = vpop.f32.mrb[139].mxu1  ;;  %v19760_v57 = vld [vmem:[#allocation11 + $0x8c] ss:$16 sps:$4 sm:$0xff]   ;;  %v19763_v53 = vld [vmem:[#allocation11 + $0xa4] ss:$16 sps:$4 sm:$0xff]  }
 0x6c6   :  { %v11515_v52 = vmax.f32 %v11459_v15, %v11461_v42  ;;  %v11465_v19 = vadd.f32 %v22679_v51, %v11303_v38  ;;  %12647 = vmatpush1.bf16.msra.mxu0 %v19737_v13  ;;  %12720 = vmatpush1.bf16.msra.mxu1 %v19740_v45  ;;  %v19758_v13 = vld [vmem:[#allocation11 + $0x88] ss:$16 sps:$4 sm:$0xff]   ;;  %v19766_v15 = vld [vmem:[#allocation11 + $0xac] ss:$16 sps:$4 sm:$0xff]   ;;  %v19761_v17 = vld [vmem:[#allocation11 + $0xa0] ss:$16 sps:$4 sm:$0xff]  }
 0x6c7   :  { %v11516_v31 = vmax.f32 %v11462_v1, %v11464_v46  ;;  %12648 = vmatprep.subr.bf16.mxu0 %v19745_v47  ;;  %12721 = vmatprep.subr.bf16.mxu1 %v19748_v12 }
 0x6c8   :  { %v11517_v14 = vmax.f32 %v11463_v26, %v11465_v19 }
 0x6c9   :  { %v11542_v54 = vmax.f32 %v11514_v40, %v11516_v31  ;;  %v11081_v27 = vpop.f32.mrb[140].mxu0  ;;  %v19764_v40 = vld [vmem:[#allocation11 + $0xa8] ss:$16 sps:$4 sm:$0xff]  }
 0x6ca   :  { %v11543_v36 = vmax.f32 %v11515_v52, %v11517_v14  ;;  %12649 = vmatpush1.bf16.msra.mxu0 %v19743_v23  ;;  %12722 = vmatpush1.bf16.msra.mxu1 %v19746_v41  ;;  %v11466_v61 = vadd.f32 %v22670_v56, %v11081_v27  ;;  %v11307_v20 = vpop.f32.mrb[140].mxu1  ;;  %v11083_v22 = vpop.f32.mrb[141].mxu0  ;;  %v19769_v23 = vld [vmem:[#allocation11 + $0xc4] ss:$16 sps:$4 sm:$0xff]   ;;  %v19772_v41 = vld [vmem:[#allocation11 + $0xcc] ss:$16 sps:$4 sm:$0xff]  }
 0x6cb   :  { %v22712_v5 = vpack.c.bf16 %v11542_v54, %v11540_v58  ;;  %v11468_v18 = vadd.f32 %v22673_v7, %v11307_v20  ;;  %v11467_v63 = vadd.f32 %v22676_v35, %v11083_v22  ;;  %v11309_v37 = vpop.f32.mrb[141].mxu1  ;;  %v11085_v3 = vpop.f32.mrb[142].mxu0  ;;  %12650 = vmatprep.subr.bf16.mxu0 %v19751_v43  ;;  %12723 = vmatprep.subr.bf16.mxu1 %v19754_v2 }
 0x6cc   :  { %v22716_v59 = vpack.c.bf16 %v11543_v36, %v11541_v25  ;;  %v11469_v28 = vadd.f32 %v22679_v51, %v11309_v37  ;;  %v11470_v10 = vadd.f32 %v22670_v56, %v11085_v3  ;;  %v11311_v16 = vpop.f32.mrb[142].mxu1  ;;  %v11087_v11 = vpop.f32.mrb[143].mxu0  ;;  %v19755_v25 = vld [vmem:[#allocation11 + $0x80] ss:$16 sps:$4 sm:$0xff]   ;;  %v19775_v37 = vld [vmem:[#allocation11 + $0xe4] ss:$16 sps:$4 sm:$0xff]  }
 0x6cd   :  { %v11518_v9 = vmax.f32 %v11466_v61, %v11468_v18  ;;  %v11472_v29 = vadd.f32 %v22673_v7, %v11311_v16  ;;  %v11471_v33 = vadd.f32 %v22676_v35, %v11087_v11  ;;  %v11313_v58 = vpop.f32.mrb[143].mxu1  ;;  %v19767_v18 = vld [vmem:[#allocation11 + $0xc0] ss:$16 sps:$4 sm:$0xff]   ;;  %v19778_v3 = vld [vmem:[#allocation11 + $0xec] ss:$16 sps:$4 sm:$0xff]  }
 0x6ce   :  { %v11519_v24 = vmax.f32 %v11467_v63, %v11469_v28  ;;  %v11473_v6 = vadd.f32 %v22679_v51, %v11313_v58  ;;  %12651 = vmatpush1.bf16.msra.mxu0 %v19749_v0  ;;  %12724 = vmatpush1.bf16.msra.mxu1 %v19752_v30  ;;  %v19773_v58 = vld [vmem:[#allocation11 + $0xe0] ss:$16 sps:$4 sm:$0xff]  }
 0x6cf   :  { %v11520_v45 = vmax.f32 %v11470_v10, %v11472_v29  ;;  %12180 = vmatprep.mubr.bf16.mxu0 %v22716_v59  ;;  %12253 = vmatprep.mubr.bf16.mxu1 %v22716_v59 }
 0x6d0   :  { %v11521_v60 = vmax.f32 %v11471_v33, %v11473_v6  ;;  %12181 = vmatmul.mubr.bf16.gmra.mrb[164].mxu0 %v22712_v5  ;;  %12254 = vmatmul.mubr.bf16.gmra.mrb[164].mxu1 %v22712_v5 }
 0x6d1   :  { %v11544_v50 = vmax.f32 %v11518_v9, %v11520_v45  ;;  %12652 = vmatprep.subr.bf16.mxu0 %v19757_v39  ;;  %12725 = vmatprep.subr.bf16.mxu1 %v19760_v57  ;;  %v11091_v47 = vpop.f32.mrb[144].mxu0  ;;  %v19776_v39 = vld [vmem:[#allocation11 + $0xe8] ss:$16 sps:$4 sm:$0xff]  }
 0x6d2   :  { %v11545_v12 = vmax.f32 %v11519_v24, %v11521_v60  ;;  %12653 = vmatpush1.bf16.msra.mxu0 %v19755_v25  ;;  %12726 = vmatpush1.bf16.msra.mxu1 %v19758_v13  ;;  %v11474_v42 = vadd.f32 %v22670_v56, %v11091_v47  ;;  %v11317_v1 = vpop.f32.mrb[144].mxu1  ;;  %v11093_v48 = vpop.f32.mrb[145].mxu0 }
 0x6d3   :  { %v22728_v46 = vpack.c.bf16 %v11544_v50, %v11542_v54  ;;  %v11476_v26 = vadd.f32 %v22673_v7, %v11317_v1  ;;  %v11475_v38 = vadd.f32 %v22676_v35, %v11093_v48  ;;  %v11319_v52 = vpop.f32.mrb[145].mxu1  ;;  %v11095_v19 = vpop.f32.mrb[146].mxu0  ;;  %12654 = vmatprep.subr.bf16.mxu0 %v19763_v53  ;;  %12727 = vmatprep.subr.bf16.mxu1 %v19766_v15 }
 0x6d4   :  { %v22732_v31 = vpack.c.bf16 %v11545_v12, %v11543_v36  ;;  %v11477_v43 = vadd.f32 %v22679_v51, %v11319_v52  ;;  %v11478_v2 = vadd.f32 %v22670_v56, %v11095_v19  ;;  %v11321_v14 = vpop.f32.mrb[146].mxu1  ;;  %v11097_v27 = vpop.f32.mrb[147].mxu0  ;;  %v19770_v36 = vld [vmem:[#allocation11 + $0xc8] ss:$16 sps:$4 sm:$0xff]  }
 0x6d5   :  { %v11522_v54 = vmax.f32 %v11474_v42, %v11476_v26  ;;  %v11480_v61 = vadd.f32 %v22673_v7, %v11321_v14  ;;  %v11479_v20 = vadd.f32 %v22676_v35, %v11097_v27  ;;  %v11323_v22 = vpop.f32.mrb[147].mxu1  ;;  %v19782_v52 = vld [vmem:[#allocation11 + $0x108] ss:$16 sps:$4 sm:$0xff]  }
 0x6d6   :  { %v11523_v0 = vmax.f32 %v11475_v38, %v11477_v43  ;;  %v11481_v30 = vadd.f32 %v22679_v51, %v11323_v22  ;;  %12655 = vmatpush1.bf16.msra.mxu0 %v19761_v17  ;;  %12728 = vmatpush1.bf16.msra.mxu1 %v19764_v40  ;;  %v19781_v17 = vld [vmem:[#allocation11 + $0x104] ss:$16 sps:$4 sm:$0xff]   ;;  %v19784_v40 = vld [vmem:[#allocation11 + $0x10c] ss:$16 sps:$4 sm:$0xff]   ;;  %v19785_v22 = vld [vmem:[#allocation11 + $0x120] ss:$16 sps:$4 sm:$0xff]  }
 0x6d7   :  { %v11524_v63 = vmax.f32 %v11478_v2, %v11480_v61  ;;  %12656 = vmatprep.subr.bf16.mxu0 %v19769_v23  ;;  %12729 = vmatprep.subr.bf16.mxu1 %v19772_v41  ;;  %v19787_v23 = vld [vmem:[#allocation11 + $0x124] ss:$16 sps:$4 sm:$0xff]   ;;  %v19790_v41 = vld [vmem:[#allocation11 + $0x12c] ss:$16 sps:$4 sm:$0xff]  }
 0x6d8   :  { %v11525_v28 = vmax.f32 %v11479_v20, %v11481_v30 }
 0x6d9   :  { %v11546_v10 = vmax.f32 %v11522_v54, %v11524_v63  ;;  %v11101_v16 = vpop.f32.mrb[148].mxu0 }
 0x6da   :  { %v11547_v11 = vmax.f32 %v11523_v0, %v11525_v28  ;;  %12657 = vmatpush1.bf16.msra.mxu0 %v19767_v18  ;;  %12730 = vmatpush1.bf16.msra.mxu1 %v19770_v36  ;;  %v11482_v9 = vadd.f32 %v22670_v56, %v11101_v16  ;;  %v11327_v29 = vpop.f32.mrb[148].mxu1  ;;  %v11103_v33 = vpop.f32.mrb[149].mxu0  ;;  %v19788_v0 = vld [vmem:[#allocation11 + $0x128] ss:$16 sps:$4 sm:$0xff]   ;;  %v19796_v28 = vld [vmem:[#allocation11 + $0x14c] ss:$16 sps:$4 sm:$0xff]  }
 0x6db   :  { %v22740_v57 = vpack.c.bf16 %v11546_v10, %v11544_v50  ;;  %v11484_v24 = vadd.f32 %v22673_v7, %v11327_v29  ;;  %v11483_v6 = vadd.f32 %v22676_v35, %v11103_v33  ;;  %v11329_v25 = vpop.f32.mrb[149].mxu1  ;;  %v11105_v13 = vpop.f32.mrb[150].mxu0  ;;  %12658 = vmatprep.subr.bf16.mxu0 %v19775_v37  ;;  %12731 = vmatprep.subr.bf16.mxu1 %v19778_v3  ;;  %v19793_v3 = vld [vmem:[#allocation11 + $0x144] ss:$16 sps:$4 sm:$0xff]  }
 0x6dc   :  { %v22744_v45 = vpack.c.bf16 %v11547_v11, %v11545_v12  ;;  %v11485_v53 = vadd.f32 %v22679_v51, %v11329_v25  ;;  %v11486_v15 = vadd.f32 %v22670_v56, %v11105_v13  ;;  %v11331_v60 = vpop.f32.mrb[150].mxu1  ;;  %v11107_v47 = vpop.f32.mrb[151].mxu0  ;;  %v19779_v12 = vld [vmem:[#allocation11 + $0x100] ss:$16 sps:$4 sm:$0xff]  }
 0x6dd   :  { %v11526_v42 = vmax.f32 %v11482_v9, %v11484_v24  ;;  %v11488_v50 = vadd.f32 %v22673_v7, %v11331_v60  ;;  %v11487_v1 = vadd.f32 %v22676_v35, %v11107_v47  ;;  %v11333_v48 = vpop.f32.mrb[151].mxu1  ;;  %v19799_v60 = vld [vmem:[#allocation11 + $0x164] ss:$16 sps:$4 sm:$0xff]   ;;  %v19802_v47 = vld [vmem:[#allocation11 + $0x16c] ss:$16 sps:$4 sm:$0xff]  }
 0x6de   :  { %v11527_v26 = vmax.f32 %v11483_v6, %v11485_v53  ;;  %v11489_v38 = vadd.f32 %v22679_v51, %v11333_v48  ;;  %12659 = vmatpush1.bf16.msra.mxu0 %v19773_v58  ;;  %12732 = vmatpush1.bf16.msra.mxu1 %v19776_v39  ;;  %v19791_v53 = vld [vmem:[#allocation11 + $0x140] ss:$16 sps:$4 sm:$0xff]  }
 0x6df   :  { %v11528_v19 = vmax.f32 %v11486_v15, %v11488_v50  ;;  %12190 = vmatprep.mubr.bf16.mxu0 %v22744_v45  ;;  %12263 = vmatprep.mubr.bf16.mxu1 %v22744_v45 }
 0x6e0   :  { %v11529_v43 = vmax.f32 %v11487_v1, %v11489_v38  ;;  %12191 = vmatmul.mubr.bf16.gmra.mrb[168].mxu0 %v22740_v57  ;;  %12264 = vmatmul.mubr.bf16.gmra.mrb[168].mxu1 %v22740_v57  ;;  %v19797_v38 = vld [vmem:[#allocation11 + $0x160] ss:$16 sps:$4 sm:$0xff]  }
 0x6e1   :  { %v11548_v2 = vmax.f32 %v11526_v42, %v11528_v19  ;;  %12660 = vmatprep.subr.bf16.mxu0 %v19781_v17  ;;  %12733 = vmatprep.subr.bf16.mxu1 %v19784_v40  ;;  %v11111_v14 = vpop.f32.mrb[152].mxu0 }
 0x6e2   :  { %v11549_v27 = vmax.f32 %v11527_v26, %v11529_v43  ;;  %12661 = vmatpush1.bf16.msra.mxu0 %v19779_v12  ;;  %12734 = vmatpush1.bf16.msra.mxu1 %v19782_v52  ;;  %v11490_v54 = vadd.f32 %v22670_v56, %v11111_v14  ;;  %v11337_v61 = vpop.f32.mrb[152].mxu1  ;;  %v11113_v20 = vpop.f32.mrb[153].mxu0  ;;  %v19800_v12 = vld [vmem:[#allocation11 + $0x168] ss:$16 sps:$4 sm:$0xff]  }
 0x6e3   :  { %v22756_v30 = vpack.c.bf16 %v11548_v2, %v11546_v10  ;;  %v11492_v18 = vadd.f32 %v22673_v7, %v11337_v61  ;;  %v11491_v36 = vadd.f32 %v22676_v35, %v11113_v20  ;;  %v11339_v63 = vpop.f32.mrb[153].mxu1  ;;  %v11115_v37 = vpop.f32.mrb[154].mxu0  ;;  %12662 = vmatprep.subr.bf16.mxu0 %v19787_v23  ;;  %12735 = vmatprep.subr.bf16.mxu1 %v19790_v41 }
 0x6e4   :  { %v22760_v16 = vpack.c.bf16 %v11549_v27, %v11547_v11  ;;  %v11493_v9 = vadd.f32 %v22679_v51, %v11339_v63  ;;  %v11494_v29 = vadd.f32 %v22670_v56, %v11115_v37  ;;  %v11341_v33 = vpop.f32.mrb[154].mxu1  ;;  %v11117_v58 = vpop.f32.mrb[155].mxu0  ;;  %v19794_v11 = vld [vmem:[#allocation11 + $0x148] ss:$16 sps:$4 sm:$0xff]   ;;  %v19805_v63 = vld [vmem:[#allocation11 + $0x184] ss:$16 sps:$4 sm:$0xff]  }
 0x6e5   :  { %v11530_v10 = vmax.f32 %v11490_v54, %v11492_v18  ;;  %v11496_v39 = vadd.f32 %v22673_v7, %v11341_v33  ;;  %v11495_v24 = vadd.f32 %v22676_v35, %v11117_v58  ;;  %v11343_v6 = vpop.f32.mrb[155].mxu1  ;;  %v19808_v37 = vld [vmem:[#allocation11 + $0x18c] ss:$16 sps:$4 sm:$0xff]   ;;  %v19809_v58 = vld [vmem:[#allocation11 + $0x1a0] ss:$16 sps:$4 sm:$0xff]  }
 0x6e6   :  { %v11531_v25 = vmax.f32 %v11491_v36, %v11493_v9  ;;  %v11497_v13 = vadd.f32 %v22679_v51, %v11343_v6  ;;  %12663 = vmatpush1.bf16.msra.mxu0 %v19785_v22  ;;  %12736 = vmatpush1.bf16.msra.mxu1 %v19788_v0  ;;  %v19806_v9 = vld [vmem:[#allocation11 + $0x188] ss:$16 sps:$4 sm:$0xff]   ;;  %v19814_v33 = vld [vmem:[#allocation11 + $0x1ac] ss:$16 sps:$4 sm:$0xff]  }
 0x6e7   :  { %v11532_v15 = vmax.f32 %v11494_v29, %v11496_v39  ;;  %12664 = vmatprep.subr.bf16.mxu0 %v19793_v3  ;;  %12737 = vmatprep.subr.bf16.mxu1 %v19796_v28  ;;  %v19820_v6 = vld [vmem:[#allocation11 + $0x1cc] ss:$16 sps:$4 sm:$0xff]  }
 0x6e8   :  { %v11533_v42 = vmax.f32 %v11495_v24, %v11497_v13  ;;  %v19817_v24 = vld [vmem:[#allocation11 + $0x1c4] ss:$16 sps:$4 sm:$0xff]  }
 0x6e9   :  { %v11550_v50 = vmax.f32 %v11530_v10, %v11532_v15  ;;  %v11121_v1 = vpop.f32.mrb[156].mxu0  ;;  %v19812_v10 = vld [vmem:[#allocation11 + $0x1a8] ss:$16 sps:$4 sm:$0xff]   ;;  %v19823_v15 = vld [vmem:[#allocation11 + $0x1e4] ss:$16 sps:$4 sm:$0xff]  }
 0x6ea   :  { %v11551_v48 = vmax.f32 %v11531_v25, %v11533_v42  ;;  %12665 = vmatpush1.bf16.msra.mxu0 %v19791_v53  ;;  %12738 = vmatpush1.bf16.msra.mxu1 %v19794_v11  ;;  %v11498_v17 = vadd.f32 %v22670_v56, %v11121_v1  ;;  %v11347_v40 = vpop.f32.mrb[156].mxu1  ;;  %v11123_v26 = vpop.f32.mrb[157].mxu0  ;;  %v19815_v53 = vld [vmem:[#allocation11 + $0x1c0] ss:$16 sps:$4 sm:$0xff]   ;;  %v19818_v11 = vld [vmem:[#allocation11 + $0x1c8] ss:$16 sps:$4 sm:$0xff]  }
 0x6eb   :  { %v22768_v52 = vpack.c.bf16 %v11550_v50, %v11548_v2  ;;  %v11500_v19 = vadd.f32 %v22673_v7, %v11347_v40  ;;  %v11499_v23 = vadd.f32 %v22676_v35, %v11123_v26  ;;  %v11349_v41 = vpop.f32.mrb[157].mxu1  ;;  %v11125_v43 = vpop.f32.mrb[158].mxu0  ;;  %12666 = vmatprep.subr.bf16.mxu0 %v19799_v60  ;;  %12739 = vmatprep.subr.bf16.mxu1 %v19802_v47  ;;  %v19826_v60 = vld [vmem:[#allocation11 + $0x1ec] ss:$16 sps:$4 sm:$0xff]   ;;  %v19821_v47 = vld [vmem:[#allocation11 + $0x1e0] ss:$16 sps:$4 sm:$0xff]  }
 0x6ec   :  { %v22772_v14 = vpack.c.bf16 %v11551_v48, %v11549_v27  ;;  %v11501_v54 = vadd.f32 %v22679_v51, %v11349_v41  ;;  %v11502_v61 = vadd.f32 %v22670_v56, %v11125_v43  ;;  %v11351_v20 = vpop.f32.mrb[158].mxu1  ;;  %v11127_v22 = vpop.f32.mrb[159].mxu0  ;;  %v19803_v27 = vld [vmem:[#allocation11 + $0x180] ss:$16 sps:$4 sm:$0xff]   ;;  %v19811_v56 = vld [vmem:[#allocation11 + $0x1a4] ss:$16 sps:$4 sm:$0xff]  }
 0x6ed   :  { %v11534_v0 = vmax.f32 %v11498_v17, %v11500_v19  ;;  %v11504_v2 = vadd.f32 %v22673_v7, %v11351_v20  ;;  %v11503_v18 = vadd.f32 %v22676_v35, %v11127_v22  ;;  %v11353_v36 = vpop.f32.mrb[159].mxu1  ;;  %v19824_v42 = vld [vmem:[#allocation11 + $0x1e8] ss:$16 sps:$4 sm:$0xff]   ;;  %v19832_v1 = vld [vmem:[#allocation11 + $0x40c] ss:$16 sps:$4 sm:$0xff]  }
 0x6ee   :  { %v11535_v3 = vmax.f32 %v11499_v23, %v11501_v54  ;;  %v11505_v28 = vadd.f32 %v22679_v51, %v11353_v36  ;;  %12667 = vmatpush1.bf16.msra.mxu0 %v19797_v38  ;;  %12740 = vmatpush1.bf16.msra.mxu1 %v19800_v12  ;;  %v19830_v17 = vld [vmem:[#allocation11 + $0x408] ss:$16 sps:$4 sm:$0xff]   ;;  %v19835_v40 = vld [vmem:[#allocation11 + $0x424] ss:$16 sps:$4 sm:$0xff]   ;;  %v19838_v26 = vld [vmem:[#allocation11 + $0x42c] ss:$16 sps:$4 sm:$0xff]  }
 0x6ef   :  { %v11536_v29 = vmax.f32 %v11502_v61, %v11504_v2  ;;  %12200 = vmatprep.mubr.bf16.mxu0 %v22772_v14  ;;  %12273 = vmatprep.mubr.bf16.mxu1 %v22772_v14  ;;  %v19833_v38 = vld [vmem:[#allocation11 + $0x420] ss:$16 sps:$4 sm:$0xff]   ;;  %v19836_v12 = vld [vmem:[#allocation11 + $0x428] ss:$16 sps:$4 sm:$0xff]   ;;  %v19841_v19 = vld [vmem:[#allocation11 + $0x444] ss:$16 sps:$4 sm:$0xff]  }
 0x6f0   :  { %v11537_v7 = vmax.f32 %v11503_v18, %v11505_v28  ;;  %12201 = vmatmul.mubr.bf16.gmra.mrb[172].mxu0 %v22768_v52  ;;  %12274 = vmatmul.mubr.bf16.gmra.mrb[172].mxu1 %v22768_v52  ;;  %v19844_v23 = vld [vmem:[#allocation11 + $0x44c] ss:$16 sps:$4 sm:$0xff]   ;;  %v19839_v41 = vld [vmem:[#allocation11 + $0x440] ss:$16 sps:$4 sm:$0xff]   ;;  %v19842_v43 = vld [vmem:[#allocation11 + $0x448] ss:$16 sps:$4 sm:$0xff]  }
 0x6f1   :  { %v11552_v35 = vmax.f32 %v11534_v0, %v11536_v29  ;;  %12668 = vmatprep.subr.bf16.mxu0 %v19805_v63  ;;  %12741 = vmatprep.subr.bf16.mxu1 %v19808_v37  ;;  %v19847_v54 = vld [vmem:[#allocation11 + $0x464] ss:$16 sps:$4 sm:$0xff]   ;;  %v19850_v61 = vld [vmem:[#allocation11 + $0x46c] ss:$16 sps:$4 sm:$0xff]   ;;  %v19845_v20 = vld [vmem:[#allocation11 + $0x460] ss:$16 sps:$4 sm:$0xff]  }
 0x6f2   :  { %v11553_v51 = vmax.f32 %v11535_v3, %v11537_v7  ;;  %12669 = vmatpush1.bf16.msra.mxu0 %v19803_v27  ;;  %12742 = vmatpush1.bf16.msra.mxu1 %v19806_v9  ;;  %v19848_v22 = vld [vmem:[#allocation11 + $0x468] ss:$16 sps:$4 sm:$0xff]   ;;  %v19853_v0 = vld [vmem:[#allocation11 + $0x484] ss:$16 sps:$4 sm:$0xff]   ;;  %v19856_v2 = vld [vmem:[#allocation11 + $0x48c] ss:$16 sps:$4 sm:$0xff]  }
 0x6f3   :  { %v22783_v39 = vpack.c.bf16 %v11552_v35, %v11550_v50  ;;  %12670 = vmatprep.subr.bf16.mxu0 %v19811_v56  ;;  %12743 = vmatprep.subr.bf16.mxu1 %v19814_v33  ;;  %v19829_v50 = vld [vmem:[#allocation11 + $0x404] ss:$16 sps:$4 sm:$0xff]   ;;  %v19851_v18 = vld [vmem:[#allocation11 + $0x480] ss:$16 sps:$4 sm:$0xff]   ;;  %v19854_v36 = vld [vmem:[#allocation11 + $0x488] ss:$16 sps:$4 sm:$0xff]  }
 0x6f4   :  { %v22785_v25 = vpack.c.bf16 %v11553_v51, %v11551_v48  ;;  %12676 = vmatprep.mubr.bf16.mxu0 %v22405_v4  ;;  %12749 = vmatprep.mubr.bf16.mxu1 %v22405_v4  ;;  %v22789_v13 = vpack.c.bf16 %v11553_v51, %v11552_v35  ;;  %v19827_v48 = vld [vmem:[#allocation11 + $0x400] ss:$16 sps:$4 sm:$0xff]   ;;  %v19859_v63 = vld [vmem:[#allocation11 + $0x4a4] ss:$16 sps:$4 sm:$0xff]   ;;  %v19862_v37 = vld [vmem:[#allocation11 + $0x4ac] ss:$16 sps:$4 sm:$0xff]  }
 0x6f5   :  { %v19857_v3 = vld [vmem:[#allocation11 + $0x4a0] ss:$16 sps:$4 sm:$0xff]   ;;  %v19860_v28 = vld [vmem:[#allocation11 + $0x4a8] ss:$16 sps:$4 sm:$0xff]   ;;  %v19865_v27 = vld [vmem:[#allocation11 + $0x4c4] ss:$16 sps:$4 sm:$0xff]  }
 0x6f6   :  { %12671 = vmatpush1.bf16.msra.mxu0 %v19809_v58  ;;  %12744 = vmatpush1.bf16.msra.mxu1 %v19812_v10  ;;  %v19868_v9 = vld [vmem:[#allocation11 + $0x4cc] ss:$16 sps:$4 sm:$0xff]   ;;  %v19863_v29 = vld [vmem:[#allocation11 + $0x4c0] ss:$16 sps:$4 sm:$0xff]   ;;  %v19866_v56 = vld [vmem:[#allocation11 + $0x4c8] ss:$16 sps:$4 sm:$0xff]  }
 0x6f7   :  { %12672 = vmatprep.subr.bf16.mxu0 %v19817_v24  ;;  %12745 = vmatprep.subr.bf16.mxu1 %v19820_v6  ;;  %v19871_v33 = vld [vmem:[#allocation11 + $0x4e4] ss:$16 sps:$4 sm:$0xff]   ;;  %v19874_v7 = vld [vmem:[#allocation11 + $0x4ec] ss:$16 sps:$4 sm:$0xff]   ;;  %v19869_v35 = vld [vmem:[#allocation11 + $0x4e0] ss:$16 sps:$4 sm:$0xff]  }
 0x6f8   :  { %v19872_v51 = vld [vmem:[#allocation11 + $0x4e8] ss:$16 sps:$4 sm:$0xff]   ;;  %v19877_v58 = vld [vmem:[#allocation11 + $0x504] ss:$16 sps:$4 sm:$0xff]   ;;  %v19880_v10 = vld [vmem:[#allocation11 + $0x50c] ss:$16 sps:$4 sm:$0xff]  }
 0x6f9   :  { %v19875_v24 = vld [vmem:[#allocation11 + $0x500] ss:$16 sps:$4 sm:$0xff]   ;;  %v19878_v6 = vld [vmem:[#allocation11 + $0x508] ss:$16 sps:$4 sm:$0xff]  }
 0x6fa   :  { %12673 = vmatpush1.bf16.msra.mxu0 %v19815_v53  ;;  %12746 = vmatpush1.bf16.msra.mxu1 %v19818_v11  ;;  %v19883_v53 = vld [vmem:[#allocation11 + $0x524] ss:$16 sps:$4 sm:$0xff]   ;;  %v19886_v11 = vld [vmem:[#allocation11 + $0x52c] ss:$16 sps:$4 sm:$0xff]  }
 0x6fb   :  { %12674 = vmatprep.subr.bf16.mxu0 %v19823_v15  ;;  %12747 = vmatprep.subr.bf16.mxu1 %v19826_v60  ;;  %v19881_v15 = vld [vmem:[#allocation11 + $0x520] ss:$16 sps:$4 sm:$0xff]   ;;  %v19889_v60 = vld [vmem:[#allocation11 + $0x544] ss:$16 sps:$4 sm:$0xff]  }
 0x6fe   :  { %12675 = vmatpush1.bf16.msra.mxu0 %v19821_v47  ;;  %12748 = vmatpush1.bf16.msra.mxu1 %v19824_v42  ;;  %v19892_v47 = vld [vmem:[#allocation11 + $0x54c] ss:$16 sps:$4 sm:$0xff]   ;;  %v19887_v42 = vld [vmem:[#allocation11 + $0x540] ss:$16 sps:$4 sm:$0xff]  }
 0x6ff   :  { %13223 = vmatprep.subr.bf16.mxu0 %v19829_v50  ;;  %13296 = vmatprep.subr.bf16.mxu1 %v19832_v1  ;;  %v19890_v50 = vld [vmem:[#allocation11 + $0x548] ss:$16 sps:$4 sm:$0xff]   ;;  %v19895_v1 = vld [vmem:[#allocation11 + $0x564] ss:$16 sps:$4 sm:$0xff]  }
 0x701   :  { %12677 = vmatmul.mubr.bf16.vlgmr.msra.gmra.mrb[160].mxu0 %v23218_v21  ;;  %12750 = vmatmul.mubr.bf16.vlgmr.msra.gmra.mrb[160].mxu1 %v23218_v21 }
 0x702   :  { %12686 = vmatprep.mubr.bf16.mxu0 %v22704_v44  ;;  %12759 = vmatprep.mubr.bf16.mxu1 %v22704_v44 }
 0x703   :  { %13224 = vmatpush1.bf16.msra.mxu0 %v19827_v48  ;;  %13297 = vmatpush1.bf16.msra.mxu1 %v19830_v17  ;;  %v19898_v48 = vld [vmem:[#allocation11 + $0x56c] ss:$16 sps:$4 sm:$0xff]   ;;  %v19893_v17 = vld [vmem:[#allocation11 + $0x560] ss:$16 sps:$4 sm:$0xff]  }
 0x704   :  { %13225 = vmatprep.subr.bf16.mxu0 %v19835_v40  ;;  %13298 = vmatprep.subr.bf16.mxu1 %v19838_v26  ;;  %v19896_v40 = vld [vmem:[#allocation11 + $0x568] ss:$16 sps:$4 sm:$0xff]   ;;  %v19901_v26 = vld [vmem:[#allocation11 + $0x584] ss:$16 sps:$4 sm:$0xff]  }
 0x707   :  { %13226 = vmatpush1.bf16.msra.mxu0 %v19833_v38  ;;  %13299 = vmatpush1.bf16.msra.mxu1 %v19836_v12  ;;  %v19904_v38 = vld [vmem:[#allocation11 + $0x58c] ss:$16 sps:$4 sm:$0xff]   ;;  %v19899_v12 = vld [vmem:[#allocation11 + $0x580] ss:$16 sps:$4 sm:$0xff]  }
 0x708   :  { %13227 = vmatprep.subr.bf16.mxu0 %v19841_v19  ;;  %13300 = vmatprep.subr.bf16.mxu1 %v19844_v23  ;;  %v19902_v19 = vld [vmem:[#allocation11 + $0x588] ss:$16 sps:$4 sm:$0xff]   ;;  %v19907_v23 = vld [vmem:[#allocation11 + $0x5a4] ss:$16 sps:$4 sm:$0xff]  }
 0x709   :  { %12687 = vmatmul.mubr.bf16.gmra.mrb[164].mxu0 %v22700_v49  ;;  %12760 = vmatmul.mubr.bf16.gmra.mrb[164].mxu1 %v22700_v49 }
 0x70a   :  { %12696 = vmatprep.mubr.bf16.mxu0 %v22732_v31  ;;  %12769 = vmatprep.mubr.bf16.mxu1 %v22732_v31 }
 0x70b   :  { %13228 = vmatpush1.bf16.msra.mxu0 %v19839_v41  ;;  %13301 = vmatpush1.bf16.msra.mxu1 %v19842_v43  ;;  %v19910_v41 = vld [vmem:[#allocation11 + $0x5ac] ss:$16 sps:$4 sm:$0xff]   ;;  %v19905_v43 = vld [vmem:[#allocation11 + $0x5a0] ss:$16 sps:$4 sm:$0xff]  }
 0x70c   :  { %13229 = vmatprep.subr.bf16.mxu0 %v19847_v54  ;;  %13302 = vmatprep.subr.bf16.mxu1 %v19850_v61  ;;  %v19908_v54 = vld [vmem:[#allocation11 + $0x5a8] ss:$16 sps:$4 sm:$0xff]   ;;  %v19913_v61 = vld [vmem:[#allocation11 + $0x5c4] ss:$16 sps:$4 sm:$0xff]  }
 0x70f   :  { %13230 = vmatpush1.bf16.msra.mxu0 %v19845_v20  ;;  %13303 = vmatpush1.bf16.msra.mxu1 %v19848_v22  ;;  %v19916_v20 = vld [vmem:[#allocation11 + $0x5cc] ss:$16 sps:$4 sm:$0xff]   ;;  %v19911_v22 = vld [vmem:[#allocation11 + $0x5c0] ss:$16 sps:$4 sm:$0xff]  }
 0x710   :  { %13231 = vmatprep.subr.bf16.mxu0 %v19853_v0  ;;  %13304 = vmatprep.subr.bf16.mxu1 %v19856_v2  ;;  %v19914_v0 = vld [vmem:[#allocation11 + $0x5c8] ss:$16 sps:$4 sm:$0xff]   ;;  %v19919_v2 = vld [vmem:[#allocation11 + $0x5e4] ss:$16 sps:$4 sm:$0xff]  }
 0x711   :  { %12697 = vmatmul.mubr.bf16.gmra.mrb[168].mxu0 %v22728_v46  ;;  %12770 = vmatmul.mubr.bf16.gmra.mrb[168].mxu1 %v22728_v46 }
 0x712   :  { %12706 = vmatprep.mubr.bf16.mxu0 %v22760_v16  ;;  %12779 = vmatprep.mubr.bf16.mxu1 %v22760_v16 }
 0x713   :  { %13232 = vmatpush1.bf16.msra.mxu0 %v19851_v18  ;;  %13305 = vmatpush1.bf16.msra.mxu1 %v19854_v36  ;;  %v19922_v18 = vld [vmem:[#allocation11 + $0x5ec] ss:$16 sps:$4 sm:$0xff]   ;;  %v19917_v36 = vld [vmem:[#allocation11 + $0x5e0] ss:$16 sps:$4 sm:$0xff]  }
 0x714   :  { %13233 = vmatprep.subr.bf16.mxu0 %v19859_v63  ;;  %13306 = vmatprep.subr.bf16.mxu1 %v19862_v37  ;;  %v19920_v63 = vld [vmem:[#allocation11 + $0x5e8] ss:$16 sps:$4 sm:$0xff]   ;;  %v19925_v37 = vld [vmem:[#allocation11 + $0x604] ss:$16 sps:$4 sm:$0xff]  }
 0x717   :  { %13234 = vmatpush1.bf16.msra.mxu0 %v19857_v3  ;;  %13307 = vmatpush1.bf16.msra.mxu1 %v19860_v28  ;;  %v19928_v3 = vld [vmem:[#allocation11 + $0x60c] ss:$16 sps:$4 sm:$0xff]   ;;  %v19923_v28 = vld [vmem:[#allocation11 + $0x600] ss:$16 sps:$4 sm:$0xff]  }
 0x718   :  { %13235 = vmatprep.subr.bf16.mxu0 %v19865_v27  ;;  %13308 = vmatprep.subr.bf16.mxu1 %v19868_v9  ;;  %v19926_v27 = vld [vmem:[#allocation11 + $0x608] ss:$16 sps:$4 sm:$0xff]   ;;  %v19931_v9 = vld [vmem:[#allocation11 + $0x624] ss:$16 sps:$4 sm:$0xff]  }
 0x719   :  { %12707 = vmatmul.mubr.bf16.gmra.mrb[172].mxu0 %v22756_v30  ;;  %12780 = vmatmul.mubr.bf16.gmra.mrb[172].mxu1 %v22756_v30 }
 0x71a   :  { %13255 = vmatprep.mubr.bf16.mxu0 %v22704_v44  ;;  %13328 = vmatprep.mubr.bf16.mxu1 %v22704_v44  ;;  %v19884_v44 = vld [vmem:[#allocation11 + $0x528] ss:$16 sps:$4 sm:$0xff]  }
 0x71b   :  { %13236 = vmatpush1.bf16.msra.mxu0 %v19863_v29  ;;  %13309 = vmatpush1.bf16.msra.mxu1 %v19866_v56  ;;  %v19934_v29 = vld [vmem:[#allocation11 + $0x62c] ss:$16 sps:$4 sm:$0xff]   ;;  %v19929_v56 = vld [vmem:[#allocation11 + $0x620] ss:$16 sps:$4 sm:$0xff]  }
 0x71c   :  { %13237 = vmatprep.subr.bf16.mxu0 %v19871_v33  ;;  %13310 = vmatprep.subr.bf16.mxu1 %v19874_v7  ;;  %v19932_v33 = vld [vmem:[#allocation11 + $0x628] ss:$16 sps:$4 sm:$0xff]   ;;  %v19937_v7 = vld [vmem:[#allocation11 + $0x644] ss:$16 sps:$4 sm:$0xff]  }
 0x71f   :  { %13238 = vmatpush1.bf16.msra.mxu0 %v19869_v35  ;;  %13311 = vmatpush1.bf16.msra.mxu1 %v19872_v51  ;;  %v19940_v35 = vld [vmem:[#allocation11 + $0x64c] ss:$16 sps:$4 sm:$0xff]   ;;  %v19935_v51 = vld [vmem:[#allocation11 + $0x640] ss:$16 sps:$4 sm:$0xff]  }
 0x720   :  { %13239 = vmatprep.subr.bf16.mxu0 %v19877_v58  ;;  %13312 = vmatprep.subr.bf16.mxu1 %v19880_v10  ;;  %v19938_v58 = vld [vmem:[#allocation11 + $0x648] ss:$16 sps:$4 sm:$0xff]   ;;  %v19943_v10 = vld [vmem:[#allocation11 + $0x664] ss:$16 sps:$4 sm:$0xff]  }
 0x723   :  { %13240 = vmatpush1.bf16.msra.mxu0 %v19875_v24  ;;  %13313 = vmatpush1.bf16.msra.mxu1 %v19878_v6  ;;  %v19941_v24 = vld [vmem:[#allocation11 + $0x660] ss:$16 sps:$4 sm:$0xff]   ;;  %v19944_v6 = vld [vmem:[#allocation11 + $0x668] ss:$16 sps:$4 sm:$0xff]  }
 0x724   :  { %13241 = vmatprep.subr.bf16.mxu0 %v19883_v53  ;;  %13314 = vmatprep.subr.bf16.mxu1 %v19886_v11  ;;  %v19949_v53 = vld [vmem:[#allocation11 + $0x684] ss:$16 sps:$4 sm:$0xff]   ;;  %v19952_v11 = vld [vmem:[#allocation11 + $0x68c] ss:$16 sps:$4 sm:$0xff]  }
 0x727   :  { %13242 = vmatpush1.bf16.msra.mxu0 %v19881_v15  ;;  %13315 = vmatpush1.bf16.msra.mxu1 %v19884_v44  ;;  %v19947_v15 = vld [vmem:[#allocation11 + $0x680] ss:$16 sps:$4 sm:$0xff]   ;;  %v19950_v44 = vld [vmem:[#allocation11 + $0x688] ss:$16 sps:$4 sm:$0xff]  }
 0x728   :  { %13243 = vmatprep.subr.bf16.mxu0 %v19889_v60  ;;  %13316 = vmatprep.subr.bf16.mxu1 %v19892_v47  ;;  %v19955_v60 = vld [vmem:[#allocation11 + $0x6a4] ss:$16 sps:$4 sm:$0xff]   ;;  %v19958_v47 = vld [vmem:[#allocation11 + $0x6ac] ss:$16 sps:$4 sm:$0xff]  }
 0x72b   :  { %13244 = vmatpush1.bf16.msra.mxu0 %v19887_v42  ;;  %13317 = vmatpush1.bf16.msra.mxu1 %v19890_v50  ;;  %v19953_v42 = vld [vmem:[#allocation11 + $0x6a0] ss:$16 sps:$4 sm:$0xff]   ;;  %v19956_v50 = vld [vmem:[#allocation11 + $0x6a8] ss:$16 sps:$4 sm:$0xff]  }
 0x72c   :  { %13245 = vmatprep.subr.bf16.mxu0 %v19895_v1  ;;  %13318 = vmatprep.subr.bf16.mxu1 %v19898_v48  ;;  %v19961_v1 = vld [vmem:[#allocation11 + $0x6c4] ss:$16 sps:$4 sm:$0xff]   ;;  %v19964_v48 = vld [vmem:[#allocation11 + $0x6cc] ss:$16 sps:$4 sm:$0xff]  }
 0x72f   :  { %13246 = vmatpush1.bf16.msra.mxu0 %v19893_v17  ;;  %13319 = vmatpush1.bf16.msra.mxu1 %v19896_v40  ;;  %v19959_v17 = vld [vmem:[#allocation11 + $0x6c0] ss:$16 sps:$4 sm:$0xff]   ;;  %v19962_v40 = vld [vmem:[#allocation11 + $0x6c8] ss:$16 sps:$4 sm:$0xff]  }
 0x730   :  { %13247 = vmatprep.subr.bf16.mxu0 %v19901_v26  ;;  %13320 = vmatprep.subr.bf16.mxu1 %v19904_v38  ;;  %v19967_v26 = vld [vmem:[#allocation11 + $0x6e4] ss:$16 sps:$4 sm:$0xff]   ;;  %v19970_v38 = vld [vmem:[#allocation11 + $0x6ec] ss:$16 sps:$4 sm:$0xff]  }
 0x733   :  { %13248 = vmatpush1.bf16.msra.mxu0 %v19899_v12  ;;  %13321 = vmatpush1.bf16.msra.mxu1 %v19902_v19  ;;  %v19965_v12 = vld [vmem:[#allocation11 + $0x6e0] ss:$16 sps:$4 sm:$0xff]   ;;  %v19968_v19 = vld [vmem:[#allocation11 + $0x6e8] ss:$16 sps:$4 sm:$0xff]  }
 0x734   :  { %13249 = vmatprep.subr.bf16.mxu0 %v19907_v23  ;;  %13322 = vmatprep.subr.bf16.mxu1 %v19910_v41  ;;  %v19973_v23 = vld [vmem:[#allocation11 + $0x704] ss:$16 sps:$4 sm:$0xff]   ;;  %v19976_v41 = vld [vmem:[#allocation11 + $0x70c] ss:$16 sps:$4 sm:$0xff]  }
 0x737   :  { %13250 = vmatpush1.bf16.msra.mxu0 %v19905_v43  ;;  %13323 = vmatpush1.bf16.msra.mxu1 %v19908_v54  ;;  %v19971_v43 = vld [vmem:[#allocation11 + $0x700] ss:$16 sps:$4 sm:$0xff]   ;;  %v19974_v54 = vld [vmem:[#allocation11 + $0x708] ss:$16 sps:$4 sm:$0xff]  }
 0x738   :  { %13251 = vmatprep.subr.bf16.mxu0 %v19913_v61  ;;  %13324 = vmatprep.subr.bf16.mxu1 %v19916_v20  ;;  %v19979_v61 = vld [vmem:[#allocation11 + $0x724] ss:$16 sps:$4 sm:$0xff]   ;;  %v19982_v20 = vld [vmem:[#allocation11 + $0x72c] ss:$16 sps:$4 sm:$0xff]  }
 0x73b   :  { %13252 = vmatpush1.bf16.msra.mxu0 %v19911_v22  ;;  %13325 = vmatpush1.bf16.msra.mxu1 %v19914_v0  ;;  %v19977_v22 = vld [vmem:[#allocation11 + $0x720] ss:$16 sps:$4 sm:$0xff]   ;;  %v19985_v0 = vld [vmem:[#allocation11 + $0x744] ss:$16 sps:$4 sm:$0xff]  }
 0x73c   :  { %13253 = vmatprep.subr.bf16.mxu0 %v19919_v2  ;;  %13326 = vmatprep.subr.bf16.mxu1 %v19922_v18  ;;  %v19988_v2 = vld [vmem:[#allocation11 + $0x74c] ss:$16 sps:$4 sm:$0xff]   ;;  %v19983_v18 = vld [vmem:[#allocation11 + $0x740] ss:$16 sps:$4 sm:$0xff]  }
 0x73f   :  { %13254 = vmatpush1.bf16.msra.mxu0 %v19917_v36  ;;  %13327 = vmatpush1.bf16.msra.mxu1 %v19920_v63  ;;  %v19986_v36 = vld [vmem:[#allocation11 + $0x748] ss:$16 sps:$4 sm:$0xff]   ;;  %v19991_v63 = vld [vmem:[#allocation11 + $0x764] ss:$16 sps:$4 sm:$0xff]  }
 0x740   :  { %13835 = vmatprep.subr.bf16.mxu0 %v19925_v37  ;;  %13908 = vmatprep.subr.bf16.mxu1 %v19928_v3  ;;  %v19994_v37 = vld [vmem:[#allocation11 + $0x76c] ss:$16 sps:$4 sm:$0xff]   ;;  %v19989_v3 = vld [vmem:[#allocation11 + $0x760] ss:$16 sps:$4 sm:$0xff]  }
 0x742   :  { %13256 = vmatmul.mubr.bf16.vlgmr.msra.gmra.mrb[160].mxu0 %v22700_v49  ;;  %13329 = vmatmul.mubr.bf16.vlgmr.msra.gmra.mrb[160].mxu1 %v22700_v49  ;;  %v19946_v49 = vld [vmem:[#allocation11 + $0x66c] ss:$16 sps:$4 sm:$0xff]  }
 0x743   :  { %13265 = vmatprep.mubr.bf16.mxu0 %v22732_v31  ;;  %13338 = vmatprep.mubr.bf16.mxu1 %v22732_v31 }
 0x744   :  { %13836 = vmatpush1.bf16.msra.mxu0 %v19923_v28  ;;  %13909 = vmatpush1.bf16.msra.mxu1 %v19926_v27  ;;  %v19992_v28 = vld [vmem:[#allocation11 + $0x768] ss:$16 sps:$4 sm:$0xff]   ;;  %v19997_v27 = vld [vmem:[#allocation11 + $0x784] ss:$16 sps:$4 sm:$0xff]  }
 0x745   :  { %13837 = vmatprep.subr.bf16.mxu0 %v19931_v9  ;;  %13910 = vmatprep.subr.bf16.mxu1 %v19934_v29  ;;  %v20000_v9 = vld [vmem:[#allocation11 + $0x78c] ss:$16 sps:$4 sm:$0xff]   ;;  %v19995_v29 = vld [vmem:[#allocation11 + $0x780] ss:$16 sps:$4 sm:$0xff]  }
 0x748   :  { %13838 = vmatpush1.bf16.msra.mxu0 %v19929_v56  ;;  %13911 = vmatpush1.bf16.msra.mxu1 %v19932_v33  ;;  %v19998_v56 = vld [vmem:[#allocation11 + $0x788] ss:$16 sps:$4 sm:$0xff]   ;;  %v20003_v33 = vld [vmem:[#allocation11 + $0x7a4] ss:$16 sps:$4 sm:$0xff]  }
 0x749   :  { %13839 = vmatprep.subr.bf16.mxu0 %v19937_v7  ;;  %13912 = vmatprep.subr.bf16.mxu1 %v19940_v35  ;;  %v20006_v7 = vld [vmem:[#allocation11 + $0x7ac] ss:$16 sps:$4 sm:$0xff]   ;;  %v20001_v35 = vld [vmem:[#allocation11 + $0x7a0] ss:$16 sps:$4 sm:$0xff]  }
 0x74a   :  { %13266 = vmatmul.mubr.bf16.gmra.mrb[164].mxu0 %v22728_v46  ;;  %13339 = vmatmul.mubr.bf16.gmra.mrb[164].mxu1 %v22728_v46 }
 0x74b   :  { %13275 = vmatprep.mubr.bf16.mxu0 %v22760_v16  ;;  %13348 = vmatprep.mubr.bf16.mxu1 %v22760_v16 }
 0x74c   :  { %13840 = vmatpush1.bf16.msra.mxu0 %v19935_v51  ;;  %13913 = vmatpush1.bf16.msra.mxu1 %v19938_v58  ;;  %v20004_v51 = vld [vmem:[#allocation11 + $0x7a8] ss:$16 sps:$4 sm:$0xff]   ;;  %v20009_v58 = vld [vmem:[#allocation11 + $0x7c4] ss:$16 sps:$4 sm:$0xff]  }
 0x74d   :  { %13841 = vmatprep.subr.bf16.mxu0 %v19943_v10  ;;  %13914 = vmatprep.subr.bf16.mxu1 %v19946_v49  ;;  %v20012_v10 = vld [vmem:[#allocation11 + $0x7cc] ss:$16 sps:$4 sm:$0xff]   ;;  %v20007_v49 = vld [vmem:[#allocation11 + $0x7c0] ss:$16 sps:$4 sm:$0xff]  }
 0x750   :  { %13842 = vmatpush1.bf16.msra.mxu0 %v19941_v24  ;;  %13915 = vmatpush1.bf16.msra.mxu1 %v19944_v6  ;;  %v20010_v24 = vld [vmem:[#allocation11 + $0x7c8] ss:$16 sps:$4 sm:$0xff]   ;;  %v20015_v6 = vld [vmem:[#allocation11 + $0x7e4] ss:$16 sps:$4 sm:$0xff]  }
 0x751   :  { %13843 = vmatprep.subr.bf16.mxu0 %v19949_v53  ;;  %13916 = vmatprep.subr.bf16.mxu1 %v19952_v11  ;;  %v20018_v53 = vld [vmem:[#allocation11 + $0x7ec] ss:$16 sps:$4 sm:$0xff]   ;;  %v20013_v11 = vld [vmem:[#allocation11 + $0x7e0] ss:$16 sps:$4 sm:$0xff]  }
 0x752   :  { %13276 = vmatmul.mubr.bf16.gmra.mrb[168].mxu0 %v22756_v30  ;;  %13349 = vmatmul.mubr.bf16.gmra.mrb[168].mxu1 %v22756_v30 }
 0x753   :  { %13285 = vmatprep.mubr.bf16.mxu0 %v22785_v25  ;;  %13358 = vmatprep.mubr.bf16.mxu1 %v22785_v25 }
 0x754   :  { %13844 = vmatpush1.bf16.msra.mxu0 %v19947_v15  ;;  %13917 = vmatpush1.bf16.msra.mxu1 %v19950_v44  ;;  %v20016_v15 = vld [vmem:[#allocation11 + $0x7e8] ss:$16 sps:$4 sm:$0xff]   ;;  %v20021_v44 = vld [vmem:[#allocation11 + $0x804] ss:$16 sps:$4 sm:$0xff]  }
 0x755   :  { %13845 = vmatprep.subr.bf16.mxu0 %v19955_v60  ;;  %13918 = vmatprep.subr.bf16.mxu1 %v19958_v47  ;;  %v20024_v60 = vld [vmem:[#allocation11 + $0x80c] ss:$16 sps:$4 sm:$0xff]   ;;  %v20019_v47 = vld [vmem:[#allocation11 + $0x800] ss:$16 sps:$4 sm:$0xff]  }
 0x758   :  { %13846 = vmatpush1.bf16.msra.mxu0 %v19953_v42  ;;  %13919 = vmatpush1.bf16.msra.mxu1 %v19956_v50  ;;  %v20022_v42 = vld [vmem:[#allocation11 + $0x808] ss:$16 sps:$4 sm:$0xff]   ;;  %v20027_v50 = vld [vmem:[#allocation11 + $0x824] ss:$16 sps:$4 sm:$0xff]  }
 0x759   :  { %13847 = vmatprep.subr.bf16.mxu0 %v19961_v1  ;;  %13920 = vmatprep.subr.bf16.mxu1 %v19964_v48  ;;  %v20030_v1 = vld [vmem:[#allocation11 + $0x82c] ss:$16 sps:$4 sm:$0xff]   ;;  %v20025_v48 = vld [vmem:[#allocation11 + $0x820] ss:$16 sps:$4 sm:$0xff]  }
 0x75a   :  { %13286 = vmatmul.mubr.bf16.gmra.mrb[172].mxu0 %v22783_v39  ;;  %13359 = vmatmul.mubr.bf16.gmra.mrb[172].mxu1 %v22783_v39 }
 0x75b   :  { %13867 = vmatprep.mubr.bf16.mxu0 %v22716_v59  ;;  %13940 = vmatprep.mubr.bf16.mxu1 %v22716_v59  ;;  %v19980_v59 = vld [vmem:[#allocation11 + $0x728] ss:$16 sps:$4 sm:$0xff]  }
 0x75c   :  { %13848 = vmatpush1.bf16.msra.mxu0 %v19959_v17  ;;  %13921 = vmatpush1.bf16.msra.mxu1 %v19962_v40  ;;  %v20028_v17 = vld [vmem:[#allocation11 + $0x828] ss:$16 sps:$4 sm:$0xff]   ;;  %v20033_v40 = vld [vmem:[#allocation11 + $0x844] ss:$16 sps:$4 sm:$0xff]  }
 0x75d   :  { %13849 = vmatprep.subr.bf16.mxu0 %v19967_v26  ;;  %13922 = vmatprep.subr.bf16.mxu1 %v19970_v38  ;;  %v20036_v26 = vld [vmem:[#allocation11 + $0x84c] ss:$16 sps:$4 sm:$0xff]   ;;  %v20031_v38 = vld [vmem:[#allocation11 + $0x840] ss:$16 sps:$4 sm:$0xff]  }
 0x760   :  { %13850 = vmatpush1.bf16.msra.mxu0 %v19965_v12  ;;  %13923 = vmatpush1.bf16.msra.mxu1 %v19968_v19  ;;  %v20034_v12 = vld [vmem:[#allocation11 + $0x848] ss:$16 sps:$4 sm:$0xff]   ;;  %v20039_v19 = vld [vmem:[#allocation11 + $0x864] ss:$16 sps:$4 sm:$0xff]  }
 0x761   :  { %13851 = vmatprep.subr.bf16.mxu0 %v19973_v23  ;;  %13924 = vmatprep.subr.bf16.mxu1 %v19976_v41  ;;  %v20040_v23 = vld [vmem:[#allocation11 + $0x868] ss:$16 sps:$4 sm:$0xff]   ;;  %v20045_v41 = vld [vmem:[#allocation11 + $0x884] ss:$16 sps:$4 sm:$0xff]  }
 0x764   :  { %13852 = vmatpush1.bf16.msra.mxu0 %v19971_v43  ;;  %13925 = vmatpush1.bf16.msra.mxu1 %v19974_v54  ;;  %v20048_v43 = vld [vmem:[#allocation11 + $0x88c] ss:$16 sps:$4 sm:$0xff]   ;;  %v20043_v54 = vld [vmem:[#allocation11 + $0x880] ss:$16 sps:$4 sm:$0xff]  }
 0x765   :  { %13853 = vmatprep.subr.bf16.mxu0 %v19979_v61  ;;  %13926 = vmatprep.subr.bf16.mxu1 %v19982_v20  ;;  %v20046_v61 = vld [vmem:[#allocation11 + $0x888] ss:$16 sps:$4 sm:$0xff]   ;;  %v20051_v20 = vld [vmem:[#allocation11 + $0x8a4] ss:$16 sps:$4 sm:$0xff]  }
 0x768   :  { %13854 = vmatpush1.bf16.msra.mxu0 %v19977_v22  ;;  %13927 = vmatpush1.bf16.msra.mxu1 %v19980_v59  ;;  %v20054_v22 = vld [vmem:[#allocation11 + $0x8ac] ss:$16 sps:$4 sm:$0xff]   ;;  %v20052_v59 = vld [vmem:[#allocation11 + $0x8a8] ss:$16 sps:$4 sm:$0xff]  }
 0x769   :  { %13855 = vmatprep.subr.bf16.mxu0 %v19985_v0  ;;  %13928 = vmatprep.subr.bf16.mxu1 %v19988_v2  ;;  %v20057_v0 = vld [vmem:[#allocation11 + $0x8c4] ss:$16 sps:$4 sm:$0xff]   ;;  %v20060_v2 = vld [vmem:[#allocation11 + $0x8cc] ss:$16 sps:$4 sm:$0xff]  }
 0x76c   :  { %13856 = vmatpush1.bf16.msra.mxu0 %v19983_v18  ;;  %13929 = vmatpush1.bf16.msra.mxu1 %v19986_v36  ;;  %v16901_v18 = vcombine.low %v22789_v13, %v23184_v34  ;;  %v20055_v36 = vld [vmem:[#allocation11 + $0x8c0] ss:$16 sps:$4 sm:$0xff]  }
 0x76d   :  { %13857 = vmatprep.subr.bf16.mxu0 %v19991_v63  ;;  %13930 = vmatprep.subr.bf16.mxu1 %v19994_v37  ;;  %v20058_v63 = vld [vmem:[#allocation11 + $0x8c8] ss:$16 sps:$4 sm:$0xff]   ;;  %v20066_v37 = vld [vmem:[#allocation11 + $0x8ec] ss:$16 sps:$4 sm:$0xff]  }
 0x770   :  { %13858 = vmatpush1.bf16.msra.mxu0 %v19989_v3  ;;  %13931 = vmatpush1.bf16.msra.mxu1 %v19992_v28  ;;  %v20061_v3 = vld [vmem:[#allocation11 + $0x8e0] ss:$16 sps:$4 sm:$0xff]   ;;  %v20064_v28 = vld [vmem:[#allocation11 + $0x8e8] ss:$16 sps:$4 sm:$0xff]  }
 0x771   :  { %13859 = vmatprep.subr.bf16.mxu0 %v19997_v27  ;;  %13932 = vmatprep.subr.bf16.mxu1 %v20000_v9  ;;  %v20069_v27 = vld [vmem:[#allocation11 + $0x904] ss:$16 sps:$4 sm:$0xff]   ;;  %v20070_v9 = vld [vmem:[#allocation11 + $0x908] ss:$16 sps:$4 sm:$0xff]  }
 0x774   :  { %13860 = vmatpush1.bf16.msra.mxu0 %v19995_v29  ;;  %13933 = vmatpush1.bf16.msra.mxu1 %v19998_v56  ;;  %v20075_v29 = vld [vmem:[#allocation11 + $0x924] ss:$16 sps:$4 sm:$0xff]   ;;  %v20078_v56 = vld [vmem:[#allocation11 + $0x92c] ss:$16 sps:$4 sm:$0xff]  }
 0x775   :  { %13861 = vmatprep.subr.bf16.mxu0 %v20003_v33  ;;  %13934 = vmatprep.subr.bf16.mxu1 %v20006_v7  ;;  %v20073_v33 = vld [vmem:[#allocation11 + $0x920] ss:$16 sps:$4 sm:$0xff]   ;;  %v20081_v7 = vld [vmem:[#allocation11 + $0x944] ss:$16 sps:$4 sm:$0xff]  }
 0x778   :  { %13862 = vmatpush1.bf16.msra.mxu0 %v20001_v35  ;;  %13935 = vmatpush1.bf16.msra.mxu1 %v20004_v51  ;;  %v20084_v35 = vld [vmem:[#allocation11 + $0x94c] ss:$16 sps:$4 sm:$0xff]   ;;  %v20079_v51 = vld [vmem:[#allocation11 + $0x940] ss:$16 sps:$4 sm:$0xff]  }
 0x779   :  { %13863 = vmatprep.subr.bf16.mxu0 %v20009_v58  ;;  %13936 = vmatprep.subr.bf16.mxu1 %v20012_v10  ;;  %v20082_v58 = vld [vmem:[#allocation11 + $0x948] ss:$16 sps:$4 sm:$0xff]   ;;  %v20087_v10 = vld [vmem:[#allocation11 + $0x964] ss:$16 sps:$4 sm:$0xff]  }
 0x77c   :  { %13864 = vmatpush1.bf16.msra.mxu0 %v20007_v49  ;;  %13937 = vmatpush1.bf16.msra.mxu1 %v20010_v24  ;;  %v20090_v49 = vld [vmem:[#allocation11 + $0x96c] ss:$16 sps:$4 sm:$0xff]   ;;  %v20085_v24 = vld [vmem:[#allocation11 + $0x960] ss:$16 sps:$4 sm:$0xff]  }
 0x77d   :  { %13865 = vmatprep.subr.bf16.mxu0 %v20015_v6  ;;  %13938 = vmatprep.subr.bf16.mxu1 %v20018_v53  ;;  %v20088_v6 = vld [vmem:[#allocation11 + $0x968] ss:$16 sps:$4 sm:$0xff]   ;;  %v20093_v53 = vld [vmem:[#allocation11 + $0x984] ss:$16 sps:$4 sm:$0xff]  }
 0x780   :  { %13866 = vmatpush1.bf16.msra.mxu0 %v20013_v11  ;;  %13939 = vmatpush1.bf16.msra.mxu1 %v20016_v15  ;;  %v20096_v11 = vld [vmem:[#allocation11 + $0x98c] ss:$16 sps:$4 sm:$0xff]   ;;  %v20091_v15 = vld [vmem:[#allocation11 + $0x980] ss:$16 sps:$4 sm:$0xff]  }
 0x781   :  { %14447 = vmatprep.subr.bf16.mxu0 %v20021_v44  ;;  %14520 = vmatprep.subr.bf16.mxu1 %v20024_v60  ;;  %v20094_v44 = vld [vmem:[#allocation11 + $0x988] ss:$16 sps:$4 sm:$0xff]   ;;  %v20099_v60 = vld [vmem:[#allocation11 + $0x9a4] ss:$16 sps:$4 sm:$0xff]  }
 0x783   :  { %13868 = vmatmul.mubr.bf16.vlgmr.msra.gmra.mrb[160].mxu0 %v22712_v5  ;;  %13941 = vmatmul.mubr.bf16.vlgmr.msra.gmra.mrb[160].mxu1 %v22712_v5  ;;  %v20042_v5 = vld [vmem:[#allocation11 + $0x86c] ss:$16 sps:$4 sm:$0xff]  }
 0x784   :  { %13877 = vmatprep.mubr.bf16.mxu0 %v22744_v45  ;;  %13950 = vmatprep.mubr.bf16.mxu1 %v22744_v45  ;;  %v20037_v45 = vld [vmem:[#allocation11 + $0x860] ss:$16 sps:$4 sm:$0xff]  }
 0x785   :  { %14448 = vmatpush1.bf16.msra.mxu0 %v20019_v47  ;;  %14521 = vmatpush1.bf16.msra.mxu1 %v20022_v42  ;;  %v20102_v47 = vld [vmem:[#allocation11 + $0x9ac] ss:$16 sps:$4 sm:$0xff]   ;;  %v20097_v42 = vld [vmem:[#allocation11 + $0x9a0] ss:$16 sps:$4 sm:$0xff]  }
 0x786   :  { %14449 = vmatprep.subr.bf16.mxu0 %v20027_v50  ;;  %14522 = vmatprep.subr.bf16.mxu1 %v20030_v1  ;;  %v20100_v50 = vld [vmem:[#allocation11 + $0x9a8] ss:$16 sps:$4 sm:$0xff]   ;;  %v20105_v1 = vld [vmem:[#allocation11 + $0x9c4] ss:$16 sps:$4 sm:$0xff]  }
 0x789   :  { %14450 = vmatpush1.bf16.msra.mxu0 %v20025_v48  ;;  %14523 = vmatpush1.bf16.msra.mxu1 %v20028_v17  ;;  %v20108_v48 = vld [vmem:[#allocation11 + $0x9cc] ss:$16 sps:$4 sm:$0xff]   ;;  %v20103_v17 = vld [vmem:[#allocation11 + $0x9c0] ss:$16 sps:$4 sm:$0xff]  }
 0x78a   :  { %14451 = vmatprep.subr.bf16.mxu0 %v20033_v40  ;;  %14524 = vmatprep.subr.bf16.mxu1 %v20036_v26  ;;  %v20106_v40 = vld [vmem:[#allocation11 + $0x9c8] ss:$16 sps:$4 sm:$0xff]   ;;  %v20111_v26 = vld [vmem:[#allocation11 + $0x9e4] ss:$16 sps:$4 sm:$0xff]  }
 0x78b   :  { %13878 = vmatmul.mubr.bf16.gmra.mrb[164].mxu0 %v22740_v57  ;;  %13951 = vmatmul.mubr.bf16.gmra.mrb[164].mxu1 %v22740_v57  ;;  %v16902_v57 = vcombine.high %v22789_v13, %v23184_v34  ;;  %v20072_v34 = vld [vmem:[#allocation11 + $0x90c] ss:$16 sps:$4 sm:$0xff]   ;;  %v20067_v13 = vld [vmem:[#allocation11 + $0x900] ss:$16 sps:$4 sm:$0xff]  }
 0x78c   :  { %13887 = vmatprep.mubr.bf16.mxu0 %v22772_v14  ;;  %13960 = vmatprep.mubr.bf16.mxu1 %v22772_v14  ;;  %v20049_v14 = vld [vmem:[#allocation11 + $0x8a0] ss:$16 sps:$4 sm:$0xff]  }
 0x78d   :  { %14452 = vmatpush1.bf16.msra.mxu0 %v20031_v38  ;;  %14525 = vmatpush1.bf16.msra.mxu1 %v20034_v12  ;;  %v20114_v38 = vld [vmem:[#allocation11 + $0x9ec] ss:$16 sps:$4 sm:$0xff]   ;;  %v20109_v12 = vld [vmem:[#allocation11 + $0x9e0] ss:$16 sps:$4 sm:$0xff]  }
 0x78e   :  { %14453 = vmatprep.subr.bf16.mxu0 %v20039_v19  ;;  %14526 = vmatprep.subr.bf16.mxu1 %v20042_v5  ;;  %v20112_v19 = vld [vmem:[#allocation11 + $0x9e8] ss:$16 sps:$4 sm:$0xff]  }
 0x78f   :  { %v20115_v5 = vld [vmem:[#allocation14 + $0x40] sm:$0xff]  }
 0x791   :  { %14454 = vmatpush1.bf16.msra.mxu0 %v20037_v45  ;;  %14527 = vmatpush1.bf16.msra.mxu1 %v20040_v23  ;;  %v20119_v45 = vld [vmem:[#allocation14 + $0xc0] sm:$0xff]  }
 0x792   :  { %14455 = vmatprep.subr.bf16.mxu0 %v20045_v41  ;;  %14528 = vmatprep.subr.bf16.mxu1 %v20048_v43  ;;  %v20116_v23 = vld [vmem:[#allocation14] sm:$0xff]   ;;  %v20117_v43 = vld [vmem:[#allocation14 + $0x48] sm:$0xff]  }
 0x793   :  { %13888 = vmatmul.mubr.bf16.gmra.mrb[168].mxu0 %v22768_v52  ;;  %13961 = vmatmul.mubr.bf16.gmra.mrb[168].mxu1 %v22768_v52  ;;  %v20063_v52 = vld [vmem:[#allocation11 + $0x8e4] ss:$16 sps:$4 sm:$0xff]  }
 0x794   :  { %13897 = vmatprep.mubr.bf16.mxu0 %v16902_v57  ;;  %13970 = vmatprep.mubr.bf16.mxu1 %v16902_v57  ;;  %v20121_v41 = vld [vmem:[#allocation14 + $0x80] sm:$0xff]   ;;  %v20125_v57 = vld [vmem:[#allocation14 + $0x88] sm:$0xff]  }
 0x795   :  { %14456 = vmatpush1.bf16.msra.mxu0 %v20043_v54  ;;  %14529 = vmatpush1.bf16.msra.mxu1 %v20046_v61  ;;  %v20123_v54 = vld [vmem:[#allocation14 + $0xc8] sm:$0xff]  }
 0x796   :  { %14457 = vmatprep.subr.bf16.mxu0 %v20051_v20  ;;  %14530 = vmatprep.subr.bf16.mxu1 %v20054_v22  ;;  %v20118_v61 = vld [vmem:[#allocation14 + $0x8] sm:$0xff]   ;;  %v20120_v20 = vld [vmem:[#allocation14 + $0x50] sm:$0xff]  }
 0x797   :  { %v20127_v22 = vld [vmem:[#allocation14 + $0xd0] sm:$0xff]  }
 0x799   :  { %14458 = vmatpush1.bf16.msra.mxu0 %v20049_v14  ;;  %14531 = vmatpush1.bf16.msra.mxu1 %v20052_v59  ;;  %v20122_v14 = vld [vmem:[#allocation14 + $0x10] sm:$0xff]  }
 0x79a   :  { %14459 = vmatprep.subr.bf16.mxu0 %v20057_v0  ;;  %14532 = vmatprep.subr.bf16.mxu1 %v20060_v2  ;;  %v20129_v59 = vld [vmem:[#allocation14 + $0x90] sm:$0xff]   ;;  %v20124_v0 = vld [vmem:[#allocation14 + $0x58] sm:$0xff]   ;;  %v20130_v2 = vld [vmem:[#allocation14 + $0x20] sm:$0xff]  }
 0x79b   :  { %13898 = vmatmul.mubr.bf16.gmra.mrb[172].mxu0 %v16901_v18  ;;  %13971 = vmatmul.mubr.bf16.gmra.mrb[172].mxu1 %v16901_v18  ;;  %v20133_v18 = vld [vmem:[#allocation14 + $0x98] sm:$0xff]  }
 0x79c   :  { %14479 = vmatprep.mubr.bf16.mxu0 %v22732_v31  ;;  %14552 = vmatprep.mubr.bf16.mxu1 %v22732_v31  ;;  %v20076_v31 = vld [vmem:[#allocation11 + $0x928] ss:$16 sps:$4 sm:$0xff]  }
 0x79d   :  { %14460 = vmatpush1.bf16.msra.mxu0 %v20055_v36  ;;  %14533 = vmatpush1.bf16.msra.mxu1 %v20058_v63  ;;  %v20134_v36 = vld [vmem:[#allocation14 + $0x28] sm:$0xff]   ;;  %v20135_v63 = vld [vmem:[#allocation14 + $0xe0] sm:$0xff]  }
 0x79e   :  { %14461 = vmatprep.subr.bf16.mxu0 %v20063_v52  ;;  %14534 = vmatprep.subr.bf16.mxu1 %v20066_v37  ;;  %v20136_v52 = vld [vmem:[#allocation14 + $0x70] sm:$0xff]  }
 0x79f   :  { %v20138_v37 = vld [vmem:[#allocation14 + $0x30] sm:$0xff]  }
 0x7a1   :  { %14462 = vmatpush1.bf16.msra.mxu0 %v20061_v3  ;;  %14535 = vmatpush1.bf16.msra.mxu1 %v20064_v28  ;;  %v20140_v3 = vld [vmem:[#allocation14 + $0x78] sm:$0xff]   ;;  %v20141_v28 = vld [vmem:[#allocation14 + $0xa8] sm:$0xff]  }
 0x7a2   :  { %14463 = vmatprep.subr.bf16.mxu0 %v20069_v27  ;;  %14536 = vmatprep.subr.bf16.mxu1 %v20072_v34  ;;  %v20143_v27 = vld [vmem:[#allocation14 + $0xf0] sm:$0xff]   ;;  %v20144_v34 = vld [vmem:[#allocation14 + $0x1c0] sm:$0xff]  }
 0x7a5   :  { %14464 = vmatpush1.bf16.msra.mxu0 %v20067_v13  ;;  %14537 = vmatpush1.bf16.msra.mxu1 %v20070_v9  ;;  %v20145_v13 = vld [vmem:[#allocation14 + $0xb0] sm:$0xff]   ;;  %v20147_v9 = vld [vmem:[#allocation14 + $0xf8] sm:$0xff]  }
 0x7a6   :  { %14465 = vmatprep.subr.bf16.mxu0 %v20075_v29  ;;  %14538 = vmatprep.subr.bf16.mxu1 %v20078_v56  ;;  %v20149_v29 = vld [vmem:[#allocation14 + $0xb8] sm:$0xff]   ;;  %v20151_v56 = vld [vmem:[#allocation14 + $0x140] sm:$0xff]  }
 0x7a9   :  { %14466 = vmatpush1.bf16.msra.mxu0 %v20073_v33  ;;  %14539 = vmatpush1.bf16.msra.mxu1 %v20076_v31  ;;  %v14625_v33 = vld [vmem:[#allocation12] sm:$0xf] }
 0x7aa   :  { %14467 = vmatprep.subr.bf16.mxu0 %v20081_v7  ;;  %14540 = vmatprep.subr.bf16.mxu1 %v20084_v35  ;;  %v22854_v31 = vrot.slane %v14625_v33, %v23219_v62  ;;  %v22857_v7 = vrot.slane %v14625_v33, %v23220_v8  ;;  %v22860_v35 = vrot.slane %v14625_v33, %v23221_v32 }
 0x7ad   :  { %14468 = vmatpush1.bf16.msra.mxu0 %v20079_v51  ;;  %14541 = vmatpush1.bf16.msra.mxu1 %v20082_v58  ;;  %v22863_v51 = vrot.slane %v14625_v33, %v23222_v55 }
 0x7ae   :  { %14469 = vmatprep.subr.bf16.mxu0 %v20087_v10  ;;  %14542 = vmatprep.subr.bf16.mxu1 %v20090_v49 }
 0x7b1   :  { %14470 = vmatpush1.bf16.msra.mxu0 %v20085_v24  ;;  %14543 = vmatpush1.bf16.msra.mxu1 %v20088_v6 }
 0x7b2   :  { %14471 = vmatprep.subr.bf16.mxu0 %v20093_v53  ;;  %14544 = vmatprep.subr.bf16.mxu1 %v20096_v11 }
 0x7b5   :  { %14472 = vmatpush1.bf16.msra.mxu0 %v20091_v15  ;;  %14545 = vmatpush1.bf16.msra.mxu1 %v20094_v44 }
 0x7b6   :  { %14473 = vmatprep.subr.bf16.mxu0 %v20099_v60  ;;  %14546 = vmatprep.subr.bf16.mxu1 %v20102_v47 }
 0x7b9   :  { %14474 = vmatpush1.bf16.msra.mxu0 %v20097_v42  ;;  %14547 = vmatpush1.bf16.msra.mxu1 %v20100_v50 }
 0x7ba   :  { %14475 = vmatprep.subr.bf16.mxu0 %v20105_v1  ;;  %14548 = vmatprep.subr.bf16.mxu1 %v20108_v48 }
 0x7bd   :  { %14476 = vmatpush1.bf16.msra.mxu0 %v20103_v17  ;;  %14549 = vmatpush1.bf16.msra.mxu1 %v20106_v40 }
 0x7be   :  { %14477 = vmatprep.subr.bf16.mxu0 %v20111_v26  ;;  %14550 = vmatprep.subr.bf16.mxu1 %v20114_v38 }
 0x7c1   :  { %14478 = vmatpush1.bf16.msra.mxu0 %v20109_v12  ;;  %14551 = vmatpush1.bf16.msra.mxu1 %v20112_v19 }
 0x7c2   :  { %17249 = vmatprep.subr.bf16.mxu1 %v20115_v5  ;;  %17227 = vmatprep.subr.bf16.mxu0 %v20119_v45 }
 0x7c4   :  { %14480 = vmatmul.mubr.bf16.vlgmr.msra.gmra.mrb[160].mxu0 %v22728_v46  ;;  %14553 = vmatmul.mubr.bf16.vlgmr.msra.gmra.mrb[160].mxu1 %v22728_v46  ;;  %v20126_v46 = vld [vmem:[#allocation14 + $0x18] sm:$0xff]  }
 0x7c5   :  { %14489 = vmatprep.mubr.bf16.mxu0 %v22760_v16  ;;  %14562 = vmatprep.mubr.bf16.mxu1 %v22760_v16  ;;  %v20128_v16 = vld [vmem:[#allocation14 + $0x60] sm:$0xff]  }
 0x7c6   :  { %17250 = vmatpush3.bf16.msra.mxu1 %v20116_v23  ;;  %17228 = vmatpush3.bf16.msra.mxu0 %v20121_v41 }
 0x7c7   :  { %17251 = vmatprep.subr.bf16.mxu1 %v20117_v43  ;;  %17229 = vmatprep.subr.bf16.mxu0 %v20123_v54 }
 0x7ca   :  { %17252 = vmatpush3.bf16.msra.mxu1 %v20118_v61  ;;  %17230 = vmatpush3.bf16.msra.mxu0 %v20125_v57 }
 0x7cb   :  { %17253 = vmatprep.subr.bf16.mxu1 %v20120_v20  ;;  %17231 = vmatprep.subr.bf16.mxu0 %v20127_v22  ;;  %v20146_v20 = vld [vmem:[#allocation14 + $0x180] sm:$0xff]  }
 0x7cc   :  { %14490 = vmatmul.mubr.bf16.gmra.mrb[164].mxu0 %v22756_v30  ;;  %14563 = vmatmul.mubr.bf16.gmra.mrb[164].mxu1 %v22756_v30  ;;  %v20131_v30 = vld [vmem:[#allocation14 + $0xd8] sm:$0xff]  }
 0x7cd   :  { %14499 = vmatprep.mubr.bf16.mxu0 %v22785_v25  ;;  %14572 = vmatprep.mubr.bf16.mxu1 %v22785_v25  ;;  %v20132_v25 = vld [vmem:[#allocation14 + $0x68] sm:$0xff]  }
 0x7ce   :  { %17254 = vmatpush3.bf16.msra.mxu1 %v20122_v14  ;;  %17232 = vmatpush3.bf16.msra.mxu0 %v20129_v59 }
 0x7cf   :  { %17255 = vmatprep.subr.bf16.mxu1 %v20124_v0  ;;  %17233 = vmatprep.subr.bf16.mxu0 %v20131_v30 }
 0x7d2   :  { %17256 = vmatpush3.bf16.msra.mxu1 %v20126_v46  ;;  %17234 = vmatpush3.bf16.msra.mxu0 %v20133_v18 }
 0x7d3   :  { %17257 = vmatprep.subr.bf16.mxu1 %v20128_v16  ;;  %17235 = vmatprep.subr.bf16.mxu0 %v20135_v63 }
 0x7d4   :  { %14500 = vmatmul.mubr.bf16.gmra.mrb[168].mxu0 %v22783_v39  ;;  %14573 = vmatmul.mubr.bf16.gmra.mrb[168].mxu1 %v22783_v39  ;;  %v20137_v39 = vld [vmem:[#allocation14 + $0xa0] sm:$0xff]  }
 0x7d5   :  { %14509 = vmatprep.mubr.bf16.mxu0 %v22405_v4  ;;  %14582 = vmatprep.mubr.bf16.mxu1 %v22405_v4  ;;  %v20139_v4 = vld [vmem:[#allocation14 + $0xe8] sm:$0xff]  }
 0x7d6   :  { %17258 = vmatpush3.bf16.msra.mxu1 %v20130_v2  ;;  %17236 = vmatpush3.bf16.msra.mxu0 %v20137_v39  ;;  %v20148_v2 = vld [vmem:[#allocation14 + $0x1c8] sm:$0xff]  }
 0x7d7   :  { %17259 = vmatprep.subr.bf16.mxu1 %v20132_v25  ;;  %17237 = vmatprep.subr.bf16.mxu0 %v20139_v4 }
 0x7da   :  { %17260 = vmatpush3.bf16.msra.mxu1 %v20134_v36  ;;  %17238 = vmatpush3.bf16.msra.mxu0 %v20141_v28 }
 0x7db   :  { %17261 = vmatprep.subr.bf16.mxu1 %v20136_v52  ;;  %17239 = vmatprep.subr.bf16.mxu0 %v20143_v27  ;;  %v20150_v52 = vld [vmem:[#allocation14 + $0x188] sm:$0xff]  }
 0x7dc   :  { %14510 = vmatmul.mubr.bf16.gmra.mrb[172].mxu0 %v23218_v21  ;;  %14583 = vmatmul.mubr.bf16.gmra.mrb[172].mxu1 %v23218_v21  ;;  %v20142_v21 = vld [vmem:[#allocation14 + $0x38] sm:$0xff]  }
 0x7de   :  { %17262 = vmatpush3.bf16.msra.mxu1 %v20138_v37  ;;  %17240 = vmatpush3.bf16.msra.mxu0 %v20145_v13  ;;  %v20152_v37 = vld [vmem:[#allocation14 + $0x1d0] sm:$0xff]  }
 0x7df   :  { %17263 = vmatprep.subr.bf16.mxu1 %v20140_v3  ;;  %17241 = vmatprep.subr.bf16.mxu0 %v20147_v9 }
 0x7e2   :  { %17264 = vmatpush3.bf16.msra.mxu1 %v20142_v21  ;;  %17242 = vmatpush3.bf16.msra.mxu0 %v20149_v29 }
 0x7e3   :  { %17293 = vmatprep.subr.bf16.mxu1 %v20144_v34  ;;  %17271 = vmatprep.subr.bf16.mxu0 %v20151_v56 }
 0x897   :  { %v14481_v58 = vpop.f32.mrb[160].mxu0  ;;  %v14554_v10 = vpop.f32.mrb[160].mxu1 }
 0x898   :  { %v14647_v49 = vadd.f32 %v22854_v31, %v14481_v58  ;;  %v14649_v24 = vadd.f32 %v22857_v7, %v14554_v10  ;;  %v14483_v6 = vpop.f32.mrb[161].mxu0  ;;  %v14556_v53 = vpop.f32.mrb[161].mxu1  ;;  %v20153_v10 = vld [vmem:[#allocation14 + $0x100] sm:$0xff]  }
 0x899   :  { %v14648_v62 = vadd.f32 %v22860_v35, %v14483_v6  ;;  %v14650_v11 = vadd.f32 %v22863_v51, %v14556_v53  ;;  %v14485_v8 = vpop.f32.mrb[162].mxu0  ;;  %v14558_v15 = vpop.f32.mrb[162].mxu1 }
 0x89a   :  { %v14679_v44 = vmax.f32 %v14647_v49, %v14649_v24  ;;  %v14651_v32 = vadd.f32 %v22854_v31, %v14485_v8  ;;  %v14653_v55 = vadd.f32 %v22857_v7, %v14558_v15  ;;  %v14487_v60 = vpop.f32.mrb[163].mxu0  ;;  %v14560_v47 = vpop.f32.mrb[163].mxu1  ;;  %v20154_v49 = vld [vmem:[#allocation14 + $0x190] sm:$0xff]   ;;  %v20155_v15 = vld [vmem:[#allocation14 + $0x148] sm:$0xff]  }
 0x89b   :  { %v14680_v42 = vmax.f32 %v14648_v62, %v14650_v11  ;;  %v14652_v50 = vadd.f32 %v22860_v35, %v14487_v60  ;;  %v14654_v1 = vadd.f32 %v22863_v51, %v14560_v47 }
 0x89c   :  { %v14681_v48 = vmax.f32 %v14651_v32, %v14653_v55 }
 0x89d   :  { %v14682_v17 = vmax.f32 %v14652_v50, %v14654_v1  ;;  %v20157_v50 = vld [vmem:[#allocation14 + $0x108] sm:$0xff]   ;;  %v20158_v1 = vld [vmem:[#allocation14 + $0x198] sm:$0xff]  }
 0x89e   :  { %v14695_v40 = vmax.f32 %v14679_v44, %v14681_v48  ;;  %v20156_v44 = vld [vmem:[#allocation14 + $0x1d8] sm:$0xff]  }
 0x89f   :  { %v14491_v26 = vpop.f32.mrb[164].mxu0  ;;  %v14564_v38 = vpop.f32.mrb[164].mxu1  ;;  %v14696_v12 = vmax.f32 %v14680_v42, %v14682_v17  ;;  %v20159_v17 = vld [vmem:[#allocation14 + $0x150] sm:$0xff]  }
 0x8a0   :  { %v14655_v19 = vadd.f32 %v22854_v31, %v14491_v26  ;;  %v14657_v5 = vadd.f32 %v22857_v7, %v14564_v38  ;;  %v14493_v45 = vpop.f32.mrb[165].mxu0  ;;  %v14566_v23 = vpop.f32.mrb[165].mxu1  ;;  %v14703_v22 = vpack.c.bf16 %v14695_v40, %v14695_v40  ;;  %v20160_v40 = vld [vmem:[#allocation14 + $0x1e0] sm:$0xff]  }
 0x8a1   :  { %v14656_v41 = vadd.f32 %v22860_v35, %v14493_v45  ;;  %v14658_v43 = vadd.f32 %v22863_v51, %v14566_v23  ;;  %v14495_v54 = vpop.f32.mrb[166].mxu0  ;;  %v14568_v61 = vpop.f32.mrb[166].mxu1  ;;  %v14704_v57 = vpack.c.bf16 %v14696_v12, %v14696_v12 }
 0x8a2   :  { %v14683_v14 = vmax.f32 %v14655_v19, %v14657_v5  ;;  %v14659_v59 = vadd.f32 %v22854_v31, %v14495_v54  ;;  %v14661_v0 = vadd.f32 %v22857_v7, %v14568_v61  ;;  %v14497_v46 = vpop.f32.mrb[167].mxu0  ;;  %v14570_v16 = vpop.f32.mrb[167].mxu1 }
 0x8a3   :  { %v14684_v30 = vmax.f32 %v14656_v41, %v14658_v43  ;;  %v14660_v25 = vadd.f32 %v22860_v35, %v14497_v46  ;;  %v14662_v18 = vadd.f32 %v22863_v51, %v14570_v16  ;;  %15040 = vmatprep.mubr.bf16.mxu1 %v14704_v57 }
 0x8a4   :  { %v14685_v36 = vmax.f32 %v14659_v59, %v14661_v0  ;;  %15041 = vmatmul.mubr.bf16.vlgmr.msra.gmra.mrb[176].mxu1 %v14703_v22  ;;  %v20162_v22 = vld [vmem:[#allocation14 + $0x1a0] sm:$0xff]  }
 0x8a5   :  { %v14686_v63 = vmax.f32 %v14660_v25, %v14662_v18  ;;  %17294 = vmatpush3.bf16.msra.mxu1 %v20146_v20  ;;  %v20161_v20 = vld [vmem:[#allocation14 + $0x110] sm:$0xff]  }
 0x8a6   :  { %v14697_v39 = vmax.f32 %v14683_v14, %v14685_v36  ;;  %17295 = vmatprep.subr.bf16.mxu1 %v20148_v2  ;;  %v20163_v2 = vld [vmem:[#allocation14 + $0x158] sm:$0xff]  }
 0x8a7   :  { %v14501_v4 = vpop.f32.mrb[168].mxu0  ;;  %v14574_v3 = vpop.f32.mrb[168].mxu1  ;;  %v14698_v28 = vmax.f32 %v14684_v30, %v14686_v63  ;;  %v20164_v30 = vld [vmem:[#allocation14 + $0x1e8] sm:$0xff]  }
 0x8a8   :  { %v14663_v21 = vadd.f32 %v22854_v31, %v14501_v4  ;;  %v14665_v27 = vadd.f32 %v22857_v7, %v14574_v3  ;;  %v14503_v34 = vpop.f32.mrb[169].mxu0  ;;  %v14576_v13 = vpop.f32.mrb[169].mxu1  ;;  %v14705_v24 = vpack.c.bf16 %v14697_v39, %v14697_v39  ;;  %v20165_v39 = vld [vmem:[#allocation14 + $0x118] sm:$0xff]   ;;  %v20168_v4 = vld [vmem:[#allocation14 + $0x1f0] sm:$0xff]  }
 0x8a9   :  { %v14664_v9 = vadd.f32 %v22860_v35, %v14503_v34  ;;  %v14666_v29 = vadd.f32 %v22863_v51, %v14576_v13  ;;  %17296 = vmatpush3.bf16.msra.mxu1 %v20150_v52  ;;  %v14505_v56 = vpop.f32.mrb[170].mxu0  ;;  %v14578_v33 = vpop.f32.mrb[170].mxu1  ;;  %v14706_v58 = vpack.c.bf16 %v14698_v28, %v14698_v28  ;;  %v20173_v34 = vld [vmem:[#allocation14 + $0x128] sm:$0xff]   ;;  %v20174_v13 = vld [vmem:[#allocation14 + $0x1b8] sm:$0xff]  }
 0x8aa   :  { %v14687_v6 = vmax.f32 %v14663_v21, %v14665_v27  ;;  %v14667_v53 = vadd.f32 %v22854_v31, %v14505_v56  ;;  %v14669_v62 = vadd.f32 %v22857_v7, %v14578_v33  ;;  %v14507_v11 = vpop.f32.mrb[171].mxu0  ;;  %v14580_v8 = vpop.f32.mrb[171].mxu1  ;;  %17297 = vmatprep.subr.bf16.mxu1 %v20152_v37  ;;  %v20169_v21 = vld [vmem:[#allocation14 + $0x120] sm:$0xff]   ;;  %v20172_v27 = vld [vmem:[#allocation14 + $0x1f8] sm:$0xff]  }
 0x8ab   :  { %v14688_v32 = vmax.f32 %v14664_v9, %v14666_v29  ;;  %v14668_v55 = vadd.f32 %v22860_v35, %v14507_v11  ;;  %v14670_v60 = vadd.f32 %v22863_v51, %v14580_v8  ;;  %14904 = vmatprep.mubr.bf16.mxu0 %v14706_v58  ;;  %v20175_v9 = vld [vmem:[#allocation14 + $0x170] sm:$0xff]   ;;  %v20177_v33 = vld [vmem:[#allocation14 + $0x178] sm:$0xff]   ;;  %v20183_v11 = vld [vmem:[#allocation17 + $0x20] sm:$0xff]  }
 0x8ac   :  { %v14689_v47 = vmax.f32 %v14667_v53, %v14669_v62  ;;  %14905 = vmatmul.mubr.bf16.vlgmr.msra.gmra.mrb[176].mxu0 %v14705_v24  ;;  %v20176_v29 = vld [vmem:[#allocation14 + $0x130] sm:$0xff]   ;;  %v20178_v58 = vld [vmem:[#allocation14 + $0x138] sm:$0xff]   ;;  %v20500_v24 = vmov 0.0  }
 0x8ad   :  { %v14690_v42 = vmax.f32 %v14668_v55, %v14670_v60  ;;  %17272 = vmatpush3.bf16.msra.mxu0 %v20153_v10  ;;  %17298 = vmatpush3.bf16.msra.mxu1 %v20154_v49  ;;  %v20179_v49 = vld [vmem:[#allocation17] sm:$0xff]   ;;  %v20181_v53 = vld [vmem:[#allocation17 + $0x10] sm:$0xff]   ;;  %v20182_v62 = vld [vmem:[#allocation17 + $0x18] sm:$0xff]  }
 0x8ae   :  { %v22889_v48 = vmax.f32 %v14687_v6, %v14689_v47  ;;  %17273 = vmatprep.subr.bf16.mxu0 %v20155_v15  ;;  %17299 = vmatprep.subr.bf16.mxu1 %v20156_v44  ;;  %v20180_v6 = vld [vmem:[#allocation17 + $0x8] sm:$0xff]   ;;  %v20185_v15 = vld [vmem:[#allocation17 + $0x30] sm:$0xff]   ;;  %v20186_v44 = vld [vmem:[#allocation17 + $0x38] sm:$0xff]  }
 0x8af   :  { %v14511_v26 = vpop.f32.mrb[172].mxu0  ;;  %v14584_v38 = vpop.f32.mrb[172].mxu1  ;;  %v14700_v12 = vmax.f32 %v14688_v32, %v14690_v42  ;;  %v20184_v8 = vld [vmem:[#allocation17 + $0x28] sm:$0xff]  }
 0x8b0   :  { %v14671_v19 = vadd.f32 %v22854_v31, %v14511_v26  ;;  %v14673_v5 = vadd.f32 %v22857_v7, %v14584_v38  ;;  %v14513_v45 = vpop.f32.mrb[173].mxu0  ;;  %v14586_v23 = vpop.f32.mrb[173].mxu1  ;;  %v14707_v10 = vpack.c.bf16 %v22889_v48, %v22889_v48 }
 0x8b1   :  { %v14672_v41 = vadd.f32 %v22860_v35, %v14513_v45  ;;  %v14674_v43 = vadd.f32 %v22863_v51, %v14586_v23  ;;  %17274 = vmatpush3.bf16.msra.mxu0 %v20157_v50  ;;  %17300 = vmatpush3.bf16.msra.mxu1 %v20158_v1  ;;  %v14515_v54 = vpop.f32.mrb[174].mxu0  ;;  %v14588_v61 = vpop.f32.mrb[174].mxu1  ;;  %v14708_v57 = vpack.c.bf16 %v14700_v12, %v14700_v12 }
 0x8b2   :  { %v14691_v14 = vmax.f32 %v14671_v19, %v14673_v5  ;;  %v14675_v59 = vadd.f32 %v22854_v31, %v14515_v54  ;;  %v14677_v0 = vadd.f32 %v22857_v7, %v14588_v61  ;;  %v14517_v46 = vpop.f32.mrb[175].mxu0  ;;  %v14590_v16 = vpop.f32.mrb[175].mxu1  ;;  %17275 = vmatprep.subr.bf16.mxu0 %v20159_v17  ;;  %17301 = vmatprep.subr.bf16.mxu1 %v20160_v40  ;;  %v20166_v31 = vld [vmem:[#allocation14 + $0x1a8] sm:$0xff]   ;;  %v20167_v7 = vld [vmem:[#allocation14 + $0x160] sm:$0xff]  }
 0x8b3   :  { %v14692_v25 = vmax.f32 %v14672_v41, %v14674_v43  ;;  %v14676_v18 = vadd.f32 %v22860_v35, %v14517_v46  ;;  %v14678_v36 = vadd.f32 %v22863_v51, %v14590_v16  ;;  %15209 = vmatprep.mubr.bf16.mxu0 %v14708_v57  ;;  %v20170_v35 = vld [vmem:[#allocation14 + $0x1b0] sm:$0xff]   ;;  %v20171_v51 = vld [vmem:[#allocation14 + $0x168] sm:$0xff]  }
 0x8b4   :  { %v14693_v63 = vmax.f32 %v14675_v59, %v14677_v0  ;;  %v17104_v0 = vld [vmem:[#allocation18] ss:$0 sm:$0xff] }
 0x8b5   :  { %v14694_v52 = vmax.f32 %v14676_v18, %v14678_v36  ;;  %17276 = vmatpush3.bf16.msra.mxu0 %v20161_v20  ;;  %17302 = vmatpush3.bf16.msra.mxu1 %v20162_v22  ;;  %v17103_v20 = vld [vmem:[#allocation15] ss:$0 sm:$0xff] }
 0x8b6   :  { %v14701_v37 = vmax.f32 %v14691_v14, %v14693_v63  ;;  %17277 = vmatprep.subr.bf16.mxu0 %v20163_v2  ;;  %17303 = vmatprep.subr.bf16.mxu1 %v20164_v30 }
 0x8b7   :  { %v14702_v3 = vmax.f32 %v14692_v25, %v14694_v52 }
 0x8b8   :  { %v14709_v56 = vpack.c.bf16 %v14701_v37, %v14701_v37 }
 0x8b9   :  { %17278 = vmatpush3.bf16.msra.mxu0 %v20165_v39  ;;  %17304 = vmatpush3.bf16.msra.mxu1 %v20166_v31  ;;  %v14710_v28 = vpack.c.bf16 %v14702_v3, %v14702_v3 }
 0x8ba   :  { %17279 = vmatprep.subr.bf16.mxu0 %v20167_v7  ;;  %17305 = vmatprep.subr.bf16.mxu1 %v20168_v4 }
 0x8bb   :  { %15379 = vmatprep.mubr.bf16.mxu1 %v14710_v28 }
 0x8bd   :  { %17280 = vmatpush3.bf16.msra.mxu0 %v20169_v21  ;;  %17306 = vmatpush3.bf16.msra.mxu1 %v20170_v35 }
 0x8be   :  { %17281 = vmatprep.subr.bf16.mxu0 %v20171_v51  ;;  %17307 = vmatprep.subr.bf16.mxu1 %v20172_v27 }
 0x8c1   :  { %17282 = vmatpush3.bf16.msra.mxu0 %v20173_v34  ;;  %17308 = vmatpush3.bf16.msra.mxu1 %v20174_v13 }
 0x8c2   :  { %17283 = vmatprep.subr.bf16.mxu0 %v20175_v9 }
 0x8c4   :  { %15380 = vmatmul.mubr.bf16.vlgmr.msra.gmra.mrb[180].mxu1 %v14709_v56 }
 0x8c5   :  { %17284 = vmatpush3.bf16.msra.mxu0 %v20176_v29 }
 0x8c6   :  { %17285 = vmatprep.subr.bf16.mxu0 %v20177_v33 }
 0x8c9   :  { %17286 = vmatpush3.bf16.msra.mxu0 %v20178_v58 }
 0x8ca   :  { %17324 = vmatprep.subr.bf16.mxu0 %v20500_v24 }
 0x8cc   :  { %15210 = vmatmul.mubr.bf16.vlgmr.msra.gmra.mrb[180].mxu0 %v14707_v10 }
 0x8cd   :  { %17325 = vmatpush3.bf16.msra.mxu0 %v20179_v49  ;;  %17340 = vmatprep.mubr.msk.bf16.mxu0 %vm20501_vm0, %v20500_v24 }
 0x8ce   :  { %17326 = vmatprep.subr.bf16.mxu0 %v20500_v24 }
 0x8d1   :  { %17327 = vmatpush3.bf16.msra.mxu0 %v20180_v6 }
 0x8d2   :  { %17328 = vmatprep.subr.bf16.mxu0 %v20500_v24 }
 0x8d5   :  { %17329 = vmatpush3.bf16.msra.mxu0 %v20181_v53 }
 0x8d6   :  { %17330 = vmatprep.subr.bf16.mxu0 %v20500_v24 }
 0x8d9   :  { %17331 = vmatpush3.bf16.msra.mxu0 %v20182_v62 }
 0x8da   :  { %17332 = vmatprep.subr.bf16.mxu0 %v20500_v24 }
 0x8dd   :  { %17333 = vmatpush3.bf16.msra.mxu0 %v20183_v11 }
 0x8de   :  { %17334 = vmatprep.subr.bf16.mxu0 %v20500_v24 }
 0x8e1   :  { %17335 = vmatpush3.bf16.msra.mxu0 %v20184_v8 }
 0x8e2   :  { %17336 = vmatprep.subr.bf16.mxu0 %v20500_v24 }
 0x8e5   :  { %17337 = vmatpush3.bf16.msra.mxu0 %v20185_v15 }
 0x8e6   :  { %17338 = vmatprep.subr.bf16.mxu0 %v20500_v24 }
 0x8e9   :  { %17339 = vmatpush3.bf16.msra.mxu0 %v20186_v44 }
 0x977   :  { %v17265_v32 = vpop.f32.mrb[176].mxu1 }
 0x978   :  { %v17266_v55 = vpop.f32.mrb[177].mxu1 }
 0x979   :  { %v17267_v60 = vadd.f32 %v17266_v55, %v17265_v32  ;;  %v17268_v47 = vpop.f32.mrb[178].mxu1 }
 0x97a   :  { %v17269_v42 = vpop.f32.mrb[179].mxu1 }
 0x97f   :  { %v17243_v50 = vpop.f32.mrb[176].mxu0 }
 0x980   :  { %v17244_v1 = vpop.f32.mrb[177].mxu0 }
 0x981   :  { %v17245_v48 = vadd.f32 %v17244_v1, %v17243_v50  ;;  %v17246_v17 = vpop.f32.mrb[178].mxu0 }
 0x982   :  { %v17247_v40 = vpop.f32.mrb[179].mxu0 }
 0x983   :  { %v15043_v26 = vadd.f32 %v17267_v60, %v17245_v48 }
 0x997   :  { %v17309_v38 = vpop.f32.mrb[180].mxu1 }
 0x998   :  { %v17310_v12 = vpop.f32.mrb[181].mxu1 }
 0x999   :  { %v17311_v19 = vadd.f32 %v17310_v12, %v17309_v38  ;;  %v17312_v5 = vpop.f32.mrb[182].mxu1 }
 0x99a   :  { %v17313_v45 = vpop.f32.mrb[183].mxu1 }
 0x99f   :  { %v17287_v23 = vpop.f32.mrb[180].mxu0 }
 0x9a0   :  { %v17288_v41 = vpop.f32.mrb[181].mxu0 }
 0x9a1   :  { %v17289_v43 = vadd.f32 %v17288_v41, %v17287_v23  ;;  %v17290_v54 = vpop.f32.mrb[182].mxu0 }
 0x9a2   :  { %v17291_v61 = vpop.f32.mrb[183].mxu0 }
 0x9a3   :  { %v15217_v57 = vadd.f32 %v17289_v43, %v15043_v26 }
 0x9a5   :  { %v15387_v22 = vadd.f32 %v17311_v19, %v15217_v57 }
 0x9a7   :  { %v15395_v14 = vadd.f32 %v17103_v20, %v15387_v22 }
 0x9a9   :  { %v15396_v59 = vpack.c.bf16 %v15395_v14, %v15395_v14 }
 0x9ab   :  { %17341 = vmatmul.mubr.bf16.vlgmr.msra.gmra.mrb[184].mxu0 %v15396_v59 }
 0xa7e   :  { %v15502_v46 = vpop.f32.mrb[184].mxu0 }
 0xa7f   :  { %v15503_v16 = vadd.f32 %v17104_v0, %v15502_v46  ;;  %v17342_v2 = vpop.f32.mrb[185].mxu0 }
 0xa80   :  { %v15505_v30 = vpop.f32.mrb[186].mxu0 }
 0xa81   :  { %15508 = vst [vmem:[%s22915_s11] sm:$0xff] %v15503_v16  ;;  %v17343_v25 = vpop.f32.mrb[187].mxu0 }
 0xa82   :  { %15513 = vsyncpa [#allocation5], 1 }
 0xa83   :  { %15514 = vsyncpa [#allocation7], 1 }
 0xa84   :  { %15515 = vsyncpa [#allocation10], 1 }
 0xa85   :  { %15516 = vsyncpa [#allocation13], 1 }
 0xa86   :  { %15517 = vsyncpa [#allocation16], 1 }
 0xa87   :  { %15518 = vsyncpa [#allocation19], 1 }

</bundles_post_ra>
